<compile_context>
chip_gen: v6e
topology: v6e:2x2x1
jax: 0.10.0
libtpu: 0.0.40
codegen_flags: <defaults>
</compile_context>

<pallas_src>
import jax
import jax.numpy as jnp
from jax import lax
from jax.experimental import pallas as pl
from jax.experimental.pallas import tpu as pltpu


def _round_up(x, m):
    return ((x + m - 1) // m) * m


def _tpl_kernel(lens_ref, x_ref, wts_ref,
                w1x_ref, w1h_ref, b1_ref, w2x_ref, w2h_ref, b2_ref,
                hid_ref, sptm_ref, hn_ref, cn_ref,
                h1_sc, c1_sc, h2_sc, c2_sc, sptm_sc):
    tchunk = pl.program_id(1)
    n_chunks = pl.num_programs(1)
    TC, TB, _ = x_ref.shape
    HP = h1_sc.shape[1]

    lens = lens_ref[...]                                   # (TB, 1) int32

    # ---- init recurrent state on the first time-chunk of each batch tile ----
    @pl.when(tchunk == 0)
    def _init():
        zero = jnp.zeros((TB, HP), jnp.float32)
        h1_sc[...] = zero
        c1_sc[...] = zero
        h2_sc[...] = zero
        c2_sc[...] = zero
        sptm_sc[...] = zero

    # hoisted loads: constant across the unrolled time loop
    w1x = w1x_ref[...]        # (IP, 4*HP) bf16
    w1h = w1h_ref[...]        # (HP, 4*HP) bf16
    w2x = w2x_ref[...]        # (HP, 4*HP) bf16
    w2h = w2h_ref[...]        # (HP, 4*HP) bf16
    b1 = jnp.broadcast_to(b1_ref[...], (TB, 4 * HP))       # hoisted broadcast
    b2 = jnp.broadcast_to(b2_ref[...], (TB, 4 * HP))

    h1 = h1_sc[...]
    c1 = c1_sc[...]
    h2 = h2_sc[...]
    c2 = c2_sc[...]
    sptm = sptm_sc[...]

    def gates(pre):
        i = jax.nn.sigmoid(pre[:, 0 * HP:1 * HP])
        f = jax.nn.sigmoid(pre[:, 1 * HP:2 * HP])
        g = jnp.tanh(pre[:, 2 * HP:3 * HP])
        o = jax.nn.sigmoid(pre[:, 3 * HP:4 * HP])
        return i, f, g, o

    # ---- 2-layer LSTM over this time chunk (static unroll, two dots/layer) ----
    for tc in range(TC):
        t = tchunk * TC + tc
        m = t < lens                                       # (TB, 1) bool
        x_t = x_ref[tc]                                    # (TB, IP) bf16, dense tile load

        pre1 = (jnp.dot(x_t, w1x, preferred_element_type=jnp.float32)
                + jnp.dot(h1.astype(jnp.bfloat16), w1h,
                          preferred_element_type=jnp.float32)
                + b1)
        i1, f1, g1, o1 = gates(pre1)
        c1n = f1 * c1 + i1 * g1
        h1n = o1 * jnp.tanh(c1n)
        h1 = jnp.where(m, h1n, h1)
        c1 = jnp.where(m, c1n, c1)

        pre2 = (jnp.dot(h1.astype(jnp.bfloat16), w2x,
                        preferred_element_type=jnp.float32)
                + jnp.dot(h2.astype(jnp.bfloat16), w2h,
                          preferred_element_type=jnp.float32)
                + b2)
        i2, f2, g2, o2 = gates(pre2)
        c2n = f2 * c2 + i2 * g2
        h2n = o2 * jnp.tanh(c2n)
        h2 = jnp.where(m, h2n, h2)
        c2 = jnp.where(m, c2n, c2)

        h2_out = jnp.where(m, h2, jnp.float32(0.0))        # pad_packed zeros
        hid_ref[tc] = h2_out                               # dense tile store

        # spatial-attention pooling: chunk-sliced weight, no one-hot gather
        w_t = wts_ref[tc]                                  # (TB, 1)
        sptm = sptm + w_t * h2_out

    h1_sc[...] = h1
    c1_sc[...] = c1
    h2_sc[...] = h2
    c2_sc[...] = c2
    sptm_sc[...] = sptm

    @pl.when(tchunk == n_chunks - 1)
    def _finalize():
        sptm_ref[...] = sptm
        hn_ref[0] = h1
        hn_ref[1] = h2
        cn_ref[0] = c1
        cn_ref[1] = c2


def _pad_gate_cols(w, H, HP):
    """(rows, 4H) PyTorch gate order [i,f,g,o] -> (rows, 4*HP), one HP lane-block per gate."""
    out = jnp.zeros((w.shape[0], 4 * HP), jnp.float32)
    for g in range(4):
        out = out.at[:, g * HP:g * HP + H].set(w[:, g * H:(g + 1) * H])
    return out


def travel_pattern_learning(input_tensor, traj, params, *, batch_tile=128, time_chunk=32):
    """input_tensor: (B, T, I) batch-first; traj: {'lens': (B,), 'spatial_feats': (B, T, F)}."""
    B, T, I = input_tensor.shape
    H = params['w_hh_l0'].shape[1]

    HP = _round_up(H, 128)               # lane-dense hidden size
    IP = _round_up(I, 128)               # lane-dense input size

    # Batch tiling: sublane-dense tiles, and keep >=2 tiles when possible so the
    # "parallel" batch axis shards across both v7x TensorCores.
    B8 = _round_up(B, 8)
    TB = min(_round_up(batch_tile, 8), B8)
    if B8 // TB < 2 and B8 >= 16:
        TB = max(8, (B8 // 2) // 8 * 8)
    BP = _round_up(B8, TB)

    TC = max(8, min(_round_up(time_chunk, 8), _round_up(T, 8)))
    TP = _round_up(T, TC)

    lens = traj['lens'].astype(jnp.int32)
    lens_p = jnp.zeros((BP, 1), jnp.int32).at[:B, 0].set(lens)

    # Time-major, lane/sublane-dense, bf16 input for single-pass MXU.
    x_tm = jnp.zeros((TP, BP, IP), jnp.bfloat16).at[:T, :B, :I].set(
        jnp.transpose(input_tensor, (1, 0, 2)).astype(jnp.bfloat16))

    # TODO(synk): original Scorer / Spatial_Attention_Layer sources are not provided;
    # reconstructed as a linear scorer + length-masked softmax attention (computed here,
    # it is tiny B*T work) over the layer-2 LSTM hidden states.
    scores = jnp.einsum('btf,f->bt', traj['spatial_feats'].astype(jnp.float32),
                        params['scorer_w'].astype(jnp.float32)) + params['scorer_b'][0]
    valid = jnp.arange(T)[None, :] < lens[:, None]
    s = jnp.where(valid, scores, jnp.float32(-1e30))
    s = s - jnp.max(s, axis=1, keepdims=True)
    e = jnp.exp(s) * valid.astype(jnp.float32)
    denom = jnp.maximum(jnp.sum(e, axis=1, keepdims=True), jnp.float32(1e-20))
    weights = e / denom                                    # (B, T)

    wts_tm = jnp.zeros((TP, BP, 1), jnp.float32).at[:T, :B, 0].set(weights.T)

    # Split, gate-block-padded, bf16 LSTM weights (two accumulating dots per layer).
    w1x = jnp.zeros((IP, 4 * HP), jnp.float32).at[:I, :].set(
        _pad_gate_cols(params['w_ih_l0'].T.astype(jnp.float32), H, HP)).astype(jnp.bfloat16)
    w1h = jnp.zeros((HP, 4 * HP), jnp.float32).at[:H, :].set(
        _pad_gate_cols(params['w_hh_l0'].T.astype(jnp.float32), H, HP)).astype(jnp.bfloat16)
    w2x = jnp.zeros((HP, 4 * HP), jnp.float32).at[:H, :].set(
        _pad_gate_cols(params['w_ih_l1'].T.astype(jnp.float32), H, HP)).astype(jnp.bfloat16)
    w2h = jnp.zeros((HP, 4 * HP), jnp.float32).at[:H, :].set(
        _pad_gate_cols(params['w_hh_l1'].T.astype(jnp.float32), H, HP)).astype(jnp.bfloat16)
    b1 = _pad_gate_cols((params['b_ih_l0'] + params['b_hh_l0']
                         ).reshape(1, 4 * H).astype(jnp.float32), H, HP)
    b2 = _pad_gate_cols((params['b_ih_l1'] + params['b_hh_l1']
                         ).reshape(1, 4 * H).astype(jnp.float32), H, HP)

    grid = (BP // TB, TP // TC)

    out_shapes = (
        jax.ShapeDtypeStruct((TP, BP, HP), jnp.float32),   # tp_hiddens (time-major, padded)
        jax.ShapeDtypeStruct((BP, HP), jnp.float32),       # sptm_out
        jax.ShapeDtypeStruct((2, BP, HP), jnp.float32),    # h_n
        jax.ShapeDtypeStruct((2, BP, HP), jnp.float32),    # c_n
    )

    hid_tm, sptm_p, hn_p, cn_p = pl.pallas_call(
        _tpl_kernel,
        out_shape=out_shapes,
        grid=grid,
        in_specs=[
            pl.BlockSpec((TB, 1), lambda b, t: (b, 0)),                 # lens
            pl.BlockSpec((TC, TB, IP), lambda b, t: (t, b, 0)),         # x, streamed per chunk
            pl.BlockSpec((TC, TB, 1), lambda b, t: (t, b, 0)),          # attention weights, streamed
            pl.BlockSpec((IP, 4 * HP), lambda b, t: (0, 0)),            # w1x
            pl.BlockSpec((HP, 4 * HP), lambda b, t: (0, 0)),            # w1h
            pl.BlockSpec((1, 4 * HP), lambda b, t: (0, 0)),             # b1
            pl.BlockSpec((HP, 4 * HP), lambda b, t: (0, 0)),            # w2x
            pl.BlockSpec((HP, 4 * HP), lambda b, t: (0, 0)),            # w2h
            pl.BlockSpec((1, 4 * HP), lambda b, t: (0, 0)),             # b2
        ],
        out_specs=(
            pl.BlockSpec((TC, TB, HP), lambda b, t: (t, b, 0)),         # tp_hiddens, streamed
            pl.BlockSpec((TB, HP), lambda b, t: (b, 0)),                # sptm_out (resident over t)
            pl.BlockSpec((2, TB, HP), lambda b, t: (0, b, 0)),          # h_n
            pl.BlockSpec((2, TB, HP), lambda b, t: (0, b, 0)),          # c_n
        ),
        scratch_shapes=[
            pltpu.VMEM((TB, HP), jnp.float32),   # h1
            pltpu.VMEM((TB, HP), jnp.float32),   # c1
            pltpu.VMEM((TB, HP), jnp.float32),   # h2
            pltpu.VMEM((TB, HP), jnp.float32),   # c2
            pltpu.VMEM((TB, HP), jnp.float32),   # sptm accumulator
        ],
        compiler_params=pltpu.CompilerParams(
            dimension_semantics=("parallel", "arbitrary"),
            vmem_limit_bytes=48 * 1024 * 1024,   # fits v7x's 64 MiB physical VMEM
        ),
    )(lens_p, x_tm, wts_tm, w1x, w1h, b1, w2x, w2h, b2)

    tp_hiddens = jnp.transpose(hid_tm[:T, :B, :H], (1, 0, 2))
    sptm_out = sptm_p[:B, :H]
    h_n = hn_p[:, :B, :H]
    c_n = cn_p[:, :B, :H]
    return sptm_out, tp_hiddens, weights, (h_n, c_n)


def init_params(key, input_size, hidden_size, feat_size):
    H = hidden_size
    k = 1.0 / float(jnp.sqrt(jnp.float32(H)))
    keys = jax.random.split(key, 10)
    u = lambda kk, shape: jax.random.uniform(kk, shape, jnp.float32, -k, k)
    return {
        'w_ih_l0': u(keys[0], (4 * H, input_size)),
        'w_hh_l0': u(keys[1], (4 * H, H)),
        'b_ih_l0': u(keys[2], (4 * H,)),
        'b_hh_l0': u(keys[3], (4 * H,)),
        'w_ih_l1': u(keys[4], (4 * H, H)),
        'w_hh_l1': u(keys[5], (4 * H, H)),
        'b_ih_l1': u(keys[6], (4 * H,)),
        'b_hh_l1': u(keys[7], (4 * H,)),
        'scorer_w': u(keys[8], (feat_size,)),
        'scorer_b': u(keys[9], (1,)),
    }


def reference_forward(input_tensor, traj, params):
    """Pure-JAX f32 reference mirroring the module math (for a correctness check)."""
    B, T, I = input_tensor.shape
    H = params['w_hh_l0'].shape[1]
    lens = traj['lens'].astype(jnp.int32)
    x = jnp.transpose(input_tensor, (1, 0, 2)).astype(jnp.float32)

    w_ih1, w_hh1 = params['w_ih_l0'], params['w_hh_l0']
    b1 = params['b_ih_l0'] + params['b_hh_l0']
    w_ih2, w_hh2 = params['w_ih_l1'], params['w_hh_l1']
    b2 = params['b_ih_l1'] + params['b_hh_l1']

    def gates(pre):
        return (jax.nn.sigmoid(pre[:, :H]), jax.nn.sigmoid(pre[:, H:2 * H]),
                jnp.tanh(pre[:, 2 * H:3 * H]), jax.nn.sigmoid(pre[:, 3 * H:]))

    def step(carry, inp):
        h1, c1, h2, c2 = carry
        x_t, t = inp
        m = (t < lens)[:, None]
        i1, f1, g1, o1 = gates(x_t @ w_ih1.T + h1 @ w_hh1.T + b1)
        c1n = f1 * c1 + i1 * g1
        h1n = o1 * jnp.tanh(c1n)
        h1 = jnp.where(m, h1n, h1)
        c1 = jnp.where(m, c1n, c1)
        i2, f2, g2, o2 = gates(h1 @ w_ih2.T + h2 @ w_hh2.T + b2)
        c2n = f2 * c2 + i2 * g2
        h2n = o2 * jnp.tanh(c2n)
        h2 = jnp.where(m, h2n, h2)
        c2 = jnp.where(m, c2n, c2)
        return (h1, c1, h2, c2), jnp.where(m, h2, 0.0)

    zero = jnp.zeros((B, H), jnp.float32)
    (h1, c1, h2, c2), outs = lax.scan(step, (zero, zero, zero, zero),
                                      (x, jnp.arange(T, dtype=jnp.int32)))
    tp_hiddens = jnp.transpose(outs, (1, 0, 2))
    scores = jnp.einsum('btf,f->bt', traj['spatial_feats'].astype(jnp.float32),
                        params['scorer_w']) + params['scorer_b'][0]
    valid = jnp.arange(T)[None, :] < lens[:, None]
    s = jnp.where(valid, scores, -1e30)
    s = s - jnp.max(s, axis=1, keepdims=True)
    e = jnp.exp(s) * valid.astype(jnp.float32)
    w = e / jnp.maximum(jnp.sum(e, axis=1, keepdims=True), 1e-20)
    sptm = jnp.sum(tp_hiddens * w[:, :, None], axis=1)
    return sptm, tp_hiddens, w, (jnp.stack([h1, h2]), jnp.stack([c1, c2]))


if __name__ == "__main__":
    B, T, I, H, F = 2, 8, 8, 32, 4

    key = jax.random.PRNGKey(0)
    k_x, k_f, k_p = jax.random.split(key, 3)
    input_tensor = jax.random.normal(k_x, (B, T, I), jnp.float32)
    traj = {
        'lens': jnp.array([8, 5], dtype=jnp.int32),             # sorted descending (pack_padded)
        'spatial_feats': jax.random.normal(k_f, (B, T, F), jnp.float32),
    }
    params = init_params(k_p, I, H, F)

    sptm_out, tp_hiddens, weights, (h_n, c_n) = jax.block_until_ready(
        travel_pattern_learning(input_tensor, traj, params))

    # sanity check against the pure-JAX f32 reference (bf16 matmul drift -> looser tol)
    r_sptm, r_hid, r_w, (r_hn, r_cn) = reference_forward(input_tensor, traj, params)
    assert jnp.allclose(weights, r_w, atol=1e-5), "weights mismatch"
    assert jnp.allclose(tp_hiddens, r_hid, atol=2e-2), "tp_hiddens mismatch"
    assert jnp.allclose(sptm_out, r_sptm, atol=2e-2), "sptm_out mismatch"
    assert jnp.allclose(h_n, r_hn, atol=2e-2), "h_n mismatch"
    assert jnp.allclose(c_n, r_cn, atol=2e-2), "c_n mismatch"

    print("KERNEL_OK")
</pallas_src>

<mosaic_0001>
module attributes {stable_mosaic.version = 11 : i64} {
  func.func @_tpl_kernel(%arg0: i32, %arg1: i32, %arg2: memref<8x1xi32, #tpu.memory_space<vmem>>, %arg3: memref<8x8x128xbf16, #tpu.memory_space<vmem>>, %arg4: memref<8x8x1xf32, #tpu.memory_space<vmem>>, %arg5: memref<128x512xbf16, #tpu.memory_space<vmem>>, %arg6: memref<128x512xbf16, #tpu.memory_space<vmem>>, %arg7: memref<1x512xf32, #tpu.memory_space<vmem>>, %arg8: memref<128x512xbf16, #tpu.memory_space<vmem>>, %arg9: memref<128x512xbf16, #tpu.memory_space<vmem>>, %arg10: memref<1x512xf32, #tpu.memory_space<vmem>>, %arg11: memref<8x8x128xf32, #tpu.memory_space<vmem>>, %arg12: memref<8x128xf32, #tpu.memory_space<vmem>>, %arg13: memref<2x8x128xf32, #tpu.memory_space<vmem>>, %arg14: memref<2x8x128xf32, #tpu.memory_space<vmem>>, %arg15: memref<8x128xf32, #tpu.memory_space<vmem>>, %arg16: memref<8x128xf32, #tpu.memory_space<vmem>>, %arg17: memref<8x128xf32, #tpu.memory_space<vmem>>, %arg18: memref<8x128xf32, #tpu.memory_space<vmem>>, %arg19: memref<8x128xf32, #tpu.memory_space<vmem>>) attributes {dimension_semantics = [#tpu.dimension_semantics<parallel>, #tpu.dimension_semantics<arbitrary>], iteration_bounds = array<i64: 1, 1>, scalar_prefetch = 0 : i64, scratch_operands = 5 : i64, tpu.core_type = #tpu.core_type<tc>, window_params = [{transform_indices = @transform_0, window_bounds = array<i64: 8, 1>}, {transform_indices = @transform_1, window_bounds = array<i64: 8, 8, 128>}, {transform_indices = @transform_2, window_bounds = array<i64: 8, 8, 1>}, {pipeline_mode = #tpu.pipeline_mode<synchronous>, transform_indices = @transform_3, window_bounds = array<i64: 128, 512>}, {pipeline_mode = #tpu.pipeline_mode<synchronous>, transform_indices = @transform_4, window_bounds = array<i64: 128, 512>}, {pipeline_mode = #tpu.pipeline_mode<synchronous>, transform_indices = @transform_5, window_bounds = array<i64: 1, 512>}, {pipeline_mode = #tpu.pipeline_mode<synchronous>, transform_indices = @transform_6, window_bounds = array<i64: 128, 512>}, {pipeline_mode = #tpu.pipeline_mode<synchronous>, transform_indices = @transform_7, window_bounds = array<i64: 128, 512>}, {pipeline_mode = #tpu.pipeline_mode<synchronous>, transform_indices = @transform_8, window_bounds = array<i64: 1, 512>}, {transform_indices = @transform_9, window_bounds = array<i64: 8, 8, 128>}, {transform_indices = @transform_10, window_bounds = array<i64: 8, 128>}, {transform_indices = @transform_11, window_bounds = array<i64: 2, 8, 128>}, {transform_indices = @transform_12, window_bounds = array<i64: 2, 8, 128>}]} {
    %c0 = arith.constant 0 : index
    %c0_0 = arith.constant 0 : index
    %0 = vector.load %arg2[%c0, %c0_0] : memref<8x1xi32, #tpu.memory_space<vmem>>, vector<8x1xi32>
    %c0_i32 = arith.constant 0 : i32
    %1 = arith.cmpi eq, %arg1, %c0_i32 : i32
    %2 = arith.extui %1 : i1 to i32
    %c0_i32_1 = arith.constant 0 : i32
    %3 = arith.cmpi ne, %2, %c0_i32_1 : i32
    scf.if %3 {
      %cst_196 = arith.constant 0.000000e+00 : f32
      %755 = vector.broadcast %cst_196 : f32 to vector<8x128xf32>
      %c0_197 = arith.constant 0 : index
      %c0_198 = arith.constant 0 : index
      %756 = vector.load %arg15[%c0_197, %c0_198] : memref<8x128xf32, #tpu.memory_space<vmem>>, vector<8x128xf32>
      tpu.vector_store %arg15[%c0_197, %c0_198], %755 {strides = array<i32>} : memref<8x128xf32, #tpu.memory_space<vmem>>, vector<8x128xf32>,
      %c0_199 = arith.constant 0 : index
      %c0_200 = arith.constant 0 : index
      %757 = vector.load %arg16[%c0_199, %c0_200] : memref<8x128xf32, #tpu.memory_space<vmem>>, vector<8x128xf32>
      tpu.vector_store %arg16[%c0_199, %c0_200], %755 {strides = array<i32>} : memref<8x128xf32, #tpu.memory_space<vmem>>, vector<8x128xf32>,
      %c0_201 = arith.constant 0 : index
      %c0_202 = arith.constant 0 : index
      %758 = vector.load %arg17[%c0_201, %c0_202] : memref<8x128xf32, #tpu.memory_space<vmem>>, vector<8x128xf32>
      tpu.vector_store %arg17[%c0_201, %c0_202], %755 {strides = array<i32>} : memref<8x128xf32, #tpu.memory_space<vmem>>, vector<8x128xf32>,
      %c0_203 = arith.constant 0 : index
      %c0_204 = arith.constant 0 : index
      %759 = vector.load %arg18[%c0_203, %c0_204] : memref<8x128xf32, #tpu.memory_space<vmem>>, vector<8x128xf32>
      tpu.vector_store %arg18[%c0_203, %c0_204], %755 {strides = array<i32>} : memref<8x128xf32, #tpu.memory_space<vmem>>, vector<8x128xf32>,
      %c0_205 = arith.constant 0 : index
      %c0_206 = arith.constant 0 : index
      %760 = vector.load %arg19[%c0_205, %c0_206] : memref<8x128xf32, #tpu.memory_space<vmem>>, vector<8x128xf32>
      tpu.vector_store %arg19[%c0_205, %c0_206], %755 {strides = array<i32>} : memref<8x128xf32, #tpu.memory_space<vmem>>, vector<8x128xf32>,
    } else {
    }
    %c0_2 = arith.constant 0 : index
    %c0_3 = arith.constant 0 : index
    %4 = vector.load %arg5[%c0_2, %c0_3] : memref<128x512xbf16, #tpu.memory_space<vmem>>, vector<128x512xbf16>
    %c0_4 = arith.constant 0 : index
    %c0_5 = arith.constant 0 : index
    %5 = vector.load %arg6[%c0_4, %c0_5] : memref<128x512xbf16, #tpu.memory_space<vmem>>, vector<128x512xbf16>
    %c0_6 = arith.constant 0 : index
    %c0_7 = arith.constant 0 : index
    %6 = vector.load %arg8[%c0_6, %c0_7] : memref<128x512xbf16, #tpu.memory_space<vmem>>, vector<128x512xbf16>
    %c0_8 = arith.constant 0 : index
    %c0_9 = arith.constant 0 : index
    %7 = vector.load %arg9[%c0_8, %c0_9] : memref<128x512xbf16, #tpu.memory_space<vmem>>, vector<128x512xbf16>
    %c0_10 = arith.constant 0 : index
    %c0_11 = arith.constant 0 : index
    %8 = vector.load %arg7[%c0_10, %c0_11] : memref<1x512xf32, #tpu.memory_space<vmem>>, vector<1x512xf32>
    %9 = vector.shape_cast %8 : vector<1x512xf32> to vector<1x512xf32>
    %10 = vector.broadcast %9 : vector<1x512xf32> to vector<8x512xf32>
    %c0_12 = arith.constant 0 : index
    %c0_13 = arith.constant 0 : index
    %11 = vector.load %arg10[%c0_12, %c0_13] : memref<1x512xf32, #tpu.memory_space<vmem>>, vector<1x512xf32>
    %12 = vector.shape_cast %11 : vector<1x512xf32> to vector<1x512xf32>
    %13 = vector.broadcast %12 : vector<1x512xf32> to vector<8x512xf32>
    %c0_14 = arith.constant 0 : index
    %c0_15 = arith.constant 0 : index
    %14 = vector.load %arg15[%c0_14, %c0_15] : memref<8x128xf32, #tpu.memory_space<vmem>>, vector<8x128xf32>
    %c0_16 = arith.constant 0 : index
    %c0_17 = arith.constant 0 : index
    %15 = vector.load %arg16[%c0_16, %c0_17] : memref<8x128xf32, #tpu.memory_space<vmem>>, vector<8x128xf32>
    %c0_18 = arith.constant 0 : index
    %c0_19 = arith.constant 0 : index
    %16 = vector.load %arg17[%c0_18, %c0_19] : memref<8x128xf32, #tpu.memory_space<vmem>>, vector<8x128xf32>
    %c0_20 = arith.constant 0 : index
    %c0_21 = arith.constant 0 : index
    %17 = vector.load %arg18[%c0_20, %c0_21] : memref<8x128xf32, #tpu.memory_space<vmem>>, vector<8x128xf32>
    %c0_22 = arith.constant 0 : index
    %c0_23 = arith.constant 0 : index
    %18 = vector.load %arg19[%c0_22, %c0_23] : memref<8x128xf32, #tpu.memory_space<vmem>>, vector<8x128xf32>
    %c8_i32 = arith.constant 8 : i32
    %19 = arith.muli %arg1, %c8_i32 : i32
    %c0_i32_24 = arith.constant 0 : i32
    %20 = arith.addi %19, %c0_i32_24 : i32
    %21 = vector.broadcast %20 : i32 to vector<8x1xi32>
    %22 = arith.cmpi slt, %21, %0 : vector<8x1xi32>
    %c0_25 = arith.constant 0 : index
    %c0_26 = arith.constant 0 : index
    %c0_27 = arith.constant 0 : index
    %23 = vector.load %arg3[%c0_25, %c0_26, %c0_27] : memref<8x8x128xbf16, #tpu.memory_space<vmem>>, vector<1x8x128xbf16>
    %24 = vector.shape_cast %23 : vector<1x8x128xbf16> to vector<8x128xbf16>
    %cst = arith.constant dense<0.000000e+00> : vector<8x512xf32>
    %25 = tpu.matmul %24, %4, %cst {dimension_numbers = #tpu.dot_dimension_numbers<[1], [0], [0], [1], [0, 0, 1, 1], [], []>} : vector<8x128xbf16>, vector<128x512xbf16>, vector<8x512xf32> -> vector<8x512xf32>
    %26 = arith.truncf %14 : vector<8x128xf32> to vector<8x128xbf16>
    %cst_28 = arith.constant dense<0.000000e+00> : vector<8x512xf32>
    %27 = tpu.matmul %26, %5, %cst_28 {dimension_numbers = #tpu.dot_dimension_numbers<[1], [0], [0], [1], [0, 0, 1, 1], [], []>} : vector<8x128xbf16>, vector<128x512xbf16>, vector<8x512xf32> -> vector<8x512xf32>
    %28 = arith.addf %25, %27 : vector<8x512xf32>
    %29 = arith.addf %28, %10 : vector<8x512xf32>
    %30 = vector.extract_strided_slice %29 {offsets = [0, 0], sizes = [8, 128], strides = [1, 1]} : vector<8x512xf32> to vector<8x128xf32>
    %31 = arith.negf %30 : vector<8x128xf32>
    %32 = math.exp %31 : vector<8x128xf32>
    %cst_29 = arith.constant 1.000000e+00 : f32
    %33 = vector.broadcast %cst_29 : f32 to vector<8x128xf32>
    %34 = arith.addf %33, %32 : vector<8x128xf32>
    %35 = arith.divf %33, %34 : vector<8x128xf32>
    %36 = vector.extract_strided_slice %29 {offsets = [0, 128], sizes = [8, 128], strides = [1, 1]} : vector<8x512xf32> to vector<8x128xf32>
    %37 = arith.negf %36 : vector<8x128xf32>
    %38 = math.exp %37 : vector<8x128xf32>
    %cst_30 = arith.constant 1.000000e+00 : f32
    %39 = vector.broadcast %cst_30 : f32 to vector<8x128xf32>
    %40 = arith.addf %39, %38 : vector<8x128xf32>
    %41 = arith.divf %39, %40 : vector<8x128xf32>
    %42 = vector.extract_strided_slice %29 {offsets = [0, 256], sizes = [8, 128], strides = [1, 1]} : vector<8x512xf32> to vector<8x128xf32>
    %43 = math.tanh %42 : vector<8x128xf32>
    %44 = vector.extract_strided_slice %29 {offsets = [0, 384], sizes = [8, 128], strides = [1, 1]} : vector<8x512xf32> to vector<8x128xf32>
    %45 = arith.negf %44 : vector<8x128xf32>
    %46 = math.exp %45 : vector<8x128xf32>
    %cst_31 = arith.constant 1.000000e+00 : f32
    %47 = vector.broadcast %cst_31 : f32 to vector<8x128xf32>
    %48 = arith.addf %47, %46 : vector<8x128xf32>
    %49 = arith.divf %47, %48 : vector<8x128xf32>
    %50 = arith.mulf %41, %15 : vector<8x128xf32>
    %51 = arith.mulf %35, %43 : vector<8x128xf32>
    %52 = arith.addf %50, %51 : vector<8x128xf32>
    %53 = math.tanh %52 : vector<8x128xf32>
    %54 = arith.mulf %49, %53 : vector<8x128xf32>
    %55 = vector.shape_cast %22 : vector<8x1xi1> to vector<8x1xi1>
    %56 = vector.broadcast %55 : vector<8x1xi1> to vector<8x128xi1>
    %57 = arith.select %56, %54, %14 : vector<8x128xi1>, vector<8x128xf32>
    %58 = vector.shape_cast %22 : vector<8x1xi1> to vector<8x1xi1>
    %59 = vector.broadcast %58 : vector<8x1xi1> to vector<8x128xi1>
    %60 = arith.select %59, %52, %15 : vector<8x128xi1>, vector<8x128xf32>
    %61 = arith.truncf %57 : vector<8x128xf32> to vector<8x128xbf16>
    %cst_32 = arith.constant dense<0.000000e+00> : vector<8x512xf32>
    %62 = tpu.matmul %61, %6, %cst_32 {dimension_numbers = #tpu.dot_dimension_numbers<[1], [0], [0], [1], [0, 0, 1, 1], [], []>} : vector<8x128xbf16>, vector<128x512xbf16>, vector<8x512xf32> -> vector<8x512xf32>
    %63 = arith.truncf %16 : vector<8x128xf32> to vector<8x128xbf16>
    %cst_33 = arith.constant dense<0.000000e+00> : vector<8x512xf32>
    %64 = tpu.matmul %63, %7, %cst_33 {dimension_numbers = #tpu.dot_dimension_numbers<[1], [0], [0], [1], [0, 0, 1, 1], [], []>} : vector<8x128xbf16>, vector<128x512xbf16>, vector<8x512xf32> -> vector<8x512xf32>
    %65 = arith.addf %62, %64 : vector<8x512xf32>
    %66 = arith.addf %65, %13 : vector<8x512xf32>
    %67 = vector.extract_strided_slice %66 {offsets = [0, 0], sizes = [8, 128], strides = [1, 1]} : vector<8x512xf32> to vector<8x128xf32>
    %68 = arith.negf %67 : vector<8x128xf32>
    %69 = math.exp %68 : vector<8x128xf32>
    %cst_34 = arith.constant 1.000000e+00 : f32
    %70 = vector.broadcast %cst_34 : f32 to vector<8x128xf32>
    %71 = arith.addf %70, %69 : vector<8x128xf32>
    %72 = arith.divf %70, %71 : vector<8x128xf32>
    %73 = vector.extract_strided_slice %66 {offsets = [0, 128], sizes = [8, 128], strides = [1, 1]} : vector<8x512xf32> to vector<8x128xf32>
    %74 = arith.negf %73 : vector<8x128xf32>
    %75 = math.exp %74 : vector<8x128xf32>
    %cst_35 = arith.constant 1.000000e+00 : f32
    %76 = vector.broadcast %cst_35 : f32 to vector<8x128xf32>
    %77 = arith.addf %76, %75 : vector<8x128xf32>
    %78 = arith.divf %76, %77 : vector<8x128xf32>
    %79 = vector.extract_strided_slice %66 {offsets = [0, 256], sizes = [8, 128], strides = [1, 1]} : vector<8x512xf32> to vector<8x128xf32>
    %80 = math.tanh %79 : vector<8x128xf32>
    %81 = vector.extract_strided_slice %66 {offsets = [0, 384], sizes = [8, 128], strides = [1, 1]} : vector<8x512xf32> to vector<8x128xf32>
    %82 = arith.negf %81 : vector<8x128xf32>
    %83 = math.exp %82 : vector<8x128xf32>
    %cst_36 = arith.constant 1.000000e+00 : f32
    %84 = vector.broadcast %cst_36 : f32 to vector<8x128xf32>
    %85 = arith.addf %84, %83 : vector<8x128xf32>
    %86 = arith.divf %84, %85 : vector<8x128xf32>
    %87 = arith.mulf %78, %17 : vector<8x128xf32>
    %88 = arith.mulf %72, %80 : vector<8x128xf32>
    %89 = arith.addf %87, %88 : vector<8x128xf32>
    %90 = math.tanh %89 : vector<8x128xf32>
    %91 = arith.mulf %86, %90 : vector<8x128xf32>
    %92 = vector.shape_cast %22 : vector<8x1xi1> to vector<8x1xi1>
    %93 = vector.broadcast %92 : vector<8x1xi1> to vector<8x128xi1>
    %94 = arith.select %93, %91, %16 : vector<8x128xi1>, vector<8x128xf32>
    %95 = vector.shape_cast %22 : vector<8x1xi1> to vector<8x1xi1>
    %96 = vector.broadcast %95 : vector<8x1xi1> to vector<8x128xi1>
    %97 = arith.select %96, %89, %17 : vector<8x128xi1>, vector<8x128xf32>
    %cst_37 = arith.constant 0.000000e+00 : f32
    %98 = vector.shape_cast %22 : vector<8x1xi1> to vector<8x1xi1>
    %99 = vector.broadcast %98 : vector<8x1xi1> to vector<8x128xi1>
    %100 = vector.broadcast %cst_37 : f32 to vector<8x128xf32>
    %101 = arith.select %99, %94, %100 : vector<8x128xi1>, vector<8x128xf32>
    %c0_38 = arith.constant 0 : index
    %c0_39 = arith.constant 0 : index
    %c0_40 = arith.constant 0 : index
    %102 = vector.load %arg11[%c0_38, %c0_39, %c0_40] : memref<8x8x128xf32, #tpu.memory_space<vmem>>, vector<1x8x128xf32>
    %103 = vector.shape_cast %102 : vector<1x8x128xf32> to vector<8x128xf32>
    %104 = vector.shape_cast %101 : vector<8x128xf32> to vector<1x8x128xf32>
    tpu.vector_store %arg11[%c0_38, %c0_39, %c0_40], %104 {strides = array<i32>} : memref<8x8x128xf32, #tpu.memory_space<vmem>>, vector<1x8x128xf32>,
    %c0_41 = arith.constant 0 : index
    %c0_42 = arith.constant 0 : index
    %c0_43 = arith.constant 0 : index
    %105 = vector.load %arg4[%c0_41, %c0_42, %c0_43] : memref<8x8x1xf32, #tpu.memory_space<vmem>>, vector<1x8x1xf32>
    %106 = vector.shape_cast %105 : vector<1x8x1xf32> to vector<8x1xf32>
    %107 = vector.broadcast %106 : vector<8x1xf32> to vector<8x128xf32>
    %108 = arith.mulf %107, %101 : vector<8x128xf32>
    %109 = arith.addf %18, %108 : vector<8x128xf32>
    %c8_i32_44 = arith.constant 8 : i32
    %110 = arith.muli %arg1, %c8_i32_44 : i32
    %c1_i32 = arith.constant 1 : i32
    %111 = arith.addi %110, %c1_i32 : i32
    %112 = vector.broadcast %111 : i32 to vector<8x1xi32>
    %113 = arith.cmpi slt, %112, %0 : vector<8x1xi32>
    %c1 = arith.constant 1 : index
    %c0_45 = arith.constant 0 : index
    %c0_46 = arith.constant 0 : index
    %114 = vector.load %arg3[%c1, %c0_45, %c0_46] : memref<8x8x128xbf16, #tpu.memory_space<vmem>>, vector<1x8x128xbf16>
    %115 = vector.shape_cast %114 : vector<1x8x128xbf16> to vector<8x128xbf16>
    %cst_47 = arith.constant dense<0.000000e+00> : vector<8x512xf32>
    %116 = tpu.matmul %115, %4, %cst_47 {dimension_numbers = #tpu.dot_dimension_numbers<[1], [0], [0], [1], [0, 0, 1, 1], [], []>} : vector<8x128xbf16>, vector<128x512xbf16>, vector<8x512xf32> -> vector<8x512xf32>
    %117 = arith.truncf %57 : vector<8x128xf32> to vector<8x128xbf16>
    %cst_48 = arith.constant dense<0.000000e+00> : vector<8x512xf32>
    %118 = tpu.matmul %117, %5, %cst_48 {dimension_numbers = #tpu.dot_dimension_numbers<[1], [0], [0], [1], [0, 0, 1, 1], [], []>} : vector<8x128xbf16>, vector<128x512xbf16>, vector<8x512xf32> -> vector<8x512xf32>
    %119 = arith.addf %116, %118 : vector<8x512xf32>
    %120 = arith.addf %119, %10 : vector<8x512xf32>
    %121 = vector.extract_strided_slice %120 {offsets = [0, 0], sizes = [8, 128], strides = [1, 1]} : vector<8x512xf32> to vector<8x128xf32>
    %122 = arith.negf %121 : vector<8x128xf32>
    %123 = math.exp %122 : vector<8x128xf32>
    %cst_49 = arith.constant 1.000000e+00 : f32
    %124 = vector.broadcast %cst_49 : f32 to vector<8x128xf32>
    %125 = arith.addf %124, %123 : vector<8x128xf32>
    %126 = arith.divf %124, %125 : vector<8x128xf32>
    %127 = vector.extract_strided_slice %120 {offsets = [0, 128], sizes = [8, 128], strides = [1, 1]} : vector<8x512xf32> to vector<8x128xf32>
    %128 = arith.negf %127 : vector<8x128xf32>
    %129 = math.exp %128 : vector<8x128xf32>
    %cst_50 = arith.constant 1.000000e+00 : f32
    %130 = vector.broadcast %cst_50 : f32 to vector<8x128xf32>
    %131 = arith.addf %130, %129 : vector<8x128xf32>
    %132 = arith.divf %130, %131 : vector<8x128xf32>
    %133 = vector.extract_strided_slice %120 {offsets = [0, 256], sizes = [8, 128], strides = [1, 1]} : vector<8x512xf32> to vector<8x128xf32>
    %134 = math.tanh %133 : vector<8x128xf32>
    %135 = vector.extract_strided_slice %120 {offsets = [0, 384], sizes = [8, 128], strides = [1, 1]} : vector<8x512xf32> to vector<8x128xf32>
    %136 = arith.negf %135 : vector<8x128xf32>
    %137 = math.exp %136 : vector<8x128xf32>
    %cst_51 = arith.constant 1.000000e+00 : f32
    %138 = vector.broadcast %cst_51 : f32 to vector<8x128xf32>
    %139 = arith.addf %138, %137 : vector<8x128xf32>
    %140 = arith.divf %138, %139 : vector<8x128xf32>
    %141 = arith.mulf %132, %60 : vector<8x128xf32>
    %142 = arith.mulf %126, %134 : vector<8x128xf32>
    %143 = arith.addf %141, %142 : vector<8x128xf32>
    %144 = math.tanh %143 : vector<8x128xf32>
    %145 = arith.mulf %140, %144 : vector<8x128xf32>
    %146 = vector.shape_cast %113 : vector<8x1xi1> to vector<8x1xi1>
    %147 = vector.broadcast %146 : vector<8x1xi1> to vector<8x128xi1>
    %148 = arith.select %147, %145, %57 : vector<8x128xi1>, vector<8x128xf32>
    %149 = vector.shape_cast %113 : vector<8x1xi1> to vector<8x1xi1>
    %150 = vector.broadcast %149 : vector<8x1xi1> to vector<8x128xi1>
    %151 = arith.select %150, %143, %60 : vector<8x128xi1>, vector<8x128xf32>
    %152 = arith.truncf %148 : vector<8x128xf32> to vector<8x128xbf16>
    %cst_52 = arith.constant dense<0.000000e+00> : vector<8x512xf32>
    %153 = tpu.matmul %152, %6, %cst_52 {dimension_numbers = #tpu.dot_dimension_numbers<[1], [0], [0], [1], [0, 0, 1, 1], [], []>} : vector<8x128xbf16>, vector<128x512xbf16>, vector<8x512xf32> -> vector<8x512xf32>
    %154 = arith.truncf %94 : vector<8x128xf32> to vector<8x128xbf16>
    %cst_53 = arith.constant dense<0.000000e+00> : vector<8x512xf32>
    %155 = tpu.matmul %154, %7, %cst_53 {dimension_numbers = #tpu.dot_dimension_numbers<[1], [0], [0], [1], [0, 0, 1, 1], [], []>} : vector<8x128xbf16>, vector<128x512xbf16>, vector<8x512xf32> -> vector<8x512xf32>
    %156 = arith.addf %153, %155 : vector<8x512xf32>
    %157 = arith.addf %156, %13 : vector<8x512xf32>
    %158 = vector.extract_strided_slice %157 {offsets = [0, 0], sizes = [8, 128], strides = [1, 1]} : vector<8x512xf32> to vector<8x128xf32>
    %159 = arith.negf %158 : vector<8x128xf32>
    %160 = math.exp %159 : vector<8x128xf32>
    %cst_54 = arith.constant 1.000000e+00 : f32
    %161 = vector.broadcast %cst_54 : f32 to vector<8x128xf32>
    %162 = arith.addf %161, %160 : vector<8x128xf32>
    %163 = arith.divf %161, %162 : vector<8x128xf32>
    %164 = vector.extract_strided_slice %157 {offsets = [0, 128], sizes = [8, 128], strides = [1, 1]} : vector<8x512xf32> to vector<8x128xf32>
    %165 = arith.negf %164 : vector<8x128xf32>
    %166 = math.exp %165 : vector<8x128xf32>
    %cst_55 = arith.constant 1.000000e+00 : f32
    %167 = vector.broadcast %cst_55 : f32 to vector<8x128xf32>
    %168 = arith.addf %167, %166 : vector<8x128xf32>
    %169 = arith.divf %167, %168 : vector<8x128xf32>
    %170 = vector.extract_strided_slice %157 {offsets = [0, 256], sizes = [8, 128], strides = [1, 1]} : vector<8x512xf32> to vector<8x128xf32>
    %171 = math.tanh %170 : vector<8x128xf32>
    %172 = vector.extract_strided_slice %157 {offsets = [0, 384], sizes = [8, 128], strides = [1, 1]} : vector<8x512xf32> to vector<8x128xf32>
    %173 = arith.negf %172 : vector<8x128xf32>
    %174 = math.exp %173 : vector<8x128xf32>
    %cst_56 = arith.constant 1.000000e+00 : f32
    %175 = vector.broadcast %cst_56 : f32 to vector<8x128xf32>
    %176 = arith.addf %175, %174 : vector<8x128xf32>
    %177 = arith.divf %175, %176 : vector<8x128xf32>
    %178 = arith.mulf %169, %97 : vector<8x128xf32>
    %179 = arith.mulf %163, %171 : vector<8x128xf32>
    %180 = arith.addf %178, %179 : vector<8x128xf32>
    %181 = math.tanh %180 : vector<8x128xf32>
    %182 = arith.mulf %177, %181 : vector<8x128xf32>
    %183 = vector.shape_cast %113 : vector<8x1xi1> to vector<8x1xi1>
    %184 = vector.broadcast %183 : vector<8x1xi1> to vector<8x128xi1>
    %185 = arith.select %184, %182, %94 : vector<8x128xi1>, vector<8x128xf32>
    %186 = vector.shape_cast %113 : vector<8x1xi1> to vector<8x1xi1>
    %187 = vector.broadcast %186 : vector<8x1xi1> to vector<8x128xi1>
    %188 = arith.select %187, %180, %97 : vector<8x128xi1>, vector<8x128xf32>
    %cst_57 = arith.constant 0.000000e+00 : f32
    %189 = vector.shape_cast %113 : vector<8x1xi1> to vector<8x1xi1>
    %190 = vector.broadcast %189 : vector<8x1xi1> to vector<8x128xi1>
    %191 = vector.broadcast %cst_57 : f32 to vector<8x128xf32>
    %192 = arith.select %190, %185, %191 : vector<8x128xi1>, vector<8x128xf32>
    %c1_58 = arith.constant 1 : index
    %c0_59 = arith.constant 0 : index
    %c0_60 = arith.constant 0 : index
    %193 = vector.load %arg11[%c1_58, %c0_59, %c0_60] : memref<8x8x128xf32, #tpu.memory_space<vmem>>, vector<1x8x128xf32>
    %194 = vector.shape_cast %193 : vector<1x8x128xf32> to vector<8x128xf32>
    %195 = vector.shape_cast %192 : vector<8x128xf32> to vector<1x8x128xf32>
    tpu.vector_store %arg11[%c1_58, %c0_59, %c0_60], %195 {strides = array<i32>} : memref<8x8x128xf32, #tpu.memory_space<vmem>>, vector<1x8x128xf32>,
    %c1_61 = arith.constant 1 : index
    %c0_62 = arith.constant 0 : index
    %c0_63 = arith.constant 0 : index
    %196 = vector.load %arg4[%c1_61, %c0_62, %c0_63] : memref<8x8x1xf32, #tpu.memory_space<vmem>>, vector<1x8x1xf32>
    %197 = vector.shape_cast %196 : vector<1x8x1xf32> to vector<8x1xf32>
    %198 = vector.broadcast %197 : vector<8x1xf32> to vector<8x128xf32>
    %199 = arith.mulf %198, %192 : vector<8x128xf32>
    %200 = arith.addf %109, %199 : vector<8x128xf32>
    %c8_i32_64 = arith.constant 8 : i32
    %201 = arith.muli %arg1, %c8_i32_64 : i32
    %c2_i32 = arith.constant 2 : i32
    %202 = arith.addi %201, %c2_i32 : i32
    %203 = vector.broadcast %202 : i32 to vector<8x1xi32>
    %204 = arith.cmpi slt, %203, %0 : vector<8x1xi32>
    %c2 = arith.constant 2 : index
    %c0_65 = arith.constant 0 : index
    %c0_66 = arith.constant 0 : index
    %205 = vector.load %arg3[%c2, %c0_65, %c0_66] : memref<8x8x128xbf16, #tpu.memory_space<vmem>>, vector<1x8x128xbf16>
    %206 = vector.shape_cast %205 : vector<1x8x128xbf16> to vector<8x128xbf16>
    %cst_67 = arith.constant dense<0.000000e+00> : vector<8x512xf32>
    %207 = tpu.matmul %206, %4, %cst_67 {dimension_numbers = #tpu.dot_dimension_numbers<[1], [0], [0], [1], [0, 0, 1, 1], [], []>} : vector<8x128xbf16>, vector<128x512xbf16>, vector<8x512xf32> -> vector<8x512xf32>
    %208 = arith.truncf %148 : vector<8x128xf32> to vector<8x128xbf16>
    %cst_68 = arith.constant dense<0.000000e+00> : vector<8x512xf32>
    %209 = tpu.matmul %208, %5, %cst_68 {dimension_numbers = #tpu.dot_dimension_numbers<[1], [0], [0], [1], [0, 0, 1, 1], [], []>} : vector<8x128xbf16>, vector<128x512xbf16>, vector<8x512xf32> -> vector<8x512xf32>
    %210 = arith.addf %207, %209 : vector<8x512xf32>
    %211 = arith.addf %210, %10 : vector<8x512xf32>
    %212 = vector.extract_strided_slice %211 {offsets = [0, 0], sizes = [8, 128], strides = [1, 1]} : vector<8x512xf32> to vector<8x128xf32>
    %213 = arith.negf %212 : vector<8x128xf32>
    %214 = math.exp %213 : vector<8x128xf32>
    %cst_69 = arith.constant 1.000000e+00 : f32
    %215 = vector.broadcast %cst_69 : f32 to vector<8x128xf32>
    %216 = arith.addf %215, %214 : vector<8x128xf32>
    %217 = arith.divf %215, %216 : vector<8x128xf32>
    %218 = vector.extract_strided_slice %211 {offsets = [0, 128], sizes = [8, 128], strides = [1, 1]} : vector<8x512xf32> to vector<8x128xf32>
    %219 = arith.negf %218 : vector<8x128xf32>
    %220 = math.exp %219 : vector<8x128xf32>
    %cst_70 = arith.constant 1.000000e+00 : f32
    %221 = vector.broadcast %cst_70 : f32 to vector<8x128xf32>
    %222 = arith.addf %221, %220 : vector<8x128xf32>
    %223 = arith.divf %221, %222 : vector<8x128xf32>
    %224 = vector.extract_strided_slice %211 {offsets = [0, 256], sizes = [8, 128], strides = [1, 1]} : vector<8x512xf32> to vector<8x128xf32>
    %225 = math.tanh %224 : vector<8x128xf32>
    %226 = vector.extract_strided_slice %211 {offsets = [0, 384], sizes = [8, 128], strides = [1, 1]} : vector<8x512xf32> to vector<8x128xf32>
    %227 = arith.negf %226 : vector<8x128xf32>
    %228 = math.exp %227 : vector<8x128xf32>
    %cst_71 = arith.constant 1.000000e+00 : f32
    %229 = vector.broadcast %cst_71 : f32 to vector<8x128xf32>
    %230 = arith.addf %229, %228 : vector<8x128xf32>
    %231 = arith.divf %229, %230 : vector<8x128xf32>
    %232 = arith.mulf %223, %151 : vector<8x128xf32>
    %233 = arith.mulf %217, %225 : vector<8x128xf32>
    %234 = arith.addf %232, %233 : vector<8x128xf32>
    %235 = math.tanh %234 : vector<8x128xf32>
    %236 = arith.mulf %231, %235 : vector<8x128xf32>
    %237 = vector.shape_cast %204 : vector<8x1xi1> to vector<8x1xi1>
    %238 = vector.broadcast %237 : vector<8x1xi1> to vector<8x128xi1>
    %239 = arith.select %238, %236, %148 : vector<8x128xi1>, vector<8x128xf32>
    %240 = vector.shape_cast %204 : vector<8x1xi1> to vector<8x1xi1>
    %241 = vector.broadcast %240 : vector<8x1xi1> to vector<8x128xi1>
    %242 = arith.select %241, %234, %151 : vector<8x128xi1>, vector<8x128xf32>
    %243 = arith.truncf %239 : vector<8x128xf32> to vector<8x128xbf16>
    %cst_72 = arith.constant dense<0.000000e+00> : vector<8x512xf32>
    %244 = tpu.matmul %243, %6, %cst_72 {dimension_numbers = #tpu.dot_dimension_numbers<[1], [0], [0], [1], [0, 0, 1, 1], [], []>} : vector<8x128xbf16>, vector<128x512xbf16>, vector<8x512xf32> -> vector<8x512xf32>
    %245 = arith.truncf %185 : vector<8x128xf32> to vector<8x128xbf16>
    %cst_73 = arith.constant dense<0.000000e+00> : vector<8x512xf32>
    %246 = tpu.matmul %245, %7, %cst_73 {dimension_numbers = #tpu.dot_dimension_numbers<[1], [0], [0], [1], [0, 0, 1, 1], [], []>} : vector<8x128xbf16>, vector<128x512xbf16>, vector<8x512xf32> -> vector<8x512xf32>
    %247 = arith.addf %244, %246 : vector<8x512xf32>
    %248 = arith.addf %247, %13 : vector<8x512xf32>
    %249 = vector.extract_strided_slice %248 {offsets = [0, 0], sizes = [8, 128], strides = [1, 1]} : vector<8x512xf32> to vector<8x128xf32>
    %250 = arith.negf %249 : vector<8x128xf32>
    %251 = math.exp %250 : vector<8x128xf32>
    %cst_74 = arith.constant 1.000000e+00 : f32
    %252 = vector.broadcast %cst_74 : f32 to vector<8x128xf32>
    %253 = arith.addf %252, %251 : vector<8x128xf32>
    %254 = arith.divf %252, %253 : vector<8x128xf32>
    %255 = vector.extract_strided_slice %248 {offsets = [0, 128], sizes = [8, 128], strides = [1, 1]} : vector<8x512xf32> to vector<8x128xf32>
    %256 = arith.negf %255 : vector<8x128xf32>
    %257 = math.exp %256 : vector<8x128xf32>
    %cst_75 = arith.constant 1.000000e+00 : f32
    %258 = vector.broadcast %cst_75 : f32 to vector<8x128xf32>
    %259 = arith.addf %258, %257 : vector<8x128xf32>
    %260 = arith.divf %258, %259 : vector<8x128xf32>
    %261 = vector.extract_strided_slice %248 {offsets = [0, 256], sizes = [8, 128], strides = [1, 1]} : vector<8x512xf32> to vector<8x128xf32>
    %262 = math.tanh %261 : vector<8x128xf32>
    %263 = vector.extract_strided_slice %248 {offsets = [0, 384], sizes = [8, 128], strides = [1, 1]} : vector<8x512xf32> to vector<8x128xf32>
    %264 = arith.negf %263 : vector<8x128xf32>
    %265 = math.exp %264 : vector<8x128xf32>
    %cst_76 = arith.constant 1.000000e+00 : f32
    %266 = vector.broadcast %cst_76 : f32 to vector<8x128xf32>
    %267 = arith.addf %266, %265 : vector<8x128xf32>
    %268 = arith.divf %266, %267 : vector<8x128xf32>
    %269 = arith.mulf %260, %188 : vector<8x128xf32>
    %270 = arith.mulf %254, %262 : vector<8x128xf32>
    %271 = arith.addf %269, %270 : vector<8x128xf32>
    %272 = math.tanh %271 : vector<8x128xf32>
    %273 = arith.mulf %268, %272 : vector<8x128xf32>
    %274 = vector.shape_cast %204 : vector<8x1xi1> to vector<8x1xi1>
    %275 = vector.broadcast %274 : vector<8x1xi1> to vector<8x128xi1>
    %276 = arith.select %275, %273, %185 : vector<8x128xi1>, vector<8x128xf32>
    %277 = vector.shape_cast %204 : vector<8x1xi1> to vector<8x1xi1>
    %278 = vector.broadcast %277 : vector<8x1xi1> to vector<8x128xi1>
    %279 = arith.select %278, %271, %188 : vector<8x128xi1>, vector<8x128xf32>
    %cst_77 = arith.constant 0.000000e+00 : f32
    %280 = vector.shape_cast %204 : vector<8x1xi1> to vector<8x1xi1>
    %281 = vector.broadcast %280 : vector<8x1xi1> to vector<8x128xi1>
    %282 = vector.broadcast %cst_77 : f32 to vector<8x128xf32>
    %283 = arith.select %281, %276, %282 : vector<8x128xi1>, vector<8x128xf32>
    %c2_78 = arith.constant 2 : index
    %c0_79 = arith.constant 0 : index
    %c0_80 = arith.constant 0 : index
    %284 = vector.load %arg11[%c2_78, %c0_79, %c0_80] : memref<8x8x128xf32, #tpu.memory_space<vmem>>, vector<1x8x128xf32>
    %285 = vector.shape_cast %284 : vector<1x8x128xf32> to vector<8x128xf32>
    %286 = vector.shape_cast %283 : vector<8x128xf32> to vector<1x8x128xf32>
    tpu.vector_store %arg11[%c2_78, %c0_79, %c0_80], %286 {strides = array<i32>} : memref<8x8x128xf32, #tpu.memory_space<vmem>>, vector<1x8x128xf32>,
    %c2_81 = arith.constant 2 : index
    %c0_82 = arith.constant 0 : index
    %c0_83 = arith.constant 0 : index
    %287 = vector.load %arg4[%c2_81, %c0_82, %c0_83] : memref<8x8x1xf32, #tpu.memory_space<vmem>>, vector<1x8x1xf32>
    %288 = vector.shape_cast %287 : vector<1x8x1xf32> to vector<8x1xf32>
    %289 = vector.broadcast %288 : vector<8x1xf32> to vector<8x128xf32>
    %290 = arith.mulf %289, %283 : vector<8x128xf32>
    %291 = arith.addf %200, %290 : vector<8x128xf32>
    %c8_i32_84 = arith.constant 8 : i32
    %292 = arith.muli %arg1, %c8_i32_84 : i32
    %c3_i32 = arith.constant 3 : i32
    %293 = arith.addi %292, %c3_i32 : i32
    %294 = vector.broadcast %293 : i32 to vector<8x1xi32>
    %295 = arith.cmpi slt, %294, %0 : vector<8x1xi32>
    %c3 = arith.constant 3 : index
    %c0_85 = arith.constant 0 : index
    %c0_86 = arith.constant 0 : index
    %296 = vector.load %arg3[%c3, %c0_85, %c0_86] : memref<8x8x128xbf16, #tpu.memory_space<vmem>>, vector<1x8x128xbf16>
    %297 = vector.shape_cast %296 : vector<1x8x128xbf16> to vector<8x128xbf16>
    %cst_87 = arith.constant dense<0.000000e+00> : vector<8x512xf32>
    %298 = tpu.matmul %297, %4, %cst_87 {dimension_numbers = #tpu.dot_dimension_numbers<[1], [0], [0], [1], [0, 0, 1, 1], [], []>} : vector<8x128xbf16>, vector<128x512xbf16>, vector<8x512xf32> -> vector<8x512xf32>
    %299 = arith.truncf %239 : vector<8x128xf32> to vector<8x128xbf16>
    %cst_88 = arith.constant dense<0.000000e+00> : vector<8x512xf32>
    %300 = tpu.matmul %299, %5, %cst_88 {dimension_numbers = #tpu.dot_dimension_numbers<[1], [0], [0], [1], [0, 0, 1, 1], [], []>} : vector<8x128xbf16>, vector<128x512xbf16>, vector<8x512xf32> -> vector<8x512xf32>
    %301 = arith.addf %298, %300 : vector<8x512xf32>
    %302 = arith.addf %301, %10 : vector<8x512xf32>
    %303 = vector.extract_strided_slice %302 {offsets = [0, 0], sizes = [8, 128], strides = [1, 1]} : vector<8x512xf32> to vector<8x128xf32>
    %304 = arith.negf %303 : vector<8x128xf32>
    %305 = math.exp %304 : vector<8x128xf32>
    %cst_89 = arith.constant 1.000000e+00 : f32
    %306 = vector.broadcast %cst_89 : f32 to vector<8x128xf32>
    %307 = arith.addf %306, %305 : vector<8x128xf32>
    %308 = arith.divf %306, %307 : vector<8x128xf32>
    %309 = vector.extract_strided_slice %302 {offsets = [0, 128], sizes = [8, 128], strides = [1, 1]} : vector<8x512xf32> to vector<8x128xf32>
    %310 = arith.negf %309 : vector<8x128xf32>
    %311 = math.exp %310 : vector<8x128xf32>
    %cst_90 = arith.constant 1.000000e+00 : f32
    %312 = vector.broadcast %cst_90 : f32 to vector<8x128xf32>
    %313 = arith.addf %312, %311 : vector<8x128xf32>
    %314 = arith.divf %312, %313 : vector<8x128xf32>
    %315 = vector.extract_strided_slice %302 {offsets = [0, 256], sizes = [8, 128], strides = [1, 1]} : vector<8x512xf32> to vector<8x128xf32>
    %316 = math.tanh %315 : vector<8x128xf32>
    %317 = vector.extract_strided_slice %302 {offsets = [0, 384], sizes = [8, 128], strides = [1, 1]} : vector<8x512xf32> to vector<8x128xf32>
    %318 = arith.negf %317 : vector<8x128xf32>
    %319 = math.exp %318 : vector<8x128xf32>
    %cst_91 = arith.constant 1.000000e+00 : f32
    %320 = vector.broadcast %cst_91 : f32 to vector<8x128xf32>
    %321 = arith.addf %320, %319 : vector<8x128xf32>
    %322 = arith.divf %320, %321 : vector<8x128xf32>
    %323 = arith.mulf %314, %242 : vector<8x128xf32>
    %324 = arith.mulf %308, %316 : vector<8x128xf32>
    %325 = arith.addf %323, %324 : vector<8x128xf32>
    %326 = math.tanh %325 : vector<8x128xf32>
    %327 = arith.mulf %322, %326 : vector<8x128xf32>
    %328 = vector.shape_cast %295 : vector<8x1xi1> to vector<8x1xi1>
    %329 = vector.broadcast %328 : vector<8x1xi1> to vector<8x128xi1>
    %330 = arith.select %329, %327, %239 : vector<8x128xi1>, vector<8x128xf32>
    %331 = vector.shape_cast %295 : vector<8x1xi1> to vector<8x1xi1>
    %332 = vector.broadcast %331 : vector<8x1xi1> to vector<8x128xi1>
    %333 = arith.select %332, %325, %242 : vector<8x128xi1>, vector<8x128xf32>
    %334 = arith.truncf %330 : vector<8x128xf32> to vector<8x128xbf16>
    %cst_92 = arith.constant dense<0.000000e+00> : vector<8x512xf32>
    %335 = tpu.matmul %334, %6, %cst_92 {dimension_numbers = #tpu.dot_dimension_numbers<[1], [0], [0], [1], [0, 0, 1, 1], [], []>} : vector<8x128xbf16>, vector<128x512xbf16>, vector<8x512xf32> -> vector<8x512xf32>
    %336 = arith.truncf %276 : vector<8x128xf32> to vector<8x128xbf16>
    %cst_93 = arith.constant dense<0.000000e+00> : vector<8x512xf32>
    %337 = tpu.matmul %336, %7, %cst_93 {dimension_numbers = #tpu.dot_dimension_numbers<[1], [0], [0], [1], [0, 0, 1, 1], [], []>} : vector<8x128xbf16>, vector<128x512xbf16>, vector<8x512xf32> -> vector<8x512xf32>
    %338 = arith.addf %335, %337 : vector<8x512xf32>
    %339 = arith.addf %338, %13 : vector<8x512xf32>
    %340 = vector.extract_strided_slice %339 {offsets = [0, 0], sizes = [8, 128], strides = [1, 1]} : vector<8x512xf32> to vector<8x128xf32>
    %341 = arith.negf %340 : vector<8x128xf32>
    %342 = math.exp %341 : vector<8x128xf32>
    %cst_94 = arith.constant 1.000000e+00 : f32
    %343 = vector.broadcast %cst_94 : f32 to vector<8x128xf32>
    %344 = arith.addf %343, %342 : vector<8x128xf32>
    %345 = arith.divf %343, %344 : vector<8x128xf32>
    %346 = vector.extract_strided_slice %339 {offsets = [0, 128], sizes = [8, 128], strides = [1, 1]} : vector<8x512xf32> to vector<8x128xf32>
    %347 = arith.negf %346 : vector<8x128xf32>
    %348 = math.exp %347 : vector<8x128xf32>
    %cst_95 = arith.constant 1.000000e+00 : f32
    %349 = vector.broadcast %cst_95 : f32 to vector<8x128xf32>
    %350 = arith.addf %349, %348 : vector<8x128xf32>
    %351 = arith.divf %349, %350 : vector<8x128xf32>
    %352 = vector.extract_strided_slice %339 {offsets = [0, 256], sizes = [8, 128], strides = [1, 1]} : vector<8x512xf32> to vector<8x128xf32>
    %353 = math.tanh %352 : vector<8x128xf32>
    %354 = vector.extract_strided_slice %339 {offsets = [0, 384], sizes = [8, 128], strides = [1, 1]} : vector<8x512xf32> to vector<8x128xf32>
    %355 = arith.negf %354 : vector<8x128xf32>
    %356 = math.exp %355 : vector<8x128xf32>
    %cst_96 = arith.constant 1.000000e+00 : f32
    %357 = vector.broadcast %cst_96 : f32 to vector<8x128xf32>
    %358 = arith.addf %357, %356 : vector<8x128xf32>
    %359 = arith.divf %357, %358 : vector<8x128xf32>
    %360 = arith.mulf %351, %279 : vector<8x128xf32>
    %361 = arith.mulf %345, %353 : vector<8x128xf32>
    %362 = arith.addf %360, %361 : vector<8x128xf32>
    %363 = math.tanh %362 : vector<8x128xf32>
    %364 = arith.mulf %359, %363 : vector<8x128xf32>
    %365 = vector.shape_cast %295 : vector<8x1xi1> to vector<8x1xi1>
    %366 = vector.broadcast %365 : vector<8x1xi1> to vector<8x128xi1>
    %367 = arith.select %366, %364, %276 : vector<8x128xi1>, vector<8x128xf32>
    %368 = vector.shape_cast %295 : vector<8x1xi1> to vector<8x1xi1>
    %369 = vector.broadcast %368 : vector<8x1xi1> to vector<8x128xi1>
    %370 = arith.select %369, %362, %279 : vector<8x128xi1>, vector<8x128xf32>
    %cst_97 = arith.constant 0.000000e+00 : f32
    %371 = vector.shape_cast %295 : vector<8x1xi1> to vector<8x1xi1>
    %372 = vector.broadcast %371 : vector<8x1xi1> to vector<8x128xi1>
    %373 = vector.broadcast %cst_97 : f32 to vector<8x128xf32>
    %374 = arith.select %372, %367, %373 : vector<8x128xi1>, vector<8x128xf32>
    %c3_98 = arith.constant 3 : index
    %c0_99 = arith.constant 0 : index
    %c0_100 = arith.constant 0 : index
    %375 = vector.load %arg11[%c3_98, %c0_99, %c0_100] : memref<8x8x128xf32, #tpu.memory_space<vmem>>, vector<1x8x128xf32>
    %376 = vector.shape_cast %375 : vector<1x8x128xf32> to vector<8x128xf32>
    %377 = vector.shape_cast %374 : vector<8x128xf32> to vector<1x8x128xf32>
    tpu.vector_store %arg11[%c3_98, %c0_99, %c0_100], %377 {strides = array<i32>} : memref<8x8x128xf32, #tpu.memory_space<vmem>>, vector<1x8x128xf32>,
    %c3_101 = arith.constant 3 : index
    %c0_102 = arith.constant 0 : index
    %c0_103 = arith.constant 0 : index
    %378 = vector.load %arg4[%c3_101, %c0_102, %c0_103] : memref<8x8x1xf32, #tpu.memory_space<vmem>>, vector<1x8x1xf32>
    %379 = vector.shape_cast %378 : vector<1x8x1xf32> to vector<8x1xf32>
    %380 = vector.broadcast %379 : vector<8x1xf32> to vector<8x128xf32>
    %381 = arith.mulf %380, %374 : vector<8x128xf32>
    %382 = arith.addf %291, %381 : vector<8x128xf32>
    %c8_i32_104 = arith.constant 8 : i32
    %383 = arith.muli %arg1, %c8_i32_104 : i32
    %c4_i32 = arith.constant 4 : i32
    %384 = arith.addi %383, %c4_i32 : i32
    %385 = vector.broadcast %384 : i32 to vector<8x1xi32>
    %386 = arith.cmpi slt, %385, %0 : vector<8x1xi32>
    %c4 = arith.constant 4 : index
    %c0_105 = arith.constant 0 : index
    %c0_106 = arith.constant 0 : index
    %387 = vector.load %arg3[%c4, %c0_105, %c0_106] : memref<8x8x128xbf16, #tpu.memory_space<vmem>>, vector<1x8x128xbf16>
    %388 = vector.shape_cast %387 : vector<1x8x128xbf16> to vector<8x128xbf16>
    %cst_107 = arith.constant dense<0.000000e+00> : vector<8x512xf32>
    %389 = tpu.matmul %388, %4, %cst_107 {dimension_numbers = #tpu.dot_dimension_numbers<[1], [0], [0], [1], [0, 0, 1, 1], [], []>} : vector<8x128xbf16>, vector<128x512xbf16>, vector<8x512xf32> -> vector<8x512xf32>
    %390 = arith.truncf %330 : vector<8x128xf32> to vector<8x128xbf16>
    %cst_108 = arith.constant dense<0.000000e+00> : vector<8x512xf32>
    %391 = tpu.matmul %390, %5, %cst_108 {dimension_numbers = #tpu.dot_dimension_numbers<[1], [0], [0], [1], [0, 0, 1, 1], [], []>} : vector<8x128xbf16>, vector<128x512xbf16>, vector<8x512xf32> -> vector<8x512xf32>
    %392 = arith.addf %389, %391 : vector<8x512xf32>
    %393 = arith.addf %392, %10 : vector<8x512xf32>
    %394 = vector.extract_strided_slice %393 {offsets = [0, 0], sizes = [8, 128], strides = [1, 1]} : vector<8x512xf32> to vector<8x128xf32>
    %395 = arith.negf %394 : vector<8x128xf32>
    %396 = math.exp %395 : vector<8x128xf32>
    %cst_109 = arith.constant 1.000000e+00 : f32
    %397 = vector.broadcast %cst_109 : f32 to vector<8x128xf32>
    %398 = arith.addf %397, %396 : vector<8x128xf32>
    %399 = arith.divf %397, %398 : vector<8x128xf32>
    %400 = vector.extract_strided_slice %393 {offsets = [0, 128], sizes = [8, 128], strides = [1, 1]} : vector<8x512xf32> to vector<8x128xf32>
    %401 = arith.negf %400 : vector<8x128xf32>
    %402 = math.exp %401 : vector<8x128xf32>
    %cst_110 = arith.constant 1.000000e+00 : f32
    %403 = vector.broadcast %cst_110 : f32 to vector<8x128xf32>
    %404 = arith.addf %403, %402 : vector<8x128xf32>
    %405 = arith.divf %403, %404 : vector<8x128xf32>
    %406 = vector.extract_strided_slice %393 {offsets = [0, 256], sizes = [8, 128], strides = [1, 1]} : vector<8x512xf32> to vector<8x128xf32>
    %407 = math.tanh %406 : vector<8x128xf32>
    %408 = vector.extract_strided_slice %393 {offsets = [0, 384], sizes = [8, 128], strides = [1, 1]} : vector<8x512xf32> to vector<8x128xf32>
    %409 = arith.negf %408 : vector<8x128xf32>
    %410 = math.exp %409 : vector<8x128xf32>
    %cst_111 = arith.constant 1.000000e+00 : f32
    %411 = vector.broadcast %cst_111 : f32 to vector<8x128xf32>
    %412 = arith.addf %411, %410 : vector<8x128xf32>
    %413 = arith.divf %411, %412 : vector<8x128xf32>
    %414 = arith.mulf %405, %333 : vector<8x128xf32>
    %415 = arith.mulf %399, %407 : vector<8x128xf32>
    %416 = arith.addf %414, %415 : vector<8x128xf32>
    %417 = math.tanh %416 : vector<8x128xf32>
    %418 = arith.mulf %413, %417 : vector<8x128xf32>
    %419 = vector.shape_cast %386 : vector<8x1xi1> to vector<8x1xi1>
    %420 = vector.broadcast %419 : vector<8x1xi1> to vector<8x128xi1>
    %421 = arith.select %420, %418, %330 : vector<8x128xi1>, vector<8x128xf32>
    %422 = vector.shape_cast %386 : vector<8x1xi1> to vector<8x1xi1>
    %423 = vector.broadcast %422 : vector<8x1xi1> to vector<8x128xi1>
    %424 = arith.select %423, %416, %333 : vector<8x128xi1>, vector<8x128xf32>
    %425 = arith.truncf %421 : vector<8x128xf32> to vector<8x128xbf16>
    %cst_112 = arith.constant dense<0.000000e+00> : vector<8x512xf32>
    %426 = tpu.matmul %425, %6, %cst_112 {dimension_numbers = #tpu.dot_dimension_numbers<[1], [0], [0], [1], [0, 0, 1, 1], [], []>} : vector<8x128xbf16>, vector<128x512xbf16>, vector<8x512xf32> -> vector<8x512xf32>
    %427 = arith.truncf %367 : vector<8x128xf32> to vector<8x128xbf16>
    %cst_113 = arith.constant dense<0.000000e+00> : vector<8x512xf32>
    %428 = tpu.matmul %427, %7, %cst_113 {dimension_numbers = #tpu.dot_dimension_numbers<[1], [0], [0], [1], [0, 0, 1, 1], [], []>} : vector<8x128xbf16>, vector<128x512xbf16>, vector<8x512xf32> -> vector<8x512xf32>
    %429 = arith.addf %426, %428 : vector<8x512xf32>
    %430 = arith.addf %429, %13 : vector<8x512xf32>
    %431 = vector.extract_strided_slice %430 {offsets = [0, 0], sizes = [8, 128], strides = [1, 1]} : vector<8x512xf32> to vector<8x128xf32>
    %432 = arith.negf %431 : vector<8x128xf32>
    %433 = math.exp %432 : vector<8x128xf32>
    %cst_114 = arith.constant 1.000000e+00 : f32
    %434 = vector.broadcast %cst_114 : f32 to vector<8x128xf32>
    %435 = arith.addf %434, %433 : vector<8x128xf32>
    %436 = arith.divf %434, %435 : vector<8x128xf32>
    %437 = vector.extract_strided_slice %430 {offsets = [0, 128], sizes = [8, 128], strides = [1, 1]} : vector<8x512xf32> to vector<8x128xf32>
    %438 = arith.negf %437 : vector<8x128xf32>
    %439 = math.exp %438 : vector<8x128xf32>
    %cst_115 = arith.constant 1.000000e+00 : f32
    %440 = vector.broadcast %cst_115 : f32 to vector<8x128xf32>
    %441 = arith.addf %440, %439 : vector<8x128xf32>
    %442 = arith.divf %440, %441 : vector<8x128xf32>
    %443 = vector.extract_strided_slice %430 {offsets = [0, 256], sizes = [8, 128], strides = [1, 1]} : vector<8x512xf32> to vector<8x128xf32>
    %444 = math.tanh %443 : vector<8x128xf32>
    %445 = vector.extract_strided_slice %430 {offsets = [0, 384], sizes = [8, 128], strides = [1, 1]} : vector<8x512xf32> to vector<8x128xf32>
    %446 = arith.negf %445 : vector<8x128xf32>
    %447 = math.exp %446 : vector<8x128xf32>
    %cst_116 = arith.constant 1.000000e+00 : f32
    %448 = vector.broadcast %cst_116 : f32 to vector<8x128xf32>
    %449 = arith.addf %448, %447 : vector<8x128xf32>
    %450 = arith.divf %448, %449 : vector<8x128xf32>
    %451 = arith.mulf %442, %370 : vector<8x128xf32>
    %452 = arith.mulf %436, %444 : vector<8x128xf32>
    %453 = arith.addf %451, %452 : vector<8x128xf32>
    %454 = math.tanh %453 : vector<8x128xf32>
    %455 = arith.mulf %450, %454 : vector<8x128xf32>
    %456 = vector.shape_cast %386 : vector<8x1xi1> to vector<8x1xi1>
    %457 = vector.broadcast %456 : vector<8x1xi1> to vector<8x128xi1>
    %458 = arith.select %457, %455, %367 : vector<8x128xi1>, vector<8x128xf32>
    %459 = vector.shape_cast %386 : vector<8x1xi1> to vector<8x1xi1>
    %460 = vector.broadcast %459 : vector<8x1xi1> to vector<8x128xi1>
    %461 = arith.select %460, %453, %370 : vector<8x128xi1>, vector<8x128xf32>
    %cst_117 = arith.constant 0.000000e+00 : f32
    %462 = vector.shape_cast %386 : vector<8x1xi1> to vector<8x1xi1>
    %463 = vector.broadcast %462 : vector<8x1xi1> to vector<8x128xi1>
    %464 = vector.broadcast %cst_117 : f32 to vector<8x128xf32>
    %465 = arith.select %463, %458, %464 : vector<8x128xi1>, vector<8x128xf32>
    %c4_118 = arith.constant 4 : index
    %c0_119 = arith.constant 0 : index
    %c0_120 = arith.constant 0 : index
    %466 = vector.load %arg11[%c4_118, %c0_119, %c0_120] : memref<8x8x128xf32, #tpu.memory_space<vmem>>, vector<1x8x128xf32>
    %467 = vector.shape_cast %466 : vector<1x8x128xf32> to vector<8x128xf32>
    %468 = vector.shape_cast %465 : vector<8x128xf32> to vector<1x8x128xf32>
    tpu.vector_store %arg11[%c4_118, %c0_119, %c0_120], %468 {strides = array<i32>} : memref<8x8x128xf32, #tpu.memory_space<vmem>>, vector<1x8x128xf32>,
    %c4_121 = arith.constant 4 : index
    %c0_122 = arith.constant 0 : index
    %c0_123 = arith.constant 0 : index
    %469 = vector.load %arg4[%c4_121, %c0_122, %c0_123] : memref<8x8x1xf32, #tpu.memory_space<vmem>>, vector<1x8x1xf32>
    %470 = vector.shape_cast %469 : vector<1x8x1xf32> to vector<8x1xf32>
    %471 = vector.broadcast %470 : vector<8x1xf32> to vector<8x128xf32>
    %472 = arith.mulf %471, %465 : vector<8x128xf32>
    %473 = arith.addf %382, %472 : vector<8x128xf32>
    %c8_i32_124 = arith.constant 8 : i32
    %474 = arith.muli %arg1, %c8_i32_124 : i32
    %c5_i32 = arith.constant 5 : i32
    %475 = arith.addi %474, %c5_i32 : i32
    %476 = vector.broadcast %475 : i32 to vector<8x1xi32>
    %477 = arith.cmpi slt, %476, %0 : vector<8x1xi32>
    %c5 = arith.constant 5 : index
    %c0_125 = arith.constant 0 : index
    %c0_126 = arith.constant 0 : index
    %478 = vector.load %arg3[%c5, %c0_125, %c0_126] : memref<8x8x128xbf16, #tpu.memory_space<vmem>>, vector<1x8x128xbf16>
    %479 = vector.shape_cast %478 : vector<1x8x128xbf16> to vector<8x128xbf16>
    %cst_127 = arith.constant dense<0.000000e+00> : vector<8x512xf32>
    %480 = tpu.matmul %479, %4, %cst_127 {dimension_numbers = #tpu.dot_dimension_numbers<[1], [0], [0], [1], [0, 0, 1, 1], [], []>} : vector<8x128xbf16>, vector<128x512xbf16>, vector<8x512xf32> -> vector<8x512xf32>
    %481 = arith.truncf %421 : vector<8x128xf32> to vector<8x128xbf16>
    %cst_128 = arith.constant dense<0.000000e+00> : vector<8x512xf32>
    %482 = tpu.matmul %481, %5, %cst_128 {dimension_numbers = #tpu.dot_dimension_numbers<[1], [0], [0], [1], [0, 0, 1, 1], [], []>} : vector<8x128xbf16>, vector<128x512xbf16>, vector<8x512xf32> -> vector<8x512xf32>
    %483 = arith.addf %480, %482 : vector<8x512xf32>
    %484 = arith.addf %483, %10 : vector<8x512xf32>
    %485 = vector.extract_strided_slice %484 {offsets = [0, 0], sizes = [8, 128], strides = [1, 1]} : vector<8x512xf32> to vector<8x128xf32>
    %486 = arith.negf %485 : vector<8x128xf32>
    %487 = math.exp %486 : vector<8x128xf32>
    %cst_129 = arith.constant 1.000000e+00 : f32
    %488 = vector.broadcast %cst_129 : f32 to vector<8x128xf32>
    %489 = arith.addf %488, %487 : vector<8x128xf32>
    %490 = arith.divf %488, %489 : vector<8x128xf32>
    %491 = vector.extract_strided_slice %484 {offsets = [0, 128], sizes = [8, 128], strides = [1, 1]} : vector<8x512xf32> to vector<8x128xf32>
    %492 = arith.negf %491 : vector<8x128xf32>
    %493 = math.exp %492 : vector<8x128xf32>
    %cst_130 = arith.constant 1.000000e+00 : f32
    %494 = vector.broadcast %cst_130 : f32 to vector<8x128xf32>
    %495 = arith.addf %494, %493 : vector<8x128xf32>
    %496 = arith.divf %494, %495 : vector<8x128xf32>
    %497 = vector.extract_strided_slice %484 {offsets = [0, 256], sizes = [8, 128], strides = [1, 1]} : vector<8x512xf32> to vector<8x128xf32>
    %498 = math.tanh %497 : vector<8x128xf32>
    %499 = vector.extract_strided_slice %484 {offsets = [0, 384], sizes = [8, 128], strides = [1, 1]} : vector<8x512xf32> to vector<8x128xf32>
    %500 = arith.negf %499 : vector<8x128xf32>
    %501 = math.exp %500 : vector<8x128xf32>
    %cst_131 = arith.constant 1.000000e+00 : f32
    %502 = vector.broadcast %cst_131 : f32 to vector<8x128xf32>
    %503 = arith.addf %502, %501 : vector<8x128xf32>
    %504 = arith.divf %502, %503 : vector<8x128xf32>
    %505 = arith.mulf %496, %424 : vector<8x128xf32>
    %506 = arith.mulf %490, %498 : vector<8x128xf32>
    %507 = arith.addf %505, %506 : vector<8x128xf32>
    %508 = math.tanh %507 : vector<8x128xf32>
    %509 = arith.mulf %504, %508 : vector<8x128xf32>
    %510 = vector.shape_cast %477 : vector<8x1xi1> to vector<8x1xi1>
    %511 = vector.broadcast %510 : vector<8x1xi1> to vector<8x128xi1>
    %512 = arith.select %511, %509, %421 : vector<8x128xi1>, vector<8x128xf32>
    %513 = vector.shape_cast %477 : vector<8x1xi1> to vector<8x1xi1>
    %514 = vector.broadcast %513 : vector<8x1xi1> to vector<8x128xi1>
    %515 = arith.select %514, %507, %424 : vector<8x128xi1>, vector<8x128xf32>
    %516 = arith.truncf %512 : vector<8x128xf32> to vector<8x128xbf16>
    %cst_132 = arith.constant dense<0.000000e+00> : vector<8x512xf32>
    %517 = tpu.matmul %516, %6, %cst_132 {dimension_numbers = #tpu.dot_dimension_numbers<[1], [0], [0], [1], [0, 0, 1, 1], [], []>} : vector<8x128xbf16>, vector<128x512xbf16>, vector<8x512xf32> -> vector<8x512xf32>
    %518 = arith.truncf %458 : vector<8x128xf32> to vector<8x128xbf16>
    %cst_133 = arith.constant dense<0.000000e+00> : vector<8x512xf32>
    %519 = tpu.matmul %518, %7, %cst_133 {dimension_numbers = #tpu.dot_dimension_numbers<[1], [0], [0], [1], [0, 0, 1, 1], [], []>} : vector<8x128xbf16>, vector<128x512xbf16>, vector<8x512xf32> -> vector<8x512xf32>
    %520 = arith.addf %517, %519 : vector<8x512xf32>
    %521 = arith.addf %520, %13 : vector<8x512xf32>
    %522 = vector.extract_strided_slice %521 {offsets = [0, 0], sizes = [8, 128], strides = [1, 1]} : vector<8x512xf32> to vector<8x128xf32>
    %523 = arith.negf %522 : vector<8x128xf32>
    %524 = math.exp %523 : vector<8x128xf32>
    %cst_134 = arith.constant 1.000000e+00 : f32
    %525 = vector.broadcast %cst_134 : f32 to vector<8x128xf32>
    %526 = arith.addf %525, %524 : vector<8x128xf32>
    %527 = arith.divf %525, %526 : vector<8x128xf32>
    %528 = vector.extract_strided_slice %521 {offsets = [0, 128], sizes = [8, 128], strides = [1, 1]} : vector<8x512xf32> to vector<8x128xf32>
    %529 = arith.negf %528 : vector<8x128xf32>
    %530 = math.exp %529 : vector<8x128xf32>
    %cst_135 = arith.constant 1.000000e+00 : f32
    %531 = vector.broadcast %cst_135 : f32 to vector<8x128xf32>
    %532 = arith.addf %531, %530 : vector<8x128xf32>
    %533 = arith.divf %531, %532 : vector<8x128xf32>
    %534 = vector.extract_strided_slice %521 {offsets = [0, 256], sizes = [8, 128], strides = [1, 1]} : vector<8x512xf32> to vector<8x128xf32>
    %535 = math.tanh %534 : vector<8x128xf32>
    %536 = vector.extract_strided_slice %521 {offsets = [0, 384], sizes = [8, 128], strides = [1, 1]} : vector<8x512xf32> to vector<8x128xf32>
    %537 = arith.negf %536 : vector<8x128xf32>
    %538 = math.exp %537 : vector<8x128xf32>
    %cst_136 = arith.constant 1.000000e+00 : f32
    %539 = vector.broadcast %cst_136 : f32 to vector<8x128xf32>
    %540 = arith.addf %539, %538 : vector<8x128xf32>
    %541 = arith.divf %539, %540 : vector<8x128xf32>
    %542 = arith.mulf %533, %461 : vector<8x128xf32>
    %543 = arith.mulf %527, %535 : vector<8x128xf32>
    %544 = arith.addf %542, %543 : vector<8x128xf32>
    %545 = math.tanh %544 : vector<8x128xf32>
    %546 = arith.mulf %541, %545 : vector<8x128xf32>
    %547 = vector.shape_cast %477 : vector<8x1xi1> to vector<8x1xi1>
    %548 = vector.broadcast %547 : vector<8x1xi1> to vector<8x128xi1>
    %549 = arith.select %548, %546, %458 : vector<8x128xi1>, vector<8x128xf32>
    %550 = vector.shape_cast %477 : vector<8x1xi1> to vector<8x1xi1>
    %551 = vector.broadcast %550 : vector<8x1xi1> to vector<8x128xi1>
    %552 = arith.select %551, %544, %461 : vector<8x128xi1>, vector<8x128xf32>
    %cst_137 = arith.constant 0.000000e+00 : f32
    %553 = vector.shape_cast %477 : vector<8x1xi1> to vector<8x1xi1>
    %554 = vector.broadcast %553 : vector<8x1xi1> to vector<8x128xi1>
    %555 = vector.broadcast %cst_137 : f32 to vector<8x128xf32>
    %556 = arith.select %554, %549, %555 : vector<8x128xi1>, vector<8x128xf32>
    %c5_138 = arith.constant 5 : index
    %c0_139 = arith.constant 0 : index
    %c0_140 = arith.constant 0 : index
    %557 = vector.load %arg11[%c5_138, %c0_139, %c0_140] : memref<8x8x128xf32, #tpu.memory_space<vmem>>, vector<1x8x128xf32>
    %558 = vector.shape_cast %557 : vector<1x8x128xf32> to vector<8x128xf32>
    %559 = vector.shape_cast %556 : vector<8x128xf32> to vector<1x8x128xf32>
    tpu.vector_store %arg11[%c5_138, %c0_139, %c0_140], %559 {strides = array<i32>} : memref<8x8x128xf32, #tpu.memory_space<vmem>>, vector<1x8x128xf32>,
    %c5_141 = arith.constant 5 : index
    %c0_142 = arith.constant 0 : index
    %c0_143 = arith.constant 0 : index
    %560 = vector.load %arg4[%c5_141, %c0_142, %c0_143] : memref<8x8x1xf32, #tpu.memory_space<vmem>>, vector<1x8x1xf32>
    %561 = vector.shape_cast %560 : vector<1x8x1xf32> to vector<8x1xf32>
    %562 = vector.broadcast %561 : vector<8x1xf32> to vector<8x128xf32>
    %563 = arith.mulf %562, %556 : vector<8x128xf32>
    %564 = arith.addf %473, %563 : vector<8x128xf32>
    %c8_i32_144 = arith.constant 8 : i32
    %565 = arith.muli %arg1, %c8_i32_144 : i32
    %c6_i32 = arith.constant 6 : i32
    %566 = arith.addi %565, %c6_i32 : i32
    %567 = vector.broadcast %566 : i32 to vector<8x1xi32>
    %568 = arith.cmpi slt, %567, %0 : vector<8x1xi32>
    %c6 = arith.constant 6 : index
    %c0_145 = arith.constant 0 : index
    %c0_146 = arith.constant 0 : index
    %569 = vector.load %arg3[%c6, %c0_145, %c0_146] : memref<8x8x128xbf16, #tpu.memory_space<vmem>>, vector<1x8x128xbf16>
    %570 = vector.shape_cast %569 : vector<1x8x128xbf16> to vector<8x128xbf16>
    %cst_147 = arith.constant dense<0.000000e+00> : vector<8x512xf32>
    %571 = tpu.matmul %570, %4, %cst_147 {dimension_numbers = #tpu.dot_dimension_numbers<[1], [0], [0], [1], [0, 0, 1, 1], [], []>} : vector<8x128xbf16>, vector<128x512xbf16>, vector<8x512xf32> -> vector<8x512xf32>
    %572 = arith.truncf %512 : vector<8x128xf32> to vector<8x128xbf16>
    %cst_148 = arith.constant dense<0.000000e+00> : vector<8x512xf32>
    %573 = tpu.matmul %572, %5, %cst_148 {dimension_numbers = #tpu.dot_dimension_numbers<[1], [0], [0], [1], [0, 0, 1, 1], [], []>} : vector<8x128xbf16>, vector<128x512xbf16>, vector<8x512xf32> -> vector<8x512xf32>
    %574 = arith.addf %571, %573 : vector<8x512xf32>
    %575 = arith.addf %574, %10 : vector<8x512xf32>
    %576 = vector.extract_strided_slice %575 {offsets = [0, 0], sizes = [8, 128], strides = [1, 1]} : vector<8x512xf32> to vector<8x128xf32>
    %577 = arith.negf %576 : vector<8x128xf32>
    %578 = math.exp %577 : vector<8x128xf32>
    %cst_149 = arith.constant 1.000000e+00 : f32
    %579 = vector.broadcast %cst_149 : f32 to vector<8x128xf32>
    %580 = arith.addf %579, %578 : vector<8x128xf32>
    %581 = arith.divf %579, %580 : vector<8x128xf32>
    %582 = vector.extract_strided_slice %575 {offsets = [0, 128], sizes = [8, 128], strides = [1, 1]} : vector<8x512xf32> to vector<8x128xf32>
    %583 = arith.negf %582 : vector<8x128xf32>
    %584 = math.exp %583 : vector<8x128xf32>
    %cst_150 = arith.constant 1.000000e+00 : f32
    %585 = vector.broadcast %cst_150 : f32 to vector<8x128xf32>
    %586 = arith.addf %585, %584 : vector<8x128xf32>
    %587 = arith.divf %585, %586 : vector<8x128xf32>
    %588 = vector.extract_strided_slice %575 {offsets = [0, 256], sizes = [8, 128], strides = [1, 1]} : vector<8x512xf32> to vector<8x128xf32>
    %589 = math.tanh %588 : vector<8x128xf32>
    %590 = vector.extract_strided_slice %575 {offsets = [0, 384], sizes = [8, 128], strides = [1, 1]} : vector<8x512xf32> to vector<8x128xf32>
    %591 = arith.negf %590 : vector<8x128xf32>
    %592 = math.exp %591 : vector<8x128xf32>
    %cst_151 = arith.constant 1.000000e+00 : f32
    %593 = vector.broadcast %cst_151 : f32 to vector<8x128xf32>
    %594 = arith.addf %593, %592 : vector<8x128xf32>
    %595 = arith.divf %593, %594 : vector<8x128xf32>
    %596 = arith.mulf %587, %515 : vector<8x128xf32>
    %597 = arith.mulf %581, %589 : vector<8x128xf32>
    %598 = arith.addf %596, %597 : vector<8x128xf32>
    %599 = math.tanh %598 : vector<8x128xf32>
    %600 = arith.mulf %595, %599 : vector<8x128xf32>
    %601 = vector.shape_cast %568 : vector<8x1xi1> to vector<8x1xi1>
    %602 = vector.broadcast %601 : vector<8x1xi1> to vector<8x128xi1>
    %603 = arith.select %602, %600, %512 : vector<8x128xi1>, vector<8x128xf32>
    %604 = vector.shape_cast %568 : vector<8x1xi1> to vector<8x1xi1>
    %605 = vector.broadcast %604 : vector<8x1xi1> to vector<8x128xi1>
    %606 = arith.select %605, %598, %515 : vector<8x128xi1>, vector<8x128xf32>
    %607 = arith.truncf %603 : vector<8x128xf32> to vector<8x128xbf16>
    %cst_152 = arith.constant dense<0.000000e+00> : vector<8x512xf32>
    %608 = tpu.matmul %607, %6, %cst_152 {dimension_numbers = #tpu.dot_dimension_numbers<[1], [0], [0], [1], [0, 0, 1, 1], [], []>} : vector<8x128xbf16>, vector<128x512xbf16>, vector<8x512xf32> -> vector<8x512xf32>
    %609 = arith.truncf %549 : vector<8x128xf32> to vector<8x128xbf16>
    %cst_153 = arith.constant dense<0.000000e+00> : vector<8x512xf32>
    %610 = tpu.matmul %609, %7, %cst_153 {dimension_numbers = #tpu.dot_dimension_numbers<[1], [0], [0], [1], [0, 0, 1, 1], [], []>} : vector<8x128xbf16>, vector<128x512xbf16>, vector<8x512xf32> -> vector<8x512xf32>
    %611 = arith.addf %608, %610 : vector<8x512xf32>
    %612 = arith.addf %611, %13 : vector<8x512xf32>
    %613 = vector.extract_strided_slice %612 {offsets = [0, 0], sizes = [8, 128], strides = [1, 1]} : vector<8x512xf32> to vector<8x128xf32>
    %614 = arith.negf %613 : vector<8x128xf32>
    %615 = math.exp %614 : vector<8x128xf32>
    %cst_154 = arith.constant 1.000000e+00 : f32
    %616 = vector.broadcast %cst_154 : f32 to vector<8x128xf32>
    %617 = arith.addf %616, %615 : vector<8x128xf32>
    %618 = arith.divf %616, %617 : vector<8x128xf32>
    %619 = vector.extract_strided_slice %612 {offsets = [0, 128], sizes = [8, 128], strides = [1, 1]} : vector<8x512xf32> to vector<8x128xf32>
    %620 = arith.negf %619 : vector<8x128xf32>
    %621 = math.exp %620 : vector<8x128xf32>
    %cst_155 = arith.constant 1.000000e+00 : f32
    %622 = vector.broadcast %cst_155 : f32 to vector<8x128xf32>
    %623 = arith.addf %622, %621 : vector<8x128xf32>
    %624 = arith.divf %622, %623 : vector<8x128xf32>
    %625 = vector.extract_strided_slice %612 {offsets = [0, 256], sizes = [8, 128], strides = [1, 1]} : vector<8x512xf32> to vector<8x128xf32>
    %626 = math.tanh %625 : vector<8x128xf32>
    %627 = vector.extract_strided_slice %612 {offsets = [0, 384], sizes = [8, 128], strides = [1, 1]} : vector<8x512xf32> to vector<8x128xf32>
    %628 = arith.negf %627 : vector<8x128xf32>
    %629 = math.exp %628 : vector<8x128xf32>
    %cst_156 = arith.constant 1.000000e+00 : f32
    %630 = vector.broadcast %cst_156 : f32 to vector<8x128xf32>
    %631 = arith.addf %630, %629 : vector<8x128xf32>
    %632 = arith.divf %630, %631 : vector<8x128xf32>
    %633 = arith.mulf %624, %552 : vector<8x128xf32>
    %634 = arith.mulf %618, %626 : vector<8x128xf32>
    %635 = arith.addf %633, %634 : vector<8x128xf32>
    %636 = math.tanh %635 : vector<8x128xf32>
    %637 = arith.mulf %632, %636 : vector<8x128xf32>
    %638 = vector.shape_cast %568 : vector<8x1xi1> to vector<8x1xi1>
    %639 = vector.broadcast %638 : vector<8x1xi1> to vector<8x128xi1>
    %640 = arith.select %639, %637, %549 : vector<8x128xi1>, vector<8x128xf32>
    %641 = vector.shape_cast %568 : vector<8x1xi1> to vector<8x1xi1>
    %642 = vector.broadcast %641 : vector<8x1xi1> to vector<8x128xi1>
    %643 = arith.select %642, %635, %552 : vector<8x128xi1>, vector<8x128xf32>
    %cst_157 = arith.constant 0.000000e+00 : f32
    %644 = vector.shape_cast %568 : vector<8x1xi1> to vector<8x1xi1>
    %645 = vector.broadcast %644 : vector<8x1xi1> to vector<8x128xi1>
    %646 = vector.broadcast %cst_157 : f32 to vector<8x128xf32>
    %647 = arith.select %645, %640, %646 : vector<8x128xi1>, vector<8x128xf32>
    %c6_158 = arith.constant 6 : index
    %c0_159 = arith.constant 0 : index
    %c0_160 = arith.constant 0 : index
    %648 = vector.load %arg11[%c6_158, %c0_159, %c0_160] : memref<8x8x128xf32, #tpu.memory_space<vmem>>, vector<1x8x128xf32>
    %649 = vector.shape_cast %648 : vector<1x8x128xf32> to vector<8x128xf32>
    %650 = vector.shape_cast %647 : vector<8x128xf32> to vector<1x8x128xf32>
    tpu.vector_store %arg11[%c6_158, %c0_159, %c0_160], %650 {strides = array<i32>} : memref<8x8x128xf32, #tpu.memory_space<vmem>>, vector<1x8x128xf32>,
    %c6_161 = arith.constant 6 : index
    %c0_162 = arith.constant 0 : index
    %c0_163 = arith.constant 0 : index
    %651 = vector.load %arg4[%c6_161, %c0_162, %c0_163] : memref<8x8x1xf32, #tpu.memory_space<vmem>>, vector<1x8x1xf32>
    %652 = vector.shape_cast %651 : vector<1x8x1xf32> to vector<8x1xf32>
    %653 = vector.broadcast %652 : vector<8x1xf32> to vector<8x128xf32>
    %654 = arith.mulf %653, %647 : vector<8x128xf32>
    %655 = arith.addf %564, %654 : vector<8x128xf32>
    %c8_i32_164 = arith.constant 8 : i32
    %656 = arith.muli %arg1, %c8_i32_164 : i32
    %c7_i32 = arith.constant 7 : i32
    %657 = arith.addi %656, %c7_i32 : i32
    %658 = vector.broadcast %657 : i32 to vector<8x1xi32>
    %659 = arith.cmpi slt, %658, %0 : vector<8x1xi32>
    %c7 = arith.constant 7 : index
    %c0_165 = arith.constant 0 : index
    %c0_166 = arith.constant 0 : index
    %660 = vector.load %arg3[%c7, %c0_165, %c0_166] : memref<8x8x128xbf16, #tpu.memory_space<vmem>>, vector<1x8x128xbf16>
    %661 = vector.shape_cast %660 : vector<1x8x128xbf16> to vector<8x128xbf16>
    %cst_167 = arith.constant dense<0.000000e+00> : vector<8x512xf32>
    %662 = tpu.matmul %661, %4, %cst_167 {dimension_numbers = #tpu.dot_dimension_numbers<[1], [0], [0], [1], [0, 0, 1, 1], [], []>} : vector<8x128xbf16>, vector<128x512xbf16>, vector<8x512xf32> -> vector<8x512xf32>
    %663 = arith.truncf %603 : vector<8x128xf32> to vector<8x128xbf16>
    %cst_168 = arith.constant dense<0.000000e+00> : vector<8x512xf32>
    %664 = tpu.matmul %663, %5, %cst_168 {dimension_numbers = #tpu.dot_dimension_numbers<[1], [0], [0], [1], [0, 0, 1, 1], [], []>} : vector<8x128xbf16>, vector<128x512xbf16>, vector<8x512xf32> -> vector<8x512xf32>
    %665 = arith.addf %662, %664 : vector<8x512xf32>
    %666 = arith.addf %665, %10 : vector<8x512xf32>
    %667 = vector.extract_strided_slice %666 {offsets = [0, 0], sizes = [8, 128], strides = [1, 1]} : vector<8x512xf32> to vector<8x128xf32>
    %668 = arith.negf %667 : vector<8x128xf32>
    %669 = math.exp %668 : vector<8x128xf32>
    %cst_169 = arith.constant 1.000000e+00 : f32
    %670 = vector.broadcast %cst_169 : f32 to vector<8x128xf32>
    %671 = arith.addf %670, %669 : vector<8x128xf32>
    %672 = arith.divf %670, %671 : vector<8x128xf32>
    %673 = vector.extract_strided_slice %666 {offsets = [0, 128], sizes = [8, 128], strides = [1, 1]} : vector<8x512xf32> to vector<8x128xf32>
    %674 = arith.negf %673 : vector<8x128xf32>
    %675 = math.exp %674 : vector<8x128xf32>
    %cst_170 = arith.constant 1.000000e+00 : f32
    %676 = vector.broadcast %cst_170 : f32 to vector<8x128xf32>
    %677 = arith.addf %676, %675 : vector<8x128xf32>
    %678 = arith.divf %676, %677 : vector<8x128xf32>
    %679 = vector.extract_strided_slice %666 {offsets = [0, 256], sizes = [8, 128], strides = [1, 1]} : vector<8x512xf32> to vector<8x128xf32>
    %680 = math.tanh %679 : vector<8x128xf32>
    %681 = vector.extract_strided_slice %666 {offsets = [0, 384], sizes = [8, 128], strides = [1, 1]} : vector<8x512xf32> to vector<8x128xf32>
    %682 = arith.negf %681 : vector<8x128xf32>
    %683 = math.exp %682 : vector<8x128xf32>
    %cst_171 = arith.constant 1.000000e+00 : f32
    %684 = vector.broadcast %cst_171 : f32 to vector<8x128xf32>
    %685 = arith.addf %684, %683 : vector<8x128xf32>
    %686 = arith.divf %684, %685 : vector<8x128xf32>
    %687 = arith.mulf %678, %606 : vector<8x128xf32>
    %688 = arith.mulf %672, %680 : vector<8x128xf32>
    %689 = arith.addf %687, %688 : vector<8x128xf32>
    %690 = math.tanh %689 : vector<8x128xf32>
    %691 = arith.mulf %686, %690 : vector<8x128xf32>
    %692 = vector.shape_cast %659 : vector<8x1xi1> to vector<8x1xi1>
    %693 = vector.broadcast %692 : vector<8x1xi1> to vector<8x128xi1>
    %694 = arith.select %693, %691, %603 : vector<8x128xi1>, vector<8x128xf32>
    %695 = vector.shape_cast %659 : vector<8x1xi1> to vector<8x1xi1>
    %696 = vector.broadcast %695 : vector<8x1xi1> to vector<8x128xi1>
    %697 = arith.select %696, %689, %606 : vector<8x128xi1>, vector<8x128xf32>
    %698 = arith.truncf %694 : vector<8x128xf32> to vector<8x128xbf16>
    %cst_172 = arith.constant dense<0.000000e+00> : vector<8x512xf32>
    %699 = tpu.matmul %698, %6, %cst_172 {dimension_numbers = #tpu.dot_dimension_numbers<[1], [0], [0], [1], [0, 0, 1, 1], [], []>} : vector<8x128xbf16>, vector<128x512xbf16>, vector<8x512xf32> -> vector<8x512xf32>
    %700 = arith.truncf %640 : vector<8x128xf32> to vector<8x128xbf16>
    %cst_173 = arith.constant dense<0.000000e+00> : vector<8x512xf32>
    %701 = tpu.matmul %700, %7, %cst_173 {dimension_numbers = #tpu.dot_dimension_numbers<[1], [0], [0], [1], [0, 0, 1, 1], [], []>} : vector<8x128xbf16>, vector<128x512xbf16>, vector<8x512xf32> -> vector<8x512xf32>
    %702 = arith.addf %699, %701 : vector<8x512xf32>
    %703 = arith.addf %702, %13 : vector<8x512xf32>
    %704 = vector.extract_strided_slice %703 {offsets = [0, 0], sizes = [8, 128], strides = [1, 1]} : vector<8x512xf32> to vector<8x128xf32>
    %705 = arith.negf %704 : vector<8x128xf32>
    %706 = math.exp %705 : vector<8x128xf32>
    %cst_174 = arith.constant 1.000000e+00 : f32
    %707 = vector.broadcast %cst_174 : f32 to vector<8x128xf32>
    %708 = arith.addf %707, %706 : vector<8x128xf32>
    %709 = arith.divf %707, %708 : vector<8x128xf32>
    %710 = vector.extract_strided_slice %703 {offsets = [0, 128], sizes = [8, 128], strides = [1, 1]} : vector<8x512xf32> to vector<8x128xf32>
    %711 = arith.negf %710 : vector<8x128xf32>
    %712 = math.exp %711 : vector<8x128xf32>
    %cst_175 = arith.constant 1.000000e+00 : f32
    %713 = vector.broadcast %cst_175 : f32 to vector<8x128xf32>
    %714 = arith.addf %713, %712 : vector<8x128xf32>
    %715 = arith.divf %713, %714 : vector<8x128xf32>
    %716 = vector.extract_strided_slice %703 {offsets = [0, 256], sizes = [8, 128], strides = [1, 1]} : vector<8x512xf32> to vector<8x128xf32>
    %717 = math.tanh %716 : vector<8x128xf32>
    %718 = vector.extract_strided_slice %703 {offsets = [0, 384], sizes = [8, 128], strides = [1, 1]} : vector<8x512xf32> to vector<8x128xf32>
    %719 = arith.negf %718 : vector<8x128xf32>
    %720 = math.exp %719 : vector<8x128xf32>
    %cst_176 = arith.constant 1.000000e+00 : f32
    %721 = vector.broadcast %cst_176 : f32 to vector<8x128xf32>
    %722 = arith.addf %721, %720 : vector<8x128xf32>
    %723 = arith.divf %721, %722 : vector<8x128xf32>
    %724 = arith.mulf %715, %643 : vector<8x128xf32>
    %725 = arith.mulf %709, %717 : vector<8x128xf32>
    %726 = arith.addf %724, %725 : vector<8x128xf32>
    %727 = math.tanh %726 : vector<8x128xf32>
    %728 = arith.mulf %723, %727 : vector<8x128xf32>
    %729 = vector.shape_cast %659 : vector<8x1xi1> to vector<8x1xi1>
    %730 = vector.broadcast %729 : vector<8x1xi1> to vector<8x128xi1>
    %731 = arith.select %730, %728, %640 : vector<8x128xi1>, vector<8x128xf32>
    %732 = vector.shape_cast %659 : vector<8x1xi1> to vector<8x1xi1>
    %733 = vector.broadcast %732 : vector<8x1xi1> to vector<8x128xi1>
    %734 = arith.select %733, %726, %643 : vector<8x128xi1>, vector<8x128xf32>
    %cst_177 = arith.constant 0.000000e+00 : f32
    %735 = vector.shape_cast %659 : vector<8x1xi1> to vector<8x1xi1>
    %736 = vector.broadcast %735 : vector<8x1xi1> to vector<8x128xi1>
    %737 = vector.broadcast %cst_177 : f32 to vector<8x128xf32>
    %738 = arith.select %736, %731, %737 : vector<8x128xi1>, vector<8x128xf32>
    %c7_178 = arith.constant 7 : index
    %c0_179 = arith.constant 0 : index
    %c0_180 = arith.constant 0 : index
    %739 = vector.load %arg11[%c7_178, %c0_179, %c0_180] : memref<8x8x128xf32, #tpu.memory_space<vmem>>, vector<1x8x128xf32>
    %740 = vector.shape_cast %739 : vector<1x8x128xf32> to vector<8x128xf32>
    %741 = vector.shape_cast %738 : vector<8x128xf32> to vector<1x8x128xf32>
    tpu.vector_store %arg11[%c7_178, %c0_179, %c0_180], %741 {strides = array<i32>} : memref<8x8x128xf32, #tpu.memory_space<vmem>>, vector<1x8x128xf32>,
    %c7_181 = arith.constant 7 : index
    %c0_182 = arith.constant 0 : index
    %c0_183 = arith.constant 0 : index
    %742 = vector.load %arg4[%c7_181, %c0_182, %c0_183] : memref<8x8x1xf32, #tpu.memory_space<vmem>>, vector<1x8x1xf32>
    %743 = vector.shape_cast %742 : vector<1x8x1xf32> to vector<8x1xf32>
    %744 = vector.broadcast %743 : vector<8x1xf32> to vector<8x128xf32>
    %745 = arith.mulf %744, %738 : vector<8x128xf32>
    %746 = arith.addf %655, %745 : vector<8x128xf32>
    %c0_184 = arith.constant 0 : index
    %c0_185 = arith.constant 0 : index
    %747 = vector.load %arg15[%c0_184, %c0_185] : memref<8x128xf32, #tpu.memory_space<vmem>>, vector<8x128xf32>
    tpu.vector_store %arg15[%c0_184, %c0_185], %694 {strides = array<i32>} : memref<8x128xf32, #tpu.memory_space<vmem>>, vector<8x128xf32>,
    %c0_186 = arith.constant 0 : index
    %c0_187 = arith.constant 0 : index
    %748 = vector.load %arg16[%c0_186, %c0_187] : memref<8x128xf32, #tpu.memory_space<vmem>>, vector<8x128xf32>
    tpu.vector_store %arg16[%c0_186, %c0_187], %697 {strides = array<i32>} : memref<8x128xf32, #tpu.memory_space<vmem>>, vector<8x128xf32>,
    %c0_188 = arith.constant 0 : index
    %c0_189 = arith.constant 0 : index
    %749 = vector.load %arg17[%c0_188, %c0_189] : memref<8x128xf32, #tpu.memory_space<vmem>>, vector<8x128xf32>
    tpu.vector_store %arg17[%c0_188, %c0_189], %731 {strides = array<i32>} : memref<8x128xf32, #tpu.memory_space<vmem>>, vector<8x128xf32>,
    %c0_190 = arith.constant 0 : index
    %c0_191 = arith.constant 0 : index
    %750 = vector.load %arg18[%c0_190, %c0_191] : memref<8x128xf32, #tpu.memory_space<vmem>>, vector<8x128xf32>
    tpu.vector_store %arg18[%c0_190, %c0_191], %734 {strides = array<i32>} : memref<8x128xf32, #tpu.memory_space<vmem>>, vector<8x128xf32>,
    %c0_192 = arith.constant 0 : index
    %c0_193 = arith.constant 0 : index
    %751 = vector.load %arg19[%c0_192, %c0_193] : memref<8x128xf32, #tpu.memory_space<vmem>>, vector<8x128xf32>
    tpu.vector_store %arg19[%c0_192, %c0_193], %746 {strides = array<i32>} : memref<8x128xf32, #tpu.memory_space<vmem>>, vector<8x128xf32>,
    %c0_i32_194 = arith.constant 0 : i32
    %752 = arith.cmpi eq, %arg1, %c0_i32_194 : i32
    %753 = arith.extui %752 : i1 to i32
    %c0_i32_195 = arith.constant 0 : i32
    %754 = arith.cmpi ne, %753, %c0_i32_195 : i32
    scf.if %754 {
      %c0_196 = arith.constant 0 : index
      %c0_197 = arith.constant 0 : index
      %755 = vector.load %arg12[%c0_196, %c0_197] : memref<8x128xf32, #tpu.memory_space<vmem>>, vector<8x128xf32>
      tpu.vector_store %arg12[%c0_196, %c0_197], %746 {strides = array<i32>} : memref<8x128xf32, #tpu.memory_space<vmem>>, vector<8x128xf32>,
      %c0_198 = arith.constant 0 : index
      %c0_199 = arith.constant 0 : index
      %c0_200 = arith.constant 0 : index
      %756 = vector.load %arg13[%c0_198, %c0_199, %c0_200] : memref<2x8x128xf32, #tpu.memory_space<vmem>>, vector<1x8x128xf32>
      %757 = vector.shape_cast %756 : vector<1x8x128xf32> to vector<8x128xf32>
      %758 = vector.shape_cast %694 : vector<8x128xf32> to vector<1x8x128xf32>
      tpu.vector_store %arg13[%c0_198, %c0_199, %c0_200], %758 {strides = array<i32>} : memref<2x8x128xf32, #tpu.memory_space<vmem>>, vector<1x8x128xf32>,
      %c1_201 = arith.constant 1 : index
      %c0_202 = arith.constant 0 : index
      %c0_203 = arith.constant 0 : index
      %759 = vector.load %arg13[%c1_201, %c0_202, %c0_203] : memref<2x8x128xf32, #tpu.memory_space<vmem>>, vector<1x8x128xf32>
      %760 = vector.shape_cast %759 : vector<1x8x128xf32> to vector<8x128xf32>
      %761 = vector.shape_cast %731 : vector<8x128xf32> to vector<1x8x128xf32>
      tpu.vector_store %arg13[%c1_201, %c0_202, %c0_203], %761 {strides = array<i32>} : memref<2x8x128xf32, #tpu.memory_space<vmem>>, vector<1x8x128xf32>,
      %c0_204 = arith.constant 0 : index
      %c0_205 = arith.constant 0 : index
      %c0_206 = arith.constant 0 : index
      %762 = vector.load %arg14[%c0_204, %c0_205, %c0_206] : memref<2x8x128xf32, #tpu.memory_space<vmem>>, vector<1x8x128xf32>
      %763 = vector.shape_cast %762 : vector<1x8x128xf32> to vector<8x128xf32>
      %764 = vector.shape_cast %697 : vector<8x128xf32> to vector<1x8x128xf32>
      tpu.vector_store %arg14[%c0_204, %c0_205, %c0_206], %764 {strides = array<i32>} : memref<2x8x128xf32, #tpu.memory_space<vmem>>, vector<1x8x128xf32>,
      %c1_207 = arith.constant 1 : index
      %c0_208 = arith.constant 0 : index
      %c0_209 = arith.constant 0 : index
      %765 = vector.load %arg14[%c1_207, %c0_208, %c0_209] : memref<2x8x128xf32, #tpu.memory_space<vmem>>, vector<1x8x128xf32>
      %766 = vector.shape_cast %765 : vector<1x8x128xf32> to vector<8x128xf32>
      %767 = vector.shape_cast %734 : vector<8x128xf32> to vector<1x8x128xf32>
      tpu.vector_store %arg14[%c1_207, %c0_208, %c0_209], %767 {strides = array<i32>} : memref<2x8x128xf32, #tpu.memory_space<vmem>>, vector<1x8x128xf32>,
    } else {
    }
    return
  }
  func.func @transform_0(%arg0: i32, %arg1: i32) -> (i32, i32) {
    %c0_i32 = arith.constant 0 : i32
    %c0_i32_0 = arith.constant 0 : i32
    return %arg0, %c0_i32 : i32, i32
  }
  func.func @transform_1(%arg0: i32, %arg1: i32) -> (i32, i32, i32) {
    %c0_i32 = arith.constant 0 : i32
    %c0_i32_0 = arith.constant 0 : i32
    return %arg1, %arg0, %c0_i32 : i32, i32, i32
  }
  func.func @transform_2(%arg0: i32, %arg1: i32) -> (i32, i32, i32) {
    %c0_i32 = arith.constant 0 : i32
    %c0_i32_0 = arith.constant 0 : i32
    return %arg1, %arg0, %c0_i32 : i32, i32, i32
  }
  func.func @transform_3(%arg0: i32, %arg1: i32) -> (i32, i32) {
    %c0_i32 = arith.constant 0 : i32
    %c0_i32_0 = arith.constant 0 : i32
    %c0_i32_1 = arith.constant 0 : i32
    return %c0_i32, %c0_i32_0 : i32, i32
  }
  func.func @transform_4(%arg0: i32, %arg1: i32) -> (i32, i32) {
    %c0_i32 = arith.constant 0 : i32
    %c0_i32_0 = arith.constant 0 : i32
    %c0_i32_1 = arith.constant 0 : i32
    return %c0_i32, %c0_i32_0 : i32, i32
  }
  func.func @transform_5(%arg0: i32, %arg1: i32) -> (i32, i32) {
    %c0_i32 = arith.constant 0 : i32
    %c0_i32_0 = arith.constant 0 : i32
    %c0_i32_1 = arith.constant 0 : i32
    return %c0_i32, %c0_i32_0 : i32, i32
  }
  func.func @transform_6(%arg0: i32, %arg1: i32) -> (i32, i32) {
    %c0_i32 = arith.constant 0 : i32
    %c0_i32_0 = arith.constant 0 : i32
    %c0_i32_1 = arith.constant 0 : i32
    return %c0_i32, %c0_i32_0 : i32, i32
  }
  func.func @transform_7(%arg0: i32, %arg1: i32) -> (i32, i32) {
    %c0_i32 = arith.constant 0 : i32
    %c0_i32_0 = arith.constant 0 : i32
    %c0_i32_1 = arith.constant 0 : i32
    return %c0_i32, %c0_i32_0 : i32, i32
  }
  func.func @transform_8(%arg0: i32, %arg1: i32) -> (i32, i32) {
    %c0_i32 = arith.constant 0 : i32
    %c0_i32_0 = arith.constant 0 : i32
    %c0_i32_1 = arith.constant 0 : i32
    return %c0_i32, %c0_i32_0 : i32, i32
  }
  func.func @transform_9(%arg0: i32, %arg1: i32) -> (i32, i32, i32) {
    %c0_i32 = arith.constant 0 : i32
    %c0_i32_0 = arith.constant 0 : i32
    return %arg1, %arg0, %c0_i32 : i32, i32, i32
  }
  func.func @transform_10(%arg0: i32, %arg1: i32) -> (i32, i32) {
    %c0_i32 = arith.constant 0 : i32
    %c0_i32_0 = arith.constant 0 : i32
    return %arg0, %c0_i32 : i32, i32
  }
  func.func @transform_11(%arg0: i32, %arg1: i32) -> (i32, i32, i32) {
    %c0_i32 = arith.constant 0 : i32
    %c0_i32_0 = arith.constant 0 : i32
    %c0_i32_1 = arith.constant 0 : i32
    return %c0_i32, %arg0, %c0_i32_0 : i32, i32, i32
  }
  func.func @transform_12(%arg0: i32, %arg1: i32) -> (i32, i32, i32) {
    %c0_i32 = arith.constant 0 : i32
    %c0_i32_0 = arith.constant 0 : i32
    %c0_i32_1 = arith.constant 0 : i32
    return %c0_i32, %arg0, %c0_i32_0 : i32, i32, i32
  }
}

</mosaic_0001>

<bundles_post_ra>
// kernel: tpu_custom_call.1
= control target key start
LH: loop header
LB: loop body
LE: loop exit
PB: predicated region body
PF: predicated region fallthrough
CT: control target
= control target key end

     0   :  { %18 = vsyncpa [#allocation8], 0  ;;  %s8284_s0 = inlined_call_operand.vmem [shape: s32[8,1], index: 0, kind: input, shape index: {}]   ;;  %s8285_s1 = inlined_call_operand.vmem [shape: bf16[8,8,128], index: 1, kind: input, shape index: {}]   ;;  %s8286_s2 = inlined_call_operand.vmem [shape: f32[8,8,1], index: 2, kind: input, shape index: {}]   ;;  %s8287_s3 = inlined_call_operand.hbm [shape: bf16[128,512], index: 3, kind: input, shape index: {}]   ;;  %s8288_s4 = inlined_call_operand.hbm [shape: bf16[128,512], index: 4, kind: input, shape index: {}]   ;;  %s8289_s5 = inlined_call_operand.vmem [shape: f32[1,512], index: 5, kind: input, shape index: {}]   ;;  %s8290_s6 = inlined_call_operand.hbm [shape: bf16[128,512], index: 6, kind: input, shape index: {}]   ;;  %s8291_s7 = inlined_call_operand.hbm [shape: bf16[128,512], index: 7, kind: input, shape index: {}]   ;;  %s8292_s8 = inlined_call_operand.vmem [shape: f32[1,512], index: 8, kind: input, shape index: {}]   ;;  %s8293_s9 = inlined_call_operand.hbm [shape: f32[8,8,128], index: 9, kind: output, shape index: {0}]   ;;  %s8294_s10 = inlined_call_operand.hbm [shape: f32[8,128], index: 10, kind: output, shape index: {1}]   ;;  %s8295_s11 = inlined_call_operand.hbm [shape: f32[2,8,128], index: 11, kind: output, shape index: {2}]   ;;  %s8296_s12 = inlined_call_operand.hbm [shape: f32[2,8,128], index: 12, kind: output, shape index: {3}]  }
   0x1   :  { %19 = vsyncpa [#allocation11], 0 }
   0x2   :  { %20 = vsyncpa [#allocation14], 0 }
   0x3   :  { %21 = vsyncpa [#allocation9], 0 }
   0x4   :  { %22 = vsyncpa [#allocation17], 0 }
   0x5   :  { %23 = vsyncpa [#allocation20], 0  ;;  %s5533_s21 = smov [#allocation10]   ;;  %s5534_s23 = smov [#allocation7]  }
   0x6   :  { %s47_s22 = sshll.u32 %s5533_s21, 4  ;;  %s35_s24 = sshll.u32 %s5534_s23, 4  ;;  %s48_s22 = int_to_ptr.vmem [resolvable:$true] %s47_s22  ;;  %s36_s24 = int_to_ptr.vmem [resolvable:$true] %s35_s24 }
   0x7   :  { %s5369_s25 = scalar_lea.vmem %s48_s22, 4096  ;;  %p5374_p1 = scmp.lt.s32.totalorder %s48_s22, %s48_s22 }
   0x8   :  { %p5370_p0 = scmp.ne.s32.totalorder %s48_s22, %s5369_s25  ;;  %p5375_p2 = scmp.lt.s32.totalorder %s5369_s25, %s5369_s25 }
   0xa   :  { %p5376_p3 = por %p5375_p2, %p5374_p1 }
   0xc   :  { %p5377_p4 = pnand %p5376_p3, %p5370_p0 }
   0xe   :  { %5380 = shalt.err (!%p5377_p4)
}
   0xf   :  { %s5535_s26 = smov 256   ;;  %s5536_s27 = smov 16  }
  0x10   :  { %53 = dma.hbm_to_vmem [thread:$0]  %s8288_s4, 4096, %s48_s22, [#allocation11], %s5535_s26, %s5535_s26, %s5536_s27  }
  0x11   :  { %s5389_s30 = scalar_lea.vmem %s36_s24, 4096  ;;  %p5394_p6 = scmp.lt.s32.totalorder %s36_s24, %s36_s24 }
  0x12   :  { %p5390_p5 = scmp.ne.s32.totalorder %s36_s24, %s5389_s30  ;;  %p5395_p7 = scmp.lt.s32.totalorder %s5389_s30, %s5389_s30 }
  0x14   :  { %p5396_p8 = por %p5395_p7, %p5394_p6 }
  0x16   :  { %p5397_p9 = pnand %p5396_p8, %p5390_p5 }
  0x18   :  { %5400 = shalt.err (!%p5397_p9)
}
  0x19   :  { %41 = dma.hbm_to_vmem [thread:$0]  %s8287_s3, 4096, %s36_s24, [#allocation8], %s5535_s26, %s5535_s26, %s5536_s27  }
  0x1a   :  { %s5537_s15 = smov [#allocation12]   ;;  %s5538_s17 = smov [#allocation13]  }
  0x1b   :  { %s61_s16 = sshll.u32 %s5537_s15, 4  ;;  %s73_s18 = sshll.u32 %s5538_s17, 4  ;;  %s62_s16 = int_to_ptr.vmem [resolvable:$true] %s61_s16  ;;  %s74_s18 = int_to_ptr.vmem [resolvable:$true] %s73_s18 }
  0x1c   :  { %s5409_s4 = scalar_lea.vmem %s62_s16, 4096  ;;  %p5414_p11 = scmp.lt.s32.totalorder %s62_s16, %s62_s16 }
  0x1d   :  { %p5410_p10 = scmp.ne.s32.totalorder %s62_s16, %s5409_s4  ;;  %p5415_p12 = scmp.lt.s32.totalorder %s5409_s4, %s5409_s4 }
  0x1f   :  { %p5416_p13 = por %p5415_p12, %p5414_p11 }
  0x21   :  { %p5417_p0 = pnand %p5416_p13, %p5410_p10 }
  0x23   :  { %5420 = shalt.err (!%p5417_p0)
}
  0x24   :  { %67 = dma.hbm_to_vmem [thread:$0]  %s8290_s6, 4096, %s62_s16, [#allocation11], %s5535_s26, %s5535_s26, %s5536_s27  }
  0x25   :  { %s5429_s3 = scalar_lea.vmem %s74_s18, 4096  ;;  %p5434_p2 = scmp.lt.s32.totalorder %s74_s18, %s74_s18 }
  0x26   :  { %p5430_p1 = scmp.ne.s32.totalorder %s74_s18, %s5429_s3  ;;  %p5435_p3 = scmp.lt.s32.totalorder %s5429_s3, %s5429_s3 }
  0x28   :  { %p5436_p4 = por %p5435_p3, %p5434_p2 }
  0x2a   :  { %p5437_p5 = pnand %p5436_p4, %p5430_p1 }
  0x2c   :  { %5440 = shalt.err (!%p5437_p5)
}
  0x2d   :  { %79 = dma.hbm_to_vmem [thread:$0]  %s8291_s7, 4096, %s74_s18, [#allocation14], %s5535_s26, %s5535_s26, %s5536_s27  }
  0x2e   :  { %5521 = dma.done.wait [#allocation8], 4096  }
  0x2f   :  { %5522 = vsyncadd [#allocation8], 4294963200 }
  0x30   :  { %5523 = dma.done.wait [#allocation11], 8192  }
  0x31   :  { %5524 = vsyncadd [#allocation11], 4294959104 }
  0x32   :  { %5525 = dma.done.wait [#allocation14], 4096  }
  0x33   :  { %5526 = vsyncadd [#allocation14], 4294963200  ;;  %v8304_v0 = vmov 0   ;;  %v5640_v1 = vld [vmem:[#allocation10 + $0xe4] ss:$16 sps:$4 sm:$0xff]   ;;  %v8297_v39 = vmov 0.0|0.0  }
  0x34   :  { %479 = vmatprep.mubr.bf16.mxu0 %v8304_v0  ;;  %520 = vmatprep.mubr.bf16.mxu1 %v8304_v0  ;;  %v5642_v2 = vld [vmem:[#allocation10 + $0xec] ss:$16 sps:$4 sm:$0xff]   ;;  %v5645_v3 = vld [vmem:[#allocation10 + $0xe0] ss:$16 sps:$4 sm:$0xff]   ;;  %v5647_v4 = vld [vmem:[#allocation10 + $0xe8] ss:$16 sps:$4 sm:$0xff]  }
  0x35   :  { %4525 = vset.pattern.permute.xlu0 %v8304_v0  ;;  %4526 = vset.pattern.permute.xlu1 %v8304_v0  ;;  %v5650_v5 = vld [vmem:[#allocation10 + $0xc4] ss:$16 sps:$4 sm:$0xff]   ;;  %v5654_v6 = vld [vmem:[#allocation10 + $0xcc] ss:$16 sps:$4 sm:$0xff]   ;;  %v5656_v7 = vld [vmem:[#allocation10 + $0xc0] ss:$16 sps:$4 sm:$0xff]  }
  0x36   :  { %447 = vmatprep.subr.bf16.mxu0 %v5640_v1  ;;  %488 = vmatprep.subr.bf16.mxu1 %v5642_v2  ;;  %v5659_v8 = vld [vmem:[#allocation10 + $0xc8] ss:$16 sps:$4 sm:$0xff]   ;;  %v5662_v9 = vld [vmem:[#allocation10 + $0xa4] ss:$16 sps:$4 sm:$0xff]   ;;  %v5664_v10 = vld [vmem:[#allocation10 + $0xac] ss:$16 sps:$4 sm:$0xff]  }
  0x37   :  { %448 = vmatpush1.bf16.msra.mxu0 %v5645_v3  ;;  %489 = vmatpush1.bf16.msra.mxu1 %v5647_v4  ;;  %v5666_v11 = vld [vmem:[#allocation10 + $0xa0] ss:$16 sps:$4 sm:$0xff]   ;;  %v5668_v12 = vld [vmem:[#allocation10 + $0xa8] ss:$16 sps:$4 sm:$0xff]   ;;  %v5672_v13 = vld [vmem:[#allocation10 + $0x84] ss:$16 sps:$4 sm:$0xff]  }
  0x38   :  { %449 = vmatprep.subr.bf16.mxu0 %v5650_v5  ;;  %490 = vmatprep.subr.bf16.mxu1 %v5654_v6  ;;  %v5676_v14 = vld [vmem:[#allocation10 + $0x8c] ss:$16 sps:$4 sm:$0xff]   ;;  %v5678_v15 = vld [vmem:[#allocation10 + $0x80] ss:$16 sps:$4 sm:$0xff]   ;;  %v5682_v16 = vld [vmem:[#allocation10 + $0x88] ss:$16 sps:$4 sm:$0xff]  }
  0x39   :  { %v5684_v17 = vld [vmem:[#allocation10 + $0x64] ss:$16 sps:$4 sm:$0xff]   ;;  %v5688_v18 = vld [vmem:[#allocation10 + $0x6c] ss:$16 sps:$4 sm:$0xff]   ;;  %v5690_v19 = vld [vmem:[#allocation10 + $0x60] ss:$16 sps:$4 sm:$0xff]  }
  0x3a   :  { %v5692_v20 = vld [vmem:[#allocation10 + $0x68] ss:$16 sps:$4 sm:$0xff]   ;;  %v5696_v21 = vld [vmem:[#allocation10 + $0x44] ss:$16 sps:$4 sm:$0xff]   ;;  %v5700_v22 = vld [vmem:[#allocation10 + $0x4c] ss:$16 sps:$4 sm:$0xff]  }
  0x3b   :  { %450 = vmatpush1.bf16.msra.mxu0 %v5656_v7  ;;  %491 = vmatpush1.bf16.msra.mxu1 %v5659_v8  ;;  %v5702_v23 = vld [vmem:[#allocation10 + $0x40] ss:$16 sps:$4 sm:$0xff]   ;;  %v5706_v24 = vld [vmem:[#allocation10 + $0x48] ss:$16 sps:$4 sm:$0xff]   ;;  %v5708_v25 = vld [vmem:[#allocation10 + $0x24] ss:$16 sps:$4 sm:$0xff]  }
  0x3c   :  { %451 = vmatprep.subr.bf16.mxu0 %v5662_v9  ;;  %492 = vmatprep.subr.bf16.mxu1 %v5664_v10  ;;  %v5712_v26 = vld [vmem:[#allocation10 + $0x2c] ss:$16 sps:$4 sm:$0xff]   ;;  %v5714_v27 = vld [vmem:[#allocation10 + $0x20] ss:$16 sps:$4 sm:$0xff]   ;;  %v5716_v28 = vld [vmem:[#allocation10 + $0x28] ss:$16 sps:$4 sm:$0xff]  }
  0x3d   :  { %v5720_v29 = vld [vmem:[#allocation10 + $0x4] ss:$16 sps:$4 sm:$0xff]   ;;  %v5724_v30 = vld [vmem:[#allocation10 + $0xc] ss:$16 sps:$4 sm:$0xff]   ;;  %v5726_v31 = vld [vmem:[#allocation10] ss:$16 sps:$4 sm:$0xff]  }
  0x3e   :  { %v5730_v32 = vld [vmem:[#allocation10 + $0x8] ss:$16 sps:$4 sm:$0xff]   ;;  %v5732_v33 = vld [vmem:[#allocation7 + $0xe4] ss:$16 sps:$4 sm:$0xff]   ;;  %v5736_v34 = vld [vmem:[#allocation7 + $0xec] ss:$16 sps:$4 sm:$0xff]  }
  0x3f   :  { %452 = vmatpush1.bf16.msra.mxu0 %v5666_v11  ;;  %493 = vmatpush1.bf16.msra.mxu1 %v5668_v12  ;;  %v5738_v35 = vld [vmem:[#allocation7 + $0xe0] ss:$16 sps:$4 sm:$0xff]   ;;  %v5740_v36 = vld [vmem:[#allocation7 + $0xe8] ss:$16 sps:$4 sm:$0xff]   ;;  %v5744_v37 = vld [vmem:[#allocation7 + $0xc4] ss:$16 sps:$4 sm:$0xff]  }
  0x40   :  { %453 = vmatprep.subr.bf16.mxu0 %v5672_v13  ;;  %494 = vmatprep.subr.bf16.mxu1 %v5676_v14  ;;  %v5748_v38 = vld [vmem:[#allocation7 + $0xcc] ss:$16 sps:$4 sm:$0xff]   ;;  %v5752_v40 = vld [vmem:[#allocation7 + $0xc0] ss:$16 sps:$4 sm:$0xff]   ;;  %v5756_v41 = vld [vmem:[#allocation7 + $0xc8] ss:$16 sps:$4 sm:$0xff]  }
  0x41   :  { %v5758_v42 = vld [vmem:[#allocation7 + $0xa4] ss:$16 sps:$4 sm:$0xff]   ;;  %v5762_v43 = vld [vmem:[#allocation7 + $0xac] ss:$16 sps:$4 sm:$0xff]   ;;  %v5766_v44 = vld [vmem:[#allocation7 + $0xa0] ss:$16 sps:$4 sm:$0xff]  }
  0x42   :  { %8664 = vst [vmem:[#allocation27_spill] sm:$0xff] %v5766_v44  ;;  %v5768_v45 = vld [vmem:[#allocation7 + $0xa8] ss:$16 sps:$4 sm:$0xff]   ;;  %v5772_v46 = vld [vmem:[#allocation7 + $0x84] ss:$16 sps:$4 sm:$0xff]  }
  0x43   :  { %454 = vmatpush1.bf16.msra.mxu0 %v5678_v15  ;;  %495 = vmatpush1.bf16.msra.mxu1 %v5682_v16  ;;  %8665 = vst [vmem:[#allocation28_spill] sm:$0xff] %v5768_v45  ;;  %8666 = vst [vmem:[#allocation29_spill] sm:$0xff] %v5772_v46  ;;  %v5776_v47 = vld [vmem:[#allocation7 + $0x8c] ss:$16 sps:$4 sm:$0xff]   ;;  %v5778_v48 = vld [vmem:[#allocation7 + $0x80] ss:$16 sps:$4 sm:$0xff]  }
  0x44   :  { %455 = vmatprep.subr.bf16.mxu0 %v5684_v17  ;;  %496 = vmatprep.subr.bf16.mxu1 %v5688_v18  ;;  %8667 = vst [vmem:[#allocation30_spill] sm:$0xff] %v5776_v47  ;;  %8668 = vst [vmem:[#allocation31_spill] sm:$0xff] %v5778_v48  ;;  %v5783_v49 = vld [vmem:[%s8284_s0] sm:$0xff]  ;;  %v5787_v50 = vld [vmem:[#allocation7 + $0x88] ss:$16 sps:$4 sm:$0xff]  }
  0x45   :  { %8669 = vst [vmem:[#allocation32_spill] sm:$0xff] %v5783_v49  ;;  %8670 = vst [vmem:[#allocation33_spill] sm:$0xff] %v5787_v50  ;;  %v5789_v51 = vld [vmem:[#allocation7 + $0x64] ss:$16 sps:$4 sm:$0xff]   ;;  %vm4295_vm0 = vcmp.gt.s32.totalorder %v5783_v49, 0  ;;  %vm4430_vm1 = vcmp.gt.s32.totalorder %v5783_v49, 1 }
  0x46   :  { %8671 = vst [vmem:[#allocation34_spill] sm:$0xff] %v5789_v51  ;;  %v5795_v52 = vld [vmem:[#allocation7 + $0x6c] ss:$16 sps:$4 sm:$0xff]   ;;  %v799_v53 = vsel %vm4295_vm0, 1, %v8304_v0  ;;  %v5798_v54 = vld [vmem:[#allocation7 + $0x60] ss:$16 sps:$4 sm:$0xff]  }
  0x47   :  { %456 = vmatpush1.bf16.msra.mxu0 %v5690_v19  ;;  %497 = vmatpush1.bf16.msra.mxu1 %v5692_v20  ;;  %8672 = vst [vmem:[#allocation35_spill] sm:$0xff] %v5795_v52  ;;  %8673 = vst [vmem:[#allocation36_spill] sm:$0xff] %v5798_v54  ;;  %v5800_v55 = vld [vmem:[#allocation7 + $0x68] ss:$16 sps:$4 sm:$0xff]   ;;  %v5802_v56 = vld [vmem:[#allocation7 + $0x44] ss:$16 sps:$4 sm:$0xff]  }
  0x48   :  { %457 = vmatprep.subr.bf16.mxu0 %v5696_v21  ;;  %498 = vmatprep.subr.bf16.mxu1 %v5700_v22  ;;  %8674 = vst [vmem:[#allocation37_spill] sm:$0xff] %v5800_v55  ;;  %8675 = vst [vmem:[#allocation38_spill] sm:$0xff] %v5802_v56  ;;  %v5804_v57 = vld [vmem:[#allocation7 + $0x4c] ss:$16 sps:$4 sm:$0xff]   ;;  %v1529_v58 = vsel %vm4430_vm1, 1, %v8304_v0  ;;  %vm4457_vm2 = vcmp.gt.s32.totalorder %v5783_v49, 4 }
  0x49   :  { %801 = vperm.xlu0 %4525, %v799_v53   ;;  %8676 = vst [vmem:[#allocation39_spill] sm:$0xff] %v5804_v57  ;;  %v5812_v59 = vld [vmem:[#allocation7 + $0x40] ss:$16 sps:$4 sm:$0xff]   ;;  %v5814_v60 = vld [vmem:[#allocation7 + $0x48] ss:$16 sps:$4 sm:$0xff]   ;;  %v2765_v63 = vsel %vm4457_vm2, 1, %v8304_v0 }
  0x4a   :  { %8677 = vst [vmem:[#allocation40_spill] sm:$0xff] %v5812_v59  ;;  %8678 = vst [vmem:[#allocation41_spill] sm:$0xff] %v5814_v60  ;;  %v5816_v61 = vld [vmem:[#allocation7 + $0x24] ss:$16 sps:$4 sm:$0xff]   ;;  %v5818_v62 = vld [vmem:[#allocation7 + $0x2c] ss:$16 sps:$4 sm:$0xff]  }
  0x4b   :  { %458 = vmatpush1.bf16.msra.mxu0 %v5702_v23  ;;  %499 = vmatpush1.bf16.msra.mxu1 %v5706_v24  ;;  %8679 = vst [vmem:[#allocation42_spill] sm:$0xff] %v5816_v61  ;;  %8680 = vst [vmem:[#allocation43_spill] sm:$0xff] %v5818_v62  ;;  %vm4475_vm3 = vcmp.gt.s32.totalorder %v5783_v49, 6  ;;  %v5826_v53 = vld [vmem:[#allocation7 + $0x20] ss:$16 sps:$4 sm:$0xff]  }
  0x4c   :  { %459 = vmatprep.subr.bf16.mxu0 %v5708_v25  ;;  %500 = vmatprep.subr.bf16.mxu1 %v5712_v26  ;;  %8681 = vst [vmem:[#allocation44_spill] sm:$0xff] %v5826_v53  ;;  %v1324_v49 = vld [vmem:[%s8286_s2] sm:$0xff] }
  0x4d   :  { %1531 = vperm.xlu0 %4525, %v1529_v58   ;;  %v5830_v58 = vld [vmem:[#allocation7 + $0x4] ss:$16 sps:$4 sm:$0xff]  }
  0x4e   :  { %8683 = vst [vmem:[#allocation46_spill] sm:$0xff] %v5830_v58 }
  0x4f   :  { %460 = vmatpush1.bf16.msra.mxu0 %v5714_v27  ;;  %501 = vmatpush1.bf16.msra.mxu1 %v5716_v28 }
  0x50   :  { %461 = vmatprep.subr.bf16.mxu0 %v5720_v29  ;;  %502 = vmatprep.subr.bf16.mxu1 %v5724_v30 }
  0x51   :  { %2767 = vperm.xlu0 %4525, %v2765_v63   ;;  %v5844_v63 = vld [vmem:[#allocation7 + $0x8] ss:$16 sps:$4 sm:$0xff]  }
  0x52   :  { %8686 = vst [vmem:[#allocation49_spill] sm:$0xff] %v5844_v63 }
  0x53   :  { %462 = vmatpush1.bf16.msra.mxu0 %v5726_v31  ;;  %503 = vmatpush1.bf16.msra.mxu1 %v5730_v32 }
  0x54   :  { %689 = vmatprep.subr.bf16.mxu0 %v5732_v33  ;;  %730 = vmatprep.subr.bf16.mxu1 %v5736_v34 }
  0x56   :  { %480 = vmatmul.mubr.bf16.vlgmr.msra.gmra.mxu0 %v8297_v39  ;;  %521 = vmatmul.mubr.bf16.vlgmr.msra.gmra.mxu1 %v8297_v39  ;;  %v5828_v39 = vld [vmem:[#allocation7 + $0x28] ss:$16 sps:$4 sm:$0xff]  }
  0x57   :  { %690 = vmatpush1.bf16.msra.mxu0 %v5738_v35  ;;  %731 = vmatpush1.bf16.msra.mxu1 %v5740_v36  ;;  %8682 = vst [vmem:[#allocation45_spill] sm:$0xff] %v5828_v39 }
  0x58   :  { %691 = vmatprep.subr.bf16.mxu0 %v5744_v37  ;;  %732 = vmatprep.subr.bf16.mxu1 %v5748_v38 }
  0x59   :  { %721 = vmatprep.mubr.bf16.mxu0 %v8304_v0  ;;  %762 = vmatprep.mubr.bf16.mxu1 %v8304_v0 }
  0x5b   :  { %692 = vmatpush1.bf16.msra.mxu0 %v5752_v40  ;;  %733 = vmatpush1.bf16.msra.mxu1 %v5756_v41 }
  0x5c   :  { %693 = vmatprep.subr.bf16.mxu0 %v5758_v42  ;;  %734 = vmatprep.subr.bf16.mxu1 %v5762_v43 }
  0x5f   :  { %694 = vmatpush1.bf16.msra.mxu0 %v5766_v44  ;;  %735 = vmatpush1.bf16.msra.mxu1 %v5768_v45 }
  0x60   :  { %695 = vmatprep.subr.bf16.mxu0 %v5772_v46  ;;  %736 = vmatprep.subr.bf16.mxu1 %v5776_v47 }
  0x63   :  { %696 = vmatpush1.bf16.msra.mxu0 %v5778_v48  ;;  %737 = vmatpush1.bf16.msra.mxu1 %v5787_v50 }
  0x64   :  { %697 = vmatprep.subr.bf16.mxu0 %v5789_v51  ;;  %738 = vmatprep.subr.bf16.mxu1 %v5795_v52  ;;  %v5832_v52 = vld [vmem:[#allocation7 + $0xc] ss:$16 sps:$4 sm:$0xff]   ;;  %v3589_v51 = vsel %vm4475_vm3, 1, %v8304_v0  ;;  %v4447_v0 = vld [vmem:[%s8286_s2 + $0x10] sm:$0xff] }
  0x65   :  { %8684 = vst [vmem:[#allocation47_spill] sm:$0xff] %v5832_v52  ;;  %3591 = vperm.xlu0 %4525, %v3589_v51   ;;  %v4465_v51 = vld [vmem:[%s8286_s2 + $0x20] sm:$0xff] }
  0x67   :  { %698 = vmatpush1.bf16.msra.mxu0 %v5798_v54  ;;  %739 = vmatpush1.bf16.msra.mxu1 %v5800_v55 }
  0x68   :  { %699 = vmatprep.subr.bf16.mxu0 %v5802_v56  ;;  %740 = vmatprep.subr.bf16.mxu1 %v5804_v57  ;;  %v5842_v57 = vld [vmem:[#allocation7] ss:$16 sps:$4 sm:$0xff]   ;;  %v235_v56 = vlaneseq }
  0x69   :  { %8685 = vst [vmem:[#allocation48_spill] sm:$0xff] %v5842_v57  ;;  %1327 = vperm.xlu0 %4525, %v1324_v49   ;;  %v4483_v49 = vld [vmem:[%s8286_s2 + $0x30] sm:$0xff] }
  0x6b   :  { %700 = vmatpush1.bf16.msra.mxu0 %v5812_v59  ;;  %741 = vmatpush1.bf16.msra.mxu1 %v5814_v60 }
  0x6c   :  { %701 = vmatprep.subr.bf16.mxu0 %v5816_v61  ;;  %742 = vmatprep.subr.bf16.mxu1 %v5818_v62  ;;  %v285_v62 = vld [vmem:[%s8285_s1] sm:$0xf] }
  0x6d   :  { %2151 = vperm.xlu0 %4525, %v4447_v0   ;;  %v5870_v0 = vld [vmem:[#allocation13 + $0xc4] ss:$16 sps:$4 sm:$0xff]  }
  0x6e   :  { %8690 = vst [vmem:[#allocation52_spill] sm:$0xff] %v5870_v0 }
  0x6f   :  { %702 = vmatpush1.bf16.msra.mxu0 %v5826_v53  ;;  %743 = vmatpush1.bf16.msra.mxu1 %v5828_v39  ;;  %v5887_v39 = vld [vmem:[#allocation13 + $0xa0] ss:$16 sps:$4 sm:$0xff]   ;;  %v5889_v53 = vld [vmem:[#allocation13 + $0xcc] ss:$16 sps:$4 sm:$0xff]  }
  0x70   :  { %703 = vmatprep.subr.bf16.mxu0 %v5830_v58  ;;  %744 = vmatprep.subr.bf16.mxu1 %v5832_v52  ;;  %v8687_v52 = vmov 0   ;;  %v5874_v58 = vld [vmem:[#allocation13 + $0xe8] ss:$16 sps:$4 sm:$0xff]   ;;  %8695 = vst [vmem:[#allocation57_spill] sm:$0xff] %v5887_v39  ;;  %8696 = vst [vmem:[#allocation58_spill] sm:$0xff] %v5889_v53 }
  0x71   :  { %2975 = vperm.xlu0 %4525, %v4465_v51   ;;  %8692 = vst [vmem:[#allocation54_spill] sm:$0xff] %v5874_v58  ;;  %v5878_v51 = vld [vmem:[#allocation13 + $0xc0] ss:$16 sps:$4 sm:$0xff]  }
  0x72   :  { %8693 = vst [vmem:[#allocation55_spill] sm:$0xff] %v5878_v51 }
  0x73   :  { %704 = vmatpush1.bf16.msra.mxu0 %v5842_v57  ;;  %745 = vmatpush1.bf16.msra.mxu1 %v5844_v63  ;;  %v5866_v57 = vld [vmem:[#allocation13 + $0xe4] ss:$16 sps:$4 sm:$0xff]   ;;  %v5868_v63 = vld [vmem:[#allocation13 + $0xe0] ss:$16 sps:$4 sm:$0xff]  }
  0x74   :  { %8688 = vst [vmem:[#allocation50_spill] sm:$0xff] %v5866_v57  ;;  %8689 = vst [vmem:[#allocation51_spill] sm:$0xff] %v5868_v63  ;;  %968 = vmatprep.subr.bf16.mxu0 %v5866_v57  ;;  %v5891_v57 = vld [vmem:[#allocation13 + $0xc8] ss:$16 sps:$4 sm:$0xff]  }
  0x75   :  { %3799 = vperm.xlu0 %4525, %v4483_v49   ;;  %v5883_v49 = vld [vmem:[#allocation13 + $0xa4] ss:$16 sps:$4 sm:$0xff]   ;;  %8697 = vst [vmem:[#allocation59_spill] sm:$0xff] %v5891_v57 }
  0x76   :  { %722 = vmatmul.mubr.bf16.vlgmr.msra.gmra.mxu0 %v285_v62  ;;  %763 = vmatmul.mubr.bf16.vlgmr.msra.gmra.mxu1 %v285_v62  ;;  %v5872_v62 = vld [vmem:[#allocation13 + $0xec] ss:$16 sps:$4 sm:$0xff]   ;;  %8694 = vst [vmem:[#allocation56_spill] sm:$0xff] %v5883_v49 }
  0x77   :  { %1000 = vmatprep.mubr.bf16.mxu0 %v8687_v52  ;;  %1041 = vmatprep.mubr.bf16.mxu1 %v8687_v52  ;;  %8691 = vst [vmem:[#allocation53_spill] sm:$0xff] %v5872_v62 }
  0x78   :  { %969 = vmatpush1.bf16.msra.mxu0 %v5868_v63  ;;  %1009 = vmatprep.subr.bf16.mxu1 %v5872_v62  ;;  %v5900_v63 = vld [vmem:[#allocation13 + $0xac] ss:$16 sps:$4 sm:$0xff]   ;;  %v5984_v62 = vld [vmem:[#allocation12 + $0xc8] ss:$16 sps:$4 sm:$0xff]  }
  0x79   :  { %970 = vmatprep.subr.bf16.mxu0 %v5870_v0  ;;  %1010 = vmatpush1.bf16.msra.mxu1 %v5874_v58  ;;  %v5896_v0 = vld [vmem:[#allocation13 + $0x84] ss:$16 sps:$4 sm:$0xff]   ;;  %v5898_v58 = vld [vmem:[#allocation13 + $0x80] ss:$16 sps:$4 sm:$0xff]   ;;  %8700 = vst [vmem:[#allocation62_spill] sm:$0xff] %v5900_v63  ;;  %8728 = vst [vmem:[#allocation89_spill] sm:$0xff] %v5984_v62 }
  0x7a   :  { %1011 = vmatprep.subr.bf16.mxu1 %v5889_v53  ;;  %8698 = vst [vmem:[#allocation60_spill] sm:$0xff] %v5896_v0  ;;  %8699 = vst [vmem:[#allocation61_spill] sm:$0xff] %v5898_v58  ;;  %v5915_v53 = vld [vmem:[#allocation13 + $0x88] ss:$16 sps:$4 sm:$0xff]  }
  0x7b   :  { %8705 = vst [vmem:[#allocation67_spill] sm:$0xff] %v5915_v53 }
  0x7c   :  { %971 = vmatpush1.bf16.msra.mxu0 %v5878_v51  ;;  %v5910_v51 = vld [vmem:[#allocation13 + $0x60] ss:$16 sps:$4 sm:$0xff]  }
  0x7d   :  { %972 = vmatprep.subr.bf16.mxu0 %v5883_v49  ;;  %1012 = vmatpush1.bf16.msra.mxu1 %v5891_v57  ;;  %v5903_v49 = vld [vmem:[#allocation13 + $0xa8] ss:$16 sps:$4 sm:$0xff]   ;;  %8703 = vst [vmem:[#allocation65_spill] sm:$0xff] %v5910_v51  ;;  %v5912_v57 = vld [vmem:[#allocation13 + $0x8c] ss:$16 sps:$4 sm:$0xff]  }
  0x7e   :  { %8701 = vst [vmem:[#allocation63_spill] sm:$0xff] %v5903_v49  ;;  %1013 = vmatprep.subr.bf16.mxu1 %v5900_v63  ;;  %8704 = vst [vmem:[#allocation66_spill] sm:$0xff] %v5912_v57  ;;  %v5927_v63 = vld [vmem:[#allocation13 + $0x68] ss:$16 sps:$4 sm:$0xff]  }
  0x7f   :  { %8709 = vst [vmem:[#allocation71_spill] sm:$0xff] %v5927_v63 }
  0x80   :  { %973 = vmatpush1.bf16.msra.mxu0 %v5887_v39  ;;  %v5908_v39 = vld [vmem:[#allocation13 + $0x64] ss:$16 sps:$4 sm:$0xff]  }
  0x81   :  { %974 = vmatprep.subr.bf16.mxu0 %v5896_v0  ;;  %1014 = vmatpush1.bf16.msra.mxu1 %v5903_v49  ;;  %8702 = vst [vmem:[#allocation64_spill] sm:$0xff] %v5908_v39  ;;  %v5922_v0 = vld [vmem:[#allocation13 + $0x40] ss:$16 sps:$4 sm:$0xff]   ;;  %v5924_v49 = vld [vmem:[#allocation13 + $0x6c] ss:$16 sps:$4 sm:$0xff]  }
  0x82   :  { %1015 = vmatprep.subr.bf16.mxu1 %v5912_v57  ;;  %8707 = vst [vmem:[#allocation69_spill] sm:$0xff] %v5922_v0  ;;  %8708 = vst [vmem:[#allocation70_spill] sm:$0xff] %v5924_v49  ;;  %v5939_v57 = vld [vmem:[#allocation13 + $0x48] ss:$16 sps:$4 sm:$0xff]  }
  0x83   :  { %8713 = vst [vmem:[#allocation75_spill] sm:$0xff] %v5939_v57 }
  0x84   :  { %975 = vmatpush1.bf16.msra.mxu0 %v5898_v58  ;;  %v5920_v58 = vld [vmem:[#allocation13 + $0x44] ss:$16 sps:$4 sm:$0xff]  }
  0x85   :  { %976 = vmatprep.subr.bf16.mxu0 %v5908_v39  ;;  %1016 = vmatpush1.bf16.msra.mxu1 %v5915_v53  ;;  %8706 = vst [vmem:[#allocation68_spill] sm:$0xff] %v5920_v58  ;;  %v5934_v39 = vld [vmem:[#allocation13 + $0x20] ss:$16 sps:$4 sm:$0xff]   ;;  %v5936_v53 = vld [vmem:[#allocation13 + $0x4c] ss:$16 sps:$4 sm:$0xff]  }
  0x86   :  { %1017 = vmatprep.subr.bf16.mxu1 %v5924_v49  ;;  %8711 = vst [vmem:[#allocation73_spill] sm:$0xff] %v5934_v39  ;;  %8712 = vst [vmem:[#allocation74_spill] sm:$0xff] %v5936_v53  ;;  %v5951_v49 = vld [vmem:[#allocation13 + $0x28] ss:$16 sps:$4 sm:$0xff]  }
  0x87   :  { %8717 = vst [vmem:[#allocation79_spill] sm:$0xff] %v5951_v49 }
  0x88   :  { %977 = vmatpush1.bf16.msra.mxu0 %v5910_v51  ;;  %v5932_v51 = vld [vmem:[#allocation13 + $0x24] ss:$16 sps:$4 sm:$0xff]  }
  0x89   :  { %978 = vmatprep.subr.bf16.mxu0 %v5920_v58  ;;  %1018 = vmatpush1.bf16.msra.mxu1 %v5927_v63  ;;  %8710 = vst [vmem:[#allocation72_spill] sm:$0xff] %v5932_v51  ;;  %v5946_v58 = vld [vmem:[#allocation13] ss:$16 sps:$4 sm:$0xff]   ;;  %v5948_v63 = vld [vmem:[#allocation13 + $0x2c] ss:$16 sps:$4 sm:$0xff]  }
  0x8a   :  { %1019 = vmatprep.subr.bf16.mxu1 %v5936_v53  ;;  %8715 = vst [vmem:[#allocation77_spill] sm:$0xff] %v5946_v58  ;;  %8716 = vst [vmem:[#allocation78_spill] sm:$0xff] %v5948_v63  ;;  %v5966_v53 = vld [vmem:[#allocation12 + $0xec] ss:$16 sps:$4 sm:$0xff]  }
  0x8b   :  { %8722 = vst [vmem:[#allocation83_spill] sm:$0xff] %v5966_v53 }
  0x8c   :  { %979 = vmatpush1.bf16.msra.mxu0 %v5922_v0  ;;  %v5944_v0 = vld [vmem:[#allocation13 + $0x4] ss:$16 sps:$4 sm:$0xff]  }
  0x8d   :  { %980 = vmatprep.subr.bf16.mxu0 %v5932_v51  ;;  %1020 = vmatpush1.bf16.msra.mxu1 %v5939_v57  ;;  %8714 = vst [vmem:[#allocation76_spill] sm:$0xff] %v5944_v0  ;;  %v8719_v51 = vmov 0.0|0.0   ;;  %v5959_v57 = vld [vmem:[#allocation13 + $0x8] ss:$16 sps:$4 sm:$0xff]  }
  0x8e   :  { %1021 = vmatprep.subr.bf16.mxu1 %v5948_v63  ;;  %8720 = vst [vmem:[#allocation81_spill] sm:$0xff] %v5959_v57  ;;  %v5970_v63 = vld [vmem:[#allocation12 + $0xe8] ss:$16 sps:$4 sm:$0xff]  }
  0x8f   :  { %8724 = vst [vmem:[#allocation85_spill] sm:$0xff] %v5970_v63 }
  0x90   :  { %981 = vmatpush1.bf16.msra.mxu0 %v5934_v39  ;;  %v5956_v39 = vld [vmem:[#allocation13 + $0xc] ss:$16 sps:$4 sm:$0xff]  }
  0x91   :  { %982 = vmatprep.subr.bf16.mxu0 %v5944_v0  ;;  %1022 = vmatpush1.bf16.msra.mxu1 %v5951_v49  ;;  %8718 = vst [vmem:[#allocation80_spill] sm:$0xff] %v5956_v39  ;;  %v5964_v0 = vld [vmem:[#allocation12 + $0xe4] ss:$16 sps:$4 sm:$0xff]   ;;  %v5982_v49 = vld [vmem:[#allocation12 + $0xc0] ss:$16 sps:$4 sm:$0xff]  }
  0x92   :  { %1023 = vmatprep.subr.bf16.mxu1 %v5956_v39  ;;  %8721 = vst [vmem:[#allocation82_spill] sm:$0xff] %v5964_v0  ;;  %v5980_v39 = vld [vmem:[#allocation12 + $0xcc] ss:$16 sps:$4 sm:$0xff]   ;;  %8727 = vst [vmem:[#allocation88_spill] sm:$0xff] %v5982_v49 }
  0x93   :  { %8726 = vst [vmem:[#allocation87_spill] sm:$0xff] %v5980_v39 }
  0x94   :  { %983 = vmatpush1.bf16.msra.mxu0 %v5946_v58  ;;  %v5968_v58 = vld [vmem:[#allocation12 + $0xe0] ss:$16 sps:$4 sm:$0xff]  }
  0x95   :  { %1024 = vmatpush1.bf16.msra.mxu1 %v5959_v57  ;;  %8723 = vst [vmem:[#allocation84_spill] sm:$0xff] %v5968_v58  ;;  %1210 = vmatprep.subr.bf16.mxu0 %v5964_v0  ;;  %v5978_v57 = vld [vmem:[#allocation12 + $0xc4] ss:$16 sps:$4 sm:$0xff]  }
  0x96   :  { %1251 = vmatprep.subr.bf16.mxu1 %v5966_v53  ;;  %8725 = vst [vmem:[#allocation86_spill] sm:$0xff] %v5978_v57  ;;  %v5996_v53 = vld [vmem:[#allocation12 + $0xa8] ss:$16 sps:$4 sm:$0xff]  }
  0x97   :  { %1001 = vmatmul.mubr.bf16.vlgmr.msra.gmra.mxu0 %v8719_v51  ;;  %8732 = vst [vmem:[#allocation93_spill] sm:$0xff] %v5996_v53 }
  0x98   :  { %1242 = vmatprep.mubr.bf16.mxu0 %v8687_v52  ;;  %1042 = vmatmul.mubr.bf16.vlgmr.msra.gmra.mxu1 %v8719_v51  ;;  %v5990_v51 = vld [vmem:[#allocation12 + $0xa4] ss:$16 sps:$4 sm:$0xff]  }
  0x99   :  { %1211 = vmatpush1.bf16.msra.mxu0 %v5968_v58  ;;  %1252 = vmatpush1.bf16.msra.mxu1 %v5970_v63  ;;  %8729 = vst [vmem:[#allocation90_spill] sm:$0xff] %v5990_v51  ;;  %v5992_v63 = vld [vmem:[#allocation12 + $0xac] ss:$16 sps:$4 sm:$0xff]   ;;  %v5994_v58 = vld [vmem:[#allocation12 + $0xa0] ss:$16 sps:$4 sm:$0xff]  }
  0x9a   :  { %1283 = vmatprep.mubr.bf16.mxu1 %v8687_v52  ;;  %1212 = vmatprep.subr.bf16.mxu0 %v5978_v57  ;;  %8730 = vst [vmem:[#allocation91_spill] sm:$0xff] %v5992_v63  ;;  %8731 = vst [vmem:[#allocation92_spill] sm:$0xff] %v5994_v58  ;;  %v6008_v57 = vld [vmem:[#allocation12 + $0x88] ss:$16 sps:$4 sm:$0xff]  }
  0x9b   :  { %1253 = vmatprep.subr.bf16.mxu1 %v5980_v39  ;;  %v6002_v39 = vld [vmem:[#allocation12 + $0x84] ss:$16 sps:$4 sm:$0xff]   ;;  %8736 = vst [vmem:[#allocation97_spill] sm:$0xff] %v6008_v57 }
  0x9c   :  { %8733 = vst [vmem:[#allocation94_spill] sm:$0xff] %v6002_v39 }
  0x9d   :  { %1213 = vmatpush1.bf16.msra.mxu0 %v5982_v49  ;;  %1254 = vmatpush1.bf16.msra.mxu1 %v5984_v62  ;;  %v6004_v49 = vld [vmem:[#allocation12 + $0x8c] ss:$16 sps:$4 sm:$0xff]   ;;  %v6006_v62 = vld [vmem:[#allocation12 + $0x80] ss:$16 sps:$4 sm:$0xff]  }
  0x9e   :  { %1214 = vmatprep.subr.bf16.mxu0 %v5990_v51  ;;  %1255 = vmatprep.subr.bf16.mxu1 %v5992_v63  ;;  %8734 = vst [vmem:[#allocation95_spill] sm:$0xff] %v6004_v49  ;;  %8735 = vst [vmem:[#allocation96_spill] sm:$0xff] %v6006_v62  ;;  %v6014_v63 = vld [vmem:[#allocation12 + $0x64] ss:$16 sps:$4 sm:$0xff]   ;;  %v6020_v51 = vld [vmem:[#allocation12 + $0x68] ss:$16 sps:$4 sm:$0xff]  }
  0x9f   :  { %8737 = vst [vmem:[#allocation98_spill] sm:$0xff] %v6014_v63  ;;  %8740 = vst [vmem:[#allocation101_spill] sm:$0xff] %v6020_v51 }
  0xa1   :  { %1215 = vmatpush1.bf16.msra.mxu0 %v5994_v58  ;;  %1256 = vmatpush1.bf16.msra.mxu1 %v5996_v53  ;;  %v6016_v58 = vld [vmem:[#allocation12 + $0x6c] ss:$16 sps:$4 sm:$0xff]   ;;  %v6018_v53 = vld [vmem:[#allocation12 + $0x60] ss:$16 sps:$4 sm:$0xff]  }
  0xa2   :  { %1216 = vmatprep.subr.bf16.mxu0 %v6002_v39  ;;  %1257 = vmatprep.subr.bf16.mxu1 %v6004_v49  ;;  %8738 = vst [vmem:[#allocation99_spill] sm:$0xff] %v6016_v58  ;;  %8739 = vst [vmem:[#allocation100_spill] sm:$0xff] %v6018_v53  ;;  %v6026_v49 = vld [vmem:[#allocation12 + $0x44] ss:$16 sps:$4 sm:$0xff]   ;;  %v6032_v39 = vld [vmem:[#allocation12 + $0x48] ss:$16 sps:$4 sm:$0xff]  }
  0xa3   :  { %8741 = vst [vmem:[#allocation102_spill] sm:$0xff] %v6026_v49  ;;  %8744 = vst [vmem:[#allocation105_spill] sm:$0xff] %v6032_v39 }
  0xa5   :  { %1217 = vmatpush1.bf16.msra.mxu0 %v6006_v62  ;;  %1258 = vmatpush1.bf16.msra.mxu1 %v6008_v57  ;;  %v6028_v62 = vld [vmem:[#allocation12 + $0x4c] ss:$16 sps:$4 sm:$0xff]   ;;  %v6030_v57 = vld [vmem:[#allocation12 + $0x40] ss:$16 sps:$4 sm:$0xff]  }
  0xa6   :  { %1218 = vmatprep.subr.bf16.mxu0 %v6014_v63  ;;  %1259 = vmatprep.subr.bf16.mxu1 %v6016_v58  ;;  %8742 = vst [vmem:[#allocation103_spill] sm:$0xff] %v6028_v62  ;;  %8743 = vst [vmem:[#allocation104_spill] sm:$0xff] %v6030_v57  ;;  %v6038_v58 = vld [vmem:[#allocation12 + $0x24] ss:$16 sps:$4 sm:$0xff]   ;;  %v6044_v63 = vld [vmem:[#allocation12 + $0x28] ss:$16 sps:$4 sm:$0xff]  }
  0xa7   :  { %8745 = vst [vmem:[#allocation106_spill] sm:$0xff] %v6038_v58  ;;  %8748 = vst [vmem:[#allocation109_spill] sm:$0xff] %v6044_v63 }
  0xa9   :  { %1219 = vmatpush1.bf16.msra.mxu0 %v6018_v53  ;;  %1260 = vmatpush1.bf16.msra.mxu1 %v6020_v51  ;;  %v6040_v53 = vld [vmem:[#allocation12 + $0x2c] ss:$16 sps:$4 sm:$0xff]   ;;  %v6042_v51 = vld [vmem:[#allocation12 + $0x20] ss:$16 sps:$4 sm:$0xff]  }
  0xaa   :  { %1220 = vmatprep.subr.bf16.mxu0 %v6026_v49  ;;  %1261 = vmatprep.subr.bf16.mxu1 %v6028_v62  ;;  %8746 = vst [vmem:[#allocation107_spill] sm:$0xff] %v6040_v53  ;;  %8747 = vst [vmem:[#allocation108_spill] sm:$0xff] %v6042_v51  ;;  %v6050_v62 = vld [vmem:[#allocation12 + $0x4] ss:$16 sps:$4 sm:$0xff]   ;;  %v6056_v49 = vld [vmem:[#allocation12 + $0x8] ss:$16 sps:$4 sm:$0xff]  }
  0xab   :  { %8749 = vst [vmem:[#allocation110_spill] sm:$0xff] %v6050_v62  ;;  %8752 = vst [vmem:[#allocation113_spill] sm:$0xff] %v6056_v49 }
  0xad   :  { %1221 = vmatpush1.bf16.msra.mxu0 %v6030_v57  ;;  %1262 = vmatpush1.bf16.msra.mxu1 %v6032_v39  ;;  %v6052_v57 = vld [vmem:[#allocation12 + $0xc] ss:$16 sps:$4 sm:$0xff]   ;;  %v6054_v39 = vld [vmem:[#allocation12] ss:$16 sps:$4 sm:$0xff]  }
  0xae   :  { %1222 = vmatprep.subr.bf16.mxu0 %v6038_v58  ;;  %1263 = vmatprep.subr.bf16.mxu1 %v6040_v53  ;;  %8750 = vst [vmem:[#allocation111_spill] sm:$0xff] %v6052_v57  ;;  %8751 = vst [vmem:[#allocation112_spill] sm:$0xff] %v6054_v39 }
  0xb1   :  { %1223 = vmatpush1.bf16.msra.mxu0 %v6042_v51  ;;  %1264 = vmatpush1.bf16.msra.mxu1 %v6044_v63 }
  0xb2   :  { %1224 = vmatprep.subr.bf16.mxu0 %v6050_v62  ;;  %1265 = vmatprep.subr.bf16.mxu1 %v6052_v57  ;;  %v6064_v62 = vshrl.u32 %v235_v56, 7 }
  0xb4   :  { %v8387_v57 = vsub.s32 0, %v6064_v62 }
  0xb5   :  { %1225 = vmatpush1.bf16.msra.mxu0 %v6054_v39  ;;  %1266 = vmatpush1.bf16.msra.mxu1 %v6056_v49  ;;  %v233_v49 = vld [vmem:[%s8289_s5] sm:$0xf] }
  0xb6   :  { %1337 = vmatprep.subr.bf16.mxu0 %v5640_v1  ;;  %1378 = vmatprep.subr.bf16.mxu1 %v5642_v2  ;;  %v8390_v1 = vsub.s32 1, %v6064_v62  ;;  %v6073_v2 = vrot.slane %v233_v49, %v8387_v57  ;;  %v8391_v57 = vsub.s32 3, %v6064_v62 }
 0x116   :  { %v481_v63 = vpop.f32.mrf.mxu0  ;;  %v522_v51 = vpop.f32.mrf.mxu1 }
 0x118   :  { %v483_v53 = vpop.f32.mrf.mxu0  ;;  %v524_v58 = vpop.f32.mrf.mxu1 }
 0x11a   :  { %v485_v0 = vpop.f32.mrf.mxu0  ;;  %v526_v61 = vpop.f32.mrf.mxu1 }
 0x11c   :  { %v486_v60 = vpop.f32.mrf.mxu0  ;;  %v527_v59 = vpop.f32.mrf.mxu1 }
 0x11d   :  { %v6077_v59 = vrot.slane %v233_v49, %v8390_v1 }
 0x136   :  { %v723_v39 = vpop.f32.mrf.mxu0  ;;  %v764_v0 = vpop.f32.mrf.mxu1 }
 0x137   :  { %v724_v61 = vadd.f32 %v723_v39, %v481_v63  ;;  %v6084_v63 = vrot.slane %v233_v49, %v8391_v57 }
 0x138   :  { %v725_v56 = vpop.f32.mrf.mxu0  ;;  %v766_v60 = vpop.f32.mrf.mxu1 }
 0x139   :  { %v771_v55 = vadd.f32 %v724_v61, %v6073_v2  ;;  %v726_v54 = vadd.f32 %v725_v56, %v483_v53  ;;  %8753 = vst [vmem:[#allocation114_spill] sm:$0xff] %v6084_v63  ;;  %v767_v1 = vadd.f32 %v766_v60, %v524_v58  ;;  %v8392_v61 = vsub.s32 2, %v6064_v62 }
 0x13a   :  { %v727_v50 = vpop.f32.mrf.mxu0  ;;  %v768_v48 = vpop.f32.mrf.mxu1 }
 0x13b   :  { %v4360_v47 = vmul.f32 -1.442695, %v771_v55  ;;  %v772_v46 = vadd.f32 %v726_v54, %v6077_v59  ;;  %v774_v50 = vadd.f32 %v767_v1, %v6084_v63  ;;  %v6090_v48 = vrot.slane %v233_v49, %v8392_v61 }
 0x13c   :  { %v728_v45 = vpop.f32.mrf.mxu0  ;;  %v769_v44 = vpop.f32.mrf.mxu1  ;;  %v765_v54 = vadd.f32 %v764_v0, %v522_v51 }
 0x13d   :  { %4719 = vpow2.f32 %v4360_v47  ;;  %v4361_v39 = vmul.f32 -1.442695, %v772_v46  ;;  %v4362_v55 = vmul.f32 -1.442695, %v774_v50  ;;  %v6096_v50 = vpop.permute.xlu0 %801 }
 0x13e   :  { %v773_v44 = vadd.f32 %v765_v54, %v6090_v48  ;;  %vm803_vm4 = vcmp.eq.s32.totalorder %v6096_v50, 1 }
 0x13f   :  { %4721 = vpow2.f32 %v4361_v39  ;;  %vm6104_vm5 = vmpackc.low %vm803_vm4, %vm803_vm4 }
 0x140   :  { %4723 = vpow2.f32 %v4362_v55 }
 0x14a   :  { %v4720_v45 = vpop.eup %4719 }
 0x14b   :  { %v778_v46 = vadd.f32 1.0, %v4720_v45  ;;  %v8787_v45 = vld [vmem:[#allocation62_spill] sm:$0xff] }
 0x14c   :  { %v4722_v47 = vpop.eup %4721 }
 0x14d   :  { %4725 = vrcp.f32 %v778_v46  ;;  %v784_v53 = vadd.f32 1.0, %v4722_v47  ;;  %v4724_v58 = vpop.eup %4723  ;;  %v8789_v46 = vld [vmem:[#allocation63_spill] sm:$0xff]  ;;  %v8790_v47 = vld [vmem:[#allocation60_spill] sm:$0xff] }
 0x14e   :  { %4727 = vtanh.f32 %v773_v44  ;;  %v791_v39 = vadd.f32 1.0, %v4724_v58  ;;  %v8788_v44 = vld [vmem:[#allocation57_spill] sm:$0xff] }
 0x14f   :  { %4729 = vrcp.f32 %v784_v53  ;;  %v8791_v53 = vld [vmem:[#allocation66_spill] sm:$0xff]  ;;  %v8792_v58 = vld [vmem:[#allocation61_spill] sm:$0xff] }
 0x150   :  { %4731 = vrcp.f32 %v791_v39  ;;  %v8796_v39 = vld [vmem:[#allocation65_spill] sm:$0xff] }
 0x15a   :  { %v4726_v56 = vpop.eup %4725 }
 0x15b   :  { %v4728_v60 = vpop.eup %4727 }
 0x15c   :  { %v4730_v1 = vpop.eup %4729  ;;  %v795_v49 = vmul.f32 %v4728_v60, %v4726_v56  ;;  %v8793_v56 = vld [vmem:[#allocation67_spill] sm:$0xff]  ;;  %v8794_v60 = vld [vmem:[#allocation64_spill] sm:$0xff] }
 0x15d   :  { %v794_v57 = vmul.f32 0.0, %v4730_v1  ;;  %v4732_v51 = vpop.eup %4731  ;;  %v8795_v1 = vld [vmem:[#allocation70_spill] sm:$0xff] }
 0x15f   :  { %v6093_v61 = vadd.f32 %v795_v49, %v794_v57  ;;  %v8797_v49 = vld [vmem:[#allocation71_spill] sm:$0xff] }
 0x161   :  { %4733 = vtanh.f32 %v6093_v61 }
 0x16e   :  { %v4734_v0 = vpop.eup %4733 }
 0x16f   :  { %v6098_v54 = vmul.f32 %v4734_v0, %v4732_v51  ;;  %v8798_v51 = vld [vmem:[#allocation68_spill] sm:$0xff]  ;;  %v8799_v0 = vld [vmem:[#allocation74_spill] sm:$0xff] }
 0x171   :  { %v4494_v57 = vpack.c.bf16 %v6098_v54, %v6098_v54 }
 0x173   :  { %4495 = vmatmul.mubr.msk.bf16.vlgmr.msra.gmra.mxu0 %vm6104_vm5, %v4494_v57  ;;  %4498 = vmatmul.mubr.msk.bf16.vlgmr.msra.gmra.mxu1 %vm6104_vm5, %v4494_v57 }
 0x174   :  { %1338 = vmatpush1.bf16.msra.mxu0 %v5645_v3  ;;  %1379 = vmatpush1.bf16.msra.mxu1 %v5647_v4  ;;  %v6144_v3 = vpop.f32.mrf.mxu0 }
 0x175   :  { %1339 = vmatprep.subr.bf16.mxu0 %v5650_v5  ;;  %1380 = vmatprep.subr.bf16.mxu1 %v5654_v6  ;;  %v6156_v6 = vpop.f32.mrf.mxu1 }
 0x176   :  { %1369 = vmatprep.mubr.bf16.mxu0 %v8687_v52  ;;  %1410 = vmatprep.mubr.bf16.mxu1 %v8687_v52  ;;  %v6148_v4 = vpop.f32.mrf.mxu0 }
 0x178   :  { %1340 = vmatpush1.bf16.msra.mxu0 %v5656_v7  ;;  %1381 = vmatpush1.bf16.msra.mxu1 %v5659_v8  ;;  %v1006_v5 = vpop.f32.mrf.mxu0  ;;  %v6162_v8 = vpop.f32.mrf.mxu1 }
 0x179   :  { %1341 = vmatprep.subr.bf16.mxu0 %v5662_v9  ;;  %1382 = vmatprep.subr.bf16.mxu1 %v5664_v10  ;;  %v8801_v5 = vld [vmem:[#allocation75_spill] sm:$0xff] }
 0x17a   :  { %v1007_v7 = vpop.f32.mrf.mxu0  ;;  %v1047_v9 = vpop.f32.mrf.mxu1 }
 0x17b   :  { %v8802_v7 = vld [vmem:[#allocation72_spill] sm:$0xff]  ;;  %v8803_v9 = vld [vmem:[#allocation78_spill] sm:$0xff] }
 0x17c   :  { %1342 = vmatpush1.bf16.msra.mxu0 %v5666_v11  ;;  %1383 = vmatpush1.bf16.msra.mxu1 %v5668_v12  ;;  %v1048_v10 = vpop.f32.mrf.mxu1  ;;  %v8756_v11 = vld [vmem:[#allocation27_spill] sm:$0xff]  ;;  %v8757_v12 = vld [vmem:[#allocation28_spill] sm:$0xff] }
 0x17d   :  { %1343 = vmatprep.subr.bf16.mxu0 %v5672_v13  ;;  %1384 = vmatprep.subr.bf16.mxu1 %v5676_v14  ;;  %v8758_v13 = vld [vmem:[#allocation29_spill] sm:$0xff]  ;;  %v8759_v14 = vld [vmem:[#allocation30_spill] sm:$0xff] }
 0x17e   :  { %v8804_v10 = vld [vmem:[#allocation73_spill] sm:$0xff] }
 0x180   :  { %1344 = vmatpush1.bf16.msra.mxu0 %v5678_v15  ;;  %1385 = vmatpush1.bf16.msra.mxu1 %v5682_v16  ;;  %v8760_v15 = vld [vmem:[#allocation31_spill] sm:$0xff]  ;;  %v8761_v16 = vld [vmem:[#allocation33_spill] sm:$0xff] }
 0x181   :  { %1345 = vmatprep.subr.bf16.mxu0 %v5684_v17  ;;  %1386 = vmatprep.subr.bf16.mxu1 %v5688_v18  ;;  %v8762_v17 = vld [vmem:[#allocation34_spill] sm:$0xff]  ;;  %v8763_v18 = vld [vmem:[#allocation35_spill] sm:$0xff] }
 0x184   :  { %1346 = vmatpush1.bf16.msra.mxu0 %v5690_v19  ;;  %1387 = vmatpush1.bf16.msra.mxu1 %v5692_v20  ;;  %v8764_v19 = vld [vmem:[#allocation36_spill] sm:$0xff]  ;;  %v8765_v20 = vld [vmem:[#allocation37_spill] sm:$0xff] }
 0x185   :  { %1347 = vmatprep.subr.bf16.mxu0 %v5696_v21  ;;  %1388 = vmatprep.subr.bf16.mxu1 %v5700_v22  ;;  %v8766_v21 = vld [vmem:[#allocation38_spill] sm:$0xff]  ;;  %v8767_v22 = vld [vmem:[#allocation39_spill] sm:$0xff] }
 0x188   :  { %1348 = vmatpush1.bf16.msra.mxu0 %v5702_v23  ;;  %1389 = vmatpush1.bf16.msra.mxu1 %v5706_v24  ;;  %v8768_v23 = vld [vmem:[#allocation40_spill] sm:$0xff]  ;;  %v8769_v24 = vld [vmem:[#allocation41_spill] sm:$0xff] }
 0x189   :  { %1349 = vmatprep.subr.bf16.mxu0 %v5708_v25  ;;  %1390 = vmatprep.subr.bf16.mxu1 %v5712_v26  ;;  %v8770_v25 = vld [vmem:[#allocation42_spill] sm:$0xff]  ;;  %v8771_v26 = vld [vmem:[#allocation43_spill] sm:$0xff] }
 0x18c   :  { %1350 = vmatpush1.bf16.msra.mxu0 %v5714_v27  ;;  %1391 = vmatpush1.bf16.msra.mxu1 %v5716_v28  ;;  %v8772_v27 = vld [vmem:[#allocation44_spill] sm:$0xff]  ;;  %v8773_v28 = vld [vmem:[#allocation45_spill] sm:$0xff] }
 0x18d   :  { %1351 = vmatprep.subr.bf16.mxu0 %v5720_v29  ;;  %1392 = vmatprep.subr.bf16.mxu1 %v5724_v30  ;;  %v8774_v29 = vld [vmem:[#allocation46_spill] sm:$0xff]  ;;  %v8775_v30 = vld [vmem:[#allocation47_spill] sm:$0xff] }
 0x190   :  { %1352 = vmatpush1.bf16.msra.mxu0 %v5726_v31  ;;  %1393 = vmatpush1.bf16.msra.mxu1 %v5730_v32  ;;  %v8776_v31 = vld [vmem:[#allocation48_spill] sm:$0xff]  ;;  %v8777_v32 = vld [vmem:[#allocation49_spill] sm:$0xff] }
 0x191   :  { %1419 = vmatprep.subr.bf16.mxu0 %v5732_v33  ;;  %1460 = vmatprep.subr.bf16.mxu1 %v5736_v34  ;;  %v4431_v33 = vld [vmem:[%s8285_s1 + $0x4] sm:$0xf] }
 0x192   :  { %v8778_v34 = vld [vmem:[#allocation50_spill] sm:$0xff] }
 0x193   :  { %4501 = vmatmul.mubr.msk.bf16.vlgmr.msra.gmra.mxu0 %vm6104_vm5, %v4494_v57  ;;  %4504 = vmatmul.mubr.msk.bf16.vlgmr.msra.gmra.mxu1 %vm6104_vm5, %v4494_v57  ;;  %v8800_v57 = vld [vmem:[#allocation69_spill] sm:$0xff] }
 0x194   :  { %1420 = vmatpush1.bf16.msra.mxu0 %v5738_v35  ;;  %1461 = vmatpush1.bf16.msra.mxu1 %v5740_v36  ;;  %v8779_v35 = vld [vmem:[#allocation53_spill] sm:$0xff]  ;;  %v8780_v36 = vld [vmem:[#allocation51_spill] sm:$0xff] }
 0x195   :  { %1421 = vmatprep.subr.bf16.mxu0 %v5744_v37  ;;  %1462 = vmatprep.subr.bf16.mxu1 %v5748_v38  ;;  %v8781_v37 = vld [vmem:[#allocation54_spill] sm:$0xff]  ;;  %v8782_v38 = vld [vmem:[#allocation52_spill] sm:$0xff] }
 0x196   :  { %1451 = vmatprep.mubr.bf16.mxu0 %v8687_v52  ;;  %1492 = vmatprep.mubr.bf16.mxu1 %v8687_v52 }
 0x198   :  { %1422 = vmatpush1.bf16.msra.mxu0 %v5752_v40  ;;  %1463 = vmatpush1.bf16.msra.mxu1 %v5756_v41  ;;  %v8783_v40 = vld [vmem:[#allocation58_spill] sm:$0xff]  ;;  %v8784_v41 = vld [vmem:[#allocation55_spill] sm:$0xff] }
 0x199   :  { %1423 = vmatprep.subr.bf16.mxu0 %v5758_v42  ;;  %1464 = vmatprep.subr.bf16.mxu1 %v5762_v43  ;;  %v8785_v42 = vld [vmem:[#allocation59_spill] sm:$0xff]  ;;  %v8786_v43 = vld [vmem:[#allocation56_spill] sm:$0xff] }
 0x19c   :  { %1424 = vmatpush1.bf16.msra.mxu0 %v8756_v11  ;;  %1465 = vmatpush1.bf16.msra.mxu1 %v8757_v12  ;;  %v8805_v11 = vld [vmem:[#allocation79_spill] sm:$0xff]  ;;  %v8806_v12 = vld [vmem:[#allocation76_spill] sm:$0xff] }
 0x19d   :  { %1425 = vmatprep.subr.bf16.mxu0 %v8758_v13  ;;  %1466 = vmatprep.subr.bf16.mxu1 %v8759_v14  ;;  %v8807_v13 = vld [vmem:[#allocation80_spill] sm:$0xff]  ;;  %v8808_v14 = vld [vmem:[#allocation77_spill] sm:$0xff] }
 0x1a0   :  { %1426 = vmatpush1.bf16.msra.mxu0 %v8760_v15  ;;  %1467 = vmatpush1.bf16.msra.mxu1 %v8761_v16  ;;  %v8809_v15 = vld [vmem:[#allocation81_spill] sm:$0xff]  ;;  %v8810_v16 = vld [vmem:[#allocation82_spill] sm:$0xff] }
 0x1a1   :  { %1427 = vmatprep.subr.bf16.mxu0 %v8762_v17  ;;  %1468 = vmatprep.subr.bf16.mxu1 %v8763_v18  ;;  %v8811_v17 = vld [vmem:[#allocation83_spill] sm:$0xff]  ;;  %v255_v18 = vld [vmem:[%s8292_s8] sm:$0xf] }
 0x1a4   :  { %1428 = vmatpush1.bf16.msra.mxu0 %v8764_v19  ;;  %1469 = vmatpush1.bf16.msra.mxu1 %v8765_v20  ;;  %v8812_v19 = vsub.s32 0, %v6064_v62 }
 0x1a5   :  { %1429 = vmatprep.subr.bf16.mxu0 %v8766_v21  ;;  %1470 = vmatprep.subr.bf16.mxu1 %v8767_v22 }
 0x1a6   :  { %v6236_v20 = vrot.slane %v255_v18, %v8812_v19  ;;  %v8819_v19 = vld [vmem:[#allocation86_spill] sm:$0xff] }
 0x1a8   :  { %1430 = vmatpush1.bf16.msra.mxu0 %v8768_v23  ;;  %1471 = vmatpush1.bf16.msra.mxu1 %v8769_v24  ;;  %v8813_v24 = vsub.s32 1, %v6064_v62 }
 0x1a9   :  { %1431 = vmatprep.subr.bf16.mxu0 %v8770_v25  ;;  %1472 = vmatprep.subr.bf16.mxu1 %v8771_v26 }
 0x1aa   :  { %v6241_v25 = vrot.slane %v255_v18, %v8813_v24 }
 0x1ac   :  { %1432 = vmatpush1.bf16.msra.mxu0 %v8772_v27  ;;  %1473 = vmatpush1.bf16.msra.mxu1 %v8773_v28 }
 0x1ad   :  { %1433 = vmatprep.subr.bf16.mxu0 %v8774_v29  ;;  %1474 = vmatprep.subr.bf16.mxu1 %v8775_v30 }
 0x1b0   :  { %1434 = vmatpush1.bf16.msra.mxu0 %v8776_v31  ;;  %1475 = vmatpush1.bf16.msra.mxu1 %v8777_v32 }
 0x1b1   :  { %1538 = vmatprep.subr.bf16.mxu0 %v8778_v34  ;;  %1579 = vmatprep.subr.bf16.mxu1 %v8779_v35 }
 0x1b3   :  { %1452 = vmatmul.mubr.bf16.vlgmr.msra.gmra.mxu0 %v4431_v33  ;;  %1493 = vmatmul.mubr.bf16.vlgmr.msra.gmra.mxu1 %v4431_v33 }
 0x1b4   :  { %1539 = vmatpush1.bf16.msra.mxu0 %v8780_v36  ;;  %1580 = vmatpush1.bf16.msra.mxu1 %v8781_v37 }
 0x1b5   :  { %1540 = vmatprep.subr.bf16.mxu0 %v8782_v38  ;;  %1581 = vmatprep.subr.bf16.mxu1 %v8783_v40 }
 0x1b6   :  { %1570 = vmatprep.mubr.bf16.mxu0 %v8687_v52  ;;  %1611 = vmatprep.mubr.bf16.mxu1 %v8687_v52 }
 0x1b8   :  { %1541 = vmatpush1.bf16.msra.mxu0 %v8784_v41  ;;  %1582 = vmatpush1.bf16.msra.mxu1 %v8785_v42 }
 0x1b9   :  { %1542 = vmatprep.subr.bf16.mxu0 %v8786_v43  ;;  %1583 = vmatprep.subr.bf16.mxu1 %v8787_v45 }
 0x1bc   :  { %1543 = vmatpush1.bf16.msra.mxu0 %v8788_v44  ;;  %1584 = vmatpush1.bf16.msra.mxu1 %v8789_v46 }
 0x1bd   :  { %1544 = vmatprep.subr.bf16.mxu0 %v8790_v47  ;;  %1585 = vmatprep.subr.bf16.mxu1 %v8791_v53 }
 0x1c0   :  { %1545 = vmatpush1.bf16.msra.mxu0 %v8792_v58  ;;  %1586 = vmatpush1.bf16.msra.mxu1 %v8793_v56 }
 0x1c1   :  { %1546 = vmatprep.subr.bf16.mxu0 %v8794_v60  ;;  %1587 = vmatprep.subr.bf16.mxu1 %v8795_v1 }
 0x1c4   :  { %1547 = vmatpush1.bf16.msra.mxu0 %v8796_v39  ;;  %1588 = vmatpush1.bf16.msra.mxu1 %v8797_v49 }
 0x1c5   :  { %1548 = vmatprep.subr.bf16.mxu0 %v8798_v51  ;;  %1589 = vmatprep.subr.bf16.mxu1 %v8799_v0 }
 0x1c8   :  { %1549 = vmatpush1.bf16.msra.mxu0 %v8800_v57  ;;  %1590 = vmatpush1.bf16.msra.mxu1 %v8801_v5 }
 0x1c9   :  { %1550 = vmatprep.subr.bf16.mxu0 %v8802_v7  ;;  %1591 = vmatprep.subr.bf16.mxu1 %v8803_v9 }
 0x1cc   :  { %1551 = vmatpush1.bf16.msra.mxu0 %v8804_v10  ;;  %1592 = vmatpush1.bf16.msra.mxu1 %v8805_v11 }
 0x1cd   :  { %1552 = vmatprep.subr.bf16.mxu0 %v8806_v12  ;;  %1593 = vmatprep.subr.bf16.mxu1 %v8807_v13 }
 0x1d0   :  { %1553 = vmatpush1.bf16.msra.mxu0 %v8808_v14  ;;  %1594 = vmatpush1.bf16.msra.mxu1 %v8809_v15 }
 0x1d1   :  { %1620 = vmatprep.subr.bf16.mxu0 %v8810_v16  ;;  %1661 = vmatprep.subr.bf16.mxu1 %v8811_v17  ;;  %v8816_v16 = vld [vmem:[#allocation84_spill] sm:$0xff]  ;;  %v8817_v17 = vld [vmem:[#allocation85_spill] sm:$0xff] }
 0x233   :  { %v1244_v21 = vpop.f32.mrf.mxu0  ;;  %v1285_v22 = vpop.f32.mrf.mxu1 }
 0x234   :  { %v1245_v23 = vadd.f32 %v1244_v21, %v6144_v3  ;;  %v8814_v3 = vsub.s32 3, %v6064_v62  ;;  %v1286_v42 = vadd.f32 %v1285_v22, %v6156_v6  ;;  %v8820_v21 = vld [vmem:[#allocation87_spill] sm:$0xff] }
 0x235   :  { %v1246_v26 = vpop.f32.mrf.mxu0  ;;  %v1287_v27 = vpop.f32.mrf.mxu1 }
 0x236   :  { %v1292_v28 = vadd.f32 %v1245_v23, %v6236_v20  ;;  %v1247_v29 = vadd.f32 %v1246_v26, %v6148_v4  ;;  %v6248_v37 = vrot.slane %v255_v18, %v8814_v3  ;;  %v1288_v38 = vadd.f32 %v1287_v27, %v6162_v8  ;;  %v8824_v3 = vld [vmem:[#allocation91_spill] sm:$0xff] }
 0x237   :  { %v1248_v30 = vpop.f32.mrf.mxu0  ;;  %v1289_v31 = vpop.f32.mrf.mxu1  ;;  %v8815_v4 = vsub.s32 2, %v6064_v62 }
 0x238   :  { %v4427_v32 = vmul.f32 -1.442695, %v1292_v28  ;;  %v1293_v33 = vadd.f32 %v1247_v29, %v6241_v25  ;;  %v1295_v40 = vadd.f32 %v1288_v38, %v6248_v37  ;;  %v8821_v28 = vld [vmem:[#allocation88_spill] sm:$0xff]  ;;  %v8822_v29 = vld [vmem:[#allocation89_spill] sm:$0xff] }
 0x239   :  { %v1249_v34 = vpop.f32.mrf.mxu0  ;;  %v1290_v35 = vpop.f32.mrf.mxu1  ;;  %v6254_v41 = vrot.slane %v255_v18, %v8815_v4  ;;  %v8818_v18 = vld [vmem:[#allocation32_spill] sm:$0xff] }
 0x23a   :  { %4735 = vpow2.f32 %v4427_v32  ;;  %v4428_v36 = vmul.f32 -1.442695, %v1293_v33  ;;  %v4429_v43 = vmul.f32 -1.442695, %v1295_v40  ;;  %vm4439_vm6 = vcmp.gt.s32.totalorder %v8818_v18, 2  ;;  %v8823_v33 = vld [vmem:[#allocation90_spill] sm:$0xff] }
 0x23b   :  { %v1294_v44 = vadd.f32 %v1286_v42, %v6254_v41  ;;  %v1941_v22 = vsel %vm4439_vm6, 1, %v8687_v52  ;;  %vm4448_vm7 = vcmp.gt.s32.totalorder %v8818_v18, 3  ;;  %v4975_v34 = vld [vmem:[%s8284_s0] sm:$0xff] }
 0x23c   :  { %4737 = vpow2.f32 %v4428_v36  ;;  %1943 = vperm.xlu1 %4526, %v1941_v22   ;;  %v2353_v30 = vsel %vm4448_vm7, 1, %v8687_v52  ;;  %vm4466_vm8 = vcmp.gt.s32.totalorder %v4975_v34, 5  ;;  %vm4484_vm9 = vcmp.gt.s32.totalorder %v4975_v34, 7  ;;  %v8842_v22 = vld [vmem:[#allocation109_spill] sm:$0xff] }
 0x23d   :  { %4739 = vpow2.f32 %v4429_v43  ;;  %v8825_v43 = vld [vmem:[#allocation92_spill] sm:$0xff] }
 0x240   :  { %2355 = vperm.xlu1 %4526, %v2353_v30  }
 0x247   :  { %v4736_v45 = vpop.eup %4735 }
 0x248   :  { %v1299_v46 = vadd.f32 1.0, %v4736_v45  ;;  %v8826_v45 = vld [vmem:[#allocation93_spill] sm:$0xff] }
 0x249   :  { %v4738_v47 = vpop.eup %4737 }
 0x24a   :  { %4741 = vrcp.f32 %v1299_v46  ;;  %v1305_v53 = vadd.f32 1.0, %v4738_v47  ;;  %v4740_v60 = vpop.eup %4739  ;;  %v8827_v47 = vld [vmem:[#allocation94_spill] sm:$0xff] }
 0x24b   :  { %4743 = vtanh.f32 %v1294_v44  ;;  %v1312_v0 = vadd.f32 1.0, %v4740_v60  ;;  %v3177_v44 = vsel %vm4466_vm8, 1, %v8687_v52  ;;  %v8830_v60 = vld [vmem:[#allocation97_spill] sm:$0xff] }
 0x24c   :  { %4745 = vrcp.f32 %v1305_v53  ;;  %v8828_v53 = vld [vmem:[#allocation95_spill] sm:$0xff]  ;;  %3179 = vperm.xlu1 %4526, %v3177_v44  }
 0x24d   :  { %4747 = vrcp.f32 %v1312_v0  ;;  %v8834_v0 = vld [vmem:[#allocation101_spill] sm:$0xff] }
 0x253   :  { %v1371_v8 = vpop.f32.mrf.mxu0  ;;  %v6258_v58 = vpop.f32.mrf.mxu1 }
 0x255   :  { %v1373_v56 = vpop.f32.mrf.mxu0  ;;  %v6260_v62 = vpop.f32.mrf.mxu1 }
 0x257   :  { %v4742_v1 = vpop.eup %4741  ;;  %v1375_v6 = vpop.f32.mrf.mxu0 }
 0x258   :  { %v1416_v39 = vpop.f32.mrf.mxu1  ;;  %v4744_v49 = vpop.eup %4743  ;;  %v8831_v6 = vld [vmem:[#allocation98_spill] sm:$0xff] }
 0x259   :  { %v4746_v51 = vpop.eup %4745  ;;  %v1376_v57 = vpop.f32.mrf.mxu0  ;;  %v1316_v9 = vmul.f32 %v4744_v49, %v4742_v1  ;;  %v4001_v1 = vsel %vm4484_vm9, 1, %v8687_v52  ;;  %v8832_v39 = vld [vmem:[#allocation99_spill] sm:$0xff] }
 0x25a   :  { %v1417_v5 = vpop.f32.mrf.mxu1  ;;  %v1315_v7 = vmul.f32 0.0, %v4746_v51  ;;  %v4748_v11 = vpop.eup %4747  ;;  %4003 = vperm.xlu1 %4526, %v4001_v1   ;;  %v8833_v51 = vld [vmem:[#allocation100_spill] sm:$0xff]  ;;  %v8835_v57 = vld [vmem:[#allocation102_spill] sm:$0xff] }
 0x25b   :  { %v8836_v5 = vld [vmem:[#allocation103_spill] sm:$0xff]  ;;  %v6376_v1 = vld [vmem:[#allocation10 + $0xa4] ss:$16 sps:$4 sm:$0xff]  }
 0x25c   :  { %v6262_v10 = vadd.f32 %v1316_v9, %v1315_v7 }
 0x25e   :  { %4749 = vtanh.f32 %v6262_v10 }
 0x26b   :  { %v4750_v12 = vpop.eup %4749 }
 0x26c   :  { %v1319_v13 = vmul.f32 %v4750_v12, %v4748_v11  ;;  %v8837_v11 = vld [vmem:[#allocation104_spill] sm:$0xff]  ;;  %v8838_v12 = vld [vmem:[#allocation105_spill] sm:$0xff] }
 0x26e   :  { %v4506_v14 = vpack.c.bf16 %v1319_v13, %v1319_v13  ;;  %v6267_v15 = vsel %vm803_vm4, %v1319_v13, 0.0  ;;  %v8839_v13 = vld [vmem:[#allocation106_spill] sm:$0xff] }
 0x26f   :  { %1323 = vst [vmem:[#allocation15] sm:$0xff] %v6267_v15 }
 0x270   :  { %4507 = vmatmul.mubr.msk.bf16.vlgmr.msra.gmra.mxu0 %vm6104_vm5, %v4506_v14  ;;  %4510 = vmatmul.mubr.msk.bf16.vlgmr.msra.gmra.mxu1 %vm6104_vm5, %v4506_v14  ;;  %v8840_v14 = vld [vmem:[#allocation107_spill] sm:$0xff] }
 0x271   :  { %1621 = vmatpush1.bf16.msra.mxu0 %v8816_v16  ;;  %1662 = vmatpush1.bf16.msra.mxu1 %v8817_v17 }
 0x272   :  { %1622 = vmatprep.subr.bf16.mxu0 %v8819_v19  ;;  %1663 = vmatprep.subr.bf16.mxu1 %v8820_v21  ;;  %v8841_v21 = vld [vmem:[#allocation108_spill] sm:$0xff] }
 0x273   :  { %v1453_v23 = vpop.f32.mrf.mxu0  ;;  %v1494_v24 = vpop.f32.mrf.mxu1  ;;  %1652 = vmatprep.mubr.bf16.mxu0 %v8687_v52  ;;  %1693 = vmatprep.mubr.bf16.mxu1 %v8687_v52 }
 0x274   :  { %v1454_v55 = vadd.f32 %v1453_v23, %v1371_v8  ;;  %v1495_v7 = vadd.f32 %v1494_v24, %v6258_v58  ;;  %v8843_v23 = vld [vmem:[#allocation110_spill] sm:$0xff]  ;;  %v8844_v24 = vld [vmem:[#allocation111_spill] sm:$0xff] }
 0x275   :  { %v1455_v26 = vpop.f32.mrf.mxu0  ;;  %v1496_v27 = vpop.f32.mrf.mxu1  ;;  %1623 = vmatpush1.bf16.msra.mxu0 %v8821_v28  ;;  %1664 = vmatpush1.bf16.msra.mxu1 %v8822_v29  ;;  %v6327_v28 = vld [vmem:[#allocation10 + $0xec] ss:$16 sps:$4 sm:$0xff]  }
 0x276   :  { %v1501_v31 = vadd.f32 %v1454_v55, %v6073_v2  ;;  %v1456_v32 = vadd.f32 %v1455_v26, %v1373_v56  ;;  %1624 = vmatprep.subr.bf16.mxu0 %v8823_v33  ;;  %1665 = vmatprep.subr.bf16.mxu1 %v8824_v3  ;;  %v1497_v8 = vadd.f32 %v1496_v27, %v6260_v62  ;;  %v8829_v56 = vld [vmem:[#allocation96_spill] sm:$0xff]  ;;  %v4438_v62 = vld [vmem:[%s8286_s2 + $0x8] sm:$0xff]  ;;  %v8846_v26 = vld [vmem:[#allocation113_spill] sm:$0xff]  ;;  %v805_v33 = vsel %vm803_vm4, %v6093_v61, 0.0  ;;  %v6333_v3 = vpop.permute.xlu0 %1531 }
 0x277   :  { %v1457_v35 = vpop.f32.mrf.mxu0  ;;  %v1498_v36 = vpop.f32.mrf.mxu1  ;;  %1739 = vperm.xlu1 %4526, %v4438_v62   ;;  %v1503_v17 = vadd.f32 %v1495_v7, %v6090_v48  ;;  %v8845_v55 = vld [vmem:[#allocation112_spill] sm:$0xff]  ;;  %vm1533_vm10 = vcmp.eq.s32.totalorder %v6333_v3, 1  ;;  %v804_v61 = vsel %vm803_vm4, %v6098_v54, 0.0  ;;  %v6394_v62 = vld [vmem:[#allocation10 + $0x8c] ss:$16 sps:$4 sm:$0xff]  }
 0x278   :  { %v4432_v38 = vmul.f32 -1.442695, %v1501_v31  ;;  %v1502_v40 = vadd.f32 %v1456_v32, %v6077_v59  ;;  %v1504_v49 = vadd.f32 %v1497_v8, %v6084_v63  ;;  %v6324_v27 = vld [vmem:[#allocation10 + $0xe4] ss:$16 sps:$4 sm:$0xff]   ;;  %v6367_v8 = vld [vmem:[#allocation10 + $0xc0] ss:$16 sps:$4 sm:$0xff]  }
 0x279   :  { %v1458_v4 = vpop.f32.mrf.mxu0  ;;  %v1499_v42 = vpop.f32.mrf.mxu1  ;;  %1625 = vmatpush1.bf16.msra.mxu0 %v8825_v43  ;;  %1666 = vmatpush1.bf16.msra.mxu1 %v8826_v45  ;;  %v6359_v54 = vld [vmem:[#allocation10 + $0xc4] ss:$16 sps:$4 sm:$0xff]   ;;  %v6403_v7 = vld [vmem:[#allocation10 + $0x88] ss:$16 sps:$4 sm:$0xff]  }
 0x27a   :  { %4751 = vpow2.f32 %v4432_v38  ;;  %v4433_v46 = vmul.f32 -1.442695, %v1502_v40  ;;  %1626 = vmatprep.subr.bf16.mxu0 %v8827_v47  ;;  %1667 = vmatprep.subr.bf16.mxu1 %v8828_v53  ;;  %v4434_v9 = vmul.f32 -1.442695, %v1504_v49  ;;  %v6356_v47 = vld [vmem:[#allocation10 + $0xe8] ss:$16 sps:$4 sm:$0xff]  }
 0x27b   :  { %v6362_v53 = vld [vmem:[#allocation10 + $0xcc] ss:$16 sps:$4 sm:$0xff]   ;;  %v6385_v49 = vld [vmem:[#allocation10 + $0xa0] ss:$16 sps:$4 sm:$0xff]   ;;  %v6694_v3 = vld [vmem:[#allocation12 + $0xc4] ss:$16 sps:$4 sm:$0xff]  }
 0x27c   :  { %4753 = vpow2.f32 %v4433_v46  ;;  %v6353_v46 = vld [vmem:[#allocation10 + $0xe0] ss:$16 sps:$4 sm:$0xff]  }
 0x27d   :  { %1627 = vmatpush1.bf16.msra.mxu0 %v8829_v56  ;;  %1668 = vmatpush1.bf16.msra.mxu1 %v8830_v60  ;;  %4755 = vpow2.f32 %v4434_v9  ;;  %v6370_v56 = vld [vmem:[#allocation10 + $0xc8] ss:$16 sps:$4 sm:$0xff]   ;;  %v6406_v9 = vld [vmem:[#allocation10 + $0x64] ss:$16 sps:$4 sm:$0xff]  }
 0x27e   :  { %1628 = vmatprep.subr.bf16.mxu0 %v8831_v6  ;;  %1669 = vmatprep.subr.bf16.mxu1 %v8832_v39  ;;  %v4456_v60 = vld [vmem:[%s8286_s2 + $0x18] sm:$0xff]  ;;  %v4474_v39 = vld [vmem:[%s8286_s2 + $0x28] sm:$0xff] }
 0x27f   :  { %v6379_v6 = vld [vmem:[#allocation10 + $0xac] ss:$16 sps:$4 sm:$0xff]   ;;  %2563 = vperm.xlu1 %4526, %v4456_v60   ;;  %v6500_v60 = vld [vmem:[#allocation7 + $0x80] ss:$16 sps:$4 sm:$0xff]  }
 0x280   :  { %8866 = vst [vmem:[#allocation47_spill] sm:$0xff] %v6500_v60 }
 0x281   :  { %1629 = vmatpush1.bf16.msra.mxu0 %v8833_v51  ;;  %1670 = vmatpush1.bf16.msra.mxu1 %v8834_v0  ;;  %v6388_v51 = vld [vmem:[#allocation10 + $0xa8] ss:$16 sps:$4 sm:$0xff]   ;;  %v6391_v0 = vld [vmem:[#allocation10 + $0x84] ss:$16 sps:$4 sm:$0xff]  }
 0x282   :  { %1630 = vmatprep.subr.bf16.mxu0 %v8835_v57  ;;  %1671 = vmatprep.subr.bf16.mxu1 %v8836_v5  ;;  %v4492_v57 = vld [vmem:[%s8286_s2 + $0x38] sm:$0xff]  ;;  %v6400_v5 = vld [vmem:[#allocation10 + $0x80] ss:$16 sps:$4 sm:$0xff]  }
 0x283   :  { %3387 = vperm.xlu1 %4526, %v4474_v39   ;;  %v6503_v39 = vld [vmem:[#allocation7 + $0x88] ss:$16 sps:$4 sm:$0xff]  }
 0x284   :  { %8867 = vst [vmem:[#allocation48_spill] sm:$0xff] %v6503_v39 }
 0x285   :  { %1631 = vmatpush1.bf16.msra.mxu0 %v8837_v11  ;;  %1672 = vmatpush1.bf16.msra.mxu1 %v8838_v12  ;;  %v6409_v11 = vld [vmem:[#allocation10 + $0x6c] ss:$16 sps:$4 sm:$0xff]   ;;  %v6412_v12 = vld [vmem:[#allocation10 + $0x60] ss:$16 sps:$4 sm:$0xff]  }
 0x286   :  { %1632 = vmatprep.subr.bf16.mxu0 %v8839_v13  ;;  %1673 = vmatprep.subr.bf16.mxu1 %v8840_v14  ;;  %v6415_v13 = vld [vmem:[#allocation10 + $0x68] ss:$16 sps:$4 sm:$0xff]   ;;  %v6418_v14 = vld [vmem:[#allocation10 + $0x44] ss:$16 sps:$4 sm:$0xff]  }
 0x287   :  { %v4752_v16 = vpop.eup %4751  ;;  %4211 = vperm.xlu1 %4526, %v4492_v57   ;;  %v6506_v57 = vld [vmem:[#allocation7 + $0x64] ss:$16 sps:$4 sm:$0xff]  }
 0x288   :  { %v1508_v18 = vadd.f32 1.0, %v4752_v16  ;;  %v6421_v16 = vld [vmem:[#allocation10 + $0x4c] ss:$16 sps:$4 sm:$0xff]   ;;  %8868 = vst [vmem:[#allocation49_spill] sm:$0xff] %v6506_v57 }
 0x289   :  { %v4754_v19 = vpop.eup %4753  ;;  %1633 = vmatpush1.bf16.msra.mxu0 %v8841_v21  ;;  %1674 = vmatpush1.bf16.msra.mxu1 %v8842_v22  ;;  %v6433_v21 = vld [vmem:[#allocation10 + $0x2c] ss:$16 sps:$4 sm:$0xff]   ;;  %v6436_v22 = vld [vmem:[#allocation10 + $0x20] ss:$16 sps:$4 sm:$0xff]  }
 0x28a   :  { %4757 = vrcp.f32 %v1508_v18  ;;  %v1514_v58 = vadd.f32 1.0, %v4754_v19  ;;  %1634 = vmatprep.subr.bf16.mxu0 %v8843_v23  ;;  %1675 = vmatprep.subr.bf16.mxu1 %v8844_v24  ;;  %v4756_v29 = vpop.eup %4755  ;;  %v6427_v18 = vld [vmem:[#allocation10 + $0x48] ss:$16 sps:$4 sm:$0xff]   ;;  %v6430_v19 = vld [vmem:[#allocation10 + $0x24] ss:$16 sps:$4 sm:$0xff]  }
 0x28b   :  { %4759 = vtanh.f32 %v1503_v17  ;;  %v1521_v34 = vadd.f32 1.0, %v4756_v29  ;;  %v6424_v17 = vld [vmem:[#allocation10 + $0x40] ss:$16 sps:$4 sm:$0xff]   ;;  %v6442_v23 = vld [vmem:[#allocation10 + $0x4] ss:$16 sps:$4 sm:$0xff]  }
 0x28c   :  { %4761 = vrcp.f32 %v1514_v58  ;;  %v6439_v58 = vld [vmem:[#allocation10 + $0x28] ss:$16 sps:$4 sm:$0xff]   ;;  %8848 = vst [vmem:[#allocation28_spill] sm:$0xff] %v6442_v23  ;;  %v6445_v24 = vld [vmem:[#allocation10 + $0xc] ss:$16 sps:$4 sm:$0xff]  }
 0x28d   :  { %1635 = vmatpush1.bf16.msra.mxu0 %v8845_v55  ;;  %1676 = vmatpush1.bf16.msra.mxu1 %v8846_v26  ;;  %4763 = vrcp.f32 %v1521_v34  ;;  %8847 = vst [vmem:[#allocation27_spill] sm:$0xff] %v6439_v58  ;;  %8849 = vst [vmem:[#allocation29_spill] sm:$0xff] %v6445_v24  ;;  %v6448_v55 = vld [vmem:[#allocation10] ss:$16 sps:$4 sm:$0xff]   ;;  %v6451_v26 = vld [vmem:[#allocation10 + $0x8] ss:$16 sps:$4 sm:$0xff]  }
 0x28e   :  { %1749 = vmatprep.subr.bf16.mxu0 %v6324_v27  ;;  %1790 = vmatprep.subr.bf16.mxu1 %v6327_v28  ;;  %8850 = vst [vmem:[#allocation30_spill] sm:$0xff] %v6448_v55  ;;  %8851 = vst [vmem:[#allocation31_spill] sm:$0xff] %v6451_v26  ;;  %v6454_v29 = vld [vmem:[#allocation7 + $0xe4] ss:$16 sps:$4 sm:$0xff]   ;;  %v6471_v34 = vld [vmem:[#allocation7 + $0xcc] ss:$16 sps:$4 sm:$0xff]  }
 0x28f   :  { %8852 = vst [vmem:[#allocation33_spill] sm:$0xff] %v6454_v29  ;;  %8857 = vst [vmem:[#allocation38_spill] sm:$0xff] %v6471_v34 }
 0x297   :  { %v4758_v30 = vpop.eup %4757 }
 0x298   :  { %v4760_v31 = vpop.eup %4759 }
 0x299   :  { %v4762_v32 = vpop.eup %4761  ;;  %v1525_v35 = vmul.f32 %v4760_v31, %v4758_v30  ;;  %v6457_v30 = vld [vmem:[#allocation7 + $0xec] ss:$16 sps:$4 sm:$0xff]   ;;  %v6462_v31 = vld [vmem:[#allocation7 + $0xe0] ss:$16 sps:$4 sm:$0xff]  }
 0x29a   :  { %v1524_v36 = vmul.f32 %v4762_v32, %v805_v33  ;;  %v4764_v4 = vpop.eup %4763  ;;  %8853 = vst [vmem:[#allocation34_spill] sm:$0xff] %v6457_v30  ;;  %8854 = vst [vmem:[#allocation35_spill] sm:$0xff] %v6462_v31  ;;  %v6465_v32 = vld [vmem:[#allocation7 + $0xe8] ss:$16 sps:$4 sm:$0xff]  }
 0x29b   :  { %8855 = vst [vmem:[#allocation36_spill] sm:$0xff] %v6465_v32 }
 0x29c   :  { %v1526_v38 = vadd.f32 %v1525_v35, %v1524_v36  ;;  %v6476_v35 = vld [vmem:[#allocation7 + $0xc0] ss:$16 sps:$4 sm:$0xff]   ;;  %v6479_v36 = vld [vmem:[#allocation7 + $0xc8] ss:$16 sps:$4 sm:$0xff]  }
 0x29d   :  { %8858 = vst [vmem:[#allocation39_spill] sm:$0xff] %v6476_v35  ;;  %8859 = vst [vmem:[#allocation40_spill] sm:$0xff] %v6479_v36 }
 0x29e   :  { %4765 = vtanh.f32 %v1526_v38  ;;  %v6338_v40 = vsel %vm1533_vm10, %v1526_v38, %v805_v33  ;;  %v6468_v33 = vld [vmem:[#allocation7 + $0xc4] ss:$16 sps:$4 sm:$0xff]  }
 0x29f   :  { %8856 = vst [vmem:[#allocation37_spill] sm:$0xff] %v6468_v33  ;;  %v6482_v38 = vld [vmem:[#allocation7 + $0xa4] ss:$16 sps:$4 sm:$0xff]  }
 0x2a0   :  { %8860 = vst [vmem:[#allocation41_spill] sm:$0xff] %v6482_v38 }
 0x2ab   :  { %v4766_v42 = vpop.eup %4765 }
 0x2ac   :  { %v1528_v43 = vmul.f32 %v4766_v42, %v4764_v4  ;;  %v6485_v4 = vld [vmem:[#allocation7 + $0xac] ss:$16 sps:$4 sm:$0xff]   ;;  %v6488_v42 = vld [vmem:[#allocation7 + $0xa0] ss:$16 sps:$4 sm:$0xff]  }
 0x2ad   :  { %8861 = vst [vmem:[#allocation42_spill] sm:$0xff] %v6485_v4  ;;  %8862 = vst [vmem:[#allocation43_spill] sm:$0xff] %v6488_v42 }
 0x2ae   :  { %v6345_v45 = vsel %vm1533_vm10, %v1528_v43, %v804_v61  ;;  %v6491_v43 = vld [vmem:[#allocation7 + $0xa8] ss:$16 sps:$4 sm:$0xff]   ;;  %v6494_v61 = vld [vmem:[#allocation7 + $0x84] ss:$16 sps:$4 sm:$0xff]  }
 0x2af   :  { %v6349_v44 = vpack.c.bf16 %v6345_v45, %v6345_v45  ;;  %8863 = vst [vmem:[#allocation44_spill] sm:$0xff] %v6491_v43  ;;  %8864 = vst [vmem:[#allocation45_spill] sm:$0xff] %v6494_v61 }
 0x2b1   :  { %1653 = vmatmul.mubr.bf16.vlgmr.msra.gmra.mxu0 %v6349_v44  ;;  %1694 = vmatmul.mubr.bf16.vlgmr.msra.gmra.mxu1 %v6349_v44 }
 0x2b2   :  { %1750 = vmatpush1.bf16.msra.mxu0 %v6353_v46  ;;  %1791 = vmatpush1.bf16.msra.mxu1 %v6356_v47 }
 0x2b3   :  { %1751 = vmatprep.subr.bf16.mxu0 %v6359_v54  ;;  %1792 = vmatprep.subr.bf16.mxu1 %v6362_v53 }
 0x2b4   :  { %1781 = vmatprep.mubr.bf16.mxu0 %v8687_v52  ;;  %1822 = vmatprep.mubr.bf16.mxu1 %v8687_v52 }
 0x2b6   :  { %1752 = vmatpush1.bf16.msra.mxu0 %v6367_v8  ;;  %1793 = vmatpush1.bf16.msra.mxu1 %v6370_v56 }
 0x2b7   :  { %1753 = vmatprep.subr.bf16.mxu0 %v6376_v1  ;;  %1794 = vmatprep.subr.bf16.mxu1 %v6379_v6 }
 0x2ba   :  { %1754 = vmatpush1.bf16.msra.mxu0 %v6385_v49  ;;  %1795 = vmatpush1.bf16.msra.mxu1 %v6388_v51 }
 0x2bb   :  { %1755 = vmatprep.subr.bf16.mxu0 %v6391_v0  ;;  %1796 = vmatprep.subr.bf16.mxu1 %v6394_v62 }
 0x2be   :  { %1756 = vmatpush1.bf16.msra.mxu0 %v6400_v5  ;;  %1797 = vmatpush1.bf16.msra.mxu1 %v6403_v7 }
 0x2bf   :  { %1757 = vmatprep.subr.bf16.mxu0 %v6406_v9  ;;  %1798 = vmatprep.subr.bf16.mxu1 %v6409_v11 }
 0x2c2   :  { %1758 = vmatpush1.bf16.msra.mxu0 %v6412_v12  ;;  %1799 = vmatpush1.bf16.msra.mxu1 %v6415_v13 }
 0x2c3   :  { %1759 = vmatprep.subr.bf16.mxu0 %v6418_v14  ;;  %1800 = vmatprep.subr.bf16.mxu1 %v6421_v16 }
 0x2c6   :  { %1760 = vmatpush1.bf16.msra.mxu0 %v6424_v17  ;;  %1801 = vmatpush1.bf16.msra.mxu1 %v6427_v18 }
 0x2c7   :  { %1761 = vmatprep.subr.bf16.mxu0 %v6430_v19  ;;  %1802 = vmatprep.subr.bf16.mxu1 %v6433_v21 }
 0x2ca   :  { %1762 = vmatpush1.bf16.msra.mxu0 %v6436_v22  ;;  %1803 = vmatpush1.bf16.msra.mxu1 %v6439_v58 }
 0x2cb   :  { %1763 = vmatprep.subr.bf16.mxu0 %v6442_v23  ;;  %1804 = vmatprep.subr.bf16.mxu1 %v6445_v24 }
 0x2ce   :  { %1764 = vmatpush1.bf16.msra.mxu0 %v6448_v55  ;;  %1805 = vmatpush1.bf16.msra.mxu1 %v6451_v26 }
 0x2cf   :  { %1831 = vmatprep.subr.bf16.mxu0 %v6454_v29  ;;  %1872 = vmatprep.subr.bf16.mxu1 %v6457_v30 }
 0x2d1   :  { %1782 = vmatmul.mubr.bf16.vlgmr.msra.gmra.mxu0 %v6349_v44  ;;  %1823 = vmatmul.mubr.bf16.vlgmr.msra.gmra.mxu1 %v6349_v44  ;;  %v6497_v44 = vld [vmem:[#allocation7 + $0x8c] ss:$16 sps:$4 sm:$0xff]  }
 0x2d2   :  { %1832 = vmatpush1.bf16.msra.mxu0 %v6462_v31  ;;  %1873 = vmatpush1.bf16.msra.mxu1 %v6465_v32  ;;  %8865 = vst [vmem:[#allocation46_spill] sm:$0xff] %v6497_v44 }
 0x2d3   :  { %1833 = vmatprep.subr.bf16.mxu0 %v6468_v33  ;;  %1874 = vmatprep.subr.bf16.mxu1 %v6471_v34 }
 0x2d4   :  { %1863 = vmatprep.mubr.bf16.mxu0 %v8687_v52  ;;  %1904 = vmatprep.mubr.bf16.mxu1 %v8687_v52 }
 0x2d6   :  { %1834 = vmatpush1.bf16.msra.mxu0 %v6476_v35  ;;  %1875 = vmatpush1.bf16.msra.mxu1 %v6479_v36 }
 0x2d7   :  { %1835 = vmatprep.subr.bf16.mxu0 %v6482_v38  ;;  %1876 = vmatprep.subr.bf16.mxu1 %v6485_v4 }
 0x2da   :  { %1836 = vmatpush1.bf16.msra.mxu0 %v6488_v42  ;;  %1877 = vmatpush1.bf16.msra.mxu1 %v6491_v43  ;;  %v6509_v43 = vld [vmem:[#allocation7 + $0x6c] ss:$16 sps:$4 sm:$0xff]  }
 0x2db   :  { %1837 = vmatprep.subr.bf16.mxu0 %v6494_v61  ;;  %1878 = vmatprep.subr.bf16.mxu1 %v6497_v44  ;;  %8869 = vst [vmem:[#allocation50_spill] sm:$0xff] %v6509_v43  ;;  %v6512_v61 = vld [vmem:[#allocation7 + $0x60] ss:$16 sps:$4 sm:$0xff]   ;;  %v6515_v44 = vld [vmem:[#allocation7 + $0x68] ss:$16 sps:$4 sm:$0xff]  }
 0x2dc   :  { %8870 = vst [vmem:[#allocation53_spill] sm:$0xff] %v6512_v61  ;;  %8871 = vst [vmem:[#allocation51_spill] sm:$0xff] %v6515_v44  ;;  %v6572_v42 = vld [vmem:[#allocation13 + $0xcc] ss:$16 sps:$4 sm:$0xff]  }
 0x2dd   :  { %8889 = vst [vmem:[#allocation68_spill] sm:$0xff] %v6572_v42 }
 0x2de   :  { %1838 = vmatpush1.bf16.msra.mxu0 %v6500_v60  ;;  %1879 = vmatpush1.bf16.msra.mxu1 %v6503_v39  ;;  %v6518_v60 = vld [vmem:[#allocation7 + $0x44] ss:$16 sps:$4 sm:$0xff]   ;;  %v6521_v39 = vld [vmem:[#allocation7 + $0x4c] ss:$16 sps:$4 sm:$0xff]  }
 0x2df   :  { %1839 = vmatprep.subr.bf16.mxu0 %v6506_v57  ;;  %1880 = vmatprep.subr.bf16.mxu1 %v6509_v43  ;;  %8872 = vst [vmem:[#allocation54_spill] sm:$0xff] %v6518_v60  ;;  %8873 = vst [vmem:[#allocation52_spill] sm:$0xff] %v6521_v39  ;;  %v6524_v57 = vld [vmem:[#allocation7 + $0x40] ss:$16 sps:$4 sm:$0xff]   ;;  %v6527_v43 = vld [vmem:[#allocation7 + $0x48] ss:$16 sps:$4 sm:$0xff]  }
 0x2e0   :  { %8874 = vst [vmem:[#allocation58_spill] sm:$0xff] %v6524_v57  ;;  %8875 = vst [vmem:[#allocation55_spill] sm:$0xff] %v6527_v43 }
 0x2e2   :  { %1840 = vmatpush1.bf16.msra.mxu0 %v6512_v61  ;;  %1881 = vmatpush1.bf16.msra.mxu1 %v6515_v44  ;;  %v6530_v61 = vld [vmem:[#allocation7 + $0x24] ss:$16 sps:$4 sm:$0xff]   ;;  %v6533_v44 = vld [vmem:[#allocation7 + $0x2c] ss:$16 sps:$4 sm:$0xff]  }
 0x2e3   :  { %1841 = vmatprep.subr.bf16.mxu0 %v6518_v60  ;;  %1882 = vmatprep.subr.bf16.mxu1 %v6521_v39  ;;  %8876 = vst [vmem:[#allocation59_spill] sm:$0xff] %v6530_v61  ;;  %8877 = vst [vmem:[#allocation56_spill] sm:$0xff] %v6533_v44  ;;  %v6536_v60 = vld [vmem:[#allocation7 + $0x20] ss:$16 sps:$4 sm:$0xff]   ;;  %v6539_v39 = vld [vmem:[#allocation7 + $0x28] ss:$16 sps:$4 sm:$0xff]  }
 0x2e4   :  { %8878 = vst [vmem:[#allocation62_spill] sm:$0xff] %v6536_v60  ;;  %8879 = vst [vmem:[#allocation57_spill] sm:$0xff] %v6539_v39 }
 0x2e6   :  { %1842 = vmatpush1.bf16.msra.mxu0 %v6524_v57  ;;  %1883 = vmatpush1.bf16.msra.mxu1 %v6527_v43  ;;  %v6542_v57 = vld [vmem:[#allocation7 + $0x4] ss:$16 sps:$4 sm:$0xff]   ;;  %v6545_v43 = vld [vmem:[#allocation7 + $0xc] ss:$16 sps:$4 sm:$0xff]  }
 0x2e7   :  { %1843 = vmatprep.subr.bf16.mxu0 %v6530_v61  ;;  %1884 = vmatprep.subr.bf16.mxu1 %v6533_v44  ;;  %8880 = vst [vmem:[#allocation63_spill] sm:$0xff] %v6542_v57  ;;  %8881 = vst [vmem:[#allocation60_spill] sm:$0xff] %v6545_v43  ;;  %v6548_v61 = vld [vmem:[#allocation7] ss:$16 sps:$4 sm:$0xff]   ;;  %v6551_v44 = vld [vmem:[#allocation7 + $0x8] ss:$16 sps:$4 sm:$0xff]  }
 0x2e8   :  { %8882 = vst [vmem:[#allocation66_spill] sm:$0xff] %v6548_v61  ;;  %8883 = vst [vmem:[#allocation61_spill] sm:$0xff] %v6551_v44 }
 0x2ea   :  { %1844 = vmatpush1.bf16.msra.mxu0 %v6536_v60  ;;  %1885 = vmatpush1.bf16.msra.mxu1 %v6539_v39  ;;  %v4440_v39 = vld [vmem:[%s8285_s1 + $0x8] sm:$0xf]  ;;  %v6557_v60 = vld [vmem:[#allocation13 + $0xe4] ss:$16 sps:$4 sm:$0xff]  }
 0x2eb   :  { %1845 = vmatprep.subr.bf16.mxu0 %v6542_v57  ;;  %1886 = vmatprep.subr.bf16.mxu1 %v6545_v43  ;;  %8884 = vst [vmem:[#allocation67_spill] sm:$0xff] %v6557_v60  ;;  %v6560_v57 = vld [vmem:[#allocation13 + $0xec] ss:$16 sps:$4 sm:$0xff]   ;;  %v6563_v43 = vld [vmem:[#allocation13 + $0xe0] ss:$16 sps:$4 sm:$0xff]  }
 0x2ec   :  { %8885 = vst [vmem:[#allocation64_spill] sm:$0xff] %v6560_v57  ;;  %8886 = vst [vmem:[#allocation70_spill] sm:$0xff] %v6563_v43 }
 0x2ee   :  { %1846 = vmatpush1.bf16.msra.mxu0 %v6548_v61  ;;  %1887 = vmatpush1.bf16.msra.mxu1 %v6551_v44  ;;  %v6566_v61 = vld [vmem:[#allocation13 + $0xe8] ss:$16 sps:$4 sm:$0xff]   ;;  %v6569_v44 = vld [vmem:[#allocation13 + $0xc4] ss:$16 sps:$4 sm:$0xff]  }
 0x2ef   :  { %1950 = vmatprep.subr.bf16.mxu0 %v6557_v60  ;;  %1991 = vmatprep.subr.bf16.mxu1 %v6560_v57  ;;  %8887 = vst [vmem:[#allocation65_spill] sm:$0xff] %v6566_v61  ;;  %8888 = vst [vmem:[#allocation71_spill] sm:$0xff] %v6569_v44  ;;  %v6592_v57 = vld [vmem:[#allocation13 + $0xa8] ss:$16 sps:$4 sm:$0xff]  }
 0x2f0   :  { %8895 = vst [vmem:[#allocation73_spill] sm:$0xff] %v6592_v57 }
 0x2f1   :  { %1864 = vmatmul.mubr.bf16.vlgmr.msra.gmra.mxu0 %v4440_v39  ;;  %1905 = vmatmul.mubr.bf16.vlgmr.msra.gmra.mxu1 %v4440_v39  ;;  %v6577_v39 = vld [vmem:[#allocation13 + $0xc0] ss:$16 sps:$4 sm:$0xff]  }
 0x2f2   :  { %1951 = vmatpush1.bf16.msra.mxu0 %v6563_v43  ;;  %1992 = vmatpush1.bf16.msra.mxu1 %v6566_v61  ;;  %8890 = vst [vmem:[#allocation74_spill] sm:$0xff] %v6577_v39  ;;  %v6580_v43 = vld [vmem:[#allocation13 + $0xc8] ss:$16 sps:$4 sm:$0xff]   ;;  %v6583_v61 = vld [vmem:[#allocation13 + $0xa4] ss:$16 sps:$4 sm:$0xff]  }
 0x2f3   :  { %1952 = vmatprep.subr.bf16.mxu0 %v6569_v44  ;;  %1993 = vmatprep.subr.bf16.mxu1 %v6572_v42  ;;  %8891 = vst [vmem:[#allocation69_spill] sm:$0xff] %v6580_v43  ;;  %8892 = vst [vmem:[#allocation75_spill] sm:$0xff] %v6583_v61  ;;  %v6586_v44 = vld [vmem:[#allocation13 + $0xac] ss:$16 sps:$4 sm:$0xff]   ;;  %v6589_v42 = vld [vmem:[#allocation13 + $0xa0] ss:$16 sps:$4 sm:$0xff]  }
 0x2f4   :  { %1982 = vmatprep.mubr.bf16.mxu0 %v8687_v52  ;;  %2023 = vmatprep.mubr.bf16.mxu1 %v8687_v52  ;;  %8893 = vst [vmem:[#allocation72_spill] sm:$0xff] %v6586_v44  ;;  %8894 = vst [vmem:[#allocation78_spill] sm:$0xff] %v6589_v42 }
 0x2f6   :  { %1953 = vmatpush1.bf16.msra.mxu0 %v6577_v39  ;;  %1994 = vmatpush1.bf16.msra.mxu1 %v6580_v43  ;;  %v6595_v39 = vld [vmem:[#allocation13 + $0x84] ss:$16 sps:$4 sm:$0xff]   ;;  %v6598_v43 = vld [vmem:[#allocation13 + $0x8c] ss:$16 sps:$4 sm:$0xff]  }
 0x2f7   :  { %1954 = vmatprep.subr.bf16.mxu0 %v6583_v61  ;;  %1995 = vmatprep.subr.bf16.mxu1 %v6586_v44  ;;  %8896 = vst [vmem:[#allocation79_spill] sm:$0xff] %v6595_v39  ;;  %8897 = vst [vmem:[#allocation76_spill] sm:$0xff] %v6598_v43  ;;  %v6601_v61 = vld [vmem:[#allocation13 + $0x80] ss:$16 sps:$4 sm:$0xff]   ;;  %v6604_v44 = vld [vmem:[#allocation13 + $0x88] ss:$16 sps:$4 sm:$0xff]  }
 0x2f8   :  { %8898 = vst [vmem:[#allocation80_spill] sm:$0xff] %v6601_v61  ;;  %8899 = vst [vmem:[#allocation77_spill] sm:$0xff] %v6604_v44 }
 0x2fa   :  { %1955 = vmatpush1.bf16.msra.mxu0 %v6589_v42  ;;  %1996 = vmatpush1.bf16.msra.mxu1 %v6592_v57  ;;  %v6607_v42 = vld [vmem:[#allocation13 + $0x64] ss:$16 sps:$4 sm:$0xff]   ;;  %v6610_v57 = vld [vmem:[#allocation13 + $0x6c] ss:$16 sps:$4 sm:$0xff]  }
 0x2fb   :  { %1956 = vmatprep.subr.bf16.mxu0 %v6595_v39  ;;  %1997 = vmatprep.subr.bf16.mxu1 %v6598_v43  ;;  %8900 = vst [vmem:[#allocation81_spill] sm:$0xff] %v6607_v42  ;;  %8901 = vst [vmem:[#allocation82_spill] sm:$0xff] %v6610_v57  ;;  %v6613_v39 = vld [vmem:[#allocation13 + $0x60] ss:$16 sps:$4 sm:$0xff]   ;;  %v6616_v43 = vld [vmem:[#allocation13 + $0x68] ss:$16 sps:$4 sm:$0xff]  }
 0x2fc   :  { %8902 = vst [vmem:[#allocation83_spill] sm:$0xff] %v6613_v39  ;;  %8903 = vst [vmem:[#allocation84_spill] sm:$0xff] %v6616_v43 }
 0x2fe   :  { %1957 = vmatpush1.bf16.msra.mxu0 %v6601_v61  ;;  %1998 = vmatpush1.bf16.msra.mxu1 %v6604_v44  ;;  %v6619_v61 = vld [vmem:[#allocation13 + $0x44] ss:$16 sps:$4 sm:$0xff]   ;;  %v6622_v44 = vld [vmem:[#allocation13 + $0x4c] ss:$16 sps:$4 sm:$0xff]  }
 0x2ff   :  { %1958 = vmatprep.subr.bf16.mxu0 %v6607_v42  ;;  %1999 = vmatprep.subr.bf16.mxu1 %v6610_v57  ;;  %8904 = vst [vmem:[#allocation85_spill] sm:$0xff] %v6619_v61  ;;  %8905 = vst [vmem:[#allocation32_spill] sm:$0xff] %v6622_v44  ;;  %v6625_v42 = vld [vmem:[#allocation13 + $0x40] ss:$16 sps:$4 sm:$0xff]   ;;  %v6628_v57 = vld [vmem:[#allocation13 + $0x48] ss:$16 sps:$4 sm:$0xff]  }
 0x300   :  { %8906 = vst [vmem:[#allocation86_spill] sm:$0xff] %v6625_v42  ;;  %8907 = vst [vmem:[#allocation87_spill] sm:$0xff] %v6628_v57 }
 0x302   :  { %1959 = vmatpush1.bf16.msra.mxu0 %v6613_v39  ;;  %2000 = vmatpush1.bf16.msra.mxu1 %v6616_v43  ;;  %v6631_v39 = vld [vmem:[#allocation13 + $0x24] ss:$16 sps:$4 sm:$0xff]   ;;  %v6634_v43 = vld [vmem:[#allocation13 + $0x2c] ss:$16 sps:$4 sm:$0xff]  }
 0x303   :  { %1960 = vmatprep.subr.bf16.mxu0 %v6619_v61  ;;  %2001 = vmatprep.subr.bf16.mxu1 %v6622_v44  ;;  %8908 = vst [vmem:[#allocation88_spill] sm:$0xff] %v6631_v39  ;;  %8909 = vst [vmem:[#allocation89_spill] sm:$0xff] %v6634_v43  ;;  %v6637_v61 = vld [vmem:[#allocation13 + $0x20] ss:$16 sps:$4 sm:$0xff]   ;;  %v6640_v44 = vld [vmem:[#allocation13 + $0x28] ss:$16 sps:$4 sm:$0xff]  }
 0x304   :  { %8910 = vst [vmem:[#allocation90_spill] sm:$0xff] %v6637_v61  ;;  %8911 = vst [vmem:[#allocation91_spill] sm:$0xff] %v6640_v44 }
 0x306   :  { %1961 = vmatpush1.bf16.msra.mxu0 %v6625_v42  ;;  %2002 = vmatpush1.bf16.msra.mxu1 %v6628_v57  ;;  %v6643_v42 = vld [vmem:[#allocation13 + $0x4] ss:$16 sps:$4 sm:$0xff]   ;;  %v6646_v57 = vld [vmem:[#allocation13 + $0xc] ss:$16 sps:$4 sm:$0xff]  }
 0x307   :  { %1962 = vmatprep.subr.bf16.mxu0 %v6631_v39  ;;  %2003 = vmatprep.subr.bf16.mxu1 %v6634_v43  ;;  %8912 = vst [vmem:[#allocation92_spill] sm:$0xff] %v6643_v42  ;;  %8913 = vst [vmem:[#allocation93_spill] sm:$0xff] %v6646_v57  ;;  %v6649_v39 = vld [vmem:[#allocation13] ss:$16 sps:$4 sm:$0xff]   ;;  %v6652_v43 = vld [vmem:[#allocation13 + $0x8] ss:$16 sps:$4 sm:$0xff]  }
 0x308   :  { %8914 = vst [vmem:[#allocation94_spill] sm:$0xff] %v6649_v39  ;;  %8915 = vst [vmem:[#allocation95_spill] sm:$0xff] %v6652_v43 }
 0x30a   :  { %1963 = vmatpush1.bf16.msra.mxu0 %v6637_v61  ;;  %2004 = vmatpush1.bf16.msra.mxu1 %v6640_v44  ;;  %v6655_v61 = vld [vmem:[#allocation12 + $0xe4] ss:$16 sps:$4 sm:$0xff]   ;;  %v6658_v44 = vld [vmem:[#allocation12 + $0xec] ss:$16 sps:$4 sm:$0xff]  }
 0x30b   :  { %1964 = vmatprep.subr.bf16.mxu0 %v6643_v42  ;;  %2005 = vmatprep.subr.bf16.mxu1 %v6646_v57  ;;  %8916 = vst [vmem:[#allocation96_spill] sm:$0xff] %v6655_v61  ;;  %8917 = vst [vmem:[#allocation97_spill] sm:$0xff] %v6658_v44 }
 0x30e   :  { %1965 = vmatpush1.bf16.msra.mxu0 %v6649_v39  ;;  %2006 = vmatpush1.bf16.msra.mxu1 %v6652_v43 }
 0x30f   :  { %2032 = vmatprep.subr.bf16.mxu0 %v6655_v61  ;;  %2073 = vmatprep.subr.bf16.mxu1 %v6658_v44 }
 0x330   :  { %v1572_v42 = vpop.f32.mrf.mxu0  ;;  %v1613_v60 = vpop.f32.mrf.mxu1 }
 0x332   :  { %v1574_v4 = vpop.f32.mrf.mxu0  ;;  %v1615_v57 = vpop.f32.mrf.mxu1 }
 0x334   :  { %v1576_v38 = vpop.f32.mrf.mxu0  ;;  %v1617_v36 = vpop.f32.mrf.mxu1 }
 0x336   :  { %v1577_v35 = vpop.f32.mrf.mxu0  ;;  %v1618_v39 = vpop.f32.mrf.mxu1 }
 0x371   :  { %v1654_v34 = vpop.f32.mrf.mxu0  ;;  %v1695_v33 = vpop.f32.mrf.mxu1 }
 0x372   :  { %v1655_v32 = vadd.f32 %v1654_v34, %v1572_v42  ;;  %v1696_v36 = vadd.f32 %v1695_v33, %v1613_v60 }
 0x373   :  { %v1656_v43 = vpop.f32.mrf.mxu0  ;;  %v1697_v31 = vpop.f32.mrf.mxu1 }
 0x374   :  { %v1702_v30 = vadd.f32 %v1655_v32, %v6236_v20  ;;  %v1657_v61 = vadd.f32 %v1656_v43, %v1574_v4  ;;  %v1698_v35 = vadd.f32 %v1697_v31, %v1615_v57  ;;  %v1704_v34 = vadd.f32 %v1696_v36, %v6254_v41 }
 0x375   :  { %v1658_v29 = vpop.f32.mrf.mxu0  ;;  %v1699_v26 = vpop.f32.mrf.mxu1 }
 0x376   :  { %v4435_v55 = vmul.f32 -1.442695, %v1702_v30  ;;  %v1703_v44 = vadd.f32 %v1657_v61, %v6241_v25  ;;  %v1705_v39 = vadd.f32 %v1698_v35, %v6248_v37 }
 0x377   :  { %v1659_v24 = vpop.f32.mrf.mxu0  ;;  %v1700_v23 = vpop.f32.mrf.mxu1 }
 0x378   :  { %4767 = vpow2.f32 %v4435_v55  ;;  %v4436_v38 = vmul.f32 -1.442695, %v1703_v44  ;;  %v4437_v42 = vmul.f32 -1.442695, %v1705_v39 }
 0x37a   :  { %4769 = vpow2.f32 %v4436_v38 }
 0x37b   :  { %4771 = vtanh.f32 %v1704_v34 }
 0x37c   :  { %4773 = vpow2.f32 %v4437_v42 }
 0x385   :  { %v4768_v58 = vpop.eup %4767 }
 0x386   :  { %v1709_v32 = vadd.f32 1.0, %v4768_v58  ;;  %v1321_v58 = vsel %vm803_vm4, %v6262_v10, 0.0 }
 0x387   :  { %v4770_v29 = vpop.eup %4769 }
 0x388   :  { %4775 = vrcp.f32 %v1709_v32  ;;  %v1715_v26 = vadd.f32 1.0, %v4770_v29  ;;  %v4772_v55 = vpop.eup %4771 }
 0x389   :  { %v4774_v33 = vpop.eup %4773 }
 0x38a   :  { %4777 = vrcp.f32 %v1715_v26  ;;  %v1722_v57 = vadd.f32 1.0, %v4774_v33  ;;  %v6691_v33 = vld [vmem:[#allocation12 + $0xe8] ss:$16 sps:$4 sm:$0xff]  }
 0x38c   :  { %4779 = vrcp.f32 %v1722_v57 }
 0x391   :  { %v1783_v24 = vpop.f32.mrf.mxu0  ;;  %v6665_v23 = vpop.f32.mrf.mxu1 }
 0x393   :  { %v1785_v30 = vpop.f32.mrf.mxu0  ;;  %v6667_v31 = vpop.f32.mrf.mxu1 }
 0x395   :  { %v4776_v4 = vpop.eup %4775  ;;  %v1787_v43 = vpop.f32.mrf.mxu0 }
 0x396   :  { %v1828_v61 = vpop.f32.mrf.mxu1  ;;  %v1726_v44 = vmul.f32 %v4776_v4, %v4772_v55  ;;  %v6688_v55 = vld [vmem:[#allocation12 + $0xe0] ss:$16 sps:$4 sm:$0xff]   ;;  %v6697_v43 = vld [vmem:[#allocation12 + $0xcc] ss:$16 sps:$4 sm:$0xff]  }
 0x397   :  { %v4778_v60 = vpop.eup %4777  ;;  %v1788_v38 = vpop.f32.mrf.mxu0 }
 0x398   :  { %v1829_v35 = vpop.f32.mrf.mxu1  ;;  %v1725_v36 = vmul.f32 %v4778_v60, %v1321_v58  ;;  %v6703_v38 = vld [vmem:[#allocation12 + $0xc0] ss:$16 sps:$4 sm:$0xff]  }
 0x399   :  { %v4780_v42 = vpop.eup %4779 }
 0x39a   :  { %v1727_v39 = vadd.f32 %v1726_v44, %v1725_v36 }
 0x39c   :  { %4781 = vtanh.f32 %v1727_v39  ;;  %v6674_v34 = vsel %vm1533_vm10, %v1727_v39, %v1321_v58  ;;  %v6706_v39 = vld [vmem:[#allocation12 + $0xc8] ss:$16 sps:$4 sm:$0xff]  }
 0x3a9   :  { %v4782_v32 = vpop.eup %4781 }
 0x3aa   :  { %v1729_v29 = vmul.f32 %v4782_v32, %v4780_v42 }
 0x3ac   :  { %v6679_v26 = vsel %vm1533_vm10, %v1729_v29, %v6267_v15  ;;  %v6683_v50 = vsel %vm1533_vm10, %v1729_v29, 0.0  ;;  %v6713_v29 = vld [vmem:[#allocation12 + $0xac] ss:$16 sps:$4 sm:$0xff]  }
 0x3ad   :  { %1734 = vst [vmem:[#allocation15 + $0x8] sm:$0xff] %v6683_v50  ;;  %v1949_v10 = vpack.c.bf16 %v6679_v26, %v6679_v26 }
 0x3af   :  { %1983 = vmatmul.mubr.bf16.vlgmr.msra.gmra.mxu0 %v1949_v10  ;;  %2024 = vmatmul.mubr.bf16.vlgmr.msra.gmra.mxu1 %v1949_v10 }
 0x3b0   :  { %2033 = vmatpush1.bf16.msra.mxu0 %v6688_v55  ;;  %2074 = vmatpush1.bf16.msra.mxu1 %v6691_v33 }
 0x3b1   :  { %v1865_v15 = vpop.f32.mrf.mxu0  ;;  %v1906_v4 = vpop.f32.mrf.mxu1  ;;  %2034 = vmatprep.subr.bf16.mxu0 %v6694_v3  ;;  %2075 = vmatprep.subr.bf16.mxu1 %v6697_v43 }
 0x3b2   :  { %v1866_v61 = vadd.f32 %v1865_v15, %v1783_v24  ;;  %2064 = vmatprep.mubr.bf16.mxu0 %v8687_v52  ;;  %2105 = vmatprep.mubr.bf16.mxu1 %v8687_v52  ;;  %v6709_v24 = vld [vmem:[#allocation12 + $0xa4] ss:$16 sps:$4 sm:$0xff]  }
 0x3b3   :  { %v1867_v44 = vpop.f32.mrf.mxu0  ;;  %v1908_v60 = vpop.f32.mrf.mxu1 }
 0x3b4   :  { %v1913_v58 = vadd.f32 %v1866_v61, %v6073_v2  ;;  %v1868_v57 = vadd.f32 %v1867_v44, %v1785_v30  ;;  %2035 = vmatpush1.bf16.msra.mxu0 %v6703_v38  ;;  %2076 = vmatpush1.bf16.msra.mxu1 %v6706_v39  ;;  %v6716_v61 = vld [vmem:[#allocation12 + $0xa0] ss:$16 sps:$4 sm:$0xff]   ;;  %v6719_v44 = vld [vmem:[#allocation12 + $0xa8] ss:$16 sps:$4 sm:$0xff]  }
 0x3b5   :  { %v1869_v35 = vpop.f32.mrf.mxu0  ;;  %v1910_v36 = vpop.f32.mrf.mxu1  ;;  %2036 = vmatprep.subr.bf16.mxu0 %v6709_v24  ;;  %2077 = vmatprep.subr.bf16.mxu1 %v6713_v29 }
 0x3b6   :  { %v4441_v42 = vmul.f32 -1.442695, %v1913_v58  ;;  %v1914_v32 = vadd.f32 %v1868_v57, %v6077_v59  ;;  %v6722_v35 = vld [vmem:[#allocation12 + $0x84] ss:$16 sps:$4 sm:$0xff]   ;;  %v6725_v58 = vld [vmem:[#allocation12 + $0x8c] ss:$16 sps:$4 sm:$0xff]   ;;  %v1909_v57 = vadd.f32 %v1908_v60, %v6667_v31  ;;  %v1907_v31 = vadd.f32 %v1906_v4, %v6665_v23 }
 0x3b7   :  { %v1870_v30 = vpop.f32.mrf.mxu0  ;;  %v1911_v10 = vpop.f32.mrf.mxu1  ;;  %v6729_v36 = vld [vmem:[#allocation12 + $0x80] ss:$16 sps:$4 sm:$0xff]   ;;  %v6746_v60 = vld [vmem:[#allocation12 + $0x68] ss:$16 sps:$4 sm:$0xff]  }
 0x3b8   :  { %4783 = vpow2.f32 %v4441_v42  ;;  %v4442_v15 = vmul.f32 -1.442695, %v1914_v32  ;;  %2037 = vmatpush1.bf16.msra.mxu0 %v6716_v61  ;;  %2078 = vmatpush1.bf16.msra.mxu1 %v6719_v44  ;;  %v6732_v42 = vld [vmem:[#allocation12 + $0x88] ss:$16 sps:$4 sm:$0xff]   ;;  %v6735_v32 = vld [vmem:[#allocation12 + $0x64] ss:$16 sps:$4 sm:$0xff]   ;;  %v1916_v10 = vadd.f32 %v1909_v57, %v6084_v63  ;;  %v1915_v23 = vadd.f32 %v1907_v31, %v6090_v48 }
 0x3b9   :  { %2038 = vmatprep.subr.bf16.mxu0 %v6722_v35  ;;  %2079 = vmatprep.subr.bf16.mxu1 %v6725_v58  ;;  %8918 = vst [vmem:[#allocation98_spill] sm:$0xff] %v6732_v42  ;;  %8919 = vst [vmem:[#allocation99_spill] sm:$0xff] %v6735_v32  ;;  %v6738_v30 = vld [vmem:[#allocation12 + $0x6c] ss:$16 sps:$4 sm:$0xff]   ;;  %v6755_v57 = vld [vmem:[#allocation12 + $0x40] ss:$16 sps:$4 sm:$0xff]  }
 0x3ba   :  { %4785 = vpow2.f32 %v4442_v15  ;;  %8920 = vst [vmem:[#allocation100_spill] sm:$0xff] %v6738_v30  ;;  %v6742_v15 = vld [vmem:[#allocation12 + $0x60] ss:$16 sps:$4 sm:$0xff]   ;;  %8922 = vst [vmem:[#allocation102_spill] sm:$0xff] %v6746_v60  ;;  %v6759_v4 = vld [vmem:[#allocation12 + $0x48] ss:$16 sps:$4 sm:$0xff]  }
 0x3bb   :  { %8921 = vst [vmem:[#allocation101_spill] sm:$0xff] %v6742_v15  ;;  %8925 = vst [vmem:[#allocation105_spill] sm:$0xff] %v6755_v57  ;;  %v6765_v63 = vld [vmem:[#allocation12 + $0x2c] ss:$16 sps:$4 sm:$0xff]   ;;  %v6771_v31 = vld [vmem:[#allocation12 + $0x28] ss:$16 sps:$4 sm:$0xff]  }
 0x3bc   :  { %2039 = vmatpush1.bf16.msra.mxu0 %v6729_v36  ;;  %2080 = vmatpush1.bf16.msra.mxu1 %v6732_v42  ;;  %v6749_v42 = vld [vmem:[#allocation12 + $0x44] ss:$16 sps:$4 sm:$0xff]   ;;  %8926 = vst [vmem:[#allocation106_spill] sm:$0xff] %v6759_v4  ;;  %8928 = vst [vmem:[#allocation108_spill] sm:$0xff] %v6765_v63 }
 0x3bd   :  { %2040 = vmatprep.subr.bf16.mxu0 %v6735_v32  ;;  %2081 = vmatprep.subr.bf16.mxu1 %v6738_v30  ;;  %8923 = vst [vmem:[#allocation103_spill] sm:$0xff] %v6749_v42  ;;  %v6752_v32 = vld [vmem:[#allocation12 + $0x4c] ss:$16 sps:$4 sm:$0xff]   ;;  %v4443_v30 = vmul.f32 -1.442695, %v1916_v10  ;;  %8930 = vst [vmem:[#allocation110_spill] sm:$0xff] %v6771_v31 }
 0x3be   :  { %8924 = vst [vmem:[#allocation104_spill] sm:$0xff] %v6752_v32 }
 0x3bf   :  { %4787 = vpow2.f32 %v4443_v30  ;;  %v6783_v30 = vld [vmem:[#allocation12 + $0x8] ss:$16 sps:$4 sm:$0xff]  }
 0x3c0   :  { %2041 = vmatpush1.bf16.msra.mxu0 %v6742_v15  ;;  %2082 = vmatpush1.bf16.msra.mxu1 %v6746_v60  ;;  %v6762_v60 = vld [vmem:[#allocation12 + $0x24] ss:$16 sps:$4 sm:$0xff]   ;;  %8934 = vst [vmem:[#allocation115_spill] sm:$0xff] %v6783_v30 }
 0x3c1   :  { %2042 = vmatprep.subr.bf16.mxu0 %v6749_v42  ;;  %2083 = vmatprep.subr.bf16.mxu1 %v6752_v32  ;;  %8927 = vst [vmem:[#allocation107_spill] sm:$0xff] %v6762_v60  ;;  %v6768_v32 = vld [vmem:[#allocation12 + $0x20] ss:$16 sps:$4 sm:$0xff]  }
 0x3c2   :  { %8929 = vst [vmem:[#allocation109_spill] sm:$0xff] %v6768_v32 }
 0x3c4   :  { %2043 = vmatpush1.bf16.msra.mxu0 %v6755_v57  ;;  %2084 = vmatpush1.bf16.msra.mxu1 %v6759_v4  ;;  %v6774_v4 = vld [vmem:[#allocation12 + $0x4] ss:$16 sps:$4 sm:$0xff]  }
 0x3c5   :  { %v4784_v15 = vpop.eup %4783  ;;  %2044 = vmatprep.subr.bf16.mxu0 %v6762_v60  ;;  %2085 = vmatprep.subr.bf16.mxu1 %v6765_v63  ;;  %8931 = vst [vmem:[#allocation111_spill] sm:$0xff] %v6774_v4 }
 0x3c6   :  { %v1920_v42 = vadd.f32 1.0, %v4784_v15  ;;  %v6777_v15 = vld [vmem:[#allocation12 + $0xc] ss:$16 sps:$4 sm:$0xff]  }
 0x3c7   :  { %v4786_v10 = vpop.eup %4785  ;;  %8932 = vst [vmem:[#allocation112_spill] sm:$0xff] %v6777_v15 }
 0x3c8   :  { %4789 = vrcp.f32 %v1920_v42  ;;  %v1926_v57 = vadd.f32 1.0, %v4786_v10  ;;  %2045 = vmatpush1.bf16.msra.mxu0 %v6768_v32  ;;  %2086 = vmatpush1.bf16.msra.mxu1 %v6771_v31  ;;  %v6780_v42 = vld [vmem:[#allocation12] ss:$16 sps:$4 sm:$0xff]   ;;  %v6788_v32 = vpop.permute.xlu1 %1943 }
 0x3c9   :  { %4791 = vtanh.f32 %v1915_v23  ;;  %2046 = vmatprep.subr.bf16.mxu0 %v6774_v4  ;;  %2087 = vmatprep.subr.bf16.mxu1 %v6777_v15  ;;  %8933 = vst [vmem:[#allocation113_spill] sm:$0xff] %v6780_v42  ;;  %vm1945_vm11 = vcmp.eq.s32.totalorder %v6788_v32, 1 }
 0x3ca   :  { %4793 = vrcp.f32 %v1926_v57 }
 0x3cc   :  { %2047 = vmatpush1.bf16.msra.mxu0 %v6780_v42  ;;  %2088 = vmatpush1.bf16.msra.mxu1 %v6783_v30  ;;  %v4788_v23 = vpop.eup %4787 }
 0x3cd   :  { %2161 = vmatprep.subr.bf16.mxu0 %v6324_v27  ;;  %2202 = vmatprep.subr.bf16.mxu1 %v6327_v28  ;;  %v1933_v31 = vadd.f32 1.0, %v4788_v23 }
 0x3cf   :  { %4795 = vrcp.f32 %v1933_v31  ;;  %v8964_v31 = vld [vmem:[#allocation59_spill] sm:$0xff] }
 0x3d5   :  { %v4790_v10 = vpop.eup %4789 }
 0x3d6   :  { %v4792_v4 = vpop.eup %4791 }
 0x3d7   :  { %v4794_v57 = vpop.eup %4793  ;;  %v1937_v15 = vmul.f32 %v4792_v4, %v4790_v10  ;;  %v8968_v10 = vld [vmem:[#allocation63_spill] sm:$0xff] }
 0x3d8   :  { %v1936_v63 = vmul.f32 %v4794_v57, %v6338_v40  ;;  %v8969_v57 = vld [vmem:[#allocation60_spill] sm:$0xff] }
 0x3da   :  { %v1938_v42 = vadd.f32 %v1937_v15, %v1936_v63  ;;  %v8935_v63 = vld [vmem:[#allocation27_spill] sm:$0xff]  ;;  %v8965_v15 = vld [vmem:[#allocation56_spill] sm:$0xff] }
 0x3dc   :  { %4797 = vtanh.f32 %v1938_v42  ;;  %v6795_v27 = vsel %vm1945_vm11, %v1938_v42, %v6338_v40  ;;  %v4796_v28 = vpop.eup %4795  ;;  %v8936_v40 = vld [vmem:[#allocation28_spill] sm:$0xff]  ;;  %v8966_v42 = vld [vmem:[#allocation62_spill] sm:$0xff] }
 0x3e9   :  { %v4798_v30 = vpop.eup %4797 }
 0x3ea   :  { %v1940_v60 = vmul.f32 %v4798_v30, %v4796_v28  ;;  %v8967_v30 = vld [vmem:[#allocation57_spill] sm:$0xff]  ;;  %v8970_v28 = vld [vmem:[#allocation66_spill] sm:$0xff] }
 0x3ec   :  { %v6800_v23 = vsel %vm1945_vm11, %v1940_v60, %v6345_v45  ;;  %v8937_v45 = vld [vmem:[#allocation29_spill] sm:$0xff]  ;;  %v8963_v60 = vld [vmem:[#allocation55_spill] sm:$0xff] }
 0x3ed   :  { %v1948_v4 = vpack.c.bf16 %v6800_v23, %v6800_v23 }
 0x3ef   :  { %2065 = vmatmul.mubr.bf16.vlgmr.msra.gmra.mxu0 %v1948_v4  ;;  %2106 = vmatmul.mubr.bf16.vlgmr.msra.gmra.mxu1 %v1948_v4 }
 0x3f0   :  { %2162 = vmatpush1.bf16.msra.mxu0 %v6353_v46  ;;  %2203 = vmatpush1.bf16.msra.mxu1 %v6356_v47  ;;  %v8938_v46 = vld [vmem:[#allocation30_spill] sm:$0xff]  ;;  %v8939_v47 = vld [vmem:[#allocation31_spill] sm:$0xff] }
 0x3f1   :  { %2163 = vmatprep.subr.bf16.mxu0 %v6359_v54  ;;  %2204 = vmatprep.subr.bf16.mxu1 %v6362_v53  ;;  %v8940_v54 = vld [vmem:[#allocation33_spill] sm:$0xff]  ;;  %v8941_v53 = vld [vmem:[#allocation34_spill] sm:$0xff] }
 0x3f2   :  { %2193 = vmatprep.mubr.bf16.mxu0 %v8687_v52  ;;  %2234 = vmatprep.mubr.bf16.mxu1 %v8687_v52 }
 0x3f4   :  { %2164 = vmatpush1.bf16.msra.mxu0 %v6367_v8  ;;  %2205 = vmatpush1.bf16.msra.mxu1 %v6370_v56  ;;  %v8942_v8 = vld [vmem:[#allocation35_spill] sm:$0xff]  ;;  %v8943_v56 = vld [vmem:[#allocation36_spill] sm:$0xff] }
 0x3f5   :  { %2165 = vmatprep.subr.bf16.mxu0 %v6376_v1  ;;  %2206 = vmatprep.subr.bf16.mxu1 %v6379_v6  ;;  %v8944_v1 = vld [vmem:[#allocation37_spill] sm:$0xff]  ;;  %v8945_v6 = vld [vmem:[#allocation38_spill] sm:$0xff] }
 0x3f8   :  { %2166 = vmatpush1.bf16.msra.mxu0 %v6385_v49  ;;  %2207 = vmatpush1.bf16.msra.mxu1 %v6388_v51  ;;  %v8946_v49 = vld [vmem:[#allocation39_spill] sm:$0xff]  ;;  %v8947_v51 = vld [vmem:[#allocation40_spill] sm:$0xff] }
 0x3f9   :  { %2167 = vmatprep.subr.bf16.mxu0 %v6391_v0  ;;  %2208 = vmatprep.subr.bf16.mxu1 %v6394_v62  ;;  %v8948_v0 = vld [vmem:[#allocation41_spill] sm:$0xff]  ;;  %v8949_v62 = vld [vmem:[#allocation42_spill] sm:$0xff] }
 0x3fc   :  { %2168 = vmatpush1.bf16.msra.mxu0 %v6400_v5  ;;  %2209 = vmatpush1.bf16.msra.mxu1 %v6403_v7  ;;  %v8950_v5 = vld [vmem:[#allocation43_spill] sm:$0xff]  ;;  %v8951_v7 = vld [vmem:[#allocation44_spill] sm:$0xff] }
 0x3fd   :  { %2169 = vmatprep.subr.bf16.mxu0 %v6406_v9  ;;  %2210 = vmatprep.subr.bf16.mxu1 %v6409_v11  ;;  %v8952_v9 = vld [vmem:[#allocation45_spill] sm:$0xff]  ;;  %v8953_v11 = vld [vmem:[#allocation46_spill] sm:$0xff] }
 0x400   :  { %2170 = vmatpush1.bf16.msra.mxu0 %v6412_v12  ;;  %2211 = vmatpush1.bf16.msra.mxu1 %v6415_v13  ;;  %v8954_v12 = vld [vmem:[#allocation47_spill] sm:$0xff]  ;;  %v8955_v13 = vld [vmem:[#allocation48_spill] sm:$0xff] }
 0x401   :  { %2171 = vmatprep.subr.bf16.mxu0 %v6418_v14  ;;  %2212 = vmatprep.subr.bf16.mxu1 %v6421_v16  ;;  %v8956_v14 = vld [vmem:[#allocation49_spill] sm:$0xff]  ;;  %v8957_v16 = vld [vmem:[#allocation50_spill] sm:$0xff] }
 0x404   :  { %2172 = vmatpush1.bf16.msra.mxu0 %v6424_v17  ;;  %2213 = vmatpush1.bf16.msra.mxu1 %v6427_v18  ;;  %v8958_v17 = vld [vmem:[#allocation53_spill] sm:$0xff]  ;;  %v8959_v18 = vld [vmem:[#allocation51_spill] sm:$0xff] }
 0x405   :  { %2173 = vmatprep.subr.bf16.mxu0 %v6430_v19  ;;  %2214 = vmatprep.subr.bf16.mxu1 %v6433_v21  ;;  %v8960_v19 = vld [vmem:[#allocation54_spill] sm:$0xff]  ;;  %v8961_v21 = vld [vmem:[#allocation52_spill] sm:$0xff] }
 0x408   :  { %2174 = vmatpush1.bf16.msra.mxu0 %v6436_v22  ;;  %2215 = vmatpush1.bf16.msra.mxu1 %v8935_v63  ;;  %v8962_v22 = vld [vmem:[#allocation58_spill] sm:$0xff]  ;;  %v4449_v63 = vld [vmem:[%s8285_s1 + $0xc] sm:$0xf] }
 0x409   :  { %2175 = vmatprep.subr.bf16.mxu0 %v8936_v40  ;;  %2216 = vmatprep.subr.bf16.mxu1 %v8937_v45  ;;  %v8972_v40 = vld [vmem:[#allocation67_spill] sm:$0xff]  ;;  %v8973_v45 = vld [vmem:[#allocation64_spill] sm:$0xff] }
 0x40c   :  { %2176 = vmatpush1.bf16.msra.mxu0 %v8938_v46  ;;  %2217 = vmatpush1.bf16.msra.mxu1 %v8939_v47  ;;  %v8974_v46 = vld [vmem:[#allocation70_spill] sm:$0xff]  ;;  %v8975_v47 = vld [vmem:[#allocation65_spill] sm:$0xff] }
 0x40d   :  { %2243 = vmatprep.subr.bf16.mxu0 %v8940_v54  ;;  %2284 = vmatprep.subr.bf16.mxu1 %v8941_v53  ;;  %v8976_v54 = vld [vmem:[#allocation71_spill] sm:$0xff]  ;;  %v8977_v53 = vld [vmem:[#allocation68_spill] sm:$0xff] }
 0x40f   :  { %2194 = vmatmul.mubr.bf16.vlgmr.msra.gmra.mxu0 %v1948_v4  ;;  %2235 = vmatmul.mubr.bf16.vlgmr.msra.gmra.mxu1 %v1948_v4  ;;  %v8971_v4 = vld [vmem:[#allocation61_spill] sm:$0xff] }
 0x410   :  { %2244 = vmatpush1.bf16.msra.mxu0 %v8942_v8  ;;  %2285 = vmatpush1.bf16.msra.mxu1 %v8943_v56  ;;  %v8978_v8 = vld [vmem:[#allocation74_spill] sm:$0xff]  ;;  %v8979_v56 = vld [vmem:[#allocation69_spill] sm:$0xff] }
 0x411   :  { %2245 = vmatprep.subr.bf16.mxu0 %v8944_v1  ;;  %2286 = vmatprep.subr.bf16.mxu1 %v8945_v6  ;;  %v8980_v1 = vld [vmem:[#allocation75_spill] sm:$0xff]  ;;  %v8981_v6 = vld [vmem:[#allocation72_spill] sm:$0xff] }
 0x412   :  { %2275 = vmatprep.mubr.bf16.mxu0 %v8687_v52  ;;  %2316 = vmatprep.mubr.bf16.mxu1 %v8687_v52 }
 0x414   :  { %2246 = vmatpush1.bf16.msra.mxu0 %v8946_v49  ;;  %2287 = vmatpush1.bf16.msra.mxu1 %v8947_v51  ;;  %v8982_v49 = vld [vmem:[#allocation78_spill] sm:$0xff]  ;;  %v8983_v51 = vld [vmem:[#allocation73_spill] sm:$0xff] }
 0x415   :  { %2247 = vmatprep.subr.bf16.mxu0 %v8948_v0  ;;  %2288 = vmatprep.subr.bf16.mxu1 %v8949_v62  ;;  %v8984_v0 = vld [vmem:[#allocation79_spill] sm:$0xff]  ;;  %v8985_v62 = vld [vmem:[#allocation76_spill] sm:$0xff] }
 0x418   :  { %2248 = vmatpush1.bf16.msra.mxu0 %v8950_v5  ;;  %2289 = vmatpush1.bf16.msra.mxu1 %v8951_v7  ;;  %v8986_v5 = vld [vmem:[#allocation80_spill] sm:$0xff]  ;;  %v8987_v7 = vld [vmem:[#allocation77_spill] sm:$0xff] }
 0x419   :  { %2249 = vmatprep.subr.bf16.mxu0 %v8952_v9  ;;  %2290 = vmatprep.subr.bf16.mxu1 %v8953_v11  ;;  %v8988_v9 = vld [vmem:[#allocation81_spill] sm:$0xff]  ;;  %v8989_v11 = vld [vmem:[#allocation82_spill] sm:$0xff] }
 0x41c   :  { %2250 = vmatpush1.bf16.msra.mxu0 %v8954_v12  ;;  %2291 = vmatpush1.bf16.msra.mxu1 %v8955_v13  ;;  %v8990_v12 = vld [vmem:[#allocation83_spill] sm:$0xff]  ;;  %v8991_v13 = vld [vmem:[#allocation84_spill] sm:$0xff] }
 0x41d   :  { %2251 = vmatprep.subr.bf16.mxu0 %v8956_v14  ;;  %2292 = vmatprep.subr.bf16.mxu1 %v8957_v16  ;;  %v8992_v14 = vld [vmem:[#allocation85_spill] sm:$0xff]  ;;  %v8993_v16 = vld [vmem:[#allocation32_spill] sm:$0xff] }
 0x420   :  { %2252 = vmatpush1.bf16.msra.mxu0 %v8958_v17  ;;  %2293 = vmatpush1.bf16.msra.mxu1 %v8959_v18  ;;  %v8994_v17 = vld [vmem:[#allocation86_spill] sm:$0xff]  ;;  %v8995_v18 = vld [vmem:[#allocation87_spill] sm:$0xff] }
 0x421   :  { %2253 = vmatprep.subr.bf16.mxu0 %v8960_v19  ;;  %2294 = vmatprep.subr.bf16.mxu1 %v8961_v21  ;;  %v8996_v19 = vld [vmem:[#allocation88_spill] sm:$0xff]  ;;  %v8997_v21 = vld [vmem:[#allocation89_spill] sm:$0xff] }
 0x424   :  { %2254 = vmatpush1.bf16.msra.mxu0 %v8962_v22  ;;  %2295 = vmatpush1.bf16.msra.mxu1 %v8963_v60  ;;  %v8998_v22 = vld [vmem:[#allocation90_spill] sm:$0xff]  ;;  %v8999_v60 = vld [vmem:[#allocation91_spill] sm:$0xff] }
 0x425   :  { %2255 = vmatprep.subr.bf16.mxu0 %v8964_v31  ;;  %2296 = vmatprep.subr.bf16.mxu1 %v8965_v15  ;;  %v9000_v31 = vld [vmem:[#allocation92_spill] sm:$0xff]  ;;  %v9001_v15 = vld [vmem:[#allocation93_spill] sm:$0xff] }
 0x428   :  { %2256 = vmatpush1.bf16.msra.mxu0 %v8966_v42  ;;  %2297 = vmatpush1.bf16.msra.mxu1 %v8967_v30  ;;  %v9002_v42 = vld [vmem:[#allocation94_spill] sm:$0xff]  ;;  %v9003_v30 = vld [vmem:[#allocation95_spill] sm:$0xff] }
 0x429   :  { %2257 = vmatprep.subr.bf16.mxu0 %v8968_v10  ;;  %2298 = vmatprep.subr.bf16.mxu1 %v8969_v57  ;;  %v9004_v10 = vld [vmem:[#allocation96_spill] sm:$0xff]  ;;  %v9005_v57 = vld [vmem:[#allocation97_spill] sm:$0xff] }
 0x42c   :  { %2258 = vmatpush1.bf16.msra.mxu0 %v8970_v28  ;;  %2299 = vmatpush1.bf16.msra.mxu1 %v8971_v4 }
 0x42d   :  { %2362 = vmatprep.subr.bf16.mxu0 %v8972_v40  ;;  %2403 = vmatprep.subr.bf16.mxu1 %v8973_v45 }
 0x42f   :  { %2276 = vmatmul.mubr.bf16.vlgmr.msra.gmra.mxu0 %v4449_v63  ;;  %2317 = vmatmul.mubr.bf16.vlgmr.msra.gmra.mxu1 %v4449_v63 }
 0x430   :  { %2363 = vmatpush1.bf16.msra.mxu0 %v8974_v46  ;;  %2404 = vmatpush1.bf16.msra.mxu1 %v8975_v47 }
 0x431   :  { %2364 = vmatprep.subr.bf16.mxu0 %v8976_v54  ;;  %2405 = vmatprep.subr.bf16.mxu1 %v8977_v53 }
 0x432   :  { %2394 = vmatprep.mubr.bf16.mxu0 %v8687_v52  ;;  %2435 = vmatprep.mubr.bf16.mxu1 %v8687_v52 }
 0x434   :  { %2365 = vmatpush1.bf16.msra.mxu0 %v8978_v8  ;;  %2406 = vmatpush1.bf16.msra.mxu1 %v8979_v56 }
 0x435   :  { %2366 = vmatprep.subr.bf16.mxu0 %v8980_v1  ;;  %2407 = vmatprep.subr.bf16.mxu1 %v8981_v6 }
 0x438   :  { %2367 = vmatpush1.bf16.msra.mxu0 %v8982_v49  ;;  %2408 = vmatpush1.bf16.msra.mxu1 %v8983_v51 }
 0x439   :  { %2368 = vmatprep.subr.bf16.mxu0 %v8984_v0  ;;  %2409 = vmatprep.subr.bf16.mxu1 %v8985_v62 }
 0x43c   :  { %2369 = vmatpush1.bf16.msra.mxu0 %v8986_v5  ;;  %2410 = vmatpush1.bf16.msra.mxu1 %v8987_v7 }
 0x43d   :  { %2370 = vmatprep.subr.bf16.mxu0 %v8988_v9  ;;  %2411 = vmatprep.subr.bf16.mxu1 %v8989_v11 }
 0x440   :  { %2371 = vmatpush1.bf16.msra.mxu0 %v8990_v12  ;;  %2412 = vmatpush1.bf16.msra.mxu1 %v8991_v13 }
 0x441   :  { %2372 = vmatprep.subr.bf16.mxu0 %v8992_v14  ;;  %2413 = vmatprep.subr.bf16.mxu1 %v8993_v16 }
 0x444   :  { %2373 = vmatpush1.bf16.msra.mxu0 %v8994_v17  ;;  %2414 = vmatpush1.bf16.msra.mxu1 %v8995_v18 }
 0x445   :  { %2374 = vmatprep.subr.bf16.mxu0 %v8996_v19  ;;  %2415 = vmatprep.subr.bf16.mxu1 %v8997_v21 }
 0x448   :  { %2375 = vmatpush1.bf16.msra.mxu0 %v8998_v22  ;;  %2416 = vmatpush1.bf16.msra.mxu1 %v8999_v60 }
 0x449   :  { %2376 = vmatprep.subr.bf16.mxu0 %v9000_v31  ;;  %2417 = vmatprep.subr.bf16.mxu1 %v9001_v15 }
 0x44c   :  { %2377 = vmatpush1.bf16.msra.mxu0 %v9002_v42  ;;  %2418 = vmatpush1.bf16.msra.mxu1 %v9003_v30 }
 0x44d   :  { %2444 = vmatprep.subr.bf16.mxu0 %v9004_v10  ;;  %2485 = vmatprep.subr.bf16.mxu1 %v9005_v57 }
 0x46f   :  { %v1984_v28 = vpop.f32.mrf.mxu0  ;;  %v2025_v4 = vpop.f32.mrf.mxu1 }
 0x471   :  { %v1986_v63 = vpop.f32.mrf.mxu0  ;;  %v2027_v40 = vpop.f32.mrf.mxu1 }
 0x473   :  { %v1988_v45 = vpop.f32.mrf.mxu0  ;;  %v2029_v46 = vpop.f32.mrf.mxu1 }
 0x475   :  { %v1989_v47 = vpop.f32.mrf.mxu0  ;;  %v2030_v54 = vpop.f32.mrf.mxu1 }
 0x4af   :  { %v2066_v53 = vpop.f32.mrf.mxu0  ;;  %v2107_v8 = vpop.f32.mrf.mxu1 }
 0x4b0   :  { %v2067_v56 = vadd.f32 %v2066_v53, %v1984_v28  ;;  %v2108_v14 = vadd.f32 %v2107_v8, %v2025_v4  ;;  %v6917_v28 = vpop.permute.xlu1 %2355 }
 0x4b1   :  { %v2068_v1 = vpop.f32.mrf.mxu0  ;;  %v2109_v6 = vpop.f32.mrf.mxu1  ;;  %vm2357_vm12 = vcmp.eq.s32.totalorder %v6917_v28, 1 }
 0x4b2   :  { %v2114_v49 = vadd.f32 %v2067_v56, %v6236_v20  ;;  %v2069_v51 = vadd.f32 %v2068_v1, %v1986_v63  ;;  %v2110_v13 = vadd.f32 %v2109_v6, %v2027_v40  ;;  %v2116_v17 = vadd.f32 %v2108_v14, %v6254_v41  ;;  %v6920_v56 = vpop.permute.xlu0 %2767 }
 0x4b3   :  { %v2070_v0 = vpop.f32.mrf.mxu0  ;;  %v2111_v62 = vpop.f32.mrf.mxu1  ;;  %vm2769_vm13 = vcmp.eq.s32.totalorder %v6920_v56, 1 }
 0x4b4   :  { %v4444_v5 = vmul.f32 -1.442695, %v2114_v49  ;;  %v2115_v7 = vadd.f32 %v2069_v51, %v6241_v25  ;;  %v2117_v16 = vadd.f32 %v2110_v13, %v6248_v37  ;;  %v6922_v1 = vpop.permute.xlu1 %3179  ;;  %v5104_v13 = vld [vmem:[#allocation15] sm:$0xff] }
 0x4b5   :  { %v2071_v9 = vpop.f32.mrf.mxu0  ;;  %v2112_v11 = vpop.f32.mrf.mxu1  ;;  %9006 = vst [vmem:[#allocation27_spill] sm:$0xff] %v6922_v1  ;;  %v7148_v1 = vld [vmem:[#allocation7 + $0x88] ss:$16 sps:$4 sm:$0xff]  }
 0x4b6   :  { %4799 = vpow2.f32 %v4444_v5  ;;  %v4445_v12 = vmul.f32 -1.442695, %v2115_v7  ;;  %v4446_v18 = vmul.f32 -1.442695, %v2117_v16  ;;  %v6929_v51 = vpop.permute.xlu0 %3591  ;;  %9048 = vst [vmem:[#allocation51_spill] sm:$0xff] %v7148_v1 }
 0x4b7   :  { %9007 = vst [vmem:[#allocation28_spill] sm:$0xff] %v6929_v51  ;;  %v7145_v51 = vld [vmem:[#allocation7 + $0x80] ss:$16 sps:$4 sm:$0xff]  }
 0x4b8   :  { %4801 = vpow2.f32 %v4445_v12  ;;  %v6931_v0 = vpop.permute.xlu1 %4003  ;;  %9047 = vst [vmem:[#allocation53_spill] sm:$0xff] %v7145_v51 }
 0x4b9   :  { %4803 = vtanh.f32 %v2116_v17  ;;  %9008 = vst [vmem:[#allocation29_spill] sm:$0xff] %v6931_v0  ;;  %v7142_v0 = vld [vmem:[#allocation7 + $0x8c] ss:$16 sps:$4 sm:$0xff]  }
 0x4ba   :  { %4805 = vpow2.f32 %v4446_v18  ;;  %v1328_v62 = vpop.permute.xlu0 %1327  ;;  %9046 = vst [vmem:[#allocation50_spill] sm:$0xff] %v7142_v0 }
 0x4bb   :  { %v1330_v14 = vmul.f32 %v5104_v13, %v1328_v62  ;;  %v9020_v62 = vld [vmem:[#allocation108_spill] sm:$0xff]  ;;  %v9025_v13 = vld [vmem:[#allocation113_spill] sm:$0xff] }
 0x4bc   :  { %v1740_v5 = vpop.permute.xlu1 %1739 }
 0x4bd   :  { %v1742_v11 = vmul.f32 %v1740_v5, %v6683_v50 }
 0x4be   :  { %v2152_v16 = vpop.permute.xlu0 %2151 }
 0x4bf   :  { %v1743_v18 = vadd.f32 %v1742_v11, %v1330_v14  ;;  %v9023_v11 = vld [vmem:[#allocation111_spill] sm:$0xff] }
 0x4c0   :  { %v9026_v14 = vld [vmem:[#allocation115_spill] sm:$0xff] }
 0x4c3   :  { %v4800_v19 = vpop.eup %4799 }
 0x4c4   :  { %v2121_v21 = vadd.f32 1.0, %v4800_v19 }
 0x4c5   :  { %v4802_v22 = vpop.eup %4801 }
 0x4c6   :  { %4807 = vrcp.f32 %v2121_v21  ;;  %v2127_v60 = vadd.f32 1.0, %v4802_v22  ;;  %v4804_v42 = vpop.eup %4803 }
 0x4c7   :  { %v4806_v57 = vpop.eup %4805 }
 0x4c8   :  { %4809 = vrcp.f32 %v2127_v60  ;;  %v2134_v47 = vadd.f32 1.0, %v4806_v57 }
 0x4ca   :  { %4811 = vrcp.f32 %v2134_v47 }
 0x4cf   :  { %v2195_v31 = vpop.f32.mrf.mxu0  ;;  %v6913_v15 = vpop.f32.mrf.mxu1 }
 0x4d1   :  { %v2197_v30 = vpop.f32.mrf.mxu0  ;;  %v6915_v10 = vpop.f32.mrf.mxu1 }
 0x4d3   :  { %v4808_v4 = vpop.eup %4807  ;;  %v2199_v63 = vpop.f32.mrf.mxu0 }
 0x4d4   :  { %v2240_v40 = vpop.f32.mrf.mxu1  ;;  %v2138_v45 = vmul.f32 %v4808_v4, %v4804_v42 }
 0x4d5   :  { %v4810_v46 = vpop.eup %4809  ;;  %v2200_v54 = vpop.f32.mrf.mxu0 }
 0x4d6   :  { %v2241_v53 = vpop.f32.mrf.mxu1  ;;  %v2137_v8 = vmul.f32 %v4810_v46, %v6674_v34  ;;  %v9015_v46 = vld [vmem:[#allocation103_spill] sm:$0xff] }
 0x4d7   :  { %v4812_v7 = vpop.eup %4811  ;;  %v9018_v53 = vld [vmem:[#allocation106_spill] sm:$0xff] }
 0x4d8   :  { %v2139_v6 = vadd.f32 %v2138_v45, %v2137_v8  ;;  %v9019_v8 = vld [vmem:[#allocation107_spill] sm:$0xff] }
 0x4da   :  { %4813 = vtanh.f32 %v2139_v6  ;;  %v6927_v49 = vsel %vm1945_vm11, %v2139_v6, %v6674_v34 }
 0x4e7   :  { %v4814_v9 = vpop.eup %4813 }
 0x4e8   :  { %v2141_v12 = vmul.f32 %v4814_v9, %v4812_v7  ;;  %v9021_v7 = vld [vmem:[#allocation109_spill] sm:$0xff]  ;;  %v9022_v9 = vld [vmem:[#allocation110_spill] sm:$0xff] }
 0x4ea   :  { %v6937_v17 = vsel %vm1945_vm11, %v2141_v12, %v6679_v26  ;;  %v2144_v34 = vsel %vm1945_vm11, %v2141_v12, 0.0  ;;  %v9024_v12 = vld [vmem:[#allocation112_spill] sm:$0xff] }
 0x4eb   :  { %2146 = vst [vmem:[#allocation15 + $0x10] sm:$0xff] %v2144_v34  ;;  %v2361_v19 = vpack.c.bf16 %v6937_v17, %v6937_v17  ;;  %v2154_v21 = vmul.f32 %v2152_v16, %v2144_v34  ;;  %v6983_v16 = vld [vmem:[#allocation10 + $0xe4] ss:$16 sps:$4 sm:$0xff]   ;;  %v6986_v34 = vld [vmem:[#allocation10 + $0xec] ss:$16 sps:$4 sm:$0xff]  }
 0x4ed   :  { %2395 = vmatmul.mubr.bf16.vlgmr.msra.gmra.mxu0 %v2361_v19  ;;  %2436 = vmatmul.mubr.bf16.vlgmr.msra.gmra.mxu1 %v2361_v19  ;;  %v6943_v50 = vadd.f32 %v2154_v21, %v1743_v18 }
 0x4ee   :  { %2445 = vmatpush1.bf16.msra.mxu0 %v6688_v55  ;;  %2486 = vmatpush1.bf16.msra.mxu1 %v6691_v33 }
 0x4ef   :  { %v2277_v22 = vpop.f32.mrf.mxu0  ;;  %v2318_v26 = vpop.f32.mrf.mxu1  ;;  %2446 = vmatprep.subr.bf16.mxu0 %v6694_v3  ;;  %2487 = vmatprep.subr.bf16.mxu1 %v6697_v43 }
 0x4f0   :  { %v2278_v32 = vadd.f32 %v2277_v22, %v2195_v31  ;;  %2476 = vmatprep.mubr.bf16.mxu0 %v8687_v52  ;;  %2517 = vmatprep.mubr.bf16.mxu1 %v8687_v52 }
 0x4f1   :  { %v2279_v60 = vpop.f32.mrf.mxu0  ;;  %v2320_v42 = vpop.f32.mrf.mxu1 }
 0x4f2   :  { %v2325_v57 = vadd.f32 %v2278_v32, %v6073_v2  ;;  %v2280_v4 = vadd.f32 %v2279_v60, %v2197_v30  ;;  %2447 = vmatpush1.bf16.msra.mxu0 %v6703_v38  ;;  %2488 = vmatpush1.bf16.msra.mxu1 %v6706_v39  ;;  %v2321_v38 = vadd.f32 %v2320_v42, %v6915_v10  ;;  %v9009_v39 = vld [vmem:[#allocation98_spill] sm:$0xff] }
 0x4f3   :  { %v2281_v55 = vpop.f32.mrf.mxu0  ;;  %v2322_v33 = vpop.f32.mrf.mxu1  ;;  %2448 = vmatprep.subr.bf16.mxu0 %v6709_v24  ;;  %2489 = vmatprep.subr.bf16.mxu1 %v6713_v29  ;;  %v9010_v24 = vld [vmem:[#allocation99_spill] sm:$0xff]  ;;  %v9011_v29 = vld [vmem:[#allocation100_spill] sm:$0xff]  ;;  %v9012_v30 = vld [vmem:[#allocation114_spill] sm:$0xff] }
 0x4f4   :  { %v4450_v3 = vmul.f32 -1.442695, %v2325_v57  ;;  %v2326_v43 = vadd.f32 %v2280_v4, %v6077_v59  ;;  %v2328_v45 = vadd.f32 %v2321_v38, %v9012_v30  ;;  %v7024_v38 = vld [vmem:[#allocation10 + $0xc8] ss:$16 sps:$4 sm:$0xff]  }
 0x4f5   :  { %v2282_v31 = vpop.f32.mrf.mxu0  ;;  %v2323_v63 = vpop.f32.mrf.mxu1 }
 0x4f6   :  { %4815 = vpow2.f32 %v4450_v3  ;;  %v4451_v40 = vmul.f32 -1.442695, %v2326_v43  ;;  %2449 = vmatpush1.bf16.msra.mxu0 %v6716_v61  ;;  %2490 = vmatpush1.bf16.msra.mxu1 %v6719_v44  ;;  %v9013_v61 = vld [vmem:[#allocation101_spill] sm:$0xff]  ;;  %v2319_v44 = vadd.f32 %v2318_v26, %v6913_v15  ;;  %v4452_v10 = vmul.f32 -1.442695, %v2328_v45 }
 0x4f7   :  { %2450 = vmatprep.subr.bf16.mxu0 %v6722_v35  ;;  %2491 = vmatprep.subr.bf16.mxu1 %v6725_v58  ;;  %v9014_v35 = vld [vmem:[#allocation102_spill] sm:$0xff]  ;;  %v9016_v58 = vld [vmem:[#allocation104_spill] sm:$0xff]  ;;  %v7036_v45 = vld [vmem:[#allocation10 + $0xa8] ss:$16 sps:$4 sm:$0xff]  }
 0x4f8   :  { %4817 = vpow2.f32 %v4451_v40  ;;  %v2327_v54 = vadd.f32 %v2319_v44, %v6090_v48  ;;  %v7007_v31 = vld [vmem:[#allocation10 + $0xe0] ss:$16 sps:$4 sm:$0xff]   ;;  %v7013_v63 = vld [vmem:[#allocation10 + $0xc4] ss:$16 sps:$4 sm:$0xff]   ;;  %v7042_v44 = vld [vmem:[#allocation10 + $0x8c] ss:$16 sps:$4 sm:$0xff]  }
 0x4f9   :  { %4819 = vpow2.f32 %v4452_v10  ;;  %v7021_v40 = vld [vmem:[#allocation10 + $0xc0] ss:$16 sps:$4 sm:$0xff]   ;;  %v7054_v10 = vld [vmem:[#allocation10 + $0x6c] ss:$16 sps:$4 sm:$0xff]  }
 0x4fa   :  { %2451 = vmatpush1.bf16.msra.mxu0 %v6729_v36  ;;  %2492 = vmatpush1.bf16.msra.mxu1 %v9009_v39  ;;  %v9017_v36 = vld [vmem:[#allocation105_spill] sm:$0xff]  ;;  %v7027_v39 = vld [vmem:[#allocation10 + $0xa4] ss:$16 sps:$4 sm:$0xff]  }
 0x4fb   :  { %2452 = vmatprep.subr.bf16.mxu0 %v9010_v24  ;;  %2493 = vmatprep.subr.bf16.mxu1 %v9011_v29  ;;  %v7030_v24 = vld [vmem:[#allocation10 + $0xac] ss:$16 sps:$4 sm:$0xff]   ;;  %v7033_v29 = vld [vmem:[#allocation10 + $0xa0] ss:$16 sps:$4 sm:$0xff]  }
 0x4fe   :  { %2453 = vmatpush1.bf16.msra.mxu0 %v9013_v61  ;;  %2494 = vmatpush1.bf16.msra.mxu1 %v9014_v35  ;;  %v7039_v61 = vld [vmem:[#allocation10 + $0x84] ss:$16 sps:$4 sm:$0xff]   ;;  %v7045_v35 = vld [vmem:[#allocation10 + $0x80] ss:$16 sps:$4 sm:$0xff]  }
 0x4ff   :  { %2454 = vmatprep.subr.bf16.mxu0 %v9015_v46  ;;  %2495 = vmatprep.subr.bf16.mxu1 %v9016_v58  ;;  %v7048_v46 = vld [vmem:[#allocation10 + $0x88] ss:$16 sps:$4 sm:$0xff]   ;;  %v7051_v58 = vld [vmem:[#allocation10 + $0x64] ss:$16 sps:$4 sm:$0xff]  }
 0x502   :  { %2455 = vmatpush1.bf16.msra.mxu0 %v9017_v36  ;;  %2496 = vmatpush1.bf16.msra.mxu1 %v9018_v53  ;;  %v7057_v36 = vld [vmem:[#allocation10 + $0x60] ss:$16 sps:$4 sm:$0xff]   ;;  %v7066_v53 = vld [vmem:[#allocation10 + $0x4c] ss:$16 sps:$4 sm:$0xff]  }
 0x503   :  { %v4816_v47 = vpop.eup %4815  ;;  %2456 = vmatprep.subr.bf16.mxu0 %v9019_v8  ;;  %2497 = vmatprep.subr.bf16.mxu1 %v9020_v62  ;;  %v7069_v8 = vld [vmem:[#allocation10 + $0x40] ss:$16 sps:$4 sm:$0xff]   ;;  %v7075_v62 = vld [vmem:[#allocation10 + $0x24] ss:$16 sps:$4 sm:$0xff]  }
 0x504   :  { %v2332_v6 = vadd.f32 1.0, %v4816_v47  ;;  %v7060_v47 = vld [vmem:[#allocation10 + $0x68] ss:$16 sps:$4 sm:$0xff]  }
 0x505   :  { %v4818_v15 = vpop.eup %4817 }
 0x506   :  { %4821 = vrcp.f32 %v2332_v6  ;;  %v2338_v5 = vadd.f32 1.0, %v4818_v15  ;;  %2457 = vmatpush1.bf16.msra.mxu0 %v9021_v7  ;;  %2498 = vmatpush1.bf16.msra.mxu1 %v9022_v9  ;;  %v4820_v18 = vpop.eup %4819  ;;  %v7072_v6 = vld [vmem:[#allocation10 + $0x48] ss:$16 sps:$4 sm:$0xff]   ;;  %v7078_v15 = vld [vmem:[#allocation10 + $0x2c] ss:$16 sps:$4 sm:$0xff]  }
 0x507   :  { %4823 = vtanh.f32 %v2327_v54  ;;  %2458 = vmatprep.subr.bf16.mxu0 %v9023_v11  ;;  %2499 = vmatprep.subr.bf16.mxu1 %v9024_v12  ;;  %v2345_v26 = vadd.f32 1.0, %v4820_v18  ;;  %v7063_v54 = vld [vmem:[#allocation10 + $0x44] ss:$16 sps:$4 sm:$0xff]   ;;  %v7084_v7 = vld [vmem:[#allocation10 + $0x28] ss:$16 sps:$4 sm:$0xff]  }
 0x508   :  { %4825 = vrcp.f32 %v2338_v5  ;;  %v7081_v5 = vld [vmem:[#allocation10 + $0x20] ss:$16 sps:$4 sm:$0xff]   ;;  %9028 = vst [vmem:[#allocation31_spill] sm:$0xff] %v7084_v7  ;;  %v7087_v9 = vld [vmem:[#allocation10 + $0x4] ss:$16 sps:$4 sm:$0xff]  }
 0x509   :  { %4827 = vrcp.f32 %v2345_v26  ;;  %9027 = vst [vmem:[#allocation30_spill] sm:$0xff] %v7081_v5  ;;  %9029 = vst [vmem:[#allocation33_spill] sm:$0xff] %v7087_v9  ;;  %v7090_v11 = vld [vmem:[#allocation10 + $0xc] ss:$16 sps:$4 sm:$0xff]   ;;  %v7093_v12 = vld [vmem:[#allocation10] ss:$16 sps:$4 sm:$0xff]  }
 0x50a   :  { %2459 = vmatpush1.bf16.msra.mxu0 %v9025_v13  ;;  %2500 = vmatpush1.bf16.msra.mxu1 %v9026_v14  ;;  %9030 = vst [vmem:[#allocation34_spill] sm:$0xff] %v7090_v11  ;;  %9031 = vst [vmem:[#allocation35_spill] sm:$0xff] %v7093_v12  ;;  %v7096_v13 = vld [vmem:[#allocation10 + $0x8] ss:$16 sps:$4 sm:$0xff]   ;;  %v7099_v14 = vld [vmem:[#allocation7 + $0xe4] ss:$16 sps:$4 sm:$0xff]  }
 0x50b   :  { %2573 = vmatprep.subr.bf16.mxu0 %v6983_v16  ;;  %2614 = vmatprep.subr.bf16.mxu1 %v6986_v34  ;;  %9032 = vst [vmem:[#allocation36_spill] sm:$0xff] %v7096_v13  ;;  %9033 = vst [vmem:[#allocation37_spill] sm:$0xff] %v7099_v14  ;;  %v7102_v18 = vld [vmem:[#allocation7 + $0xec] ss:$16 sps:$4 sm:$0xff]  }
 0x50c   :  { %9034 = vst [vmem:[#allocation38_spill] sm:$0xff] %v7102_v18  ;;  %v7116_v26 = vld [vmem:[#allocation7 + $0xcc] ss:$16 sps:$4 sm:$0xff]  }
 0x50d   :  { %9038 = vst [vmem:[#allocation42_spill] sm:$0xff] %v7116_v26 }
 0x513   :  { %v4822_v19 = vpop.eup %4821 }
 0x514   :  { %v4824_v21 = vpop.eup %4823 }
 0x515   :  { %v4826_v22 = vpop.eup %4825  ;;  %v2349_v32 = vmul.f32 %v4824_v21, %v4822_v19  ;;  %v7107_v19 = vld [vmem:[#allocation7 + $0xe0] ss:$16 sps:$4 sm:$0xff]   ;;  %v7110_v21 = vld [vmem:[#allocation7 + $0xe8] ss:$16 sps:$4 sm:$0xff]  }
 0x516   :  { %v2348_v60 = vmul.f32 %v4826_v22, %v6795_v27  ;;  %v4828_v4 = vpop.eup %4827  ;;  %9035 = vst [vmem:[#allocation39_spill] sm:$0xff] %v7107_v19  ;;  %9036 = vst [vmem:[#allocation40_spill] sm:$0xff] %v7110_v21  ;;  %v7113_v22 = vld [vmem:[#allocation7 + $0xc4] ss:$16 sps:$4 sm:$0xff]  }
 0x517   :  { %9037 = vst [vmem:[#allocation41_spill] sm:$0xff] %v7113_v22 }
 0x518   :  { %v2350_v42 = vadd.f32 %v2349_v32, %v2348_v60  ;;  %v7121_v32 = vld [vmem:[#allocation7 + $0xc0] ss:$16 sps:$4 sm:$0xff]   ;;  %v7124_v60 = vld [vmem:[#allocation7 + $0xc8] ss:$16 sps:$4 sm:$0xff]  }
 0x519   :  { %9039 = vst [vmem:[#allocation43_spill] sm:$0xff] %v7121_v32  ;;  %9040 = vst [vmem:[#allocation44_spill] sm:$0xff] %v7124_v60 }
 0x51a   :  { %4829 = vtanh.f32 %v2350_v42  ;;  %v6994_v57 = vsel %vm2357_vm12, %v2350_v42, %v6795_v27  ;;  %v7010_v27 = vld [vmem:[#allocation10 + $0xe8] ss:$16 sps:$4 sm:$0xff]   ;;  %v7127_v42 = vld [vmem:[#allocation7 + $0xa4] ss:$16 sps:$4 sm:$0xff]  }
 0x51b   :  { %9041 = vst [vmem:[#allocation45_spill] sm:$0xff] %v7127_v42 }
 0x527   :  { %v4830_v55 = vpop.eup %4829 }
 0x528   :  { %v2352_v33 = vmul.f32 %v4830_v55, %v4828_v4  ;;  %v7130_v4 = vld [vmem:[#allocation7 + $0xac] ss:$16 sps:$4 sm:$0xff]   ;;  %v7133_v55 = vld [vmem:[#allocation7 + $0xa0] ss:$16 sps:$4 sm:$0xff]  }
 0x529   :  { %9042 = vst [vmem:[#allocation46_spill] sm:$0xff] %v7130_v4  ;;  %9043 = vst [vmem:[#allocation47_spill] sm:$0xff] %v7133_v55 }
 0x52a   :  { %v6999_v3 = vsel %vm2357_vm12, %v2352_v33, %v6800_v23  ;;  %v7016_v23 = vld [vmem:[#allocation10 + $0xcc] ss:$16 sps:$4 sm:$0xff]   ;;  %v7136_v33 = vld [vmem:[#allocation7 + $0xa8] ss:$16 sps:$4 sm:$0xff]  }
 0x52b   :  { %v7003_v43 = vpack.c.bf16 %v6999_v3, %v6999_v3  ;;  %9044 = vst [vmem:[#allocation48_spill] sm:$0xff] %v7136_v33 }
 0x52d   :  { %2477 = vmatmul.mubr.bf16.vlgmr.msra.gmra.mxu0 %v7003_v43  ;;  %2518 = vmatmul.mubr.bf16.vlgmr.msra.gmra.mxu1 %v7003_v43 }
 0x52e   :  { %2574 = vmatpush1.bf16.msra.mxu0 %v7007_v31  ;;  %2615 = vmatpush1.bf16.msra.mxu1 %v7010_v27 }
 0x52f   :  { %2575 = vmatprep.subr.bf16.mxu0 %v7013_v63  ;;  %2616 = vmatprep.subr.bf16.mxu1 %v7016_v23 }
 0x530   :  { %2605 = vmatprep.mubr.bf16.mxu0 %v8687_v52  ;;  %2646 = vmatprep.mubr.bf16.mxu1 %v8687_v52 }
 0x532   :  { %2576 = vmatpush1.bf16.msra.mxu0 %v7021_v40  ;;  %2617 = vmatpush1.bf16.msra.mxu1 %v7024_v38 }
 0x533   :  { %2577 = vmatprep.subr.bf16.mxu0 %v7027_v39  ;;  %2618 = vmatprep.subr.bf16.mxu1 %v7030_v24 }
 0x536   :  { %2578 = vmatpush1.bf16.msra.mxu0 %v7033_v29  ;;  %2619 = vmatpush1.bf16.msra.mxu1 %v7036_v45 }
 0x537   :  { %2579 = vmatprep.subr.bf16.mxu0 %v7039_v61  ;;  %2620 = vmatprep.subr.bf16.mxu1 %v7042_v44 }
 0x53a   :  { %2580 = vmatpush1.bf16.msra.mxu0 %v7045_v35  ;;  %2621 = vmatpush1.bf16.msra.mxu1 %v7048_v46 }
 0x53b   :  { %2581 = vmatprep.subr.bf16.mxu0 %v7051_v58  ;;  %2622 = vmatprep.subr.bf16.mxu1 %v7054_v10 }
 0x53e   :  { %2582 = vmatpush1.bf16.msra.mxu0 %v7057_v36  ;;  %2623 = vmatpush1.bf16.msra.mxu1 %v7060_v47 }
 0x53f   :  { %2583 = vmatprep.subr.bf16.mxu0 %v7063_v54  ;;  %2624 = vmatprep.subr.bf16.mxu1 %v7066_v53 }
 0x542   :  { %2584 = vmatpush1.bf16.msra.mxu0 %v7069_v8  ;;  %2625 = vmatpush1.bf16.msra.mxu1 %v7072_v6 }
 0x543   :  { %2585 = vmatprep.subr.bf16.mxu0 %v7075_v62  ;;  %2626 = vmatprep.subr.bf16.mxu1 %v7078_v15 }
 0x546   :  { %2586 = vmatpush1.bf16.msra.mxu0 %v7081_v5  ;;  %2627 = vmatpush1.bf16.msra.mxu1 %v7084_v7 }
 0x547   :  { %2587 = vmatprep.subr.bf16.mxu0 %v7087_v9  ;;  %2628 = vmatprep.subr.bf16.mxu1 %v7090_v11 }
 0x54a   :  { %2588 = vmatpush1.bf16.msra.mxu0 %v7093_v12  ;;  %2629 = vmatpush1.bf16.msra.mxu1 %v7096_v13 }
 0x54b   :  { %2655 = vmatprep.subr.bf16.mxu0 %v7099_v14  ;;  %2696 = vmatprep.subr.bf16.mxu1 %v7102_v18 }
 0x54d   :  { %2606 = vmatmul.mubr.bf16.vlgmr.msra.gmra.mxu0 %v7003_v43  ;;  %2647 = vmatmul.mubr.bf16.vlgmr.msra.gmra.mxu1 %v7003_v43  ;;  %v7139_v43 = vld [vmem:[#allocation7 + $0x84] ss:$16 sps:$4 sm:$0xff]  }
 0x54e   :  { %2656 = vmatpush1.bf16.msra.mxu0 %v7107_v19  ;;  %2697 = vmatpush1.bf16.msra.mxu1 %v7110_v21  ;;  %9045 = vst [vmem:[#allocation49_spill] sm:$0xff] %v7139_v43 }
 0x54f   :  { %2657 = vmatprep.subr.bf16.mxu0 %v7113_v22  ;;  %2698 = vmatprep.subr.bf16.mxu1 %v7116_v26 }
 0x550   :  { %2687 = vmatprep.mubr.bf16.mxu0 %v8687_v52  ;;  %2728 = vmatprep.mubr.bf16.mxu1 %v8687_v52 }
 0x552   :  { %2658 = vmatpush1.bf16.msra.mxu0 %v7121_v32  ;;  %2699 = vmatpush1.bf16.msra.mxu1 %v7124_v60 }
 0x553   :  { %2659 = vmatprep.subr.bf16.mxu0 %v7127_v42  ;;  %2700 = vmatprep.subr.bf16.mxu1 %v7130_v4  ;;  %v7217_v4 = vld [vmem:[#allocation13 + $0xcc] ss:$16 sps:$4 sm:$0xff]  }
 0x554   :  { %9070 = vst [vmem:[#allocation72_spill] sm:$0xff] %v7217_v4 }
 0x556   :  { %2660 = vmatpush1.bf16.msra.mxu0 %v7133_v55  ;;  %2701 = vmatpush1.bf16.msra.mxu1 %v7136_v33  ;;  %v7151_v55 = vld [vmem:[#allocation7 + $0x64] ss:$16 sps:$4 sm:$0xff]   ;;  %v7154_v33 = vld [vmem:[#allocation7 + $0x6c] ss:$16 sps:$4 sm:$0xff]  }
 0x557   :  { %2661 = vmatprep.subr.bf16.mxu0 %v7139_v43  ;;  %2702 = vmatprep.subr.bf16.mxu1 %v7142_v0  ;;  %9049 = vst [vmem:[#allocation54_spill] sm:$0xff] %v7151_v55  ;;  %9050 = vst [vmem:[#allocation52_spill] sm:$0xff] %v7154_v33  ;;  %v7157_v43 = vld [vmem:[#allocation7 + $0x60] ss:$16 sps:$4 sm:$0xff]   ;;  %v7160_v0 = vld [vmem:[#allocation7 + $0x68] ss:$16 sps:$4 sm:$0xff]  }
 0x558   :  { %9051 = vst [vmem:[#allocation58_spill] sm:$0xff] %v7157_v43  ;;  %9052 = vst [vmem:[#allocation55_spill] sm:$0xff] %v7160_v0 }
 0x55a   :  { %2662 = vmatpush1.bf16.msra.mxu0 %v7145_v51  ;;  %2703 = vmatpush1.bf16.msra.mxu1 %v7148_v1  ;;  %v7163_v51 = vld [vmem:[#allocation7 + $0x44] ss:$16 sps:$4 sm:$0xff]   ;;  %v7166_v1 = vld [vmem:[#allocation7 + $0x4c] ss:$16 sps:$4 sm:$0xff]  }
 0x55b   :  { %2663 = vmatprep.subr.bf16.mxu0 %v7151_v55  ;;  %2704 = vmatprep.subr.bf16.mxu1 %v7154_v33  ;;  %9053 = vst [vmem:[#allocation59_spill] sm:$0xff] %v7163_v51  ;;  %9054 = vst [vmem:[#allocation56_spill] sm:$0xff] %v7166_v1  ;;  %v7169_v55 = vld [vmem:[#allocation7 + $0x40] ss:$16 sps:$4 sm:$0xff]   ;;  %v7172_v33 = vld [vmem:[#allocation7 + $0x48] ss:$16 sps:$4 sm:$0xff]  }
 0x55c   :  { %9055 = vst [vmem:[#allocation62_spill] sm:$0xff] %v7169_v55  ;;  %9056 = vst [vmem:[#allocation57_spill] sm:$0xff] %v7172_v33 }
 0x55e   :  { %2664 = vmatpush1.bf16.msra.mxu0 %v7157_v43  ;;  %2705 = vmatpush1.bf16.msra.mxu1 %v7160_v0  ;;  %v7175_v43 = vld [vmem:[#allocation7 + $0x24] ss:$16 sps:$4 sm:$0xff]   ;;  %v7178_v0 = vld [vmem:[#allocation7 + $0x2c] ss:$16 sps:$4 sm:$0xff]  }
 0x55f   :  { %2665 = vmatprep.subr.bf16.mxu0 %v7163_v51  ;;  %2706 = vmatprep.subr.bf16.mxu1 %v7166_v1  ;;  %9057 = vst [vmem:[#allocation63_spill] sm:$0xff] %v7175_v43  ;;  %9058 = vst [vmem:[#allocation60_spill] sm:$0xff] %v7178_v0  ;;  %v7181_v51 = vld [vmem:[#allocation7 + $0x20] ss:$16 sps:$4 sm:$0xff]   ;;  %v7184_v1 = vld [vmem:[#allocation7 + $0x28] ss:$16 sps:$4 sm:$0xff]  }
 0x560   :  { %9059 = vst [vmem:[#allocation66_spill] sm:$0xff] %v7181_v51  ;;  %9060 = vst [vmem:[#allocation61_spill] sm:$0xff] %v7184_v1 }
 0x562   :  { %2666 = vmatpush1.bf16.msra.mxu0 %v7169_v55  ;;  %2707 = vmatpush1.bf16.msra.mxu1 %v7172_v33  ;;  %v7187_v55 = vld [vmem:[#allocation7 + $0x4] ss:$16 sps:$4 sm:$0xff]   ;;  %v7190_v33 = vld [vmem:[#allocation7 + $0xc] ss:$16 sps:$4 sm:$0xff]  }
 0x563   :  { %2667 = vmatprep.subr.bf16.mxu0 %v7175_v43  ;;  %2708 = vmatprep.subr.bf16.mxu1 %v7178_v0  ;;  %9061 = vst [vmem:[#allocation67_spill] sm:$0xff] %v7187_v55  ;;  %9062 = vst [vmem:[#allocation64_spill] sm:$0xff] %v7190_v33  ;;  %v7193_v43 = vld [vmem:[#allocation7] ss:$16 sps:$4 sm:$0xff]   ;;  %v7196_v0 = vld [vmem:[#allocation7 + $0x8] ss:$16 sps:$4 sm:$0xff]  }
 0x564   :  { %9063 = vst [vmem:[#allocation70_spill] sm:$0xff] %v7193_v43  ;;  %9064 = vst [vmem:[#allocation65_spill] sm:$0xff] %v7196_v0 }
 0x566   :  { %2668 = vmatpush1.bf16.msra.mxu0 %v7181_v51  ;;  %2709 = vmatpush1.bf16.msra.mxu1 %v7184_v1  ;;  %v4458_v1 = vld [vmem:[%s8285_s1 + $0x10] sm:$0xf]  ;;  %v7202_v51 = vld [vmem:[#allocation13 + $0xe4] ss:$16 sps:$4 sm:$0xff]  }
 0x567   :  { %2669 = vmatprep.subr.bf16.mxu0 %v7187_v55  ;;  %2710 = vmatprep.subr.bf16.mxu1 %v7190_v33  ;;  %9065 = vst [vmem:[#allocation71_spill] sm:$0xff] %v7202_v51  ;;  %v7205_v55 = vld [vmem:[#allocation13 + $0xec] ss:$16 sps:$4 sm:$0xff]   ;;  %v7208_v33 = vld [vmem:[#allocation13 + $0xe0] ss:$16 sps:$4 sm:$0xff]  }
 0x568   :  { %9066 = vst [vmem:[#allocation68_spill] sm:$0xff] %v7205_v55  ;;  %9067 = vst [vmem:[#allocation74_spill] sm:$0xff] %v7208_v33 }
 0x56a   :  { %2670 = vmatpush1.bf16.msra.mxu0 %v7193_v43  ;;  %2711 = vmatpush1.bf16.msra.mxu1 %v7196_v0  ;;  %v7211_v43 = vld [vmem:[#allocation13 + $0xe8] ss:$16 sps:$4 sm:$0xff]   ;;  %v7214_v0 = vld [vmem:[#allocation13 + $0xc4] ss:$16 sps:$4 sm:$0xff]  }
 0x56b   :  { %2774 = vmatprep.subr.bf16.mxu0 %v7202_v51  ;;  %2815 = vmatprep.subr.bf16.mxu1 %v7205_v55  ;;  %9068 = vst [vmem:[#allocation69_spill] sm:$0xff] %v7211_v43  ;;  %9069 = vst [vmem:[#allocation75_spill] sm:$0xff] %v7214_v0  ;;  %v7237_v55 = vld [vmem:[#allocation13 + $0xa8] ss:$16 sps:$4 sm:$0xff]  }
 0x56c   :  { %9076 = vst [vmem:[#allocation77_spill] sm:$0xff] %v7237_v55 }
 0x56d   :  { %2688 = vmatmul.mubr.bf16.vlgmr.msra.gmra.mxu0 %v4458_v1  ;;  %2729 = vmatmul.mubr.bf16.vlgmr.msra.gmra.mxu1 %v4458_v1  ;;  %v7222_v1 = vld [vmem:[#allocation13 + $0xc0] ss:$16 sps:$4 sm:$0xff]  }
 0x56e   :  { %2775 = vmatpush1.bf16.msra.mxu0 %v7208_v33  ;;  %2816 = vmatpush1.bf16.msra.mxu1 %v7211_v43  ;;  %9071 = vst [vmem:[#allocation78_spill] sm:$0xff] %v7222_v1  ;;  %v7225_v33 = vld [vmem:[#allocation13 + $0xc8] ss:$16 sps:$4 sm:$0xff]   ;;  %v7228_v43 = vld [vmem:[#allocation13 + $0xa4] ss:$16 sps:$4 sm:$0xff]  }
 0x56f   :  { %2776 = vmatprep.subr.bf16.mxu0 %v7214_v0  ;;  %2817 = vmatprep.subr.bf16.mxu1 %v7217_v4  ;;  %9072 = vst [vmem:[#allocation73_spill] sm:$0xff] %v7225_v33  ;;  %9073 = vst [vmem:[#allocation79_spill] sm:$0xff] %v7228_v43  ;;  %v7231_v0 = vld [vmem:[#allocation13 + $0xac] ss:$16 sps:$4 sm:$0xff]   ;;  %v7234_v4 = vld [vmem:[#allocation13 + $0xa0] ss:$16 sps:$4 sm:$0xff]  }
 0x570   :  { %2806 = vmatprep.mubr.bf16.mxu0 %v8687_v52  ;;  %2847 = vmatprep.mubr.bf16.mxu1 %v8687_v52  ;;  %9074 = vst [vmem:[#allocation76_spill] sm:$0xff] %v7231_v0  ;;  %9075 = vst [vmem:[#allocation80_spill] sm:$0xff] %v7234_v4 }
 0x572   :  { %2777 = vmatpush1.bf16.msra.mxu0 %v7222_v1  ;;  %2818 = vmatpush1.bf16.msra.mxu1 %v7225_v33  ;;  %v7240_v1 = vld [vmem:[#allocation13 + $0x84] ss:$16 sps:$4 sm:$0xff]   ;;  %v7243_v33 = vld [vmem:[#allocation13 + $0x8c] ss:$16 sps:$4 sm:$0xff]  }
 0x573   :  { %2778 = vmatprep.subr.bf16.mxu0 %v7228_v43  ;;  %2819 = vmatprep.subr.bf16.mxu1 %v7231_v0  ;;  %9077 = vst [vmem:[#allocation81_spill] sm:$0xff] %v7240_v1  ;;  %9078 = vst [vmem:[#allocation82_spill] sm:$0xff] %v7243_v33  ;;  %v7246_v43 = vld [vmem:[#allocation13 + $0x80] ss:$16 sps:$4 sm:$0xff]   ;;  %v7249_v0 = vld [vmem:[#allocation13 + $0x88] ss:$16 sps:$4 sm:$0xff]  }
 0x574   :  { %9079 = vst [vmem:[#allocation83_spill] sm:$0xff] %v7246_v43  ;;  %9080 = vst [vmem:[#allocation84_spill] sm:$0xff] %v7249_v0 }
 0x576   :  { %2779 = vmatpush1.bf16.msra.mxu0 %v7234_v4  ;;  %2820 = vmatpush1.bf16.msra.mxu1 %v7237_v55  ;;  %v7252_v4 = vld [vmem:[#allocation13 + $0x64] ss:$16 sps:$4 sm:$0xff]   ;;  %v7255_v55 = vld [vmem:[#allocation13 + $0x6c] ss:$16 sps:$4 sm:$0xff]  }
 0x577   :  { %2780 = vmatprep.subr.bf16.mxu0 %v7240_v1  ;;  %2821 = vmatprep.subr.bf16.mxu1 %v7243_v33  ;;  %9081 = vst [vmem:[#allocation85_spill] sm:$0xff] %v7252_v4  ;;  %9082 = vst [vmem:[#allocation32_spill] sm:$0xff] %v7255_v55  ;;  %v7258_v1 = vld [vmem:[#allocation13 + $0x60] ss:$16 sps:$4 sm:$0xff]   ;;  %v7261_v33 = vld [vmem:[#allocation13 + $0x68] ss:$16 sps:$4 sm:$0xff]  }
 0x578   :  { %9083 = vst [vmem:[#allocation86_spill] sm:$0xff] %v7258_v1  ;;  %9084 = vst [vmem:[#allocation87_spill] sm:$0xff] %v7261_v33 }
 0x57a   :  { %2781 = vmatpush1.bf16.msra.mxu0 %v7246_v43  ;;  %2822 = vmatpush1.bf16.msra.mxu1 %v7249_v0  ;;  %v7264_v43 = vld [vmem:[#allocation13 + $0x44] ss:$16 sps:$4 sm:$0xff]   ;;  %v7267_v0 = vld [vmem:[#allocation13 + $0x4c] ss:$16 sps:$4 sm:$0xff]  }
 0x57b   :  { %2782 = vmatprep.subr.bf16.mxu0 %v7252_v4  ;;  %2823 = vmatprep.subr.bf16.mxu1 %v7255_v55  ;;  %9085 = vst [vmem:[#allocation88_spill] sm:$0xff] %v7264_v43  ;;  %9086 = vst [vmem:[#allocation89_spill] sm:$0xff] %v7267_v0  ;;  %v7270_v4 = vld [vmem:[#allocation13 + $0x40] ss:$16 sps:$4 sm:$0xff]   ;;  %v7273_v55 = vld [vmem:[#allocation13 + $0x48] ss:$16 sps:$4 sm:$0xff]  }
 0x57c   :  { %9087 = vst [vmem:[#allocation90_spill] sm:$0xff] %v7270_v4  ;;  %9088 = vst [vmem:[#allocation91_spill] sm:$0xff] %v7273_v55 }
 0x57e   :  { %2783 = vmatpush1.bf16.msra.mxu0 %v7258_v1  ;;  %2824 = vmatpush1.bf16.msra.mxu1 %v7261_v33  ;;  %v7276_v1 = vld [vmem:[#allocation13 + $0x24] ss:$16 sps:$4 sm:$0xff]   ;;  %v7279_v33 = vld [vmem:[#allocation13 + $0x2c] ss:$16 sps:$4 sm:$0xff]  }
 0x57f   :  { %2784 = vmatprep.subr.bf16.mxu0 %v7264_v43  ;;  %2825 = vmatprep.subr.bf16.mxu1 %v7267_v0  ;;  %9089 = vst [vmem:[#allocation92_spill] sm:$0xff] %v7276_v1  ;;  %9090 = vst [vmem:[#allocation93_spill] sm:$0xff] %v7279_v33  ;;  %v7282_v43 = vld [vmem:[#allocation13 + $0x20] ss:$16 sps:$4 sm:$0xff]   ;;  %v7285_v0 = vld [vmem:[#allocation13 + $0x28] ss:$16 sps:$4 sm:$0xff]  }
 0x580   :  { %9091 = vst [vmem:[#allocation94_spill] sm:$0xff] %v7282_v43  ;;  %9092 = vst [vmem:[#allocation95_spill] sm:$0xff] %v7285_v0 }
 0x582   :  { %2785 = vmatpush1.bf16.msra.mxu0 %v7270_v4  ;;  %2826 = vmatpush1.bf16.msra.mxu1 %v7273_v55  ;;  %v7288_v4 = vld [vmem:[#allocation13 + $0x4] ss:$16 sps:$4 sm:$0xff]   ;;  %v7291_v55 = vld [vmem:[#allocation13 + $0xc] ss:$16 sps:$4 sm:$0xff]  }
 0x583   :  { %2786 = vmatprep.subr.bf16.mxu0 %v7276_v1  ;;  %2827 = vmatprep.subr.bf16.mxu1 %v7279_v33  ;;  %9093 = vst [vmem:[#allocation96_spill] sm:$0xff] %v7288_v4  ;;  %9094 = vst [vmem:[#allocation97_spill] sm:$0xff] %v7291_v55  ;;  %v7294_v1 = vld [vmem:[#allocation13] ss:$16 sps:$4 sm:$0xff]   ;;  %v7297_v33 = vld [vmem:[#allocation13 + $0x8] ss:$16 sps:$4 sm:$0xff]  }
 0x584   :  { %9095 = vst [vmem:[#allocation98_spill] sm:$0xff] %v7294_v1  ;;  %9096 = vst [vmem:[#allocation99_spill] sm:$0xff] %v7297_v33 }
 0x586   :  { %2787 = vmatpush1.bf16.msra.mxu0 %v7282_v43  ;;  %2828 = vmatpush1.bf16.msra.mxu1 %v7285_v0  ;;  %v7300_v43 = vld [vmem:[#allocation12 + $0xe4] ss:$16 sps:$4 sm:$0xff]   ;;  %v7303_v0 = vld [vmem:[#allocation12 + $0xec] ss:$16 sps:$4 sm:$0xff]  }
 0x587   :  { %2788 = vmatprep.subr.bf16.mxu0 %v7288_v4  ;;  %2829 = vmatprep.subr.bf16.mxu1 %v7291_v55  ;;  %9097 = vst [vmem:[#allocation100_spill] sm:$0xff] %v7300_v43  ;;  %9098 = vst [vmem:[#allocation101_spill] sm:$0xff] %v7303_v0 }
 0x58a   :  { %2789 = vmatpush1.bf16.msra.mxu0 %v7294_v1  ;;  %2830 = vmatpush1.bf16.msra.mxu1 %v7297_v33 }
 0x58b   :  { %2856 = vmatprep.subr.bf16.mxu0 %v7300_v43  ;;  %2897 = vmatprep.subr.bf16.mxu1 %v7303_v0 }
 0x5ad   :  { %v2396_v4 = vpop.f32.mrf.mxu0  ;;  %v2437_v51 = vpop.f32.mrf.mxu1 }
 0x5af   :  { %v2398_v42 = vpop.f32.mrf.mxu0  ;;  %v2439_v55 = vpop.f32.mrf.mxu1 }
 0x5b1   :  { %v2400_v60 = vpop.f32.mrf.mxu0  ;;  %v2441_v32 = vpop.f32.mrf.mxu1 }
 0x5b3   :  { %v2401_v26 = vpop.f32.mrf.mxu0  ;;  %v2442_v1 = vpop.f32.mrf.mxu1 }
 0x5ed   :  { %v2478_v22 = vpop.f32.mrf.mxu0  ;;  %v2519_v21 = vpop.f32.mrf.mxu1 }
 0x5ee   :  { %v2479_v19 = vadd.f32 %v2478_v22, %v2396_v4  ;;  %v2520_v32 = vadd.f32 %v2519_v21, %v2437_v51 }
 0x5ef   :  { %v2480_v33 = vpop.f32.mrf.mxu0  ;;  %v2521_v18 = vpop.f32.mrf.mxu1 }
 0x5f0   :  { %v2526_v14 = vadd.f32 %v2479_v19, %v6236_v20  ;;  %v2481_v43 = vadd.f32 %v2480_v33, %v2398_v42  ;;  %v2522_v26 = vadd.f32 %v2521_v18, %v2439_v55  ;;  %v2528_v22 = vadd.f32 %v2520_v32, %v6254_v41 }
 0x5f1   :  { %v2482_v13 = vpop.f32.mrf.mxu0  ;;  %v2523_v12 = vpop.f32.mrf.mxu1 }
 0x5f2   :  { %v4453_v11 = vmul.f32 -1.442695, %v2526_v14  ;;  %v2527_v0 = vadd.f32 %v2481_v43, %v6241_v25  ;;  %v2529_v1 = vadd.f32 %v2522_v26, %v6248_v37 }
 0x5f3   :  { %v2483_v9 = vpop.f32.mrf.mxu0  ;;  %v2524_v7 = vpop.f32.mrf.mxu1 }
 0x5f4   :  { %4831 = vpow2.f32 %v4453_v11  ;;  %v4454_v60 = vmul.f32 -1.442695, %v2527_v0  ;;  %v4455_v4 = vmul.f32 -1.442695, %v2529_v1 }
 0x5f6   :  { %4833 = vpow2.f32 %v4454_v60 }
 0x5f7   :  { %4835 = vtanh.f32 %v2528_v22 }
 0x5f8   :  { %4837 = vpow2.f32 %v4455_v4 }
 0x601   :  { %v4832_v5 = vpop.eup %4831 }
 0x602   :  { %v2533_v19 = vadd.f32 1.0, %v4832_v5 }
 0x603   :  { %v4834_v13 = vpop.eup %4833 }
 0x604   :  { %4839 = vrcp.f32 %v2533_v19  ;;  %v2539_v12 = vadd.f32 1.0, %v4834_v13  ;;  %v4836_v0 = vpop.eup %4835  ;;  %v2564_v13 = vpop.permute.xlu1 %2563 }
 0x605   :  { %v4838_v51 = vpop.eup %4837 }
 0x606   :  { %4841 = vrcp.f32 %v2539_v12  ;;  %v2546_v5 = vadd.f32 1.0, %v4838_v51 }
 0x608   :  { %4843 = vrcp.f32 %v2546_v5 }
 0x60d   :  { %v2607_v9 = vpop.f32.mrf.mxu0  ;;  %v7310_v7 = vpop.f32.mrf.mxu1 }
 0x60f   :  { %v2609_v11 = vpop.f32.mrf.mxu0  ;;  %v7312_v14 = vpop.f32.mrf.mxu1 }
 0x611   :  { %v4840_v18 = vpop.eup %4839  ;;  %v2611_v21 = vpop.f32.mrf.mxu0 }
 0x612   :  { %v2652_v42 = vpop.f32.mrf.mxu1  ;;  %v2550_v55 = vmul.f32 %v4840_v18, %v4836_v0  ;;  %v7332_v21 = vld [vmem:[#allocation12 + $0xe0] ss:$16 sps:$4 sm:$0xff]  }
 0x613   :  { %v4842_v33 = vpop.eup %4841  ;;  %v2612_v43 = vpop.f32.mrf.mxu0  ;;  %v7335_v42 = vld [vmem:[#allocation12 + $0xe8] ss:$16 sps:$4 sm:$0xff]  }
 0x614   :  { %v2653_v60 = vpop.f32.mrf.mxu1  ;;  %v2549_v26 = vmul.f32 %v4842_v33, %v6927_v49  ;;  %v7341_v33 = vld [vmem:[#allocation12 + $0xcc] ss:$16 sps:$4 sm:$0xff]  }
 0x615   :  { %v4844_v22 = vpop.eup %4843 }
 0x616   :  { %v2551_v32 = vadd.f32 %v2550_v55, %v2549_v26  ;;  %v7338_v55 = vld [vmem:[#allocation12 + $0xc4] ss:$16 sps:$4 sm:$0xff]  }
 0x618   :  { %4845 = vtanh.f32 %v2551_v32  ;;  %v7318_v1 = vsel %vm2357_vm12, %v2551_v32, %v6927_v49  ;;  %v7347_v32 = vld [vmem:[#allocation12 + $0xc0] ss:$16 sps:$4 sm:$0xff]  }
 0x625   :  { %v4846_v4 = vpop.eup %4845 }
 0x626   :  { %v2553_v19 = vmul.f32 %v4846_v4, %v4844_v22 }
 0x628   :  { %v7323_v12 = vsel %vm2357_vm12, %v2553_v19, %v6937_v17  ;;  %v2556_v0 = vsel %vm2357_vm12, %v2553_v19, 0.0  ;;  %v7350_v19 = vld [vmem:[#allocation12 + $0xc8] ss:$16 sps:$4 sm:$0xff]  }
 0x629   :  { %v2773_v51 = vpack.c.bf16 %v7323_v12, %v7323_v12  ;;  %2558 = vst [vmem:[#allocation15 + $0x18] sm:$0xff] %v2556_v0  ;;  %v2566_v18 = vmul.f32 %v2564_v13, %v2556_v0 }
 0x62b   :  { %2807 = vmatmul.mubr.bf16.vlgmr.msra.gmra.mxu0 %v2773_v51  ;;  %2848 = vmatmul.mubr.bf16.vlgmr.msra.gmra.mxu1 %v2773_v51  ;;  %v7330_v49 = vadd.f32 %v2566_v18, %v6943_v50  ;;  %v7357_v51 = vld [vmem:[#allocation12 + $0xac] ss:$16 sps:$4 sm:$0xff]  }
 0x62c   :  { %2857 = vmatpush1.bf16.msra.mxu0 %v7332_v21  ;;  %2898 = vmatpush1.bf16.msra.mxu1 %v7335_v42 }
 0x62d   :  { %v2689_v28 = vpop.f32.mrf.mxu0  ;;  %v2730_v17 = vpop.f32.mrf.mxu1  ;;  %2858 = vmatprep.subr.bf16.mxu0 %v7338_v55  ;;  %2899 = vmatprep.subr.bf16.mxu1 %v7341_v33 }
 0x62e   :  { %v2690_v50 = vadd.f32 %v2689_v28, %v2607_v9  ;;  %2888 = vmatprep.mubr.bf16.mxu0 %v8687_v52  ;;  %2929 = vmatprep.mubr.bf16.mxu1 %v8687_v52  ;;  %v7353_v9 = vld [vmem:[#allocation12 + $0xa4] ss:$16 sps:$4 sm:$0xff]  }
 0x62f   :  { %v2691_v5 = vpop.f32.mrf.mxu0  ;;  %v2732_v43 = vpop.f32.mrf.mxu1 }
 0x630   :  { %v2737_v60 = vadd.f32 %v2690_v50, %v6073_v2  ;;  %v2692_v26 = vadd.f32 %v2691_v5, %v2609_v11  ;;  %2859 = vmatpush1.bf16.msra.mxu0 %v7347_v32  ;;  %2900 = vmatpush1.bf16.msra.mxu1 %v7350_v19  ;;  %v7360_v50 = vld [vmem:[#allocation12 + $0xa0] ss:$16 sps:$4 sm:$0xff]   ;;  %v7363_v5 = vld [vmem:[#allocation12 + $0xa8] ss:$16 sps:$4 sm:$0xff]  }
 0x631   :  { %v2693_v22 = vpop.f32.mrf.mxu0  ;;  %v2734_v4 = vpop.f32.mrf.mxu1  ;;  %2860 = vmatprep.subr.bf16.mxu0 %v7353_v9  ;;  %2901 = vmatprep.subr.bf16.mxu1 %v7357_v51 }
 0x632   :  { %v4459_v13 = vmul.f32 -1.442695, %v2737_v60  ;;  %v2738_v0 = vadd.f32 %v2692_v26, %v6077_v59  ;;  %v7366_v22 = vld [vmem:[#allocation12 + $0x84] ss:$16 sps:$4 sm:$0xff]   ;;  %v7369_v60 = vld [vmem:[#allocation12 + $0x8c] ss:$16 sps:$4 sm:$0xff]   ;;  %v2733_v26 = vadd.f32 %v2732_v43, %v7312_v14  ;;  %v2731_v14 = vadd.f32 %v2730_v17, %v7310_v7 }
 0x633   :  { %v2694_v11 = vpop.f32.mrf.mxu0  ;;  %v2735_v18 = vpop.f32.mrf.mxu1  ;;  %v7373_v4 = vld [vmem:[#allocation12 + $0x80] ss:$16 sps:$4 sm:$0xff]   ;;  %v7390_v43 = vld [vmem:[#allocation12 + $0x68] ss:$16 sps:$4 sm:$0xff]  }
 0x634   :  { %4847 = vpow2.f32 %v4459_v13  ;;  %v4460_v28 = vmul.f32 -1.442695, %v2738_v0  ;;  %2861 = vmatpush1.bf16.msra.mxu0 %v7360_v50  ;;  %2902 = vmatpush1.bf16.msra.mxu1 %v7363_v5  ;;  %v7376_v13 = vld [vmem:[#allocation12 + $0x88] ss:$16 sps:$4 sm:$0xff]   ;;  %v7379_v0 = vld [vmem:[#allocation12 + $0x64] ss:$16 sps:$4 sm:$0xff]   ;;  %v2740_v18 = vadd.f32 %v2733_v26, %v9012_v30  ;;  %v2739_v7 = vadd.f32 %v2731_v14, %v6090_v48 }
 0x635   :  { %2862 = vmatprep.subr.bf16.mxu0 %v7366_v22  ;;  %2903 = vmatprep.subr.bf16.mxu1 %v7369_v60  ;;  %9099 = vst [vmem:[#allocation102_spill] sm:$0xff] %v7376_v13  ;;  %9100 = vst [vmem:[#allocation103_spill] sm:$0xff] %v7379_v0  ;;  %v7382_v11 = vld [vmem:[#allocation12 + $0x6c] ss:$16 sps:$4 sm:$0xff]   ;;  %v7399_v26 = vld [vmem:[#allocation12 + $0x40] ss:$16 sps:$4 sm:$0xff]  }
 0x636   :  { %4849 = vpow2.f32 %v4460_v28  ;;  %9101 = vst [vmem:[#allocation104_spill] sm:$0xff] %v7382_v11  ;;  %v7386_v28 = vld [vmem:[#allocation12 + $0x60] ss:$16 sps:$4 sm:$0xff]   ;;  %9103 = vst [vmem:[#allocation106_spill] sm:$0xff] %v7390_v43  ;;  %v7403_v17 = vld [vmem:[#allocation12 + $0x48] ss:$16 sps:$4 sm:$0xff]  }
 0x637   :  { %9102 = vst [vmem:[#allocation105_spill] sm:$0xff] %v7386_v28  ;;  %9106 = vst [vmem:[#allocation109_spill] sm:$0xff] %v7399_v26  ;;  %v7409_v30 = vld [vmem:[#allocation12 + $0x2c] ss:$16 sps:$4 sm:$0xff]   ;;  %v7415_v14 = vld [vmem:[#allocation12 + $0x28] ss:$16 sps:$4 sm:$0xff]  }
 0x638   :  { %2863 = vmatpush1.bf16.msra.mxu0 %v7373_v4  ;;  %2904 = vmatpush1.bf16.msra.mxu1 %v7376_v13  ;;  %v7393_v13 = vld [vmem:[#allocation12 + $0x44] ss:$16 sps:$4 sm:$0xff]   ;;  %9107 = vst [vmem:[#allocation110_spill] sm:$0xff] %v7403_v17  ;;  %9108 = vst [vmem:[#allocation111_spill] sm:$0xff] %v7409_v30 }
 0x639   :  { %2864 = vmatprep.subr.bf16.mxu0 %v7379_v0  ;;  %2905 = vmatprep.subr.bf16.mxu1 %v7382_v11  ;;  %9104 = vst [vmem:[#allocation107_spill] sm:$0xff] %v7393_v13  ;;  %v7396_v0 = vld [vmem:[#allocation12 + $0x4c] ss:$16 sps:$4 sm:$0xff]   ;;  %v4461_v11 = vmul.f32 -1.442695, %v2740_v18  ;;  %9110 = vst [vmem:[#allocation113_spill] sm:$0xff] %v7415_v14 }
 0x63a   :  { %9105 = vst [vmem:[#allocation108_spill] sm:$0xff] %v7396_v0 }
 0x63b   :  { %4851 = vpow2.f32 %v4461_v11  ;;  %v7427_v11 = vld [vmem:[#allocation12 + $0x8] ss:$16 sps:$4 sm:$0xff]  }
 0x63c   :  { %2865 = vmatpush1.bf16.msra.mxu0 %v7386_v28  ;;  %2906 = vmatpush1.bf16.msra.mxu1 %v7390_v43  ;;  %v7406_v43 = vld [vmem:[#allocation12 + $0x24] ss:$16 sps:$4 sm:$0xff]   ;;  %9114 = vst [vmem:[#allocation118_spill] sm:$0xff] %v7427_v11 }
 0x63d   :  { %2866 = vmatprep.subr.bf16.mxu0 %v7393_v13  ;;  %2907 = vmatprep.subr.bf16.mxu1 %v7396_v0  ;;  %v7412_v0 = vld [vmem:[#allocation12 + $0x20] ss:$16 sps:$4 sm:$0xff]  }
 0x63e   :  { %9109 = vst [vmem:[#allocation112_spill] sm:$0xff] %v7412_v0 }
 0x640   :  { %2867 = vmatpush1.bf16.msra.mxu0 %v7399_v26  ;;  %2908 = vmatpush1.bf16.msra.mxu1 %v7403_v17  ;;  %v7418_v17 = vld [vmem:[#allocation12 + $0x4] ss:$16 sps:$4 sm:$0xff]  }
 0x641   :  { %v4848_v28 = vpop.eup %4847  ;;  %2868 = vmatprep.subr.bf16.mxu0 %v7406_v43  ;;  %2909 = vmatprep.subr.bf16.mxu1 %v7409_v30  ;;  %9111 = vst [vmem:[#allocation115_spill] sm:$0xff] %v7418_v17 }
 0x642   :  { %v2744_v13 = vadd.f32 1.0, %v4848_v28  ;;  %v7421_v28 = vld [vmem:[#allocation12 + $0xc] ss:$16 sps:$4 sm:$0xff]  }
 0x643   :  { %v4850_v18 = vpop.eup %4849  ;;  %9112 = vst [vmem:[#allocation116_spill] sm:$0xff] %v7421_v28 }
 0x644   :  { %4853 = vrcp.f32 %v2744_v13  ;;  %v2750_v26 = vadd.f32 1.0, %v4850_v18  ;;  %2869 = vmatpush1.bf16.msra.mxu0 %v7412_v0  ;;  %2910 = vmatpush1.bf16.msra.mxu1 %v7415_v14  ;;  %v7424_v13 = vld [vmem:[#allocation12] ss:$16 sps:$4 sm:$0xff]  }
 0x645   :  { %4855 = vtanh.f32 %v2739_v7  ;;  %2870 = vmatprep.subr.bf16.mxu0 %v7418_v17  ;;  %2911 = vmatprep.subr.bf16.mxu1 %v7421_v28  ;;  %9113 = vst [vmem:[#allocation117_spill] sm:$0xff] %v7424_v13 }
 0x646   :  { %4857 = vrcp.f32 %v2750_v26 }
 0x648   :  { %2871 = vmatpush1.bf16.msra.mxu0 %v7424_v13  ;;  %2912 = vmatpush1.bf16.msra.mxu1 %v7427_v11  ;;  %v4852_v7 = vpop.eup %4851 }
 0x649   :  { %2985 = vmatprep.subr.bf16.mxu0 %v6983_v16  ;;  %3026 = vmatprep.subr.bf16.mxu1 %v6986_v34  ;;  %v2757_v14 = vadd.f32 1.0, %v4852_v7 }
 0x64b   :  { %4859 = vrcp.f32 %v2757_v14  ;;  %v9143_v14 = vld [vmem:[#allocation62_spill] sm:$0xff] }
 0x651   :  { %v4854_v18 = vpop.eup %4853 }
 0x652   :  { %v4856_v17 = vpop.eup %4855 }
 0x653   :  { %v4858_v26 = vpop.eup %4857  ;;  %v2761_v0 = vmul.f32 %v4856_v17, %v4854_v18  ;;  %v9142_v17 = vld [vmem:[#allocation56_spill] sm:$0xff] }
 0x654   :  { %v2760_v28 = vmul.f32 %v4858_v26, %v6994_v57  ;;  %v9146_v18 = vld [vmem:[#allocation60_spill] sm:$0xff]  ;;  %v9147_v26 = vld [vmem:[#allocation66_spill] sm:$0xff] }
 0x656   :  { %v2762_v30 = vadd.f32 %v2761_v0, %v2760_v28  ;;  %v9144_v28 = vld [vmem:[#allocation57_spill] sm:$0xff] }
 0x658   :  { %4861 = vtanh.f32 %v2762_v30  ;;  %v7437_v11 = vsel %vm2769_vm13, %v2762_v30, %v6994_v57  ;;  %v4860_v16 = vpop.eup %4859  ;;  %v9115_v30 = vld [vmem:[#allocation30_spill] sm:$0xff]  ;;  %v9116_v57 = vld [vmem:[#allocation31_spill] sm:$0xff] }
 0x665   :  { %v4862_v34 = vpop.eup %4861 }
 0x666   :  { %v2764_v13 = vmul.f32 %v4862_v34, %v4860_v16  ;;  %v9148_v16 = vld [vmem:[#allocation61_spill] sm:$0xff]  ;;  %v9149_v34 = vld [vmem:[#allocation67_spill] sm:$0xff] }
 0x668   :  { %v7442_v7 = vsel %vm2769_vm13, %v2764_v13, %v6999_v3  ;;  %v9117_v3 = vld [vmem:[#allocation33_spill] sm:$0xff]  ;;  %v9145_v13 = vld [vmem:[#allocation63_spill] sm:$0xff] }
 0x669   :  { %v2772_v0 = vpack.c.bf16 %v7442_v7, %v7442_v7 }
 0x66b   :  { %2889 = vmatmul.mubr.bf16.vlgmr.msra.gmra.mxu0 %v2772_v0  ;;  %2930 = vmatmul.mubr.bf16.vlgmr.msra.gmra.mxu1 %v2772_v0 }
 0x66c   :  { %2986 = vmatpush1.bf16.msra.mxu0 %v7007_v31  ;;  %3027 = vmatpush1.bf16.msra.mxu1 %v7010_v27  ;;  %v9118_v31 = vld [vmem:[#allocation34_spill] sm:$0xff]  ;;  %v9119_v27 = vld [vmem:[#allocation35_spill] sm:$0xff] }
 0x66d   :  { %2987 = vmatprep.subr.bf16.mxu0 %v7013_v63  ;;  %3028 = vmatprep.subr.bf16.mxu1 %v7016_v23  ;;  %v9120_v63 = vld [vmem:[#allocation36_spill] sm:$0xff]  ;;  %v9121_v23 = vld [vmem:[#allocation37_spill] sm:$0xff] }
 0x66e   :  { %3017 = vmatprep.mubr.bf16.mxu0 %v8687_v52  ;;  %3058 = vmatprep.mubr.bf16.mxu1 %v8687_v52 }
 0x670   :  { %2988 = vmatpush1.bf16.msra.mxu0 %v7021_v40  ;;  %3029 = vmatpush1.bf16.msra.mxu1 %v7024_v38  ;;  %v9122_v40 = vld [vmem:[#allocation38_spill] sm:$0xff]  ;;  %v9123_v38 = vld [vmem:[#allocation39_spill] sm:$0xff] }
 0x671   :  { %2989 = vmatprep.subr.bf16.mxu0 %v7027_v39  ;;  %3030 = vmatprep.subr.bf16.mxu1 %v7030_v24  ;;  %v9124_v39 = vld [vmem:[#allocation40_spill] sm:$0xff]  ;;  %v9125_v24 = vld [vmem:[#allocation41_spill] sm:$0xff] }
 0x674   :  { %2990 = vmatpush1.bf16.msra.mxu0 %v7033_v29  ;;  %3031 = vmatpush1.bf16.msra.mxu1 %v7036_v45  ;;  %v9126_v29 = vld [vmem:[#allocation42_spill] sm:$0xff]  ;;  %v9127_v45 = vld [vmem:[#allocation43_spill] sm:$0xff] }
 0x675   :  { %2991 = vmatprep.subr.bf16.mxu0 %v7039_v61  ;;  %3032 = vmatprep.subr.bf16.mxu1 %v7042_v44  ;;  %v9128_v61 = vld [vmem:[#allocation44_spill] sm:$0xff]  ;;  %v9129_v44 = vld [vmem:[#allocation45_spill] sm:$0xff] }
 0x678   :  { %2992 = vmatpush1.bf16.msra.mxu0 %v7045_v35  ;;  %3033 = vmatpush1.bf16.msra.mxu1 %v7048_v46  ;;  %v9130_v35 = vld [vmem:[#allocation46_spill] sm:$0xff]  ;;  %v9131_v46 = vld [vmem:[#allocation47_spill] sm:$0xff] }
 0x679   :  { %2993 = vmatprep.subr.bf16.mxu0 %v7051_v58  ;;  %3034 = vmatprep.subr.bf16.mxu1 %v7054_v10  ;;  %v9132_v58 = vld [vmem:[#allocation48_spill] sm:$0xff]  ;;  %v9133_v10 = vld [vmem:[#allocation49_spill] sm:$0xff] }
 0x67c   :  { %2994 = vmatpush1.bf16.msra.mxu0 %v7057_v36  ;;  %3035 = vmatpush1.bf16.msra.mxu1 %v7060_v47  ;;  %v9134_v36 = vld [vmem:[#allocation50_spill] sm:$0xff]  ;;  %v9135_v47 = vld [vmem:[#allocation53_spill] sm:$0xff] }
 0x67d   :  { %2995 = vmatprep.subr.bf16.mxu0 %v7063_v54  ;;  %3036 = vmatprep.subr.bf16.mxu1 %v7066_v53  ;;  %v9136_v54 = vld [vmem:[#allocation51_spill] sm:$0xff]  ;;  %v9137_v53 = vld [vmem:[#allocation54_spill] sm:$0xff] }
 0x680   :  { %2996 = vmatpush1.bf16.msra.mxu0 %v7069_v8  ;;  %3037 = vmatpush1.bf16.msra.mxu1 %v7072_v6  ;;  %v9138_v8 = vld [vmem:[#allocation52_spill] sm:$0xff]  ;;  %v9139_v6 = vld [vmem:[#allocation58_spill] sm:$0xff] }
 0x681   :  { %2997 = vmatprep.subr.bf16.mxu0 %v7075_v62  ;;  %3038 = vmatprep.subr.bf16.mxu1 %v7078_v15  ;;  %v9140_v62 = vld [vmem:[#allocation55_spill] sm:$0xff] }
 0x682   :  { %v9141_v15 = vld [vmem:[#allocation59_spill] sm:$0xff] }
 0x684   :  { %2998 = vmatpush1.bf16.msra.mxu0 %v9115_v30  ;;  %3039 = vmatpush1.bf16.msra.mxu1 %v9116_v57  ;;  %v9151_v30 = vld [vmem:[#allocation70_spill] sm:$0xff]  ;;  %v9152_v57 = vld [vmem:[#allocation65_spill] sm:$0xff] }
 0x685   :  { %2999 = vmatprep.subr.bf16.mxu0 %v9117_v3  ;;  %3040 = vmatprep.subr.bf16.mxu1 %v9118_v31  ;;  %v4467_v3 = vld [vmem:[%s8285_s1 + $0x14] sm:$0xf]  ;;  %v9153_v31 = vld [vmem:[#allocation71_spill] sm:$0xff] }
 0x688   :  { %3000 = vmatpush1.bf16.msra.mxu0 %v9119_v27  ;;  %3041 = vmatpush1.bf16.msra.mxu1 %v9120_v63  ;;  %v9154_v27 = vld [vmem:[#allocation68_spill] sm:$0xff]  ;;  %v9155_v63 = vld [vmem:[#allocation74_spill] sm:$0xff] }
 0x689   :  { %3067 = vmatprep.subr.bf16.mxu0 %v9121_v23  ;;  %3108 = vmatprep.subr.bf16.mxu1 %v9122_v40  ;;  %v9156_v23 = vld [vmem:[#allocation69_spill] sm:$0xff]  ;;  %v9157_v40 = vld [vmem:[#allocation75_spill] sm:$0xff] }
 0x68b   :  { %3018 = vmatmul.mubr.bf16.vlgmr.msra.gmra.mxu0 %v2772_v0  ;;  %3059 = vmatmul.mubr.bf16.vlgmr.msra.gmra.mxu1 %v2772_v0  ;;  %v9150_v0 = vld [vmem:[#allocation64_spill] sm:$0xff] }
 0x68c   :  { %3068 = vmatpush1.bf16.msra.mxu0 %v9123_v38  ;;  %3109 = vmatpush1.bf16.msra.mxu1 %v9124_v39  ;;  %v9158_v38 = vld [vmem:[#allocation72_spill] sm:$0xff]  ;;  %v9159_v39 = vld [vmem:[#allocation78_spill] sm:$0xff] }
 0x68d   :  { %3069 = vmatprep.subr.bf16.mxu0 %v9125_v24  ;;  %3110 = vmatprep.subr.bf16.mxu1 %v9126_v29  ;;  %v9160_v24 = vld [vmem:[#allocation73_spill] sm:$0xff]  ;;  %v9161_v29 = vld [vmem:[#allocation79_spill] sm:$0xff] }
 0x68e   :  { %3099 = vmatprep.mubr.bf16.mxu0 %v8687_v52  ;;  %3140 = vmatprep.mubr.bf16.mxu1 %v8687_v52 }
 0x690   :  { %3070 = vmatpush1.bf16.msra.mxu0 %v9127_v45  ;;  %3111 = vmatpush1.bf16.msra.mxu1 %v9128_v61  ;;  %v9162_v45 = vld [vmem:[#allocation76_spill] sm:$0xff] }
 0x691   :  { %3071 = vmatprep.subr.bf16.mxu0 %v9129_v44  ;;  %3112 = vmatprep.subr.bf16.mxu1 %v9130_v35  ;;  %v9163_v61 = vld [vmem:[#allocation80_spill] sm:$0xff]  ;;  %v9164_v44 = vld [vmem:[#allocation77_spill] sm:$0xff] }
 0x692   :  { %v9165_v35 = vld [vmem:[#allocation81_spill] sm:$0xff] }
 0x694   :  { %3072 = vmatpush1.bf16.msra.mxu0 %v9131_v46  ;;  %3113 = vmatpush1.bf16.msra.mxu1 %v9132_v58  ;;  %v9166_v46 = vld [vmem:[#allocation82_spill] sm:$0xff]  ;;  %v9167_v58 = vld [vmem:[#allocation83_spill] sm:$0xff] }
 0x695   :  { %3073 = vmatprep.subr.bf16.mxu0 %v9133_v10  ;;  %3114 = vmatprep.subr.bf16.mxu1 %v9134_v36  ;;  %v9168_v10 = vld [vmem:[#allocation84_spill] sm:$0xff]  ;;  %v9169_v36 = vld [vmem:[#allocation85_spill] sm:$0xff] }
 0x698   :  { %3074 = vmatpush1.bf16.msra.mxu0 %v9135_v47  ;;  %3115 = vmatpush1.bf16.msra.mxu1 %v9136_v54  ;;  %v9170_v47 = vld [vmem:[#allocation32_spill] sm:$0xff]  ;;  %v9171_v54 = vld [vmem:[#allocation86_spill] sm:$0xff] }
 0x699   :  { %3075 = vmatprep.subr.bf16.mxu0 %v9137_v53  ;;  %3116 = vmatprep.subr.bf16.mxu1 %v9138_v8  ;;  %v9172_v53 = vld [vmem:[#allocation87_spill] sm:$0xff]  ;;  %v9173_v8 = vld [vmem:[#allocation88_spill] sm:$0xff] }
 0x69c   :  { %3076 = vmatpush1.bf16.msra.mxu0 %v9139_v6  ;;  %3117 = vmatpush1.bf16.msra.mxu1 %v9140_v62  ;;  %v9174_v6 = vld [vmem:[#allocation89_spill] sm:$0xff]  ;;  %v9175_v62 = vld [vmem:[#allocation90_spill] sm:$0xff] }
 0x69d   :  { %3077 = vmatprep.subr.bf16.mxu0 %v9141_v15  ;;  %3118 = vmatprep.subr.bf16.mxu1 %v9142_v17  ;;  %v9176_v15 = vld [vmem:[#allocation91_spill] sm:$0xff]  ;;  %v9177_v17 = vld [vmem:[#allocation92_spill] sm:$0xff] }
 0x6a0   :  { %3078 = vmatpush1.bf16.msra.mxu0 %v9143_v14  ;;  %3119 = vmatpush1.bf16.msra.mxu1 %v9144_v28  ;;  %v9178_v14 = vld [vmem:[#allocation93_spill] sm:$0xff]  ;;  %v9179_v28 = vld [vmem:[#allocation94_spill] sm:$0xff] }
 0x6a1   :  { %3079 = vmatprep.subr.bf16.mxu0 %v9145_v13  ;;  %3120 = vmatprep.subr.bf16.mxu1 %v9146_v18  ;;  %v9180_v13 = vld [vmem:[#allocation95_spill] sm:$0xff]  ;;  %v9181_v18 = vld [vmem:[#allocation96_spill] sm:$0xff] }
 0x6a4   :  { %3080 = vmatpush1.bf16.msra.mxu0 %v9147_v26  ;;  %3121 = vmatpush1.bf16.msra.mxu1 %v9148_v16  ;;  %v9182_v26 = vld [vmem:[#allocation97_spill] sm:$0xff]  ;;  %v9183_v16 = vld [vmem:[#allocation98_spill] sm:$0xff] }
 0x6a5   :  { %3081 = vmatprep.subr.bf16.mxu0 %v9149_v34  ;;  %3122 = vmatprep.subr.bf16.mxu1 %v9150_v0  ;;  %v9184_v34 = vld [vmem:[#allocation99_spill] sm:$0xff]  ;;  %v9185_v0 = vld [vmem:[#allocation100_spill] sm:$0xff] }
 0x6a8   :  { %3082 = vmatpush1.bf16.msra.mxu0 %v9151_v30  ;;  %3123 = vmatpush1.bf16.msra.mxu1 %v9152_v57  ;;  %v9186_v30 = vld [vmem:[#allocation101_spill] sm:$0xff] }
 0x6a9   :  { %3186 = vmatprep.subr.bf16.mxu0 %v9153_v31  ;;  %3227 = vmatprep.subr.bf16.mxu1 %v9154_v27 }
 0x6ab   :  { %3100 = vmatmul.mubr.bf16.vlgmr.msra.gmra.mxu0 %v4467_v3  ;;  %3141 = vmatmul.mubr.bf16.vlgmr.msra.gmra.mxu1 %v4467_v3 }
 0x6ac   :  { %3187 = vmatpush1.bf16.msra.mxu0 %v9155_v63  ;;  %3228 = vmatpush1.bf16.msra.mxu1 %v9156_v23 }
 0x6ad   :  { %3188 = vmatprep.subr.bf16.mxu0 %v9157_v40  ;;  %3229 = vmatprep.subr.bf16.mxu1 %v9158_v38 }
 0x6ae   :  { %3218 = vmatprep.mubr.bf16.mxu0 %v8687_v52  ;;  %3259 = vmatprep.mubr.bf16.mxu1 %v8687_v52 }
 0x6b0   :  { %3189 = vmatpush1.bf16.msra.mxu0 %v9159_v39  ;;  %3230 = vmatpush1.bf16.msra.mxu1 %v9160_v24 }
 0x6b1   :  { %3190 = vmatprep.subr.bf16.mxu0 %v9161_v29  ;;  %3231 = vmatprep.subr.bf16.mxu1 %v9162_v45 }
 0x6b4   :  { %3191 = vmatpush1.bf16.msra.mxu0 %v9163_v61  ;;  %3232 = vmatpush1.bf16.msra.mxu1 %v9164_v44 }
 0x6b5   :  { %3192 = vmatprep.subr.bf16.mxu0 %v9165_v35  ;;  %3233 = vmatprep.subr.bf16.mxu1 %v9166_v46 }
 0x6b8   :  { %3193 = vmatpush1.bf16.msra.mxu0 %v9167_v58  ;;  %3234 = vmatpush1.bf16.msra.mxu1 %v9168_v10 }
 0x6b9   :  { %3194 = vmatprep.subr.bf16.mxu0 %v9169_v36  ;;  %3235 = vmatprep.subr.bf16.mxu1 %v9170_v47 }
 0x6bc   :  { %3195 = vmatpush1.bf16.msra.mxu0 %v9171_v54  ;;  %3236 = vmatpush1.bf16.msra.mxu1 %v9172_v53 }
 0x6bd   :  { %3196 = vmatprep.subr.bf16.mxu0 %v9173_v8  ;;  %3237 = vmatprep.subr.bf16.mxu1 %v9174_v6 }
 0x6c0   :  { %3197 = vmatpush1.bf16.msra.mxu0 %v9175_v62  ;;  %3238 = vmatpush1.bf16.msra.mxu1 %v9176_v15 }
 0x6c1   :  { %3198 = vmatprep.subr.bf16.mxu0 %v9177_v17  ;;  %3239 = vmatprep.subr.bf16.mxu1 %v9178_v14 }
 0x6c4   :  { %3199 = vmatpush1.bf16.msra.mxu0 %v9179_v28  ;;  %3240 = vmatpush1.bf16.msra.mxu1 %v9180_v13 }
 0x6c5   :  { %3200 = vmatprep.subr.bf16.mxu0 %v9181_v18  ;;  %3241 = vmatprep.subr.bf16.mxu1 %v9182_v26 }
 0x6c8   :  { %3201 = vmatpush1.bf16.msra.mxu0 %v9183_v16  ;;  %3242 = vmatpush1.bf16.msra.mxu1 %v9184_v34 }
 0x6c9   :  { %3268 = vmatprep.subr.bf16.mxu0 %v9185_v0  ;;  %3309 = vmatprep.subr.bf16.mxu1 %v9186_v30 }
 0x6eb   :  { %v2808_v57 = vpop.f32.mrf.mxu0  ;;  %v2849_v3 = vpop.f32.mrf.mxu1 }
 0x6ed   :  { %v2810_v31 = vpop.f32.mrf.mxu0  ;;  %v2851_v27 = vpop.f32.mrf.mxu1 }
 0x6ef   :  { %v2812_v63 = vpop.f32.mrf.mxu0  ;;  %v2853_v23 = vpop.f32.mrf.mxu1 }
 0x6f1   :  { %v2813_v40 = vpop.f32.mrf.mxu0  ;;  %v2854_v38 = vpop.f32.mrf.mxu1 }
 0x72b   :  { %v2890_v39 = vpop.f32.mrf.mxu0  ;;  %v2931_v24 = vpop.f32.mrf.mxu1 }
 0x72c   :  { %v2891_v29 = vadd.f32 %v2890_v39, %v2808_v57  ;;  %v2932_v6 = vadd.f32 %v2931_v24, %v2849_v3 }
 0x72d   :  { %v2892_v45 = vpop.f32.mrf.mxu0  ;;  %v2933_v61 = vpop.f32.mrf.mxu1 }
 0x72e   :  { %v2938_v44 = vadd.f32 %v2891_v29, %v6236_v20  ;;  %v2893_v35 = vadd.f32 %v2892_v45, %v2810_v31  ;;  %v2934_v8 = vadd.f32 %v2933_v61, %v2851_v27  ;;  %v2940_v15 = vadd.f32 %v2932_v6, %v6254_v41 }
 0x72f   :  { %v2894_v46 = vpop.f32.mrf.mxu0  ;;  %v2935_v58 = vpop.f32.mrf.mxu1 }
 0x730   :  { %v4462_v10 = vmul.f32 -1.442695, %v2938_v44  ;;  %v2939_v36 = vadd.f32 %v2893_v35, %v6241_v25  ;;  %v2941_v62 = vadd.f32 %v2934_v8, %v6248_v37  ;;  %v2976_v46 = vpop.permute.xlu0 %2975 }
 0x731   :  { %v2895_v47 = vpop.f32.mrf.mxu0  ;;  %v2936_v54 = vpop.f32.mrf.mxu1 }
 0x732   :  { %4863 = vpow2.f32 %v4462_v10  ;;  %v4463_v53 = vmul.f32 -1.442695, %v2939_v36  ;;  %v4464_v17 = vmul.f32 -1.442695, %v2941_v62 }
 0x734   :  { %4865 = vpow2.f32 %v4463_v53 }
 0x735   :  { %4867 = vtanh.f32 %v2940_v15 }
 0x736   :  { %4869 = vpow2.f32 %v4464_v17 }
 0x73f   :  { %v4864_v14 = vpop.eup %4863 }
 0x740   :  { %v2945_v28 = vadd.f32 1.0, %v4864_v14  ;;  %v9190_v14 = vld [vmem:[#allocation114_spill] sm:$0xff] }
 0x741   :  { %v4866_v13 = vpop.eup %4865 }
 0x742   :  { %4871 = vrcp.f32 %v2945_v28  ;;  %v2951_v18 = vadd.f32 1.0, %v4866_v13  ;;  %v4868_v34 = vpop.eup %4867  ;;  %v9191_v13 = vld [vmem:[#allocation105_spill] sm:$0xff] }
 0x743   :  { %v4870_v57 = vpop.eup %4869 }
 0x744   :  { %4873 = vrcp.f32 %v2951_v18  ;;  %v2958_v40 = vadd.f32 1.0, %v4870_v57  ;;  %v9197_v57 = vld [vmem:[#allocation111_spill] sm:$0xff] }
 0x746   :  { %4875 = vrcp.f32 %v2958_v40  ;;  %v9202_v40 = vld [vmem:[#allocation117_spill] sm:$0xff] }
 0x74b   :  { %v3019_v26 = vpop.f32.mrf.mxu0  ;;  %v7555_v16 = vpop.f32.mrf.mxu1 }
 0x74d   :  { %v3021_v0 = vpop.f32.mrf.mxu0  ;;  %v3062_v30 = vpop.f32.mrf.mxu1 }
 0x74f   :  { %v4872_v3 = vpop.eup %4871  ;;  %v3023_v31 = vpop.f32.mrf.mxu0 }
 0x750   :  { %v3064_v27 = vpop.f32.mrf.mxu1  ;;  %v2962_v63 = vmul.f32 %v4872_v3, %v4868_v34  ;;  %v9198_v31 = vld [vmem:[#allocation112_spill] sm:$0xff] }
 0x751   :  { %v4874_v23 = vpop.eup %4873  ;;  %v3024_v38 = vpop.f32.mrf.mxu0  ;;  %v9199_v27 = vld [vmem:[#allocation113_spill] sm:$0xff] }
 0x752   :  { %v3065_v39 = vpop.f32.mrf.mxu1  ;;  %v2961_v24 = vmul.f32 %v4874_v23, %v7318_v1  ;;  %v9201_v23 = vld [vmem:[#allocation116_spill] sm:$0xff] }
 0x753   :  { %v4876_v61 = vpop.eup %4875  ;;  %v7612_v38 = vld [vmem:[#allocation10 + $0xe4] ss:$16 sps:$4 sm:$0xff]   ;;  %v7615_v39 = vld [vmem:[#allocation10 + $0xec] ss:$16 sps:$4 sm:$0xff]  }
 0x754   :  { %v2963_v29 = vadd.f32 %v2962_v63, %v2961_v24  ;;  %v9200_v63 = vld [vmem:[#allocation115_spill] sm:$0xff] }
 0x756   :  { %4877 = vtanh.f32 %v2963_v29  ;;  %v7561_v45 = vsel %vm2769_vm13, %v2963_v29, %v7318_v1 }
 0x763   :  { %v4878_v44 = vpop.eup %4877 }
 0x764   :  { %v2965_v35 = vmul.f32 %v4878_v44, %v4876_v61 }
 0x766   :  { %v7566_v58 = vsel %vm2769_vm13, %v2965_v35, %v7323_v12  ;;  %v2968_v10 = vsel %vm2769_vm13, %v2965_v35, 0.0 }
 0x767   :  { %v3185_v36 = vpack.c.bf16 %v7566_v58, %v7566_v58  ;;  %2970 = vst [vmem:[#allocation15 + $0x20] sm:$0xff] %v2968_v10  ;;  %v2978_v47 = vmul.f32 %v2976_v46, %v2968_v10 }
 0x769   :  { %3219 = vmatmul.mubr.bf16.vlgmr.msra.gmra.mxu0 %v3185_v36  ;;  %3260 = vmatmul.mubr.bf16.vlgmr.msra.gmra.mxu1 %v3185_v36  ;;  %v7573_v1 = vadd.f32 %v2978_v47, %v7330_v49  ;;  %v9204_v47 = vld [vmem:[#allocation27_spill] sm:$0xff] }
 0x76a   :  { %3269 = vmatpush1.bf16.msra.mxu0 %v7332_v21  ;;  %3310 = vmatpush1.bf16.msra.mxu1 %v7335_v42  ;;  %vm3181_vm14 = vcmp.eq.s32.totalorder %v9204_v47, 1 }
 0x76b   :  { %v3101_v54 = vpop.f32.mrf.mxu0  ;;  %v3142_v12 = vpop.f32.mrf.mxu1  ;;  %3270 = vmatprep.subr.bf16.mxu0 %v7338_v55  ;;  %3311 = vmatprep.subr.bf16.mxu1 %v7341_v33 }
 0x76c   :  { %v3102_v56 = vadd.f32 %v3101_v54, %v3019_v26  ;;  %3300 = vmatprep.mubr.bf16.mxu0 %v8687_v52  ;;  %3341 = vmatprep.mubr.bf16.mxu1 %v8687_v52 }
 0x76d   :  { %v3103_v53 = vpop.f32.mrf.mxu0  ;;  %v3144_v8 = vpop.f32.mrf.mxu1 }
 0x76e   :  { %v3149_v49 = vadd.f32 %v3102_v56, %v6073_v2  ;;  %v3104_v6 = vadd.f32 %v3103_v53, %v3021_v0  ;;  %3271 = vmatpush1.bf16.msra.mxu0 %v7347_v32  ;;  %3312 = vmatpush1.bf16.msra.mxu1 %v7350_v19  ;;  %v3145_v32 = vadd.f32 %v3144_v8, %v3062_v30  ;;  %v9187_v19 = vld [vmem:[#allocation102_spill] sm:$0xff] }
 0x76f   :  { %v3105_v21 = vpop.f32.mrf.mxu0  ;;  %v3146_v42 = vpop.f32.mrf.mxu1  ;;  %3272 = vmatprep.subr.bf16.mxu0 %v7353_v9  ;;  %3313 = vmatprep.subr.bf16.mxu1 %v7357_v51  ;;  %v9188_v9 = vld [vmem:[#allocation103_spill] sm:$0xff]  ;;  %v9189_v51 = vld [vmem:[#allocation104_spill] sm:$0xff]  ;;  %v9196_v0 = vld [vmem:[#allocation110_spill] sm:$0xff] }
 0x770   :  { %v4468_v55 = vmul.f32 -1.442695, %v3149_v49  ;;  %v3150_v33 = vadd.f32 %v3104_v6, %v6077_v59  ;;  %v3152_v28 = vadd.f32 %v3145_v32, %v9190_v14  ;;  %v7636_v6 = vld [vmem:[#allocation10 + $0xe0] ss:$16 sps:$4 sm:$0xff]   ;;  %v7642_v21 = vld [vmem:[#allocation10 + $0xc4] ss:$16 sps:$4 sm:$0xff]  }
 0x771   :  { %v3106_v62 = vpop.f32.mrf.mxu0  ;;  %v3147_v15 = vpop.f32.mrf.mxu1  ;;  %v7650_v42 = vld [vmem:[#allocation10 + $0xc0] ss:$16 sps:$4 sm:$0xff]   ;;  %v7668_v32 = vld [vmem:[#allocation10 + $0x84] ss:$16 sps:$4 sm:$0xff]  }
 0x772   :  { %4879 = vpow2.f32 %v4468_v55  ;;  %v4469_v17 = vmul.f32 -1.442695, %v3150_v33  ;;  %3273 = vmatpush1.bf16.msra.mxu0 %v7360_v50  ;;  %3314 = vmatpush1.bf16.msra.mxu1 %v7363_v5  ;;  %v3143_v50 = vadd.f32 %v3142_v12, %v7555_v16  ;;  %v9192_v5 = vld [vmem:[#allocation106_spill] sm:$0xff]  ;;  %v4470_v18 = vmul.f32 -1.442695, %v3152_v28 }
 0x773   :  { %3274 = vmatprep.subr.bf16.mxu0 %v7366_v22  ;;  %3315 = vmatprep.subr.bf16.mxu1 %v7369_v60  ;;  %v9193_v22 = vld [vmem:[#allocation107_spill] sm:$0xff]  ;;  %v9194_v60 = vld [vmem:[#allocation108_spill] sm:$0xff] }
 0x774   :  { %4881 = vpow2.f32 %v4469_v17  ;;  %v3151_v34 = vadd.f32 %v3143_v50, %v6090_v48  ;;  %v7653_v55 = vld [vmem:[#allocation10 + $0xc8] ss:$16 sps:$4 sm:$0xff]   ;;  %v7656_v33 = vld [vmem:[#allocation10 + $0xa4] ss:$16 sps:$4 sm:$0xff]   ;;  %v7659_v62 = vld [vmem:[#allocation10 + $0xac] ss:$16 sps:$4 sm:$0xff]  }
 0x775   :  { %4883 = vpow2.f32 %v4470_v18  ;;  %v7662_v15 = vld [vmem:[#allocation10 + $0xa0] ss:$16 sps:$4 sm:$0xff]   ;;  %v7665_v17 = vld [vmem:[#allocation10 + $0xa8] ss:$16 sps:$4 sm:$0xff]   ;;  %v7680_v28 = vld [vmem:[#allocation10 + $0x64] ss:$16 sps:$4 sm:$0xff]  }
 0x776   :  { %3275 = vmatpush1.bf16.msra.mxu0 %v7373_v4  ;;  %3316 = vmatpush1.bf16.msra.mxu1 %v9187_v19  ;;  %v9195_v4 = vld [vmem:[#allocation109_spill] sm:$0xff]  ;;  %v7686_v50 = vld [vmem:[#allocation10 + $0x60] ss:$16 sps:$4 sm:$0xff]  }
 0x777   :  { %3276 = vmatprep.subr.bf16.mxu0 %v9188_v9  ;;  %3317 = vmatprep.subr.bf16.mxu1 %v9189_v51  ;;  %v7671_v19 = vld [vmem:[#allocation10 + $0x8c] ss:$16 sps:$4 sm:$0xff]   ;;  %v7674_v9 = vld [vmem:[#allocation10 + $0x80] ss:$16 sps:$4 sm:$0xff]   ;;  %v7677_v51 = vld [vmem:[#allocation10 + $0x88] ss:$16 sps:$4 sm:$0xff]  }
 0x778   :  { %v7698_v18 = vld [vmem:[#allocation10 + $0x40] ss:$16 sps:$4 sm:$0xff]  }
 0x77a   :  { %3277 = vmatpush1.bf16.msra.mxu0 %v9191_v13  ;;  %3318 = vmatpush1.bf16.msra.mxu1 %v9192_v5  ;;  %v7683_v13 = vld [vmem:[#allocation10 + $0x6c] ss:$16 sps:$4 sm:$0xff]   ;;  %v7689_v5 = vld [vmem:[#allocation10 + $0x68] ss:$16 sps:$4 sm:$0xff]  }
 0x77b   :  { %3278 = vmatprep.subr.bf16.mxu0 %v9193_v22  ;;  %3319 = vmatprep.subr.bf16.mxu1 %v9194_v60  ;;  %v7692_v22 = vld [vmem:[#allocation10 + $0x44] ss:$16 sps:$4 sm:$0xff]   ;;  %v7695_v60 = vld [vmem:[#allocation10 + $0x4c] ss:$16 sps:$4 sm:$0xff]  }
 0x77e   :  { %3279 = vmatpush1.bf16.msra.mxu0 %v9195_v4  ;;  %3320 = vmatpush1.bf16.msra.mxu1 %v9196_v0  ;;  %v7701_v4 = vld [vmem:[#allocation10 + $0x48] ss:$16 sps:$4 sm:$0xff]   ;;  %v7710_v0 = vld [vmem:[#allocation10 + $0x20] ss:$16 sps:$4 sm:$0xff]  }
 0x77f   :  { %v4880_v26 = vpop.eup %4879  ;;  %3280 = vmatprep.subr.bf16.mxu0 %v7406_v43  ;;  %3321 = vmatprep.subr.bf16.mxu1 %v9197_v57  ;;  %v9203_v43 = vld [vmem:[#allocation118_spill] sm:$0xff] }
 0x780   :  { %v3156_v30 = vadd.f32 1.0, %v4880_v26  ;;  %v7704_v26 = vld [vmem:[#allocation10 + $0x24] ss:$16 sps:$4 sm:$0xff]  }
 0x781   :  { %v4882_v16 = vpop.eup %4881  ;;  %v7716_v57 = vld [vmem:[#allocation10 + $0x4] ss:$16 sps:$4 sm:$0xff]  }
 0x782   :  { %4885 = vrcp.f32 %v3156_v30  ;;  %v3162_v3 = vadd.f32 1.0, %v4882_v16  ;;  %3281 = vmatpush1.bf16.msra.mxu0 %v9198_v31  ;;  %3322 = vmatpush1.bf16.msra.mxu1 %v9199_v27  ;;  %v4884_v24 = vpop.eup %4883  ;;  %v7713_v30 = vld [vmem:[#allocation10 + $0x28] ss:$16 sps:$4 sm:$0xff]   ;;  %9206 = vst [vmem:[#allocation31_spill] sm:$0xff] %v7716_v57  ;;  %v7719_v16 = vld [vmem:[#allocation10 + $0xc] ss:$16 sps:$4 sm:$0xff]  }
 0x783   :  { %4887 = vtanh.f32 %v3151_v34  ;;  %3282 = vmatprep.subr.bf16.mxu0 %v9200_v63  ;;  %3323 = vmatprep.subr.bf16.mxu1 %v9201_v23  ;;  %v3169_v35 = vadd.f32 1.0, %v4884_v24  ;;  %v7707_v34 = vld [vmem:[#allocation10 + $0x2c] ss:$16 sps:$4 sm:$0xff]   ;;  %9205 = vst [vmem:[#allocation30_spill] sm:$0xff] %v7713_v30  ;;  %9207 = vst [vmem:[#allocation33_spill] sm:$0xff] %v7719_v16 }
 0x784   :  { %4889 = vrcp.f32 %v3162_v3  ;;  %v7722_v3 = vld [vmem:[#allocation10] ss:$16 sps:$4 sm:$0xff]   ;;  %v7725_v31 = vld [vmem:[#allocation10 + $0x8] ss:$16 sps:$4 sm:$0xff]   ;;  %v7728_v27 = vld [vmem:[#allocation7 + $0xe4] ss:$16 sps:$4 sm:$0xff]  }
 0x785   :  { %4891 = vrcp.f32 %v3169_v35  ;;  %9208 = vst [vmem:[#allocation34_spill] sm:$0xff] %v7722_v3  ;;  %9209 = vst [vmem:[#allocation35_spill] sm:$0xff] %v7725_v31  ;;  %v7731_v63 = vld [vmem:[#allocation7 + $0xec] ss:$16 sps:$4 sm:$0xff]   ;;  %v7736_v23 = vld [vmem:[#allocation7 + $0xe0] ss:$16 sps:$4 sm:$0xff]  }
 0x786   :  { %3283 = vmatpush1.bf16.msra.mxu0 %v9202_v40  ;;  %3324 = vmatpush1.bf16.msra.mxu1 %v9203_v43  ;;  %9210 = vst [vmem:[#allocation36_spill] sm:$0xff] %v7728_v27  ;;  %9211 = vst [vmem:[#allocation37_spill] sm:$0xff] %v7731_v63  ;;  %v7739_v40 = vld [vmem:[#allocation7 + $0xe8] ss:$16 sps:$4 sm:$0xff]   ;;  %v7742_v43 = vld [vmem:[#allocation7 + $0xc4] ss:$16 sps:$4 sm:$0xff]  }
 0x787   :  { %3397 = vmatprep.subr.bf16.mxu0 %v7612_v38  ;;  %3438 = vmatprep.subr.bf16.mxu1 %v7615_v39  ;;  %9212 = vst [vmem:[#allocation38_spill] sm:$0xff] %v7736_v23  ;;  %9213 = vst [vmem:[#allocation39_spill] sm:$0xff] %v7739_v40  ;;  %v7745_v24 = vld [vmem:[#allocation7 + $0xcc] ss:$16 sps:$4 sm:$0xff]  }
 0x788   :  { %9214 = vst [vmem:[#allocation40_spill] sm:$0xff] %v7742_v43  ;;  %9215 = vst [vmem:[#allocation41_spill] sm:$0xff] %v7745_v24  ;;  %v7759_v35 = vld [vmem:[#allocation7 + $0xac] ss:$16 sps:$4 sm:$0xff]  }
 0x789   :  { %9219 = vst [vmem:[#allocation45_spill] sm:$0xff] %v7759_v35 }
 0x78f   :  { %v4886_v29 = vpop.eup %4885 }
 0x790   :  { %v4888_v61 = vpop.eup %4887 }
 0x791   :  { %v4890_v44 = vpop.eup %4889  ;;  %v3173_v46 = vmul.f32 %v4888_v61, %v4886_v29  ;;  %v7750_v29 = vld [vmem:[#allocation7 + $0xc0] ss:$16 sps:$4 sm:$0xff]   ;;  %v7753_v61 = vld [vmem:[#allocation7 + $0xc8] ss:$16 sps:$4 sm:$0xff]  }
 0x792   :  { %v3172_v10 = vmul.f32 %v4890_v44, %v7437_v11  ;;  %v4892_v12 = vpop.eup %4891  ;;  %9216 = vst [vmem:[#allocation42_spill] sm:$0xff] %v7750_v29  ;;  %9217 = vst [vmem:[#allocation43_spill] sm:$0xff] %v7753_v61  ;;  %v7756_v44 = vld [vmem:[#allocation7 + $0xa4] ss:$16 sps:$4 sm:$0xff]  }
 0x793   :  { %9218 = vst [vmem:[#allocation44_spill] sm:$0xff] %v7756_v44 }
 0x794   :  { %v3174_v36 = vadd.f32 %v3173_v46, %v3172_v10  ;;  %v7762_v46 = vld [vmem:[#allocation7 + $0xa0] ss:$16 sps:$4 sm:$0xff]   ;;  %v7765_v10 = vld [vmem:[#allocation7 + $0xa8] ss:$16 sps:$4 sm:$0xff]  }
 0x795   :  { %9220 = vst [vmem:[#allocation46_spill] sm:$0xff] %v7762_v46  ;;  %9221 = vst [vmem:[#allocation47_spill] sm:$0xff] %v7765_v10 }
 0x796   :  { %4893 = vtanh.f32 %v3174_v36  ;;  %v7623_v54 = vsel %vm3181_vm14, %v3174_v36, %v7437_v11  ;;  %v7639_v11 = vld [vmem:[#allocation10 + $0xe8] ss:$16 sps:$4 sm:$0xff]   ;;  %v7768_v36 = vld [vmem:[#allocation7 + $0x84] ss:$16 sps:$4 sm:$0xff]  }
 0x797   :  { %9222 = vst [vmem:[#allocation48_spill] sm:$0xff] %v7768_v36 }
 0x7a3   :  { %v4894_v56 = vpop.eup %4893 }
 0x7a4   :  { %v3176_v53 = vmul.f32 %v4894_v56, %v4892_v12  ;;  %v7771_v12 = vld [vmem:[#allocation7 + $0x8c] ss:$16 sps:$4 sm:$0xff]   ;;  %v7774_v56 = vld [vmem:[#allocation7 + $0x80] ss:$16 sps:$4 sm:$0xff]  }
 0x7a5   :  { %9223 = vst [vmem:[#allocation49_spill] sm:$0xff] %v7771_v12  ;;  %9224 = vst [vmem:[#allocation50_spill] sm:$0xff] %v7774_v56 }
 0x7a6   :  { %v7628_v8 = vsel %vm3181_vm14, %v3176_v53, %v7442_v7  ;;  %v7645_v7 = vld [vmem:[#allocation10 + $0xcc] ss:$16 sps:$4 sm:$0xff]   ;;  %v7777_v53 = vld [vmem:[#allocation7 + $0x88] ss:$16 sps:$4 sm:$0xff]  }
 0x7a7   :  { %v7632_v49 = vpack.c.bf16 %v7628_v8, %v7628_v8  ;;  %9225 = vst [vmem:[#allocation53_spill] sm:$0xff] %v7777_v53 }
 0x7a9   :  { %3301 = vmatmul.mubr.bf16.vlgmr.msra.gmra.mxu0 %v7632_v49  ;;  %3342 = vmatmul.mubr.bf16.vlgmr.msra.gmra.mxu1 %v7632_v49 }
 0x7aa   :  { %3398 = vmatpush1.bf16.msra.mxu0 %v7636_v6  ;;  %3439 = vmatpush1.bf16.msra.mxu1 %v7639_v11 }
 0x7ab   :  { %3399 = vmatprep.subr.bf16.mxu0 %v7642_v21  ;;  %3440 = vmatprep.subr.bf16.mxu1 %v7645_v7 }
 0x7ac   :  { %3429 = vmatprep.mubr.bf16.mxu0 %v8687_v52  ;;  %3470 = vmatprep.mubr.bf16.mxu1 %v8687_v52 }
 0x7ae   :  { %3400 = vmatpush1.bf16.msra.mxu0 %v7650_v42  ;;  %3441 = vmatpush1.bf16.msra.mxu1 %v7653_v55 }
 0x7af   :  { %3401 = vmatprep.subr.bf16.mxu0 %v7656_v33  ;;  %3442 = vmatprep.subr.bf16.mxu1 %v7659_v62 }
 0x7b2   :  { %3402 = vmatpush1.bf16.msra.mxu0 %v7662_v15  ;;  %3443 = vmatpush1.bf16.msra.mxu1 %v7665_v17 }
 0x7b3   :  { %3403 = vmatprep.subr.bf16.mxu0 %v7668_v32  ;;  %3444 = vmatprep.subr.bf16.mxu1 %v7671_v19 }
 0x7b6   :  { %3404 = vmatpush1.bf16.msra.mxu0 %v7674_v9  ;;  %3445 = vmatpush1.bf16.msra.mxu1 %v7677_v51 }
 0x7b7   :  { %3405 = vmatprep.subr.bf16.mxu0 %v7680_v28  ;;  %3446 = vmatprep.subr.bf16.mxu1 %v7683_v13 }
 0x7ba   :  { %3406 = vmatpush1.bf16.msra.mxu0 %v7686_v50  ;;  %3447 = vmatpush1.bf16.msra.mxu1 %v7689_v5 }
 0x7bb   :  { %3407 = vmatprep.subr.bf16.mxu0 %v7692_v22  ;;  %3448 = vmatprep.subr.bf16.mxu1 %v7695_v60 }
 0x7be   :  { %3408 = vmatpush1.bf16.msra.mxu0 %v7698_v18  ;;  %3449 = vmatpush1.bf16.msra.mxu1 %v7701_v4 }
 0x7bf   :  { %3409 = vmatprep.subr.bf16.mxu0 %v7704_v26  ;;  %3450 = vmatprep.subr.bf16.mxu1 %v7707_v34 }
 0x7c2   :  { %3410 = vmatpush1.bf16.msra.mxu0 %v7710_v0  ;;  %3451 = vmatpush1.bf16.msra.mxu1 %v7713_v30 }
 0x7c3   :  { %3411 = vmatprep.subr.bf16.mxu0 %v7716_v57  ;;  %3452 = vmatprep.subr.bf16.mxu1 %v7719_v16 }
 0x7c6   :  { %3412 = vmatpush1.bf16.msra.mxu0 %v7722_v3  ;;  %3453 = vmatpush1.bf16.msra.mxu1 %v7725_v31 }
 0x7c7   :  { %3479 = vmatprep.subr.bf16.mxu0 %v7728_v27  ;;  %3520 = vmatprep.subr.bf16.mxu1 %v7731_v63 }
 0x7c9   :  { %3430 = vmatmul.mubr.bf16.vlgmr.msra.gmra.mxu0 %v7632_v49  ;;  %3471 = vmatmul.mubr.bf16.vlgmr.msra.gmra.mxu1 %v7632_v49  ;;  %v7780_v49 = vld [vmem:[#allocation7 + $0x64] ss:$16 sps:$4 sm:$0xff]  }
 0x7ca   :  { %3480 = vmatpush1.bf16.msra.mxu0 %v7736_v23  ;;  %3521 = vmatpush1.bf16.msra.mxu1 %v7739_v40  ;;  %9226 = vst [vmem:[#allocation51_spill] sm:$0xff] %v7780_v49 }
 0x7cb   :  { %3481 = vmatprep.subr.bf16.mxu0 %v7742_v43  ;;  %3522 = vmatprep.subr.bf16.mxu1 %v7745_v24 }
 0x7cc   :  { %3511 = vmatprep.mubr.bf16.mxu0 %v8687_v52  ;;  %3552 = vmatprep.mubr.bf16.mxu1 %v8687_v52 }
 0x7ce   :  { %3482 = vmatpush1.bf16.msra.mxu0 %v7750_v29  ;;  %3523 = vmatpush1.bf16.msra.mxu1 %v7753_v61 }
 0x7cf   :  { %3483 = vmatprep.subr.bf16.mxu0 %v7756_v44  ;;  %3524 = vmatprep.subr.bf16.mxu1 %v7759_v35 }
 0x7d2   :  { %3484 = vmatpush1.bf16.msra.mxu0 %v7762_v46  ;;  %3525 = vmatpush1.bf16.msra.mxu1 %v7765_v10  ;;  %v7783_v10 = vld [vmem:[#allocation7 + $0x6c] ss:$16 sps:$4 sm:$0xff]  }
 0x7d3   :  { %3485 = vmatprep.subr.bf16.mxu0 %v7768_v36  ;;  %3526 = vmatprep.subr.bf16.mxu1 %v7771_v12  ;;  %9227 = vst [vmem:[#allocation54_spill] sm:$0xff] %v7783_v10  ;;  %v7786_v36 = vld [vmem:[#allocation7 + $0x60] ss:$16 sps:$4 sm:$0xff]   ;;  %v7789_v12 = vld [vmem:[#allocation7 + $0x68] ss:$16 sps:$4 sm:$0xff]  }
 0x7d4   :  { %9228 = vst [vmem:[#allocation52_spill] sm:$0xff] %v7786_v36  ;;  %9229 = vst [vmem:[#allocation58_spill] sm:$0xff] %v7789_v12  ;;  %v7846_v46 = vld [vmem:[#allocation13 + $0xcc] ss:$16 sps:$4 sm:$0xff]  }
 0x7d5   :  { %9247 = vst [vmem:[#allocation75_spill] sm:$0xff] %v7846_v46 }
 0x7d6   :  { %3486 = vmatpush1.bf16.msra.mxu0 %v7774_v56  ;;  %3527 = vmatpush1.bf16.msra.mxu1 %v7777_v53  ;;  %v7792_v56 = vld [vmem:[#allocation7 + $0x44] ss:$16 sps:$4 sm:$0xff]   ;;  %v7795_v53 = vld [vmem:[#allocation7 + $0x4c] ss:$16 sps:$4 sm:$0xff]  }
 0x7d7   :  { %3487 = vmatprep.subr.bf16.mxu0 %v7780_v49  ;;  %3528 = vmatprep.subr.bf16.mxu1 %v7783_v10  ;;  %9230 = vst [vmem:[#allocation55_spill] sm:$0xff] %v7792_v56  ;;  %9231 = vst [vmem:[#allocation59_spill] sm:$0xff] %v7795_v53  ;;  %v7798_v49 = vld [vmem:[#allocation7 + $0x40] ss:$16 sps:$4 sm:$0xff]   ;;  %v7801_v10 = vld [vmem:[#allocation7 + $0x48] ss:$16 sps:$4 sm:$0xff]  }
 0x7d8   :  { %9232 = vst [vmem:[#allocation56_spill] sm:$0xff] %v7798_v49  ;;  %9233 = vst [vmem:[#allocation62_spill] sm:$0xff] %v7801_v10 }
 0x7da   :  { %3488 = vmatpush1.bf16.msra.mxu0 %v7786_v36  ;;  %3529 = vmatpush1.bf16.msra.mxu1 %v7789_v12  ;;  %v7804_v36 = vld [vmem:[#allocation7 + $0x24] ss:$16 sps:$4 sm:$0xff]   ;;  %v7807_v12 = vld [vmem:[#allocation7 + $0x2c] ss:$16 sps:$4 sm:$0xff]  }
 0x7db   :  { %3489 = vmatprep.subr.bf16.mxu0 %v7792_v56  ;;  %3530 = vmatprep.subr.bf16.mxu1 %v7795_v53  ;;  %9234 = vst [vmem:[#allocation57_spill] sm:$0xff] %v7804_v36  ;;  %9235 = vst [vmem:[#allocation63_spill] sm:$0xff] %v7807_v12  ;;  %v7810_v56 = vld [vmem:[#allocation7 + $0x20] ss:$16 sps:$4 sm:$0xff]   ;;  %v7813_v53 = vld [vmem:[#allocation7 + $0x28] ss:$16 sps:$4 sm:$0xff]  }
 0x7dc   :  { %9236 = vst [vmem:[#allocation60_spill] sm:$0xff] %v7810_v56  ;;  %9237 = vst [vmem:[#allocation66_spill] sm:$0xff] %v7813_v53 }
 0x7de   :  { %3490 = vmatpush1.bf16.msra.mxu0 %v7798_v49  ;;  %3531 = vmatpush1.bf16.msra.mxu1 %v7801_v10  ;;  %v7816_v49 = vld [vmem:[#allocation7 + $0x4] ss:$16 sps:$4 sm:$0xff]   ;;  %v7819_v10 = vld [vmem:[#allocation7 + $0xc] ss:$16 sps:$4 sm:$0xff]  }
 0x7df   :  { %3491 = vmatprep.subr.bf16.mxu0 %v7804_v36  ;;  %3532 = vmatprep.subr.bf16.mxu1 %v7807_v12  ;;  %9238 = vst [vmem:[#allocation61_spill] sm:$0xff] %v7816_v49  ;;  %9239 = vst [vmem:[#allocation67_spill] sm:$0xff] %v7819_v10  ;;  %v7822_v36 = vld [vmem:[#allocation7] ss:$16 sps:$4 sm:$0xff]   ;;  %v7825_v12 = vld [vmem:[#allocation7 + $0x8] ss:$16 sps:$4 sm:$0xff]  }
 0x7e0   :  { %9240 = vst [vmem:[#allocation64_spill] sm:$0xff] %v7822_v36  ;;  %9241 = vst [vmem:[#allocation70_spill] sm:$0xff] %v7825_v12 }
 0x7e2   :  { %3492 = vmatpush1.bf16.msra.mxu0 %v7810_v56  ;;  %3533 = vmatpush1.bf16.msra.mxu1 %v7813_v53  ;;  %v4476_v53 = vld [vmem:[%s8285_s1 + $0x18] sm:$0xf]  ;;  %v7831_v56 = vld [vmem:[#allocation13 + $0xe4] ss:$16 sps:$4 sm:$0xff]  }
 0x7e3   :  { %3493 = vmatprep.subr.bf16.mxu0 %v7816_v49  ;;  %3534 = vmatprep.subr.bf16.mxu1 %v7819_v10  ;;  %9242 = vst [vmem:[#allocation65_spill] sm:$0xff] %v7831_v56  ;;  %v7834_v49 = vld [vmem:[#allocation13 + $0xec] ss:$16 sps:$4 sm:$0xff]   ;;  %v7837_v10 = vld [vmem:[#allocation13 + $0xe0] ss:$16 sps:$4 sm:$0xff]  }
 0x7e4   :  { %9243 = vst [vmem:[#allocation71_spill] sm:$0xff] %v7834_v49  ;;  %9244 = vst [vmem:[#allocation68_spill] sm:$0xff] %v7837_v10 }
 0x7e6   :  { %3494 = vmatpush1.bf16.msra.mxu0 %v7822_v36  ;;  %3535 = vmatpush1.bf16.msra.mxu1 %v7825_v12  ;;  %v7840_v36 = vld [vmem:[#allocation13 + $0xe8] ss:$16 sps:$4 sm:$0xff]   ;;  %v7843_v12 = vld [vmem:[#allocation13 + $0xc4] ss:$16 sps:$4 sm:$0xff]  }
 0x7e7   :  { %3598 = vmatprep.subr.bf16.mxu0 %v7831_v56  ;;  %3639 = vmatprep.subr.bf16.mxu1 %v7834_v49  ;;  %9245 = vst [vmem:[#allocation74_spill] sm:$0xff] %v7840_v36  ;;  %9246 = vst [vmem:[#allocation69_spill] sm:$0xff] %v7843_v12  ;;  %v7866_v49 = vld [vmem:[#allocation13 + $0xa8] ss:$16 sps:$4 sm:$0xff]  }
 0x7e8   :  { %9253 = vst [vmem:[#allocation80_spill] sm:$0xff] %v7866_v49 }
 0x7e9   :  { %3512 = vmatmul.mubr.bf16.vlgmr.msra.gmra.mxu0 %v4476_v53  ;;  %3553 = vmatmul.mubr.bf16.vlgmr.msra.gmra.mxu1 %v4476_v53  ;;  %v7851_v53 = vld [vmem:[#allocation13 + $0xc0] ss:$16 sps:$4 sm:$0xff]  }
 0x7ea   :  { %3599 = vmatpush1.bf16.msra.mxu0 %v7837_v10  ;;  %3640 = vmatpush1.bf16.msra.mxu1 %v7840_v36  ;;  %9248 = vst [vmem:[#allocation72_spill] sm:$0xff] %v7851_v53  ;;  %v7854_v10 = vld [vmem:[#allocation13 + $0xc8] ss:$16 sps:$4 sm:$0xff]   ;;  %v7857_v36 = vld [vmem:[#allocation13 + $0xa4] ss:$16 sps:$4 sm:$0xff]  }
 0x7eb   :  { %3600 = vmatprep.subr.bf16.mxu0 %v7843_v12  ;;  %3641 = vmatprep.subr.bf16.mxu1 %v7846_v46  ;;  %9249 = vst [vmem:[#allocation78_spill] sm:$0xff] %v7854_v10  ;;  %9250 = vst [vmem:[#allocation73_spill] sm:$0xff] %v7857_v36  ;;  %v7860_v12 = vld [vmem:[#allocation13 + $0xac] ss:$16 sps:$4 sm:$0xff]   ;;  %v7863_v46 = vld [vmem:[#allocation13 + $0xa0] ss:$16 sps:$4 sm:$0xff]  }
 0x7ec   :  { %3630 = vmatprep.mubr.bf16.mxu0 %v8687_v52  ;;  %3671 = vmatprep.mubr.bf16.mxu1 %v8687_v52  ;;  %9251 = vst [vmem:[#allocation79_spill] sm:$0xff] %v7860_v12  ;;  %9252 = vst [vmem:[#allocation76_spill] sm:$0xff] %v7863_v46 }
 0x7ee   :  { %3601 = vmatpush1.bf16.msra.mxu0 %v7851_v53  ;;  %3642 = vmatpush1.bf16.msra.mxu1 %v7854_v10  ;;  %v7869_v53 = vld [vmem:[#allocation13 + $0x84] ss:$16 sps:$4 sm:$0xff]   ;;  %v7872_v10 = vld [vmem:[#allocation13 + $0x8c] ss:$16 sps:$4 sm:$0xff]  }
 0x7ef   :  { %3602 = vmatprep.subr.bf16.mxu0 %v7857_v36  ;;  %3643 = vmatprep.subr.bf16.mxu1 %v7860_v12  ;;  %9254 = vst [vmem:[#allocation77_spill] sm:$0xff] %v7869_v53  ;;  %9255 = vst [vmem:[#allocation81_spill] sm:$0xff] %v7872_v10  ;;  %v7875_v36 = vld [vmem:[#allocation13 + $0x80] ss:$16 sps:$4 sm:$0xff]   ;;  %v7878_v12 = vld [vmem:[#allocation13 + $0x88] ss:$16 sps:$4 sm:$0xff]  }
 0x7f0   :  { %9256 = vst [vmem:[#allocation82_spill] sm:$0xff] %v7875_v36  ;;  %9257 = vst [vmem:[#allocation83_spill] sm:$0xff] %v7878_v12 }
 0x7f2   :  { %3603 = vmatpush1.bf16.msra.mxu0 %v7863_v46  ;;  %3644 = vmatpush1.bf16.msra.mxu1 %v7866_v49  ;;  %v7881_v46 = vld [vmem:[#allocation13 + $0x64] ss:$16 sps:$4 sm:$0xff]   ;;  %v7884_v49 = vld [vmem:[#allocation13 + $0x6c] ss:$16 sps:$4 sm:$0xff]  }
 0x7f3   :  { %3604 = vmatprep.subr.bf16.mxu0 %v7869_v53  ;;  %3645 = vmatprep.subr.bf16.mxu1 %v7872_v10  ;;  %9258 = vst [vmem:[#allocation84_spill] sm:$0xff] %v7881_v46  ;;  %9259 = vst [vmem:[#allocation85_spill] sm:$0xff] %v7884_v49  ;;  %v7887_v53 = vld [vmem:[#allocation13 + $0x60] ss:$16 sps:$4 sm:$0xff]   ;;  %v7890_v10 = vld [vmem:[#allocation13 + $0x68] ss:$16 sps:$4 sm:$0xff]  }
 0x7f4   :  { %9260 = vst [vmem:[#allocation32_spill] sm:$0xff] %v7887_v53  ;;  %9261 = vst [vmem:[#allocation86_spill] sm:$0xff] %v7890_v10 }
 0x7f6   :  { %3605 = vmatpush1.bf16.msra.mxu0 %v7875_v36  ;;  %3646 = vmatpush1.bf16.msra.mxu1 %v7878_v12  ;;  %v7893_v36 = vld [vmem:[#allocation13 + $0x44] ss:$16 sps:$4 sm:$0xff]   ;;  %v7896_v12 = vld [vmem:[#allocation13 + $0x4c] ss:$16 sps:$4 sm:$0xff]  }
 0x7f7   :  { %3606 = vmatprep.subr.bf16.mxu0 %v7881_v46  ;;  %3647 = vmatprep.subr.bf16.mxu1 %v7884_v49  ;;  %9262 = vst [vmem:[#allocation87_spill] sm:$0xff] %v7893_v36  ;;  %9263 = vst [vmem:[#allocation88_spill] sm:$0xff] %v7896_v12  ;;  %v7899_v46 = vld [vmem:[#allocation13 + $0x40] ss:$16 sps:$4 sm:$0xff]   ;;  %v7902_v49 = vld [vmem:[#allocation13 + $0x48] ss:$16 sps:$4 sm:$0xff]  }
 0x7f8   :  { %9264 = vst [vmem:[#allocation89_spill] sm:$0xff] %v7899_v46  ;;  %9265 = vst [vmem:[#allocation90_spill] sm:$0xff] %v7902_v49 }
 0x7fa   :  { %3607 = vmatpush1.bf16.msra.mxu0 %v7887_v53  ;;  %3648 = vmatpush1.bf16.msra.mxu1 %v7890_v10  ;;  %v7905_v53 = vld [vmem:[#allocation13 + $0x24] ss:$16 sps:$4 sm:$0xff]   ;;  %v7908_v10 = vld [vmem:[#allocation13 + $0x2c] ss:$16 sps:$4 sm:$0xff]  }
 0x7fb   :  { %3608 = vmatprep.subr.bf16.mxu0 %v7893_v36  ;;  %3649 = vmatprep.subr.bf16.mxu1 %v7896_v12  ;;  %9266 = vst [vmem:[#allocation91_spill] sm:$0xff] %v7905_v53  ;;  %9267 = vst [vmem:[#allocation92_spill] sm:$0xff] %v7908_v10  ;;  %v7911_v36 = vld [vmem:[#allocation13 + $0x20] ss:$16 sps:$4 sm:$0xff]   ;;  %v7914_v12 = vld [vmem:[#allocation13 + $0x28] ss:$16 sps:$4 sm:$0xff]  }
 0x7fc   :  { %9268 = vst [vmem:[#allocation93_spill] sm:$0xff] %v7911_v36  ;;  %9269 = vst [vmem:[#allocation94_spill] sm:$0xff] %v7914_v12 }
 0x7fe   :  { %3609 = vmatpush1.bf16.msra.mxu0 %v7899_v46  ;;  %3650 = vmatpush1.bf16.msra.mxu1 %v7902_v49  ;;  %v7917_v46 = vld [vmem:[#allocation13 + $0x4] ss:$16 sps:$4 sm:$0xff]   ;;  %v7920_v49 = vld [vmem:[#allocation13 + $0xc] ss:$16 sps:$4 sm:$0xff]  }
 0x7ff   :  { %3610 = vmatprep.subr.bf16.mxu0 %v7905_v53  ;;  %3651 = vmatprep.subr.bf16.mxu1 %v7908_v10  ;;  %9270 = vst [vmem:[#allocation95_spill] sm:$0xff] %v7917_v46  ;;  %9271 = vst [vmem:[#allocation96_spill] sm:$0xff] %v7920_v49  ;;  %v7923_v53 = vld [vmem:[#allocation13] ss:$16 sps:$4 sm:$0xff]   ;;  %v7926_v10 = vld [vmem:[#allocation13 + $0x8] ss:$16 sps:$4 sm:$0xff]  }
 0x800   :  { %9272 = vst [vmem:[#allocation97_spill] sm:$0xff] %v7923_v53  ;;  %9273 = vst [vmem:[#allocation98_spill] sm:$0xff] %v7926_v10 }
 0x802   :  { %3611 = vmatpush1.bf16.msra.mxu0 %v7911_v36  ;;  %3652 = vmatpush1.bf16.msra.mxu1 %v7914_v12  ;;  %v7929_v36 = vld [vmem:[#allocation12 + $0xe4] ss:$16 sps:$4 sm:$0xff]   ;;  %v7932_v12 = vld [vmem:[#allocation12 + $0xec] ss:$16 sps:$4 sm:$0xff]  }
 0x803   :  { %3612 = vmatprep.subr.bf16.mxu0 %v7917_v46  ;;  %3653 = vmatprep.subr.bf16.mxu1 %v7920_v49  ;;  %9274 = vst [vmem:[#allocation99_spill] sm:$0xff] %v7929_v36  ;;  %9275 = vst [vmem:[#allocation100_spill] sm:$0xff] %v7932_v12 }
 0x806   :  { %3613 = vmatpush1.bf16.msra.mxu0 %v7923_v53  ;;  %3654 = vmatpush1.bf16.msra.mxu1 %v7926_v10 }
 0x807   :  { %3680 = vmatprep.subr.bf16.mxu0 %v7929_v36  ;;  %3721 = vmatprep.subr.bf16.mxu1 %v7932_v12 }
 0x829   :  { %v3220_v46 = vpop.f32.mrf.mxu0  ;;  %v3261_v56 = vpop.f32.mrf.mxu1 }
 0x82b   :  { %v3222_v35 = vpop.f32.mrf.mxu0  ;;  %v3263_v49 = vpop.f32.mrf.mxu1 }
 0x82d   :  { %v3224_v44 = vpop.f32.mrf.mxu0  ;;  %v3265_v61 = vpop.f32.mrf.mxu1 }
 0x82f   :  { %v3225_v29 = vpop.f32.mrf.mxu0  ;;  %v3266_v53 = vpop.f32.mrf.mxu1 }
 0x869   :  { %v3302_v24 = vpop.f32.mrf.mxu0  ;;  %v3343_v43 = vpop.f32.mrf.mxu1 }
 0x86a   :  { %v3303_v40 = vadd.f32 %v3302_v24, %v3220_v46  ;;  %v3344_v61 = vadd.f32 %v3343_v43, %v3261_v56 }
 0x86b   :  { %v3304_v10 = vpop.f32.mrf.mxu0  ;;  %v3345_v23 = vpop.f32.mrf.mxu1 }
 0x86c   :  { %v3350_v63 = vadd.f32 %v3303_v40, %v6236_v20  ;;  %v3305_v36 = vadd.f32 %v3304_v10, %v3222_v35  ;;  %v3346_v29 = vadd.f32 %v3345_v23, %v3263_v49  ;;  %v3352_v24 = vadd.f32 %v3344_v61, %v6254_v41 }
 0x86d   :  { %v3306_v27 = vpop.f32.mrf.mxu0  ;;  %v3347_v31 = vpop.f32.mrf.mxu1 }
 0x86e   :  { %v4471_v3 = vmul.f32 -1.442695, %v3350_v63  ;;  %v3351_v12 = vadd.f32 %v3305_v36, %v6241_v25  ;;  %v3353_v53 = vadd.f32 %v3346_v29, %v6248_v37 }
 0x86f   :  { %v3307_v16 = vpop.f32.mrf.mxu0  ;;  %v3348_v57 = vpop.f32.mrf.mxu1 }
 0x870   :  { %4895 = vpow2.f32 %v4471_v3  ;;  %v4472_v44 = vmul.f32 -1.442695, %v3351_v12  ;;  %v4473_v46 = vmul.f32 -1.442695, %v3353_v53 }
 0x872   :  { %4897 = vpow2.f32 %v4472_v44 }
 0x873   :  { %4899 = vtanh.f32 %v3352_v24 }
 0x874   :  { %4901 = vpow2.f32 %v4473_v46 }
 0x87d   :  { %v4896_v30 = vpop.eup %4895 }
 0x87e   :  { %v3357_v40 = vadd.f32 1.0, %v4896_v30 }
 0x87f   :  { %v4898_v27 = vpop.eup %4897 }
 0x880   :  { %4903 = vrcp.f32 %v3357_v40  ;;  %v3363_v31 = vadd.f32 1.0, %v4898_v27  ;;  %v4900_v3 = vpop.eup %4899  ;;  %v3388_v27 = vpop.permute.xlu1 %3387 }
 0x881   :  { %v4902_v43 = vpop.eup %4901 }
 0x882   :  { %4905 = vrcp.f32 %v3363_v31  ;;  %v3370_v30 = vadd.f32 1.0, %v4902_v43 }
 0x884   :  { %4907 = vrcp.f32 %v3370_v30 }
 0x889   :  { %v3431_v16 = vpop.f32.mrf.mxu0  ;;  %v7939_v57 = vpop.f32.mrf.mxu1 }
 0x88b   :  { %v3433_v63 = vpop.f32.mrf.mxu0  ;;  %v7941_v23 = vpop.f32.mrf.mxu1 }
 0x88d   :  { %v4904_v35 = vpop.eup %4903  ;;  %v3435_v10 = vpop.f32.mrf.mxu0 }
 0x88e   :  { %v3476_v36 = vpop.f32.mrf.mxu1  ;;  %v3374_v12 = vmul.f32 %v4904_v35, %v4900_v3  ;;  %v7961_v10 = vld [vmem:[#allocation12 + $0xe0] ss:$16 sps:$4 sm:$0xff]  }
 0x88f   :  { %v4906_v56 = vpop.eup %4905  ;;  %v3436_v49 = vpop.f32.mrf.mxu0  ;;  %v7964_v36 = vld [vmem:[#allocation12 + $0xe8] ss:$16 sps:$4 sm:$0xff]  }
 0x890   :  { %v3477_v44 = vpop.f32.mrf.mxu1  ;;  %v3373_v29 = vmul.f32 %v4906_v56, %v7561_v45  ;;  %v7970_v56 = vld [vmem:[#allocation12 + $0xcc] ss:$16 sps:$4 sm:$0xff]  }
 0x891   :  { %v4908_v24 = vpop.eup %4907 }
 0x892   :  { %v3375_v61 = vadd.f32 %v3374_v12, %v3373_v29  ;;  %v7967_v12 = vld [vmem:[#allocation12 + $0xc4] ss:$16 sps:$4 sm:$0xff]  }
 0x894   :  { %4909 = vtanh.f32 %v3375_v61  ;;  %v7947_v53 = vsel %vm3181_vm14, %v3375_v61, %v7561_v45  ;;  %v7976_v61 = vld [vmem:[#allocation12 + $0xc0] ss:$16 sps:$4 sm:$0xff]  }
 0x8a1   :  { %v4910_v46 = vpop.eup %4909 }
 0x8a2   :  { %v3377_v40 = vmul.f32 %v4910_v46, %v4908_v24 }
 0x8a4   :  { %v7952_v31 = vsel %vm3181_vm14, %v3377_v40, %v7566_v58  ;;  %v3380_v3 = vsel %vm3181_vm14, %v3377_v40, 0.0  ;;  %v7979_v40 = vld [vmem:[#allocation12 + $0xc8] ss:$16 sps:$4 sm:$0xff]  }
 0x8a5   :  { %v3597_v43 = vpack.c.bf16 %v7952_v31, %v7952_v31  ;;  %3382 = vst [vmem:[#allocation15 + $0x28] sm:$0xff] %v3380_v3  ;;  %v3390_v35 = vmul.f32 %v3388_v27, %v3380_v3 }
 0x8a7   :  { %3631 = vmatmul.mubr.bf16.vlgmr.msra.gmra.mxu0 %v3597_v43  ;;  %3672 = vmatmul.mubr.bf16.vlgmr.msra.gmra.mxu1 %v3597_v43  ;;  %v7959_v45 = vadd.f32 %v3390_v35, %v7573_v1  ;;  %v7986_v43 = vld [vmem:[#allocation12 + $0xac] ss:$16 sps:$4 sm:$0xff]  }
 0x8a8   :  { %3681 = vmatpush1.bf16.msra.mxu0 %v7961_v10  ;;  %3722 = vmatpush1.bf16.msra.mxu1 %v7964_v36 }
 0x8a9   :  { %v3513_v58 = vpop.f32.mrf.mxu0  ;;  %v3554_v47 = vpop.f32.mrf.mxu1  ;;  %3682 = vmatprep.subr.bf16.mxu0 %v7967_v12  ;;  %3723 = vmatprep.subr.bf16.mxu1 %v7970_v56 }
 0x8aa   :  { %v3514_v1 = vadd.f32 %v3513_v58, %v3431_v16  ;;  %3712 = vmatprep.mubr.bf16.mxu0 %v8687_v52  ;;  %3753 = vmatprep.mubr.bf16.mxu1 %v8687_v52  ;;  %v7982_v16 = vld [vmem:[#allocation12 + $0xa4] ss:$16 sps:$4 sm:$0xff]  }
 0x8ab   :  { %v3515_v30 = vpop.f32.mrf.mxu0  ;;  %v3556_v49 = vpop.f32.mrf.mxu1 }
 0x8ac   :  { %v3561_v44 = vadd.f32 %v3514_v1, %v6073_v2  ;;  %v3516_v29 = vadd.f32 %v3515_v30, %v3433_v63  ;;  %3683 = vmatpush1.bf16.msra.mxu0 %v7976_v61  ;;  %3724 = vmatpush1.bf16.msra.mxu1 %v7979_v40  ;;  %v7989_v1 = vld [vmem:[#allocation12 + $0xa0] ss:$16 sps:$4 sm:$0xff]   ;;  %v7992_v30 = vld [vmem:[#allocation12 + $0xa8] ss:$16 sps:$4 sm:$0xff]  }
 0x8ad   :  { %v3517_v24 = vpop.f32.mrf.mxu0  ;;  %v3558_v46 = vpop.f32.mrf.mxu1  ;;  %3684 = vmatprep.subr.bf16.mxu0 %v7982_v16  ;;  %3725 = vmatprep.subr.bf16.mxu1 %v7986_v43 }
 0x8ae   :  { %v4477_v27 = vmul.f32 -1.442695, %v3561_v44  ;;  %v3562_v3 = vadd.f32 %v3516_v29, %v6077_v59  ;;  %v7995_v24 = vld [vmem:[#allocation12 + $0x84] ss:$16 sps:$4 sm:$0xff]   ;;  %v7998_v44 = vld [vmem:[#allocation12 + $0x8c] ss:$16 sps:$4 sm:$0xff]   ;;  %v3557_v29 = vadd.f32 %v3556_v49, %v7941_v23  ;;  %v3555_v23 = vadd.f32 %v3554_v47, %v7939_v57 }
 0x8af   :  { %v3518_v63 = vpop.f32.mrf.mxu0  ;;  %v3559_v35 = vpop.f32.mrf.mxu1  ;;  %v8002_v46 = vld [vmem:[#allocation12 + $0x80] ss:$16 sps:$4 sm:$0xff]   ;;  %v8019_v49 = vld [vmem:[#allocation12 + $0x68] ss:$16 sps:$4 sm:$0xff]  }
 0x8b0   :  { %4911 = vpow2.f32 %v4477_v27  ;;  %v4478_v58 = vmul.f32 -1.442695, %v3562_v3  ;;  %3685 = vmatpush1.bf16.msra.mxu0 %v7989_v1  ;;  %3726 = vmatpush1.bf16.msra.mxu1 %v7992_v30  ;;  %v8005_v27 = vld [vmem:[#allocation12 + $0x88] ss:$16 sps:$4 sm:$0xff]   ;;  %v8008_v3 = vld [vmem:[#allocation12 + $0x64] ss:$16 sps:$4 sm:$0xff]   ;;  %v3564_v35 = vadd.f32 %v3557_v29, %v9190_v14  ;;  %v3563_v57 = vadd.f32 %v3555_v23, %v6090_v48 }
 0x8b1   :  { %3686 = vmatprep.subr.bf16.mxu0 %v7995_v24  ;;  %3727 = vmatprep.subr.bf16.mxu1 %v7998_v44  ;;  %9276 = vst [vmem:[#allocation101_spill] sm:$0xff] %v8005_v27  ;;  %9277 = vst [vmem:[#allocation102_spill] sm:$0xff] %v8008_v3  ;;  %v8011_v63 = vld [vmem:[#allocation12 + $0x6c] ss:$16 sps:$4 sm:$0xff]   ;;  %v8028_v29 = vld [vmem:[#allocation12 + $0x40] ss:$16 sps:$4 sm:$0xff]  }
 0x8b2   :  { %4913 = vpow2.f32 %v4478_v58  ;;  %9278 = vst [vmem:[#allocation103_spill] sm:$0xff] %v8011_v63  ;;  %v8015_v58 = vld [vmem:[#allocation12 + $0x60] ss:$16 sps:$4 sm:$0xff]   ;;  %9280 = vst [vmem:[#allocation105_spill] sm:$0xff] %v8019_v49  ;;  %v8032_v47 = vld [vmem:[#allocation12 + $0x48] ss:$16 sps:$4 sm:$0xff]  }
 0x8b3   :  { %9279 = vst [vmem:[#allocation104_spill] sm:$0xff] %v8015_v58  ;;  %9283 = vst [vmem:[#allocation108_spill] sm:$0xff] %v8028_v29  ;;  %v8038_v14 = vld [vmem:[#allocation12 + $0x2c] ss:$16 sps:$4 sm:$0xff]   ;;  %v8044_v23 = vld [vmem:[#allocation12 + $0x28] ss:$16 sps:$4 sm:$0xff]  }
 0x8b4   :  { %3687 = vmatpush1.bf16.msra.mxu0 %v8002_v46  ;;  %3728 = vmatpush1.bf16.msra.mxu1 %v8005_v27  ;;  %v8022_v27 = vld [vmem:[#allocation12 + $0x44] ss:$16 sps:$4 sm:$0xff]   ;;  %9284 = vst [vmem:[#allocation109_spill] sm:$0xff] %v8032_v47  ;;  %9286 = vst [vmem:[#allocation111_spill] sm:$0xff] %v8038_v14 }
 0x8b5   :  { %3688 = vmatprep.subr.bf16.mxu0 %v8008_v3  ;;  %3729 = vmatprep.subr.bf16.mxu1 %v8011_v63  ;;  %9281 = vst [vmem:[#allocation106_spill] sm:$0xff] %v8022_v27  ;;  %v8025_v3 = vld [vmem:[#allocation12 + $0x4c] ss:$16 sps:$4 sm:$0xff]   ;;  %v4479_v63 = vmul.f32 -1.442695, %v3564_v35  ;;  %9288 = vst [vmem:[#allocation113_spill] sm:$0xff] %v8044_v23 }
 0x8b6   :  { %9282 = vst [vmem:[#allocation107_spill] sm:$0xff] %v8025_v3 }
 0x8b7   :  { %4915 = vpow2.f32 %v4479_v63  ;;  %v8056_v63 = vld [vmem:[#allocation12 + $0x8] ss:$16 sps:$4 sm:$0xff]  }
 0x8b8   :  { %3689 = vmatpush1.bf16.msra.mxu0 %v8015_v58  ;;  %3730 = vmatpush1.bf16.msra.mxu1 %v8019_v49  ;;  %v8035_v49 = vld [vmem:[#allocation12 + $0x24] ss:$16 sps:$4 sm:$0xff]   ;;  %9292 = vst [vmem:[#allocation118_spill] sm:$0xff] %v8056_v63 }
 0x8b9   :  { %3690 = vmatprep.subr.bf16.mxu0 %v8022_v27  ;;  %3731 = vmatprep.subr.bf16.mxu1 %v8025_v3  ;;  %9285 = vst [vmem:[#allocation110_spill] sm:$0xff] %v8035_v49  ;;  %v8041_v3 = vld [vmem:[#allocation12 + $0x20] ss:$16 sps:$4 sm:$0xff]  }
 0x8ba   :  { %9287 = vst [vmem:[#allocation112_spill] sm:$0xff] %v8041_v3 }
 0x8bc   :  { %3691 = vmatpush1.bf16.msra.mxu0 %v8028_v29  ;;  %3732 = vmatpush1.bf16.msra.mxu1 %v8032_v47  ;;  %v8047_v47 = vld [vmem:[#allocation12 + $0x4] ss:$16 sps:$4 sm:$0xff]  }
 0x8bd   :  { %v4912_v58 = vpop.eup %4911  ;;  %3692 = vmatprep.subr.bf16.mxu0 %v8035_v49  ;;  %3733 = vmatprep.subr.bf16.mxu1 %v8038_v14  ;;  %9289 = vst [vmem:[#allocation115_spill] sm:$0xff] %v8047_v47  ;;  %v9293_v49 = vld [vmem:[#allocation28_spill] sm:$0xff] }
 0x8be   :  { %v3568_v27 = vadd.f32 1.0, %v4912_v58  ;;  %v8050_v58 = vld [vmem:[#allocation12 + $0xc] ss:$16 sps:$4 sm:$0xff]   ;;  %vm3593_vm15 = vcmp.eq.s32.totalorder %v9293_v49, 1 }
 0x8bf   :  { %v4914_v35 = vpop.eup %4913  ;;  %9290 = vst [vmem:[#allocation116_spill] sm:$0xff] %v8050_v58 }
 0x8c0   :  { %4917 = vrcp.f32 %v3568_v27  ;;  %v3574_v29 = vadd.f32 1.0, %v4914_v35  ;;  %3693 = vmatpush1.bf16.msra.mxu0 %v8041_v3  ;;  %3734 = vmatpush1.bf16.msra.mxu1 %v8044_v23  ;;  %v8053_v27 = vld [vmem:[#allocation12] ss:$16 sps:$4 sm:$0xff]  }
 0x8c1   :  { %4919 = vtanh.f32 %v3563_v57  ;;  %3694 = vmatprep.subr.bf16.mxu0 %v8047_v47  ;;  %3735 = vmatprep.subr.bf16.mxu1 %v8050_v58  ;;  %9291 = vst [vmem:[#allocation117_spill] sm:$0xff] %v8053_v27 }
 0x8c2   :  { %4921 = vrcp.f32 %v3574_v29 }
 0x8c4   :  { %3695 = vmatpush1.bf16.msra.mxu0 %v8053_v27  ;;  %3736 = vmatpush1.bf16.msra.mxu1 %v8056_v63  ;;  %v4916_v57 = vpop.eup %4915 }
 0x8c5   :  { %3809 = vmatprep.subr.bf16.mxu0 %v7612_v38  ;;  %3850 = vmatprep.subr.bf16.mxu1 %v7615_v39  ;;  %v3581_v23 = vadd.f32 1.0, %v4916_v57 }
 0x8c7   :  { %4923 = vrcp.f32 %v3581_v23  ;;  %v9323_v23 = vld [vmem:[#allocation57_spill] sm:$0xff] }
 0x8cd   :  { %v4918_v35 = vpop.eup %4917 }
 0x8ce   :  { %v4920_v47 = vpop.eup %4919 }
 0x8cf   :  { %v4922_v29 = vpop.eup %4921  ;;  %v3585_v3 = vmul.f32 %v4920_v47, %v4918_v35  ;;  %v9322_v47 = vld [vmem:[#allocation62_spill] sm:$0xff] }
 0x8d0   :  { %v3584_v58 = vmul.f32 %v4922_v29, %v7623_v54  ;;  %v9326_v35 = vld [vmem:[#allocation66_spill] sm:$0xff]  ;;  %v9327_v29 = vld [vmem:[#allocation61_spill] sm:$0xff] }
 0x8d2   :  { %v3586_v14 = vadd.f32 %v3585_v3, %v3584_v58  ;;  %v9324_v58 = vld [vmem:[#allocation63_spill] sm:$0xff] }
 0x8d4   :  { %4925 = vtanh.f32 %v3586_v14  ;;  %v8066_v63 = vsel %vm3593_vm15, %v3586_v14, %v7623_v54  ;;  %v4924_v38 = vpop.eup %4923  ;;  %v9294_v14 = vld [vmem:[#allocation30_spill] sm:$0xff]  ;;  %v9295_v54 = vld [vmem:[#allocation31_spill] sm:$0xff] }
 0x8e1   :  { %v4926_v39 = vpop.eup %4925 }
 0x8e2   :  { %v3588_v27 = vmul.f32 %v4926_v39, %v4924_v38  ;;  %v9328_v38 = vld [vmem:[#allocation67_spill] sm:$0xff]  ;;  %v9329_v39 = vld [vmem:[#allocation64_spill] sm:$0xff] }
 0x8e4   :  { %v8071_v57 = vsel %vm3593_vm15, %v3588_v27, %v7628_v8  ;;  %v9296_v8 = vld [vmem:[#allocation33_spill] sm:$0xff]  ;;  %v9325_v27 = vld [vmem:[#allocation60_spill] sm:$0xff] }
 0x8e5   :  { %v3596_v3 = vpack.c.bf16 %v8071_v57, %v8071_v57 }
 0x8e7   :  { %3713 = vmatmul.mubr.bf16.vlgmr.msra.gmra.mxu0 %v3596_v3  ;;  %3754 = vmatmul.mubr.bf16.vlgmr.msra.gmra.mxu1 %v3596_v3 }
 0x8e8   :  { %3810 = vmatpush1.bf16.msra.mxu0 %v7636_v6  ;;  %3851 = vmatpush1.bf16.msra.mxu1 %v7639_v11  ;;  %v9297_v6 = vld [vmem:[#allocation34_spill] sm:$0xff]  ;;  %v9298_v11 = vld [vmem:[#allocation35_spill] sm:$0xff] }
 0x8e9   :  { %3811 = vmatprep.subr.bf16.mxu0 %v7642_v21  ;;  %3852 = vmatprep.subr.bf16.mxu1 %v7645_v7  ;;  %v9299_v21 = vld [vmem:[#allocation36_spill] sm:$0xff]  ;;  %v9300_v7 = vld [vmem:[#allocation37_spill] sm:$0xff] }
 0x8ea   :  { %3841 = vmatprep.mubr.bf16.mxu0 %v8687_v52  ;;  %3882 = vmatprep.mubr.bf16.mxu1 %v8687_v52 }
 0x8ec   :  { %3812 = vmatpush1.bf16.msra.mxu0 %v7650_v42  ;;  %3853 = vmatpush1.bf16.msra.mxu1 %v7653_v55  ;;  %v9301_v42 = vld [vmem:[#allocation38_spill] sm:$0xff]  ;;  %v9302_v55 = vld [vmem:[#allocation39_spill] sm:$0xff] }
 0x8ed   :  { %3813 = vmatprep.subr.bf16.mxu0 %v7656_v33  ;;  %3854 = vmatprep.subr.bf16.mxu1 %v7659_v62  ;;  %v9303_v33 = vld [vmem:[#allocation40_spill] sm:$0xff]  ;;  %v9304_v62 = vld [vmem:[#allocation41_spill] sm:$0xff] }
 0x8f0   :  { %3814 = vmatpush1.bf16.msra.mxu0 %v7662_v15  ;;  %3855 = vmatpush1.bf16.msra.mxu1 %v7665_v17  ;;  %v9305_v15 = vld [vmem:[#allocation42_spill] sm:$0xff]  ;;  %v9306_v17 = vld [vmem:[#allocation43_spill] sm:$0xff] }
 0x8f1   :  { %3815 = vmatprep.subr.bf16.mxu0 %v7668_v32  ;;  %3856 = vmatprep.subr.bf16.mxu1 %v7671_v19  ;;  %v9307_v32 = vld [vmem:[#allocation44_spill] sm:$0xff]  ;;  %v9308_v19 = vld [vmem:[#allocation45_spill] sm:$0xff] }
 0x8f4   :  { %3816 = vmatpush1.bf16.msra.mxu0 %v7674_v9  ;;  %3857 = vmatpush1.bf16.msra.mxu1 %v7677_v51  ;;  %v9309_v9 = vld [vmem:[#allocation46_spill] sm:$0xff]  ;;  %v9310_v51 = vld [vmem:[#allocation47_spill] sm:$0xff] }
 0x8f5   :  { %3817 = vmatprep.subr.bf16.mxu0 %v7680_v28  ;;  %3858 = vmatprep.subr.bf16.mxu1 %v7683_v13  ;;  %v9311_v28 = vld [vmem:[#allocation48_spill] sm:$0xff]  ;;  %v9312_v13 = vld [vmem:[#allocation49_spill] sm:$0xff] }
 0x8f8   :  { %3818 = vmatpush1.bf16.msra.mxu0 %v7686_v50  ;;  %3859 = vmatpush1.bf16.msra.mxu1 %v7689_v5  ;;  %v9313_v50 = vld [vmem:[#allocation50_spill] sm:$0xff]  ;;  %v9314_v5 = vld [vmem:[#allocation53_spill] sm:$0xff] }
 0x8f9   :  { %3819 = vmatprep.subr.bf16.mxu0 %v7692_v22  ;;  %3860 = vmatprep.subr.bf16.mxu1 %v7695_v60  ;;  %v9315_v22 = vld [vmem:[#allocation51_spill] sm:$0xff]  ;;  %v9316_v60 = vld [vmem:[#allocation54_spill] sm:$0xff] }
 0x8fc   :  { %3820 = vmatpush1.bf16.msra.mxu0 %v7698_v18  ;;  %3861 = vmatpush1.bf16.msra.mxu1 %v7701_v4  ;;  %v9317_v18 = vld [vmem:[#allocation52_spill] sm:$0xff]  ;;  %v9318_v4 = vld [vmem:[#allocation58_spill] sm:$0xff] }
 0x8fd   :  { %3821 = vmatprep.subr.bf16.mxu0 %v7704_v26  ;;  %3862 = vmatprep.subr.bf16.mxu1 %v7707_v34  ;;  %v9319_v26 = vld [vmem:[#allocation55_spill] sm:$0xff] }
 0x8fe   :  { %v9320_v34 = vld [vmem:[#allocation59_spill] sm:$0xff] }
 0x900   :  { %3822 = vmatpush1.bf16.msra.mxu0 %v7710_v0  ;;  %3863 = vmatpush1.bf16.msra.mxu1 %v9294_v14  ;;  %v9321_v0 = vld [vmem:[#allocation56_spill] sm:$0xff]  ;;  %v4485_v14 = vld [vmem:[%s8285_s1 + $0x1c] sm:$0xf]  ;;  %s5541_s1 = smov [#allocation19]  }
 0x901   :  { %3823 = vmatprep.subr.bf16.mxu0 %v9295_v54  ;;  %3864 = vmatprep.subr.bf16.mxu1 %v9296_v8  ;;  %v9331_v54 = vld [vmem:[#allocation65_spill] sm:$0xff]  ;;  %v9332_v8 = vld [vmem:[#allocation71_spill] sm:$0xff]  ;;  %s4270_s5 = sshll.u32 %s5541_s1, 4  ;;  %s4271_s5 = int_to_ptr.vmem [resolvable:$true] %s4270_s5 }
 0x902   :  { %s5441_s17 = scalar_lea.vmem %s4271_s5, 256  ;;  %p5446_p7 = scmp.lt.s32.totalorder %s4271_s5, %s4271_s5 }
 0x903   :  { %p5442_p6 = scmp.ne.s32.totalorder %s4271_s5, %s5441_s17  ;;  %p5447_p8 = scmp.lt.s32.totalorder %s5441_s17, %s5441_s17 }
 0x904   :  { %3824 = vmatpush1.bf16.msra.mxu0 %v9297_v6  ;;  %3865 = vmatpush1.bf16.msra.mxu1 %v9298_v11  ;;  %v9333_v6 = vld [vmem:[#allocation68_spill] sm:$0xff]  ;;  %v9334_v11 = vld [vmem:[#allocation74_spill] sm:$0xff] }
 0x905   :  { %3891 = vmatprep.subr.bf16.mxu0 %v9299_v21  ;;  %3932 = vmatprep.subr.bf16.mxu1 %v9300_v7  ;;  %v9335_v21 = vld [vmem:[#allocation69_spill] sm:$0xff]  ;;  %v9336_v7 = vld [vmem:[#allocation75_spill] sm:$0xff]  ;;  %p5448_p9 = por %p5447_p8, %p5446_p7 }
 0x907   :  { %3842 = vmatmul.mubr.bf16.vlgmr.msra.gmra.mxu0 %v3596_v3  ;;  %3883 = vmatmul.mubr.bf16.vlgmr.msra.gmra.mxu1 %v3596_v3  ;;  %v9330_v3 = vld [vmem:[#allocation70_spill] sm:$0xff]  ;;  %p5449_p10 = pnand %p5448_p9, %p5442_p6 }
 0x908   :  { %3892 = vmatpush1.bf16.msra.mxu0 %v9301_v42  ;;  %3933 = vmatpush1.bf16.msra.mxu1 %v9302_v55  ;;  %v9337_v42 = vld [vmem:[#allocation72_spill] sm:$0xff]  ;;  %v9338_v55 = vld [vmem:[#allocation78_spill] sm:$0xff] }
 0x909   :  { %3893 = vmatprep.subr.bf16.mxu0 %v9303_v33  ;;  %3934 = vmatprep.subr.bf16.mxu1 %v9304_v62  ;;  %v9339_v33 = vld [vmem:[#allocation73_spill] sm:$0xff]  ;;  %v9340_v62 = vld [vmem:[#allocation79_spill] sm:$0xff] }
 0x90a   :  { %3923 = vmatprep.mubr.bf16.mxu0 %v8687_v52  ;;  %3964 = vmatprep.mubr.bf16.mxu1 %v8687_v52 }
 0x90c   :  { %3894 = vmatpush1.bf16.msra.mxu0 %v9305_v15  ;;  %3935 = vmatpush1.bf16.msra.mxu1 %v9306_v17  ;;  %v9341_v15 = vld [vmem:[#allocation76_spill] sm:$0xff] }
 0x90d   :  { %3895 = vmatprep.subr.bf16.mxu0 %v9307_v32  ;;  %3936 = vmatprep.subr.bf16.mxu1 %v9308_v19  ;;  %v9342_v17 = vld [vmem:[#allocation80_spill] sm:$0xff]  ;;  %v9343_v32 = vld [vmem:[#allocation77_spill] sm:$0xff] }
 0x90e   :  { %v9344_v19 = vld [vmem:[#allocation81_spill] sm:$0xff] }
 0x910   :  { %3896 = vmatpush1.bf16.msra.mxu0 %v9309_v9  ;;  %3937 = vmatpush1.bf16.msra.mxu1 %v9310_v51  ;;  %v9345_v9 = vld [vmem:[#allocation82_spill] sm:$0xff]  ;;  %v9346_v51 = vld [vmem:[#allocation83_spill] sm:$0xff] }
 0x911   :  { %3897 = vmatprep.subr.bf16.mxu0 %v9311_v28  ;;  %3938 = vmatprep.subr.bf16.mxu1 %v9312_v13  ;;  %v9347_v28 = vld [vmem:[#allocation84_spill] sm:$0xff]  ;;  %v9348_v13 = vld [vmem:[#allocation85_spill] sm:$0xff] }
 0x914   :  { %3898 = vmatpush1.bf16.msra.mxu0 %v9313_v50  ;;  %3939 = vmatpush1.bf16.msra.mxu1 %v9314_v5  ;;  %v9349_v50 = vld [vmem:[#allocation32_spill] sm:$0xff]  ;;  %v9350_v5 = vld [vmem:[#allocation86_spill] sm:$0xff] }
 0x915   :  { %3899 = vmatprep.subr.bf16.mxu0 %v9315_v22  ;;  %3940 = vmatprep.subr.bf16.mxu1 %v9316_v60  ;;  %v9351_v22 = vld [vmem:[#allocation87_spill] sm:$0xff]  ;;  %v9352_v60 = vld [vmem:[#allocation88_spill] sm:$0xff] }
 0x918   :  { %3900 = vmatpush1.bf16.msra.mxu0 %v9317_v18  ;;  %3941 = vmatpush1.bf16.msra.mxu1 %v9318_v4  ;;  %v9353_v18 = vld [vmem:[#allocation89_spill] sm:$0xff]  ;;  %v9354_v4 = vld [vmem:[#allocation90_spill] sm:$0xff] }
 0x919   :  { %3901 = vmatprep.subr.bf16.mxu0 %v9319_v26  ;;  %3942 = vmatprep.subr.bf16.mxu1 %v9320_v34  ;;  %v9355_v26 = vld [vmem:[#allocation91_spill] sm:$0xff]  ;;  %v9356_v34 = vld [vmem:[#allocation92_spill] sm:$0xff] }
 0x91c   :  { %3902 = vmatpush1.bf16.msra.mxu0 %v9321_v0  ;;  %3943 = vmatpush1.bf16.msra.mxu1 %v9322_v47  ;;  %v9357_v0 = vld [vmem:[#allocation93_spill] sm:$0xff]  ;;  %v9358_v47 = vld [vmem:[#allocation94_spill] sm:$0xff] }
 0x91d   :  { %3903 = vmatprep.subr.bf16.mxu0 %v9323_v23  ;;  %3944 = vmatprep.subr.bf16.mxu1 %v9324_v58  ;;  %v9359_v23 = vld [vmem:[#allocation95_spill] sm:$0xff]  ;;  %v9360_v58 = vld [vmem:[#allocation96_spill] sm:$0xff] }
 0x920   :  { %3904 = vmatpush1.bf16.msra.mxu0 %v9325_v27  ;;  %3945 = vmatpush1.bf16.msra.mxu1 %v9326_v35  ;;  %v9361_v27 = vld [vmem:[#allocation97_spill] sm:$0xff]  ;;  %v9362_v35 = vld [vmem:[#allocation98_spill] sm:$0xff] }
 0x921   :  { %3905 = vmatprep.subr.bf16.mxu0 %v9327_v29  ;;  %3946 = vmatprep.subr.bf16.mxu1 %v9328_v38  ;;  %v9363_v29 = vld [vmem:[#allocation99_spill] sm:$0xff]  ;;  %v9364_v38 = vld [vmem:[#allocation100_spill] sm:$0xff] }
 0x924   :  { %3906 = vmatpush1.bf16.msra.mxu0 %v9329_v39  ;;  %3947 = vmatpush1.bf16.msra.mxu1 %v9330_v3 }
 0x925   :  { %4010 = vmatprep.subr.bf16.mxu0 %v9331_v54  ;;  %4051 = vmatprep.subr.bf16.mxu1 %v9332_v8 }
 0x927   :  { %3924 = vmatmul.mubr.bf16.vlgmr.msra.gmra.mxu0 %v4485_v14  ;;  %3965 = vmatmul.mubr.bf16.vlgmr.msra.gmra.mxu1 %v4485_v14 }
 0x928   :  { %4011 = vmatpush1.bf16.msra.mxu0 %v9333_v6  ;;  %4052 = vmatpush1.bf16.msra.mxu1 %v9334_v11 }
 0x929   :  { %4012 = vmatprep.subr.bf16.mxu0 %v9335_v21  ;;  %4053 = vmatprep.subr.bf16.mxu1 %v9336_v7 }
 0x92a   :  { %4042 = vmatprep.mubr.bf16.mxu0 %v8687_v52  ;;  %4083 = vmatprep.mubr.bf16.mxu1 %v8687_v52 }
 0x92c   :  { %4013 = vmatpush1.bf16.msra.mxu0 %v9337_v42  ;;  %4054 = vmatpush1.bf16.msra.mxu1 %v9338_v55 }
 0x92d   :  { %4014 = vmatprep.subr.bf16.mxu0 %v9339_v33  ;;  %4055 = vmatprep.subr.bf16.mxu1 %v9340_v62 }
 0x930   :  { %4015 = vmatpush1.bf16.msra.mxu0 %v9341_v15  ;;  %4056 = vmatpush1.bf16.msra.mxu1 %v9342_v17 }
 0x931   :  { %4016 = vmatprep.subr.bf16.mxu0 %v9343_v32  ;;  %4057 = vmatprep.subr.bf16.mxu1 %v9344_v19 }
 0x934   :  { %4017 = vmatpush1.bf16.msra.mxu0 %v9345_v9  ;;  %4058 = vmatpush1.bf16.msra.mxu1 %v9346_v51 }
 0x935   :  { %4018 = vmatprep.subr.bf16.mxu0 %v9347_v28  ;;  %4059 = vmatprep.subr.bf16.mxu1 %v9348_v13 }
 0x938   :  { %4019 = vmatpush1.bf16.msra.mxu0 %v9349_v50  ;;  %4060 = vmatpush1.bf16.msra.mxu1 %v9350_v5 }
 0x939   :  { %4020 = vmatprep.subr.bf16.mxu0 %v9351_v22  ;;  %4061 = vmatprep.subr.bf16.mxu1 %v9352_v60 }
 0x93c   :  { %4021 = vmatpush1.bf16.msra.mxu0 %v9353_v18  ;;  %4062 = vmatpush1.bf16.msra.mxu1 %v9354_v4 }
 0x93d   :  { %4022 = vmatprep.subr.bf16.mxu0 %v9355_v26  ;;  %4063 = vmatprep.subr.bf16.mxu1 %v9356_v34 }
 0x940   :  { %4023 = vmatpush1.bf16.msra.mxu0 %v9357_v0  ;;  %4064 = vmatpush1.bf16.msra.mxu1 %v9358_v47 }
 0x941   :  { %4024 = vmatprep.subr.bf16.mxu0 %v9359_v23  ;;  %4065 = vmatprep.subr.bf16.mxu1 %v9360_v58 }
 0x944   :  { %4025 = vmatpush1.bf16.msra.mxu0 %v9361_v27  ;;  %4066 = vmatpush1.bf16.msra.mxu1 %v9362_v35 }
 0x945   :  { %4092 = vmatprep.subr.bf16.mxu0 %v9363_v29  ;;  %4133 = vmatprep.subr.bf16.mxu1 %v9364_v38 }
 0x967   :  { %v3632_v39 = vpop.f32.mrf.mxu0  ;;  %v3673_v3 = vpop.f32.mrf.mxu1 }
 0x969   :  { %v3634_v14 = vpop.f32.mrf.mxu0  ;;  %v3675_v54 = vpop.f32.mrf.mxu1 }
 0x96b   :  { %v3636_v8 = vpop.f32.mrf.mxu0  ;;  %v3677_v6 = vpop.f32.mrf.mxu1 }
 0x96d   :  { %v3637_v11 = vpop.f32.mrf.mxu0  ;;  %v3678_v21 = vpop.f32.mrf.mxu1 }
 0x9a7   :  { %v3714_v7 = vpop.f32.mrf.mxu0  ;;  %v3755_v42 = vpop.f32.mrf.mxu1 }
 0x9a8   :  { %v3715_v55 = vadd.f32 %v3714_v7, %v3632_v39  ;;  %v3756_v22 = vadd.f32 %v3755_v42, %v3673_v3 }
 0x9a9   :  { %v3716_v33 = vpop.f32.mrf.mxu0  ;;  %v3757_v62 = vpop.f32.mrf.mxu1 }
 0x9aa   :  { %v3762_v15 = vadd.f32 %v3715_v55, %v6236_v20  ;;  %v3717_v17 = vadd.f32 %v3716_v33, %v3634_v14  ;;  %v3758_v5 = vadd.f32 %v3757_v62, %v3675_v54  ;;  %v3764_v18 = vadd.f32 %v3756_v22, %v6254_v41 }
 0x9ab   :  { %v3718_v32 = vpop.f32.mrf.mxu0  ;;  %v3759_v19 = vpop.f32.mrf.mxu1 }
 0x9ac   :  { %v4480_v9 = vmul.f32 -1.442695, %v3762_v15  ;;  %v3763_v51 = vadd.f32 %v3717_v17, %v6241_v25  ;;  %v3765_v60 = vadd.f32 %v3758_v5, %v6248_v37  ;;  %v3800_v17 = vpop.permute.xlu0 %3799 }
 0x9ad   :  { %v3719_v28 = vpop.f32.mrf.mxu0  ;;  %v3760_v13 = vpop.f32.mrf.mxu1 }
 0x9ae   :  { %4927 = vpow2.f32 %v4480_v9  ;;  %v4481_v50 = vmul.f32 -1.442695, %v3763_v51  ;;  %v4482_v4 = vmul.f32 -1.442695, %v3765_v60 }
 0x9b0   :  { %4929 = vpow2.f32 %v4481_v50 }
 0x9b1   :  { %4931 = vtanh.f32 %v3764_v18  ;;  %v9369_v18 = vld [vmem:[#allocation104_spill] sm:$0xff] }
 0x9b2   :  { %4933 = vpow2.f32 %v4482_v4 }
 0x9bb   :  { %v4928_v26 = vpop.eup %4927 }
 0x9bc   :  { %v3769_v34 = vadd.f32 1.0, %v4928_v26 }
 0x9bd   :  { %v4930_v0 = vpop.eup %4929 }
 0x9be   :  { %4935 = vrcp.f32 %v3769_v34  ;;  %v3775_v47 = vadd.f32 1.0, %v4930_v0  ;;  %v4932_v27 = vpop.eup %4931  ;;  %v9374_v0 = vld [vmem:[#allocation109_spill] sm:$0xff] }
 0x9bf   :  { %v4934_v38 = vpop.eup %4933 }
 0x9c0   :  { %4937 = vrcp.f32 %v3775_v47  ;;  %v3782_v6 = vadd.f32 1.0, %v4934_v38  ;;  %v9375_v47 = vld [vmem:[#allocation110_spill] sm:$0xff]  ;;  %v9378_v38 = vld [vmem:[#allocation113_spill] sm:$0xff] }
 0x9c2   :  { %4939 = vrcp.f32 %v3782_v6 }
 0x9c7   :  { %v3843_v23 = vpop.f32.mrf.mxu0  ;;  %v8184_v58 = vpop.f32.mrf.mxu1 }
 0x9c9   :  { %v3845_v35 = vpop.f32.mrf.mxu0  ;;  %v3886_v29 = vpop.f32.mrf.mxu1 }
 0x9cb   :  { %v4936_v39 = vpop.eup %4935  ;;  %v3847_v3 = vpop.f32.mrf.mxu0 }
 0x9cc   :  { %v3888_v14 = vpop.f32.mrf.mxu1  ;;  %v3786_v54 = vmul.f32 %v4936_v39, %v4932_v27  ;;  %v9376_v27 = vld [vmem:[#allocation111_spill] sm:$0xff]  ;;  %v9381_v3 = vld [vmem:[#allocation117_spill] sm:$0xff] }
 0x9cd   :  { %v4938_v8 = vpop.eup %4937  ;;  %v3848_v11 = vpop.f32.mrf.mxu0  ;;  %v9379_v39 = vld [vmem:[#allocation115_spill] sm:$0xff]  ;;  %v9382_v14 = vld [vmem:[#allocation118_spill] sm:$0xff] }
 0x9ce   :  { %v3889_v21 = vpop.f32.mrf.mxu1  ;;  %v3785_v7 = vmul.f32 %v4938_v8, %v7947_v53 }
 0x9cf   :  { %v4940_v33 = vpop.eup %4939 }
 0x9d0   :  { %v3787_v42 = vadd.f32 %v3786_v54, %v3785_v7 }
 0x9d2   :  { %4941 = vtanh.f32 %v3787_v42  ;;  %v8190_v55 = vsel %vm3593_vm15, %v3787_v42, %v7947_v53 }
 0x9df   :  { %v4942_v62 = vpop.eup %4941 }
 0x9e0   :  { %v3789_v15 = vmul.f32 %v4942_v62, %v4940_v33  ;;  %v9383_v62 = vld [vmem:[#allocation29_spill] sm:$0xff] }
 0x9e1   :  { %vm4005_vm0 = vcmp.eq.s32.totalorder %v9383_v62, 1 }
 0x9e2   :  { %v8195_v32 = vsel %vm3593_vm15, %v3789_v15, %v7952_v31  ;;  %v3792_v19 = vsel %vm3593_vm15, %v3789_v15, 0.0 }
 0x9e3   :  { %v4009_v9 = vpack.c.bf16 %v8195_v32, %v8195_v32  ;;  %3794 = vst [vmem:[#allocation15 + $0x30] sm:$0xff] %v3792_v19  ;;  %v3802_v51 = vmul.f32 %v3800_v17, %v3792_v19 }
 0x9e5   :  { %4043 = vmatmul.mubr.bf16.vlgmr.msra.gmra.mxu0 %v4009_v9  ;;  %4084 = vmatmul.mubr.bf16.vlgmr.msra.gmra.mxu1 %v4009_v9  ;;  %v8202_v53 = vadd.f32 %v3802_v51, %v7959_v45 }
 0x9e6   :  { %4093 = vmatpush1.bf16.msra.mxu0 %v7961_v10  ;;  %4134 = vmatpush1.bf16.msra.mxu1 %v7964_v36 }
 0x9e7   :  { %v3925_v28 = vpop.f32.mrf.mxu0  ;;  %v3966_v31 = vpop.f32.mrf.mxu1  ;;  %4094 = vmatprep.subr.bf16.mxu0 %v7967_v12  ;;  %4135 = vmatprep.subr.bf16.mxu1 %v7970_v56 }
 0x9e8   :  { %v3926_v49 = vadd.f32 %v3925_v28, %v3843_v23  ;;  %4124 = vmatprep.mubr.bf16.mxu0 %v8687_v52  ;;  %4165 = vmatprep.mubr.bf16.mxu1 %v8687_v52 }
 0x9e9   :  { %v3927_v13 = vpop.f32.mrf.mxu0  ;;  %v3968_v50 = vpop.f32.mrf.mxu1 }
 0x9ea   :  { %v3973_v45 = vadd.f32 %v3926_v49, %v6073_v2  ;;  %v3928_v5 = vadd.f32 %v3927_v13, %v3845_v35  ;;  %4095 = vmatpush1.bf16.msra.mxu0 %v7976_v61  ;;  %4136 = vmatpush1.bf16.msra.mxu1 %v7979_v40  ;;  %v3969_v2 = vadd.f32 %v3968_v50, %v3886_v29  ;;  %v9365_v61 = vld [vmem:[#allocation101_spill] sm:$0xff]  ;;  %v9367_v40 = vld [vmem:[#allocation103_spill] sm:$0xff]  ;;  %v9377_v29 = vld [vmem:[#allocation112_spill] sm:$0xff] }
 0x9eb   :  { %v3929_v10 = vpop.f32.mrf.mxu0  ;;  %v3970_v36 = vpop.f32.mrf.mxu1  ;;  %4096 = vmatprep.subr.bf16.mxu0 %v7982_v16  ;;  %4137 = vmatprep.subr.bf16.mxu1 %v7986_v43  ;;  %v9368_v16 = vld [vmem:[#allocation114_spill] sm:$0xff] }
 0x9ec   :  { %v4486_v12 = vmul.f32 -1.442695, %v3973_v45  ;;  %v3974_v56 = vadd.f32 %v3928_v5, %v6077_v59  ;;  %v9366_v59 = vld [vmem:[#allocation102_spill] sm:$0xff]  ;;  %v3976_v43 = vadd.f32 %v3969_v2, %v9368_v16 }
 0x9ed   :  { %v3930_v22 = vpop.f32.mrf.mxu0  ;;  %v3971_v52 = vpop.f32.mrf.mxu1 }
 0x9ee   :  { %4943 = vpow2.f32 %v4486_v12  ;;  %v4487_v60 = vmul.f32 -1.442695, %v3974_v56  ;;  %4097 = vmatpush1.bf16.msra.mxu0 %v7989_v1  ;;  %4138 = vmatpush1.bf16.msra.mxu1 %v7992_v30  ;;  %v3967_v1 = vadd.f32 %v3966_v31, %v8184_v58  ;;  %v9370_v30 = vld [vmem:[#allocation105_spill] sm:$0xff]  ;;  %v4488_v4 = vmul.f32 -1.442695, %v3976_v43 }
 0x9ef   :  { %4098 = vmatprep.subr.bf16.mxu0 %v7995_v24  ;;  %4139 = vmatprep.subr.bf16.mxu1 %v7998_v44  ;;  %v9371_v24 = vld [vmem:[#allocation106_spill] sm:$0xff]  ;;  %v9372_v44 = vld [vmem:[#allocation107_spill] sm:$0xff] }
 0x9f0   :  { %4945 = vpow2.f32 %v4487_v60  ;;  %v3975_v34 = vadd.f32 %v3967_v1, %v6090_v48  ;;  %v9380_v48 = vld [vmem:[#allocation116_spill] sm:$0xff] }
 0x9f1   :  { %4947 = vpow2.f32 %v4488_v4 }
 0x9f2   :  { %4099 = vmatpush1.bf16.msra.mxu0 %v8002_v46  ;;  %4140 = vmatpush1.bf16.msra.mxu1 %v9365_v61  ;;  %v9373_v46 = vld [vmem:[#allocation108_spill] sm:$0xff] }
 0x9f3   :  { %4100 = vmatprep.subr.bf16.mxu0 %v9366_v59  ;;  %4141 = vmatprep.subr.bf16.mxu1 %v9367_v40 }
 0x9f6   :  { %4101 = vmatpush1.bf16.msra.mxu0 %v9369_v18  ;;  %4142 = vmatpush1.bf16.msra.mxu1 %v9370_v30 }
 0x9f7   :  { %4102 = vmatprep.subr.bf16.mxu0 %v9371_v24  ;;  %4143 = vmatprep.subr.bf16.mxu1 %v9372_v44 }
 0x9fa   :  { %4103 = vmatpush1.bf16.msra.mxu0 %v9373_v46  ;;  %4144 = vmatpush1.bf16.msra.mxu1 %v9374_v0 }
 0x9fb   :  { %v4944_v26 = vpop.eup %4943  ;;  %4104 = vmatprep.subr.bf16.mxu0 %v9375_v47  ;;  %4145 = vmatprep.subr.bf16.mxu1 %v9376_v27 }
 0x9fc   :  { %v3980_v23 = vadd.f32 1.0, %v4944_v26 }
 0x9fd   :  { %v4946_v58 = vpop.eup %4945 }
 0x9fe   :  { %4949 = vrcp.f32 %v3980_v23  ;;  %v3986_v35 = vadd.f32 1.0, %v4946_v58  ;;  %4105 = vmatpush1.bf16.msra.mxu0 %v9377_v29  ;;  %4146 = vmatpush1.bf16.msra.mxu1 %v9378_v38  ;;  %v4948_v54 = vpop.eup %4947 }
 0x9ff   :  { %4951 = vtanh.f32 %v3975_v34  ;;  %4106 = vmatprep.subr.bf16.mxu0 %v9379_v39  ;;  %4147 = vmatprep.subr.bf16.mxu1 %v9380_v48  ;;  %v3993_v21 = vadd.f32 1.0, %v4948_v54 }
 0xa00   :  { %4953 = vrcp.f32 %v3986_v35 }
 0xa01   :  { %4955 = vrcp.f32 %v3993_v21 }
 0xa02   :  { %4107 = vmatpush1.bf16.msra.mxu0 %v9381_v3  ;;  %4148 = vmatpush1.bf16.msra.mxu1 %v9382_v14 }
 0xa0b   :  { %v4950_v8 = vpop.eup %4949 }
 0xa0c   :  { %v4952_v6 = vpop.eup %4951 }
 0xa0d   :  { %v4954_v11 = vpop.eup %4953  ;;  %v3997_v7 = vmul.f32 %v4952_v6, %v4950_v8 }
 0xa0e   :  { %v3996_v42 = vmul.f32 %v4954_v11, %v8066_v63  ;;  %v4956_v17 = vpop.eup %4955 }
 0xa10   :  { %v3998_v33 = vadd.f32 %v3997_v7, %v3996_v42 }
 0xa12   :  { %4957 = vtanh.f32 %v3998_v33  ;;  %v4007_v15 = vsel %vm4005_vm0, %v3998_v33, %v8066_v63 }
 0xa13   :  { %4228 = vst [vmem:[#allocation19] sm:$0xff] %v4007_v15 }
 0xa1f   :  { %v4958_v19 = vpop.eup %4957 }
 0xa20   :  { %v4000_v9 = vmul.f32 %v4958_v19, %v4956_v17 }
 0xa22   :  { %v4006_v51 = vsel %vm4005_vm0, %v4000_v9, %v8071_v57 }
 0xa23   :  { %v4008_v28 = vpack.c.bf16 %v4006_v51, %v4006_v51  ;;  %4225 = vst [vmem:[#allocation18] sm:$0xff] %v4006_v51 }
 0xa25   :  { %4125 = vmatmul.mubr.bf16.vlgmr.msra.gmra.mxu0 %v4008_v28  ;;  %4166 = vmatmul.mubr.bf16.vlgmr.msra.gmra.mxu1 %v4008_v28 }
 0xaa5   :  { %v4044_v31 = vpop.f32.mrf.mxu0  ;;  %v4085_v49 = vpop.f32.mrf.mxu1 }
 0xaa7   :  { %v4046_v13 = vpop.f32.mrf.mxu0  ;;  %v4087_v50 = vpop.f32.mrf.mxu1 }
 0xaa9   :  { %v4048_v45 = vpop.f32.mrf.mxu0  ;;  %v4089_v5 = vpop.f32.mrf.mxu1 }
 0xaab   :  { %v4049_v10 = vpop.f32.mrf.mxu0  ;;  %v4090_v63 = vpop.f32.mrf.mxu1 }
 0xae5   :  { %v4126_v36 = vpop.f32.mrf.mxu0  ;;  %v4167_v12 = vpop.f32.mrf.mxu1 }
 0xae6   :  { %v4127_v56 = vadd.f32 %v4126_v36, %v4044_v31  ;;  %v4168_v30 = vadd.f32 %v4167_v12, %v4085_v49 }
 0xae7   :  { %v4128_v22 = vpop.f32.mrf.mxu0  ;;  %v4169_v52 = vpop.f32.mrf.mxu1 }
 0xae8   :  { %v4174_v60 = vadd.f32 %v4127_v56, %v6236_v20  ;;  %v4129_v57 = vadd.f32 %v4128_v22, %v4046_v13  ;;  %v4170_v1 = vadd.f32 %v4169_v52, %v4087_v50  ;;  %v4176_v44 = vadd.f32 %v4168_v30, %v6254_v41 }
 0xae9   :  { %v4130_v2 = vpop.f32.mrf.mxu0  ;;  %v4171_v61 = vpop.f32.mrf.mxu1 }
 0xaea   :  { %v4489_v59 = vmul.f32 -1.442695, %v4174_v60  ;;  %v4175_v40 = vadd.f32 %v4129_v57, %v6241_v25  ;;  %v4177_v24 = vadd.f32 %v4170_v1, %v6248_v37 }
 0xaeb   :  { %v4131_v16 = vpop.f32.mrf.mxu0  ;;  %v4172_v43 = vpop.f32.mrf.mxu1 }
 0xaec   :  { %4959 = vpow2.f32 %v4489_v59  ;;  %v4490_v18 = vmul.f32 -1.442695, %v4175_v40  ;;  %v4491_v4 = vmul.f32 -1.442695, %v4177_v24 }
 0xaee   :  { %4961 = vpow2.f32 %v4490_v18 }
 0xaef   :  { %4963 = vtanh.f32 %v4176_v44 }
 0xaf0   :  { %4965 = vpow2.f32 %v4491_v4 }
 0xaf9   :  { %v4960_v46 = vpop.eup %4959 }
 0xafa   :  { %v4181_v20 = vadd.f32 1.0, %v4960_v46 }
 0xafb   :  { %v4962_v26 = vpop.eup %4961 }
 0xafc   :  { %4967 = vrcp.f32 %v4181_v20  ;;  %v4187_v34 = vadd.f32 1.0, %v4962_v26  ;;  %v4964_v25 = vpop.eup %4963 }
 0xafd   :  { %v4966_v0 = vpop.eup %4965 }
 0xafe   :  { %4969 = vrcp.f32 %v4187_v34  ;;  %v4194_v58 = vadd.f32 1.0, %v4966_v0 }
 0xb00   :  { %4971 = vrcp.f32 %v4194_v58 }
 0xb09   :  { %v4968_v47 = vpop.eup %4967 }
 0xb0a   :  { %v4198_v23 = vmul.f32 %v4968_v47, %v4964_v25 }
 0xb0b   :  { %v4970_v27 = vpop.eup %4969 }
 0xb0c   :  { %v4197_v35 = vmul.f32 %v4970_v27, %v8190_v55 }
 0xb0e   :  { %v4199_v37 = vadd.f32 %v4198_v23, %v4197_v35 }
 0xb10   :  { %4973 = vtanh.f32 %v4199_v37  ;;  %v4203_v41 = vsel %vm4005_vm0, %v4199_v37, %v8190_v55 }
 0xb11   :  { %4230 = vst [vmem:[#allocation19 + $0x8] sm:$0xff] %v4203_v41 }
 0xb12   :  { %5452 = shalt.err (!%p5449_p10)
}
 0xb13   :  { %s5542_s18 = smov 128   ;;  %s5543_s4 = smov 8   ;;  %v4972_v29 = vpop.eup %4971  ;;  %v4212_v39 = vpop.permute.xlu1 %4211 }
 0xb14   :  { %4276 = dma.vmem_to_hbm [thread:$0]  %s4271_s5, 256, %s8296_s12, [#allocation20], %s5542_s18, %s5542_s18, %s5543_s4  }
 0xb15   :  { %s5544_s0 = smov [#allocation15]   ;;  %s5545_s3 = smov [#allocation16]  }
 0xb16   :  { %s4236_s20 = sshll.u32 %s5544_s0, 4  ;;  %s4249_s21 = sshll.u32 %s5545_s3, 4  ;;  %s4237_s20 = int_to_ptr.vmem [resolvable:$true] %s4236_s20  ;;  %s4250_s21 = int_to_ptr.vmem [resolvable:$true] %s4249_s21 }
 0xb17   :  { %s5546_s12 = smov [#allocation18]   ;;  %s5461_s6 = scalar_lea.vmem %s4237_s20, 1024 }
 0xb18   :  { %s4258_s22 = sshll.u32 %s5546_s12, 4  ;;  %p5462_p11 = scmp.ne.s32.totalorder %s4237_s20, %s5461_s6  ;;  %s4259_s22 = int_to_ptr.vmem [resolvable:$true] %s4258_s22 }
 0xb19   :  { %p5466_p12 = scmp.lt.s32.totalorder %s4237_s20, %s4237_s20  ;;  %p5467_p13 = scmp.lt.s32.totalorder %s5461_s6, %s5461_s6 }
 0xb1b   :  { %p5468_p0 = por %p5467_p13, %p5466_p12 }
 0xb1d   :  { %v4974_v55 = vpop.eup %4973  ;;  %p5469_p1 = pnand %p5468_p0, %p5462_p11 }
 0xb1e   :  { %v4201_v38 = vmul.f32 %v4974_v55, %v4972_v29 }
 0xb20   :  { %v4204_v48 = vsel %vm4005_vm0, %v4201_v38, 0.0  ;;  %v4202_v3 = vsel %vm4005_vm0, %v4201_v38, %v8195_v32 }
 0xb21   :  { %4206 = vst [vmem:[#allocation15 + $0x38] sm:$0xff] %v4204_v48  ;;  %v4214_v14 = vmul.f32 %v4212_v39, %v4204_v48  ;;  %4227 = vst [vmem:[#allocation18 + $0x8] sm:$0xff] %v4202_v3 }
 0xb22   :  { %5472 = shalt.err (!%p5469_p1)
}
 0xb23   :  { %4242 = dma.vmem_to_hbm [thread:$0]  %s4237_s20, 1024, %s8293_s9, [#allocation9], %s5542_s18, %s5542_s18, %s5543_s4   ;;  %v4215_v32 = vadd.f32 %v4214_v14, %v8202_v53 }
 0xb24   :  { %s5481_s2 = scalar_lea.vmem %s4250_s21, 128  ;;  %p5486_p3 = scmp.lt.s32.totalorder %s4250_s21, %s4250_s21 }
 0xb25   :  { %4224 = vst [vmem:[#allocation16] sm:$0xff] %v4215_v32  ;;  %p5482_p2 = scmp.ne.s32.totalorder %s4250_s21, %s5481_s2  ;;  %p5487_p4 = scmp.lt.s32.totalorder %s5481_s2, %s5481_s2 }
 0xb27   :  { %p5488_p5 = por %p5487_p4, %p5486_p3 }
 0xb29   :  { %p5489_p6 = pnand %p5488_p5, %p5482_p2 }
 0xb2b   :  { %5492 = shalt.err (!%p5489_p6)
}
 0xb2c   :  { %4252 = dma.vmem_to_hbm [thread:$0]  %s4250_s21, 128, %s8294_s10, [#allocation17]  }
 0xb2d   :  { %s5501_s26 = scalar_lea.vmem %s4259_s22, 256  ;;  %p5506_p8 = scmp.lt.s32.totalorder %s4259_s22, %s4259_s22 }
 0xb2e   :  { %p5502_p7 = scmp.ne.s32.totalorder %s4259_s22, %s5501_s26  ;;  %p5507_p9 = scmp.lt.s32.totalorder %s5501_s26, %s5501_s26 }
 0xb30   :  { %p5508_p10 = por %p5507_p9, %p5506_p8 }
 0xb32   :  { %p5509_p11 = pnand %p5508_p10, %p5502_p7 }
 0xb34   :  { %5512 = shalt.err (!%p5509_p11)
}
 0xb35   :  { %4264 = dma.vmem_to_hbm [thread:$0]  %s4259_s22, 256, %s8295_s11, [#allocation17], %s5542_s18, %s5542_s18, %s5543_s4  }
 0xb36   :  { %5527 = dma.done.wait [#allocation9], 1024  }
 0xb37   :  { %5528 = vsyncadd [#allocation9], 4294966272 }
 0xb38   :  { %5529 = dma.done.wait [#allocation17], 384  }
 0xb39   :  { %5530 = vsyncadd [#allocation17], 4294966912 }
 0xb3a   :  { %5531 = dma.done.wait [#allocation20], 256  }
 0xb3b   :  { %5532 = vsyncadd [#allocation20], 4294967040 }
 0xb3c   :  { %4289 = vsyncpa [#allocation8], 1 }
 0xb3d   :  { %4290 = vsyncpa [#allocation11], 1 }
 0xb3e   :  { %4291 = vsyncpa [#allocation14], 1 }
 0xb3f   :  { %4292 = vsyncpa [#allocation9], 1 }
 0xb40   :  { %4293 = vsyncpa [#allocation17], 1 }
 0xb41   :  { %4294 = vsyncpa [#allocation20], 1 }

</bundles_post_ra>
